<compile_context>
chip_gen: v6e
topology: v6e:2x2x1
jax: 0.10.0
libtpu: 0.0.40
codegen_flags: <defaults>
</compile_context>

<pallas_src>
import numpy as np
import jax
import jax.numpy as jnp
from jax import lax
from jax.experimental import pallas as pl
from jax.experimental.pallas import tpu as pltpu

MXU_DTYPE = jnp.bfloat16          # conv/upsample MXU operand dtype (f32 accum)
_LANE = 128


def _round_up(x, m):
    return (x + m - 1) // m * m


def _vmem_limit_bytes():
    """Generation-aware scoped-VMEM budget (leave a little headroom)."""
    cap = 64 * 1024 * 1024
    try:
        info = pltpu.get_tpu_info()
        cap = int(getattr(info, "vmem_capacity_bytes", cap))
    except Exception:
        pass
    return int(min(max(cap - 2 * 1024 * 1024, 32 * 1024 * 1024),
                   100 * 1024 * 1024))


_VMEM_LIMIT = _vmem_limit_bytes()


# ----------------------------------------------------------------------------
# bilinear interpolation matrix (align_corners=True), matches nn.Upsample
# ----------------------------------------------------------------------------
def _bilinear_matrix(n_in, n_out):
    A = np.zeros((n_out, n_in), np.float32)
    if n_in == 1:
        A[:, 0] = 1.0
        return A
    for i in range(n_out):
        src = i * (n_in - 1) / (n_out - 1)
        i0 = min(int(np.floor(src)), n_in - 2)
        frac = src - i0
        A[i, i0] += 1.0 - frac
        A[i, i0 + 1] += frac
    return A


# ----------------------------------------------------------------------------
# Pallas kernel 1: fused bilinear upsample (both passes in VMEM, bf16 MXU
# operands with f32 accumulation), emits bf16 NCHW.
# ----------------------------------------------------------------------------
def _upsample_kernel(x_ref, ah_ref, awt_ref, o_ref):
    _, C1, H1, W1 = x_ref.shape
    Ho = ah_ref.shape[0]
    x = x_ref[0].astype(awt_ref.dtype)                        # (C1, H1, W1) bf16
    # W-direction interpolation: (C1*H1, W1) @ (W1, Wo)   [leading-dim reshape]
    t = jnp.dot(x.reshape(C1 * H1, W1), awt_ref[...],
                preferred_element_type=jnp.float32)           # (C1*H1, Wo) f32
    t3 = t.reshape(C1, H1, t.shape[-1]).astype(ah_ref.dtype)  # (C1, H1, Wo) bf16
    # H-direction interpolation, batched over channels: Ah @ t3[c]
    ah_b = jnp.broadcast_to(ah_ref[...], (C1, Ho, H1))
    out = lax.dot_general(ah_b, t3, (((2,), (1,)), ((0,), (0,))),
                          preferred_element_type=jnp.float32)  # (C1, Ho, Wo)
    o_ref[0] = out.astype(o_ref.dtype)


def _upsample(x1_nchw, ah, awt):
    N, C1, H1, W1 = x1_nchw.shape
    Ho, Wo = ah.shape[0], awt.shape[1]
    return pl.pallas_call(
        _upsample_kernel,
        out_shape=jax.ShapeDtypeStruct((N, C1, Ho, Wo), MXU_DTYPE),
        grid=(N,),
        in_specs=[pl.BlockSpec((1, C1, H1, W1), lambda n: (n, 0, 0, 0)),
                  pl.BlockSpec((Ho, H1), lambda n: (0, 0)),
                  pl.BlockSpec((W1, Wo), lambda n: (0, 0))],
        out_specs=pl.BlockSpec((1, C1, Ho, Wo), lambda n: (n, 0, 0, 0)),
        compiler_params=pltpu.CompilerParams(
            dimension_semantics=("parallel",),
            vmem_limit_bytes=_VMEM_LIMIT),
    )(x1_nchw, ah, awt)


# ----------------------------------------------------------------------------
# Pallas kernel 2: conv3x3 of the pre-concatenated, channel-padded (lane
# aligned) input.  Builds the im2col slab in VMEM (no HBM im2col) and runs a
# single MXU matmul per image.  Emits bf16 conv output + f32 BN partials.
# ----------------------------------------------------------------------------
def _conv1_kernel(x_ref, w_ref, y_ref, st_ref):
    _, Hp, Wp, C = x_ref.shape
    H, W = Hp - 2, Wp - 2
    x = x_ref[0]                                              # (Hp, Wp, C) bf16
    pieces = [x[ky:ky + H, kx:kx + W, :].reshape(H * W, C)
              for ky in range(3) for kx in range(3)]
    patches = jnp.concatenate(pieces, axis=1)                 # (H*W, 9*C), aligned
    acc = jnp.dot(patches, w_ref[...],
                  preferred_element_type=jnp.float32)         # (H*W, CP1) f32
    st_ref[0] = jnp.concatenate(
        [jnp.sum(acc, axis=0, keepdims=True),
         jnp.sum(acc * acc, axis=0, keepdims=True)], axis=0)
    y_ref[0] = acc.reshape(H, W, acc.shape[-1]).astype(y_ref.dtype)


def _conv1_call(xcat, w, H, W, cp):
    N, Hp, Wp, CIP = xcat.shape
    return pl.pallas_call(
        _conv1_kernel,
        out_shape=(jax.ShapeDtypeStruct((N, H, W, cp), MXU_DTYPE),
                   jax.ShapeDtypeStruct((N, 2, cp), jnp.float32)),
        grid=(N,),
        in_specs=[pl.BlockSpec((1, Hp, Wp, CIP), lambda n: (n, 0, 0, 0)),
                  pl.BlockSpec((9 * CIP, cp), lambda n: (0, 0))],
        out_specs=(pl.BlockSpec((1, H, W, cp), lambda n: (n, 0, 0, 0)),
                   pl.BlockSpec((1, 2, cp), lambda n: (n, 0, 0))),
        compiler_params=pltpu.CompilerParams(
            dimension_semantics=("parallel",),
            vmem_limit_bytes=_VMEM_LIMIT),
    )(xcat, w)


# ----------------------------------------------------------------------------
# Pallas kernel 3: fused [BN1 + ReLU] + zero-pad into a VMEM scratch + conv3x3
# (single matmul via in-VMEM im2col), plus BN2 partials.  No XLA pad, no masks.
# ----------------------------------------------------------------------------
def _conv2_kernel(y1_ref, scale_ref, shift_ref, w_ref, y2_ref, st_ref, xp_ref):
    _, H, W, C = y1_ref.shape
    y = y1_ref[0].astype(jnp.float32)                         # (H, W, C)
    scale = scale_ref[...].reshape(1, 1, C)
    shift = shift_ref[...].reshape(1, 1, C)
    act = jnp.maximum(y * scale + shift, 0.0).astype(xp_ref.dtype)
    # zero-padded activation (F.pad-of-activation / conv halo) in VMEM scratch
    xp_ref[...] = jnp.zeros_like(xp_ref)
    xp_ref[1:H + 1, 1:W + 1, :] = act
    x = xp_ref[...]                                           # (H+2, W+2, C)
    pieces = [x[ky:ky + H, kx:kx + W, :].reshape(H * W, C)
              for ky in range(3) for kx in range(3)]
    patches = jnp.concatenate(pieces, axis=1)                 # (H*W, 9*C)
    acc = jnp.dot(patches, w_ref[...],
                  preferred_element_type=jnp.float32)         # (H*W, CP2) f32
    st_ref[0] = jnp.concatenate(
        [jnp.sum(acc, axis=0, keepdims=True),
         jnp.sum(acc * acc, axis=0, keepdims=True)], axis=0)
    y2_ref[0] = acc.astype(y2_ref.dtype)


def _conv2_call(y1, scale, shift, w, H, W, cp2):
    N, _, _, CP1 = y1.shape
    return pl.pallas_call(
        _conv2_kernel,
        out_shape=(jax.ShapeDtypeStruct((N, H * W, cp2), MXU_DTYPE),
                   jax.ShapeDtypeStruct((N, 2, cp2), jnp.float32)),
        grid=(N,),
        in_specs=[pl.BlockSpec((1, H, W, CP1), lambda n: (n, 0, 0, 0)),
                  pl.BlockSpec((1, CP1), lambda n: (0, 0)),
                  pl.BlockSpec((1, CP1), lambda n: (0, 0)),
                  pl.BlockSpec((9 * CP1, cp2), lambda n: (0, 0))],
        out_specs=(pl.BlockSpec((1, H * W, cp2), lambda n: (n, 0, 0)),
                   pl.BlockSpec((1, 2, cp2), lambda n: (n, 0, 0))),
        scratch_shapes=[pltpu.VMEM((H + 2, W + 2, CP1), MXU_DTYPE)],
        compiler_params=pltpu.CompilerParams(
            dimension_semantics=("parallel",),
            vmem_limit_bytes=_VMEM_LIMIT),
    )(y1, scale, shift, w)


# ----------------------------------------------------------------------------
# Pallas kernel 4: final BatchNorm + ReLU + channel-padding strip (real
# channels only hit HBM).
# ----------------------------------------------------------------------------
def _bn_act_kernel(y_ref, scale_ref, shift_ref, o_ref):
    cout = o_ref.shape[-1]
    y = y_ref[0].astype(jnp.float32)                          # (M, CP2)
    act = jnp.maximum(y * scale_ref[...] + shift_ref[...], 0.0)
    o_ref[0] = act[:, :cout]


def _bn_act_call(y2, scale, shift, cout):
    N, M, CP2 = y2.shape
    return pl.pallas_call(
        _bn_act_kernel,
        out_shape=jax.ShapeDtypeStruct((N, M, cout), jnp.float32),
        grid=(N,),
        in_specs=[pl.BlockSpec((1, M, CP2), lambda n: (n, 0, 0)),
                  pl.BlockSpec((1, CP2), lambda n: (0, 0)),
                  pl.BlockSpec((1, CP2), lambda n: (0, 0))],
        out_specs=pl.BlockSpec((1, M, cout), lambda n: (n, 0, 0)),
        compiler_params=pltpu.CompilerParams(
            dimension_semantics=("parallel",),
            vmem_limit_bytes=_VMEM_LIMIT),
    )(y2, scale, shift)


# ----------------------------------------------------------------------------
# glue helpers (cheap XLA ops)
# ----------------------------------------------------------------------------
def _pad_or_crop_hw(x_nhwc, top, bottom, left, right):
    """Zero-pad (or crop, for negative amounts - F.pad semantics) H/W of NHWC."""
    if top < 0:
        x_nhwc = x_nhwc[:, -top:, :, :]
        top = 0
    if bottom < 0:
        x_nhwc = x_nhwc[:, :x_nhwc.shape[1] + bottom, :, :]
        bottom = 0
    if left < 0:
        x_nhwc = x_nhwc[:, :, -left:, :]
        left = 0
    if right < 0:
        x_nhwc = x_nhwc[:, :, :x_nhwc.shape[2] + right, :]
        right = 0
    return jnp.pad(x_nhwc, ((0, 0), (top, bottom), (left, right), (0, 0)))


def _w_to_mat(w_torch, ci_pad, co_pad):
    """(Cout, Cin, 3, 3) torch weight -> ((3*3*ci_pad), co_pad), rows ordered
    (ky, kx, cin) to match the in-kernel im2col concatenation."""
    Co, Ci = w_torch.shape[0], w_torch.shape[1]
    wk = jnp.transpose(w_torch, (2, 3, 1, 0))                 # (3, 3, Ci, Co)
    wk = jnp.pad(wk, ((0, 0), (0, 0), (0, ci_pad - Ci), (0, co_pad - Co)))
    return wk.reshape(9 * ci_pad, co_pad)


def _bn_scale_shift(stats, count, gamma, beta, cp, eps=1e-5):
    """Fold per-image (sum, sumsq) partials into per-channel scale/shift (f32)."""
    s = jnp.sum(stats, axis=0)                                # (2, cp)
    mean = s[0] / count
    var = jnp.maximum(s[1] / count - mean * mean, 0.0)
    inv = lax.rsqrt(var + eps)
    g = jnp.pad(gamma.reshape(-1), (0, cp - gamma.size))
    b = jnp.pad(beta.reshape(-1), (0, cp - beta.size))
    scale = g * inv
    shift = b - mean * scale
    return (scale.reshape(1, cp).astype(jnp.float32),
            shift.reshape(1, cp).astype(jnp.float32))


# ----------------------------------------------------------------------------
# Up.forward
# ----------------------------------------------------------------------------
def up_forward(x1, x2, params, mxu_dtype=MXU_DTYPE):
    """x1, x2: NCHW float32.  Returns NCHW output of DoubleConv(cat(x2, up(x1)))."""
    N, C1, H1, W1 = x1.shape
    _, C2, H2, W2 = x2.shape
    Ho, Wo = 2 * H1, 2 * W1
    Cmid = params["w1"].shape[0]
    Cout = params["w2"].shape[0]
    Cin = C1 + C2
    assert params["w1"].shape[1] == Cin
    CIP = _round_up(Cin, _LANE)        # conv1 input channels, lane aligned
    CP1 = _round_up(Cmid, _LANE)       # conv1 output / conv2 input channels
    CP2 = _round_up(Cout, _LANE)       # conv2 output channels

    # --- fused bilinear upsample of x1 (scale 2, align_corners=True), bf16 ---
    ah = jnp.asarray(_bilinear_matrix(H1, Ho)).astype(mxu_dtype)   # (Ho, H1)
    awt = jnp.asarray(_bilinear_matrix(W1, Wo).T).astype(mxu_dtype)  # (W1, Wo)
    x1_up = _upsample(x1, ah, awt)                                   # NCHW bf16

    # --- single fused XLA repack: NHWC + F.pad(+crop) + halo pad + channel
    #     concat [x2 | x1_up] + lane-align channel pad + bf16 cast -------------
    x1n = jnp.transpose(x1_up, (0, 2, 3, 1))
    x2n = jnp.transpose(x2, (0, 2, 3, 1)).astype(mxu_dtype)
    dY, dX = H2 - Ho, W2 - Wo
    x1p = _pad_or_crop_hw(x1n, dY // 2 + 1, (dY - dY // 2) + 1,
                          dX // 2 + 1, (dX - dX // 2) + 1)
    x2p = _pad_or_crop_hw(x2n, 1, 1, 1, 1)
    assert x1p.shape[1:3] == x2p.shape[1:3] == (H2 + 2, W2 + 2)
    xcat = jnp.concatenate([x2p, x1p], axis=-1)               # (N, H2+2, W2+2, Cin)
    if CIP > Cin:
        xcat = jnp.pad(xcat, ((0, 0), (0, 0), (0, 0), (0, CIP - Cin)))

    # --- weights as im2col matrices (trace-time prep, negligible) ------------
    w1 = _w_to_mat(params["w1"], CIP, CP1).astype(mxu_dtype)  # (9*CIP, CP1)
    w2 = _w_to_mat(params["w2"], CP1, CP2).astype(mxu_dtype)  # (9*CP1, CP2)

    # --- conv1 (single matmul per image) + BN1 partials -----------------------
    y1, st1 = _conv1_call(xcat, w1, H2, W2, CP1)              # (N, H2, W2, CP1) bf16
    scale1, shift1 = _bn_scale_shift(st1, N * H2 * W2,
                                     params["g1"], params["b1"], CP1)

    # --- conv2 with BN1+ReLU + zero-pad fused into its input path ------------
    y2, st2 = _conv2_call(y1, scale1, shift1, w2, H2, W2, CP2)  # (N, H*W, CP2) bf16
    scale2, shift2 = _bn_scale_shift(st2, N * H2 * W2,
                                     params["g2"], params["b2"], CP2)

    # --- final BN2 + ReLU (+ channel-pad strip), then back to NCHW -----------
    out = _bn_act_call(y2, scale2, shift2, Cout)              # (N, H*W, Cout) f32
    out = out.reshape(N, H2, W2, Cout)
    return jnp.transpose(out, (0, 3, 1, 2))


# ----------------------------------------------------------------------------
# pure-JAX reference (same math; conv operands use the same MXU dtype and the
# intermediate conv outputs are rounded through bf16 to mirror the kernel's
# bf16 storage, so the check validates kernel structure tightly).
# ----------------------------------------------------------------------------
def _conv_bn_relu_ref(x_nhwc, w_torch, gamma, beta, conv_dtype):
    w_hwio = jnp.transpose(w_torch, (2, 3, 1, 0))
    y = lax.conv_general_dilated(
        x_nhwc.astype(conv_dtype), w_hwio.astype(conv_dtype), (1, 1), "SAME",
        dimension_numbers=("NHWC", "HWIO", "NHWC"),
        preferred_element_type=jnp.float32)
    y = y.astype(conv_dtype).astype(jnp.float32)     # emulate bf16 storage
    mean = jnp.mean(y, axis=(0, 1, 2), keepdims=True)
    var = jnp.mean(jnp.square(y - mean), axis=(0, 1, 2), keepdims=True)
    yhat = (y - mean) * lax.rsqrt(var + 1e-5)
    return jnp.maximum(yhat * gamma.reshape(1, 1, 1, -1)
                       + beta.reshape(1, 1, 1, -1), 0.0)


def up_reference(x1, x2, params, conv_dtype=MXU_DTYPE):
    N, C1, H1, W1 = x1.shape
    _, C2, H2, W2 = x2.shape
    x1n = jnp.transpose(x1, (0, 2, 3, 1))
    x2n = jnp.transpose(x2, (0, 2, 3, 1))
    Ah = jnp.asarray(_bilinear_matrix(H1, 2 * H1))
    Aw = jnp.asarray(_bilinear_matrix(W1, 2 * W1))
    x1_up = jnp.einsum("oh,pw,nhwc->nopc", Ah, Aw, x1n,
                       precision=lax.Precision.HIGHEST)
    x1_up = x1_up.astype(conv_dtype).astype(jnp.float32)
    dY, dX = H2 - 2 * H1, W2 - 2 * W1
    x1_up = _pad_or_crop_hw(x1_up, dY // 2, dY - dY // 2, dX // 2, dX - dX // 2)
    x = jnp.concatenate([x2n, x1_up], axis=-1)
    y1 = _conv_bn_relu_ref(x, params["w1"], params["g1"], params["b1"], conv_dtype)
    y2 = _conv_bn_relu_ref(y1, params["w2"], params["g2"], params["b2"], conv_dtype)
    return jnp.transpose(y2, (0, 3, 1, 2))


# ----------------------------------------------------------------------------
if __name__ == "__main__":
    # Up(in_channels=8, out_channels=8, bilinear=True)
    in_channels, out_channels = 8, 8
    mid_channels = in_channels // 2          # DoubleConv mid = 4
    N = 2
    C1 = C2 = in_channels // 2               # x1 / x2 each carry half the channels
    H1 = W1 = 8                              # x1 spatial (gets upsampled 2x)
    H2 = W2 = 16                             # x2 spatial

    key = jax.random.PRNGKey(0)
    k1, k2, kw1, kw2, kg1, kb1, kg2, kb2 = jax.random.split(key, 8)
    x1 = jax.random.normal(k1, (N, C1, H1, W1), jnp.float32)
    x2 = jax.random.normal(k2, (N, C2, H2, W2), jnp.float32)

    params = {
        # conv weights (PyTorch layout: Cout, Cin, 3, 3)
        "w1": 0.1 * jax.random.normal(kw1, (mid_channels, in_channels, 3, 3), jnp.float32),
        "w2": 0.1 * jax.random.normal(kw2, (out_channels, mid_channels, 3, 3), jnp.float32),
        # BatchNorm affine params (non-trivial to exercise the BN path)
        "g1": 1.0 + 0.1 * jax.random.normal(kg1, (mid_channels,), jnp.float32),
        "b1": 0.1 * jax.random.normal(kb1, (mid_channels,), jnp.float32),
        "g2": 1.0 + 0.1 * jax.random.normal(kg2, (out_channels,), jnp.float32),
        "b2": 0.1 * jax.random.normal(kb2, (out_channels,), jnp.float32),
    }

    out = jax.block_until_ready(jax.jit(up_forward)(x1, x2, params))
    ref = jax.block_until_ready(up_reference(x1, x2, params))

    assert out.shape == (N, out_channels, H2, W2), out.shape
    # bf16 MXU operands + bf16 intermediate storage in both paths.
    np.testing.assert_allclose(np.asarray(out), np.asarray(ref),
                               rtol=3e-2, atol=3e-2)
    print("KERNEL_OK")
</pallas_src>

<mosaic_0001>
module attributes {stable_mosaic.version = 11 : i64} {
  func.func @_upsample_kernel(%arg0: i32, %arg1: memref<1x4x8x8xf32, #tpu.memory_space<vmem>>, %arg2: memref<16x8xbf16, #tpu.memory_space<vmem>>, %arg3: memref<8x16xbf16, #tpu.memory_space<vmem>>, %arg4: memref<1x4x16x16xbf16, #tpu.memory_space<vmem>>) attributes {dimension_semantics = [#tpu.dimension_semantics<parallel>], iteration_bounds = array<i64: 2>, scalar_prefetch = 0 : i64, scratch_operands = 0 : i64, tpu.core_type = #tpu.core_type<tc>, window_params = [{transform_indices = @transform_0, window_bounds = array<i64: 1, 4, 8, 8>}, {pipeline_mode = #tpu.pipeline_mode<synchronous>, transform_indices = @transform_1, window_bounds = array<i64: 16, 8>}, {pipeline_mode = #tpu.pipeline_mode<synchronous>, transform_indices = @transform_2, window_bounds = array<i64: 8, 16>}, {transform_indices = @transform_3, window_bounds = array<i64: 1, 4, 16, 16>}]} {
    %c0 = arith.constant 0 : index
    %c0_0 = arith.constant 0 : index
    %c0_1 = arith.constant 0 : index
    %c0_2 = arith.constant 0 : index
    %0 = vector.load %arg1[%c0, %c0_0, %c0_1, %c0_2] : memref<1x4x8x8xf32, #tpu.memory_space<vmem>>, vector<1x4x8x8xf32>
    %1 = vector.shape_cast %0 : vector<1x4x8x8xf32> to vector<4x8x8xf32>
    %2 = arith.truncf %1 : vector<4x8x8xf32> to vector<4x8x8xbf16>
    %3 = vector.shape_cast %2 : vector<4x8x8xbf16> to vector<32x8xbf16>
    %c0_3 = arith.constant 0 : index
    %c0_4 = arith.constant 0 : index
    %4 = vector.load %arg3[%c0_3, %c0_4] : memref<8x16xbf16, #tpu.memory_space<vmem>>, vector<8x16xbf16>
    %cst = arith.constant dense<0.000000e+00> : vector<32x16xf32>
    %5 = tpu.matmul %3, %4, %cst {dimension_numbers = #tpu.dot_dimension_numbers<[1], [0], [0], [1], [0, 0, 1, 1], [], []>} : vector<32x8xbf16>, vector<8x16xbf16>, vector<32x16xf32> -> vector<32x16xf32>
    %6 = vector.shape_cast %5 : vector<32x16xf32> to vector<4x8x16xf32>
    %7 = arith.truncf %6 : vector<4x8x16xf32> to vector<4x8x16xbf16>
    %c0_5 = arith.constant 0 : index
    %c0_6 = arith.constant 0 : index
    %8 = vector.load %arg2[%c0_5, %c0_6] : memref<16x8xbf16, #tpu.memory_space<vmem>>, vector<16x8xbf16>
    %9 = vector.shape_cast %8 : vector<16x8xbf16> to vector<1x16x8xbf16>
    %10 = vector.broadcast %9 : vector<1x16x8xbf16> to vector<4x16x8xbf16>
    %cst_7 = arith.constant dense<0.000000e+00> : vector<4x16x16xf32>
    %11 = tpu.matmul %10, %7, %cst_7 {dimension_numbers = #tpu.dot_dimension_numbers<[2], [1], [1], [2], [0, 0, 0, 1, 1, 2], [0], [0]>} : vector<4x16x8xbf16>, vector<4x8x16xbf16>, vector<4x16x16xf32> -> vector<4x16x16xf32>
    %12 = arith.truncf %11 : vector<4x16x16xf32> to vector<4x16x16xbf16>
    %c0_8 = arith.constant 0 : index
    %c0_9 = arith.constant 0 : index
    %c0_10 = arith.constant 0 : index
    %c0_11 = arith.constant 0 : index
    %13 = vector.load %arg4[%c0_8, %c0_9, %c0_10, %c0_11] : memref<1x4x16x16xbf16, #tpu.memory_space<vmem>>, vector<1x4x16x16xbf16>
    %14 = vector.shape_cast %13 : vector<1x4x16x16xbf16> to vector<4x16x16xbf16>
    %15 = vector.shape_cast %12 : vector<4x16x16xbf16> to vector<1x4x16x16xbf16>
    tpu.vector_store %arg4[%c0_8, %c0_9, %c0_10, %c0_11], %15 {strides = array<i32>} : memref<1x4x16x16xbf16, #tpu.memory_space<vmem>>, vector<1x4x16x16xbf16>,
    return
  }
  func.func @transform_0(%arg0: i32) -> (i32, i32, i32, i32) {
    %c0_i32 = arith.constant 0 : i32
    %c0_i32_0 = arith.constant 0 : i32
    %c0_i32_1 = arith.constant 0 : i32
    %c0_i32_2 = arith.constant 0 : i32
    return %arg0, %c0_i32, %c0_i32_0, %c0_i32_1 : i32, i32, i32, i32
  }
  func.func @transform_1(%arg0: i32) -> (i32, i32) {
    %c0_i32 = arith.constant 0 : i32
    %c0_i32_0 = arith.constant 0 : i32
    %c0_i32_1 = arith.constant 0 : i32
    return %c0_i32, %c0_i32_0 : i32, i32
  }
  func.func @transform_2(%arg0: i32) -> (i32, i32) {
    %c0_i32 = arith.constant 0 : i32
    %c0_i32_0 = arith.constant 0 : i32
    %c0_i32_1 = arith.constant 0 : i32
    return %c0_i32, %c0_i32_0 : i32, i32
  }
  func.func @transform_3(%arg0: i32) -> (i32, i32, i32, i32) {
    %c0_i32 = arith.constant 0 : i32
    %c0_i32_0 = arith.constant 0 : i32
    %c0_i32_1 = arith.constant 0 : i32
    %c0_i32_2 = arith.constant 0 : i32
    return %arg0, %c0_i32, %c0_i32_0, %c0_i32_1 : i32, i32, i32, i32
  }
}

module attributes {stable_mosaic.version = 11 : i64} {
  func.func @_conv2_kernel(%arg0: i32, %arg1: memref<1x16x16x128xbf16, #tpu.memory_space<vmem>>, %arg2: memref<1x128xf32, #tpu.memory_space<vmem>>, %arg3: memref<1x128xf32, #tpu.memory_space<vmem>>, %arg4: memref<1152x128xbf16, #tpu.memory_space<vmem>>, %arg5: memref<1x256x128xbf16, #tpu.memory_space<vmem>>, %arg6: memref<1x2x128xf32, #tpu.memory_space<vmem>>, %arg7: memref<18x18x128xbf16, #tpu.memory_space<vmem>>) attributes {dimension_semantics = [#tpu.dimension_semantics<parallel>], iteration_bounds = array<i64: 2>, scalar_prefetch = 0 : i64, scratch_operands = 1 : i64, tpu.core_type = #tpu.core_type<tc>, window_params = [{transform_indices = @transform_0, window_bounds = array<i64: 1, 16, 16, 128>}, {pipeline_mode = #tpu.pipeline_mode<synchronous>, transform_indices = @transform_1, window_bounds = array<i64: 1, 128>}, {pipeline_mode = #tpu.pipeline_mode<synchronous>, transform_indices = @transform_2, window_bounds = array<i64: 1, 128>}, {pipeline_mode = #tpu.pipeline_mode<synchronous>, transform_indices = @transform_3, window_bounds = array<i64: 1152, 128>}, {transform_indices = @transform_4, window_bounds = array<i64: 1, 256, 128>}, {transform_indices = @transform_5, window_bounds = array<i64: 1, 2, 128>}]} {
    %c0 = arith.constant 0 : index
    %c0_0 = arith.constant 0 : index
    %c0_1 = arith.constant 0 : index
    %c0_2 = arith.constant 0 : index
    %0 = vector.load %arg1[%c0, %c0_0, %c0_1, %c0_2] : memref<1x16x16x128xbf16, #tpu.memory_space<vmem>>, vector<1x16x16x128xbf16>
    %1 = vector.shape_cast %0 : vector<1x16x16x128xbf16> to vector<16x16x128xbf16>
    %2 = arith.extf %1 : vector<16x16x128xbf16> to vector<16x16x128xf32>
    %c0_3 = arith.constant 0 : index
    %c0_4 = arith.constant 0 : index
    %3 = vector.load %arg2[%c0_3, %c0_4] : memref<1x128xf32, #tpu.memory_space<vmem>>, vector<1x128xf32>
    %4 = vector.shape_cast %3 : vector<1x128xf32> to vector<1x1x128xf32>
    %c0_5 = arith.constant 0 : index
    %c0_6 = arith.constant 0 : index
    %5 = vector.load %arg3[%c0_5, %c0_6] : memref<1x128xf32, #tpu.memory_space<vmem>>, vector<1x128xf32>
    %6 = vector.shape_cast %5 : vector<1x128xf32> to vector<1x1x128xf32>
    %7 = vector.broadcast %4 : vector<1x1x128xf32> to vector<16x16x128xf32>
    %8 = arith.mulf %2, %7 : vector<16x16x128xf32>
    %9 = vector.broadcast %6 : vector<1x1x128xf32> to vector<16x16x128xf32>
    %10 = arith.addf %8, %9 : vector<16x16x128xf32>
    %cst = arith.constant 0.000000e+00 : f32
    %11 = vector.broadcast %cst : f32 to vector<16x16x128xf32>
    %12 = arith.maximumf %10, %11 : vector<16x16x128xf32>
    %13 = arith.truncf %12 : vector<16x16x128xf32> to vector<16x16x128xbf16>
    %cst_7 = arith.constant 0.000000e+00 : bf16
    %14 = vector.broadcast %cst_7 : bf16 to vector<18x18x128xbf16>
    %c0_8 = arith.constant 0 : index
    %c0_9 = arith.constant 0 : index
    %c0_10 = arith.constant 0 : index
    %15 = vector.load %arg7[%c0_8, %c0_9, %c0_10] : memref<18x18x128xbf16, #tpu.memory_space<vmem>>, vector<18x18x128xbf16>
    tpu.vector_store %arg7[%c0_8, %c0_9, %c0_10], %14 {strides = array<i32>} : memref<18x18x128xbf16, #tpu.memory_space<vmem>>, vector<18x18x128xbf16>,
    %c1 = arith.constant 1 : index
    %c1_11 = arith.constant 1 : index
    %c0_12 = arith.constant 0 : index
    %16 = vector.load %arg7[%c1, %c1_11, %c0_12] : memref<18x18x128xbf16, #tpu.memory_space<vmem>>, vector<16x16x128xbf16>
    tpu.vector_store %arg7[%c1, %c1_11, %c0_12], %13 {strides = array<i32>} : memref<18x18x128xbf16, #tpu.memory_space<vmem>>, vector<16x16x128xbf16>,
    %c0_13 = arith.constant 0 : index
    %c0_14 = arith.constant 0 : index
    %c0_15 = arith.constant 0 : index
    %17 = vector.load %arg7[%c0_13, %c0_14, %c0_15] : memref<18x18x128xbf16, #tpu.memory_space<vmem>>, vector<18x18x128xbf16>
    %18 = vector.extract_strided_slice %17 {offsets = [0, 0, 0], sizes = [16, 16, 128], strides = [1, 1, 1]} : vector<18x18x128xbf16> to vector<16x16x128xbf16>
    %19 = vector.shape_cast %18 : vector<16x16x128xbf16> to vector<256x128xbf16>
    %20 = vector.extract_strided_slice %17 {offsets = [0, 1, 0], sizes = [16, 16, 128], strides = [1, 1, 1]} : vector<18x18x128xbf16> to vector<16x16x128xbf16>
    %21 = vector.shape_cast %20 : vector<16x16x128xbf16> to vector<256x128xbf16>
    %22 = vector.extract_strided_slice %17 {offsets = [0, 2, 0], sizes = [16, 16, 128], strides = [1, 1, 1]} : vector<18x18x128xbf16> to vector<16x16x128xbf16>
    %23 = vector.shape_cast %22 : vector<16x16x128xbf16> to vector<256x128xbf16>
    %24 = vector.extract_strided_slice %17 {offsets = [1, 0, 0], sizes = [16, 16, 128], strides = [1, 1, 1]} : vector<18x18x128xbf16> to vector<16x16x128xbf16>
    %25 = vector.shape_cast %24 : vector<16x16x128xbf16> to vector<256x128xbf16>
    %26 = vector.extract_strided_slice %17 {offsets = [1, 1, 0], sizes = [16, 16, 128], strides = [1, 1, 1]} : vector<18x18x128xbf16> to vector<16x16x128xbf16>
    %27 = vector.shape_cast %26 : vector<16x16x128xbf16> to vector<256x128xbf16>
    %28 = vector.extract_strided_slice %17 {offsets = [1, 2, 0], sizes = [16, 16, 128], strides = [1, 1, 1]} : vector<18x18x128xbf16> to vector<16x16x128xbf16>
    %29 = vector.shape_cast %28 : vector<16x16x128xbf16> to vector<256x128xbf16>
    %30 = vector.extract_strided_slice %17 {offsets = [2, 0, 0], sizes = [16, 16, 128], strides = [1, 1, 1]} : vector<18x18x128xbf16> to vector<16x16x128xbf16>
    %31 = vector.shape_cast %30 : vector<16x16x128xbf16> to vector<256x128xbf16>
    %32 = vector.extract_strided_slice %17 {offsets = [2, 1, 0], sizes = [16, 16, 128], strides = [1, 1, 1]} : vector<18x18x128xbf16> to vector<16x16x128xbf16>
    %33 = vector.shape_cast %32 : vector<16x16x128xbf16> to vector<256x128xbf16>
    %34 = vector.extract_strided_slice %17 {offsets = [2, 2, 0], sizes = [16, 16, 128], strides = [1, 1, 1]} : vector<18x18x128xbf16> to vector<16x16x128xbf16>
    %35 = vector.shape_cast %34 : vector<16x16x128xbf16> to vector<256x128xbf16>
    %36 = tpu.concatenate %19, %21, %23, %25, %27, %29, %31, %33, %35 in 1 : vector<256x128xbf16>, vector<256x128xbf16>, vector<256x128xbf16>, vector<256x128xbf16>, vector<256x128xbf16>, vector<256x128xbf16>, vector<256x128xbf16>, vector<256x128xbf16>, vector<256x128xbf16> -> vector<256x1152xbf16>
    %c0_16 = arith.constant 0 : index
    %c0_17 = arith.constant 0 : index
    %37 = vector.load %arg4[%c0_16, %c0_17] : memref<1152x128xbf16, #tpu.memory_space<vmem>>, vector<1152x128xbf16>
    %cst_18 = arith.constant dense<0.000000e+00> : vector<256x128xf32>
    %38 = tpu.matmul %36, %37, %cst_18 {dimension_numbers = #tpu.dot_dimension_numbers<[1], [0], [0], [1], [0, 0, 1, 1], [], []>} : vector<256x1152xbf16>, vector<1152x128xbf16>, vector<256x128xf32> -> vector<256x128xf32>
    %cst_19 = arith.constant dense<0.000000e+00> : vector<128xf32>
    %39 = vector.multi_reduction <add>, %38, %cst_19 [0] : vector<256x128xf32> to vector<128xf32>
    %40 = vector.shape_cast %39 : vector<128xf32> to vector<1x128xf32>
    %41 = arith.mulf %38, %38 : vector<256x128xf32>
    %cst_20 = arith.constant dense<0.000000e+00> : vector<128xf32>
    %42 = vector.multi_reduction <add>, %41, %cst_20 [0] : vector<256x128xf32> to vector<128xf32>
    %43 = vector.shape_cast %42 : vector<128xf32> to vector<1x128xf32>
    %44 = tpu.concatenate %40, %43 in 0 : vector<1x128xf32>, vector<1x128xf32> -> vector<2x128xf32>
    %c0_21 = arith.constant 0 : index
    %c0_22 = arith.constant 0 : index
    %c0_23 = arith.constant 0 : index
    %45 = vector.load %arg6[%c0_21, %c0_22, %c0_23] : memref<1x2x128xf32, #tpu.memory_space<vmem>>, vector<1x2x128xf32>
    %46 = vector.shape_cast %45 : vector<1x2x128xf32> to vector<2x128xf32>
    %47 = vector.shape_cast %44 : vector<2x128xf32> to vector<1x2x128xf32>
    tpu.vector_store %arg6[%c0_21, %c0_22, %c0_23], %47 {strides = array<i32>} : memref<1x2x128xf32, #tpu.memory_space<vmem>>, vector<1x2x128xf32>,
    %48 = arith.truncf %38 : vector<256x128xf32> to vector<256x128xbf16>
    %c0_24 = arith.constant 0 : index
    %c0_25 = arith.constant 0 : index
    %c0_26 = arith.constant 0 : index
    %49 = vector.load %arg5[%c0_24, %c0_25, %c0_26] : memref<1x256x128xbf16, #tpu.memory_space<vmem>>, vector<1x256x128xbf16>
    %50 = vector.shape_cast %49 : vector<1x256x128xbf16> to vector<256x128xbf16>
    %51 = vector.shape_cast %48 : vector<256x128xbf16> to vector<1x256x128xbf16>
    tpu.vector_store %arg5[%c0_24, %c0_25, %c0_26], %51 {strides = array<i32>} : memref<1x256x128xbf16, #tpu.memory_space<vmem>>, vector<1x256x128xbf16>,
    return
  }
  func.func @transform_0(%arg0: i32) -> (i32, i32, i32, i32) {
    %c0_i32 = arith.constant 0 : i32
    %c0_i32_0 = arith.constant 0 : i32
    %c0_i32_1 = arith.constant 0 : i32
    %c0_i32_2 = arith.constant 0 : i32
    return %arg0, %c0_i32, %c0_i32_0, %c0_i32_1 : i32, i32, i32, i32
  }
  func.func @transform_1(%arg0: i32) -> (i32, i32) {
    %c0_i32 = arith.constant 0 : i32
    %c0_i32_0 = arith.constant 0 : i32
    %c0_i32_1 = arith.constant 0 : i32
    return %c0_i32, %c0_i32_0 : i32, i32
  }
  func.func @transform_2(%arg0: i32) -> (i32, i32) {
    %c0_i32 = arith.constant 0 : i32
    %c0_i32_0 = arith.constant 0 : i32
    %c0_i32_1 = arith.constant 0 : i32
    return %c0_i32, %c0_i32_0 : i32, i32
  }
  func.func @transform_3(%arg0: i32) -> (i32, i32) {
    %c0_i32 = arith.constant 0 : i32
    %c0_i32_0 = arith.constant 0 : i32
    %c0_i32_1 = arith.constant 0 : i32
    return %c0_i32, %c0_i32_0 : i32, i32
  }
  func.func @transform_4(%arg0: i32) -> (i32, i32, i32) {
    %c0_i32 = arith.constant 0 : i32
    %c0_i32_0 = arith.constant 0 : i32
    %c0_i32_1 = arith.constant 0 : i32
    return %arg0, %c0_i32, %c0_i32_0 : i32, i32, i32
  }
  func.func @transform_5(%arg0: i32) -> (i32, i32, i32) {
    %c0_i32 = arith.constant 0 : i32
    %c0_i32_0 = arith.constant 0 : i32
    %c0_i32_1 = arith.constant 0 : i32
    return %arg0, %c0_i32, %c0_i32_0 : i32, i32, i32
  }
}

module attributes {stable_mosaic.version = 11 : i64} {
  func.func @_conv1_kernel(%arg0: i32, %arg1: memref<1x18x18x128xbf16, #tpu.memory_space<vmem>>, %arg2: memref<1152x128xbf16, #tpu.memory_space<vmem>>, %arg3: memref<1x16x16x128xbf16, #tpu.memory_space<vmem>>, %arg4: memref<1x2x128xf32, #tpu.memory_space<vmem>>) attributes {dimension_semantics = [#tpu.dimension_semantics<parallel>], iteration_bounds = array<i64: 2>, scalar_prefetch = 0 : i64, scratch_operands = 0 : i64, tpu.core_type = #tpu.core_type<tc>, window_params = [{transform_indices = @transform_0, window_bounds = array<i64: 1, 18, 18, 128>}, {pipeline_mode = #tpu.pipeline_mode<synchronous>, transform_indices = @transform_1, window_bounds = array<i64: 1152, 128>}, {transform_indices = @transform_2, window_bounds = array<i64: 1, 16, 16, 128>}, {transform_indices = @transform_3, window_bounds = array<i64: 1, 2, 128>}]} {
    %c0 = arith.constant 0 : index
    %c0_0 = arith.constant 0 : index
    %c0_1 = arith.constant 0 : index
    %c0_2 = arith.constant 0 : index
    %0 = vector.load %arg1[%c0, %c0_0, %c0_1, %c0_2] : memref<1x18x18x128xbf16, #tpu.memory_space<vmem>>, vector<1x18x18x128xbf16>
    %1 = vector.shape_cast %0 : vector<1x18x18x128xbf16> to vector<18x18x128xbf16>
    %2 = vector.extract_strided_slice %1 {offsets = [0, 0, 0], sizes = [16, 16, 128], strides = [1, 1, 1]} : vector<18x18x128xbf16> to vector<16x16x128xbf16>
    %3 = vector.shape_cast %2 : vector<16x16x128xbf16> to vector<256x128xbf16>
    %4 = vector.extract_strided_slice %1 {offsets = [0, 1, 0], sizes = [16, 16, 128], strides = [1, 1, 1]} : vector<18x18x128xbf16> to vector<16x16x128xbf16>
    %5 = vector.shape_cast %4 : vector<16x16x128xbf16> to vector<256x128xbf16>
    %6 = vector.extract_strided_slice %1 {offsets = [0, 2, 0], sizes = [16, 16, 128], strides = [1, 1, 1]} : vector<18x18x128xbf16> to vector<16x16x128xbf16>
    %7 = vector.shape_cast %6 : vector<16x16x128xbf16> to vector<256x128xbf16>
    %8 = vector.extract_strided_slice %1 {offsets = [1, 0, 0], sizes = [16, 16, 128], strides = [1, 1, 1]} : vector<18x18x128xbf16> to vector<16x16x128xbf16>
    %9 = vector.shape_cast %8 : vector<16x16x128xbf16> to vector<256x128xbf16>
    %10 = vector.extract_strided_slice %1 {offsets = [1, 1, 0], sizes = [16, 16, 128], strides = [1, 1, 1]} : vector<18x18x128xbf16> to vector<16x16x128xbf16>
    %11 = vector.shape_cast %10 : vector<16x16x128xbf16> to vector<256x128xbf16>
    %12 = vector.extract_strided_slice %1 {offsets = [1, 2, 0], sizes = [16, 16, 128], strides = [1, 1, 1]} : vector<18x18x128xbf16> to vector<16x16x128xbf16>
    %13 = vector.shape_cast %12 : vector<16x16x128xbf16> to vector<256x128xbf16>
    %14 = vector.extract_strided_slice %1 {offsets = [2, 0, 0], sizes = [16, 16, 128], strides = [1, 1, 1]} : vector<18x18x128xbf16> to vector<16x16x128xbf16>
    %15 = vector.shape_cast %14 : vector<16x16x128xbf16> to vector<256x128xbf16>
    %16 = vector.extract_strided_slice %1 {offsets = [2, 1, 0], sizes = [16, 16, 128], strides = [1, 1, 1]} : vector<18x18x128xbf16> to vector<16x16x128xbf16>
    %17 = vector.shape_cast %16 : vector<16x16x128xbf16> to vector<256x128xbf16>
    %18 = vector.extract_strided_slice %1 {offsets = [2, 2, 0], sizes = [16, 16, 128], strides = [1, 1, 1]} : vector<18x18x128xbf16> to vector<16x16x128xbf16>
    %19 = vector.shape_cast %18 : vector<16x16x128xbf16> to vector<256x128xbf16>
    %20 = tpu.concatenate %3, %5, %7, %9, %11, %13, %15, %17, %19 in 1 : vector<256x128xbf16>, vector<256x128xbf16>, vector<256x128xbf16>, vector<256x128xbf16>, vector<256x128xbf16>, vector<256x128xbf16>, vector<256x128xbf16>, vector<256x128xbf16>, vector<256x128xbf16> -> vector<256x1152xbf16>
    %c0_3 = arith.constant 0 : index
    %c0_4 = arith.constant 0 : index
    %21 = vector.load %arg2[%c0_3, %c0_4] : memref<1152x128xbf16, #tpu.memory_space<vmem>>, vector<1152x128xbf16>
    %cst = arith.constant dense<0.000000e+00> : vector<256x128xf32>
    %22 = tpu.matmul %20, %21, %cst {dimension_numbers = #tpu.dot_dimension_numbers<[1], [0], [0], [1], [0, 0, 1, 1], [], []>} : vector<256x1152xbf16>, vector<1152x128xbf16>, vector<256x128xf32> -> vector<256x128xf32>
    %cst_5 = arith.constant dense<0.000000e+00> : vector<128xf32>
    %23 = vector.multi_reduction <add>, %22, %cst_5 [0] : vector<256x128xf32> to vector<128xf32>
    %24 = vector.shape_cast %23 : vector<128xf32> to vector<1x128xf32>
    %25 = arith.mulf %22, %22 : vector<256x128xf32>
    %cst_6 = arith.constant dense<0.000000e+00> : vector<128xf32>
    %26 = vector.multi_reduction <add>, %25, %cst_6 [0] : vector<256x128xf32> to vector<128xf32>
    %27 = vector.shape_cast %26 : vector<128xf32> to vector<1x128xf32>
    %28 = tpu.concatenate %24, %27 in 0 : vector<1x128xf32>, vector<1x128xf32> -> vector<2x128xf32>
    %c0_7 = arith.constant 0 : index
    %c0_8 = arith.constant 0 : index
    %c0_9 = arith.constant 0 : index
    %29 = vector.load %arg4[%c0_7, %c0_8, %c0_9] : memref<1x2x128xf32, #tpu.memory_space<vmem>>, vector<1x2x128xf32>
    %30 = vector.shape_cast %29 : vector<1x2x128xf32> to vector<2x128xf32>
    %31 = vector.shape_cast %28 : vector<2x128xf32> to vector<1x2x128xf32>
    tpu.vector_store %arg4[%c0_7, %c0_8, %c0_9], %31 {strides = array<i32>} : memref<1x2x128xf32, #tpu.memory_space<vmem>>, vector<1x2x128xf32>,
    %32 = vector.shape_cast %22 : vector<256x128xf32> to vector<16x16x128xf32>
    %33 = arith.truncf %32 : vector<16x16x128xf32> to vector<16x16x128xbf16>
    %c0_10 = arith.constant 0 : index
    %c0_11 = arith.constant 0 : index
    %c0_12 = arith.constant 0 : index
    %c0_13 = arith.constant 0 : index
    %34 = vector.load %arg3[%c0_10, %c0_11, %c0_12, %c0_13] : memref<1x16x16x128xbf16, #tpu.memory_space<vmem>>, vector<1x16x16x128xbf16>
    %35 = vector.shape_cast %34 : vector<1x16x16x128xbf16> to vector<16x16x128xbf16>
    %36 = vector.shape_cast %33 : vector<16x16x128xbf16> to vector<1x16x16x128xbf16>
    tpu.vector_store %arg3[%c0_10, %c0_11, %c0_12, %c0_13], %36 {strides = array<i32>} : memref<1x16x16x128xbf16, #tpu.memory_space<vmem>>, vector<1x16x16x128xbf16>,
    return
  }
  func.func @transform_0(%arg0: i32) -> (i32, i32, i32, i32) {
    %c0_i32 = arith.constant 0 : i32
    %c0_i32_0 = arith.constant 0 : i32
    %c0_i32_1 = arith.constant 0 : i32
    %c0_i32_2 = arith.constant 0 : i32
    return %arg0, %c0_i32, %c0_i32_0, %c0_i32_1 : i32, i32, i32, i32
  }
  func.func @transform_1(%arg0: i32) -> (i32, i32) {
    %c0_i32 = arith.constant 0 : i32
    %c0_i32_0 = arith.constant 0 : i32
    %c0_i32_1 = arith.constant 0 : i32
    return %c0_i32, %c0_i32_0 : i32, i32
  }
  func.func @transform_2(%arg0: i32) -> (i32, i32, i32, i32) {
    %c0_i32 = arith.constant 0 : i32
    %c0_i32_0 = arith.constant 0 : i32
    %c0_i32_1 = arith.constant 0 : i32
    %c0_i32_2 = arith.constant 0 : i32
    return %arg0, %c0_i32, %c0_i32_0, %c0_i32_1 : i32, i32, i32, i32
  }
  func.func @transform_3(%arg0: i32) -> (i32, i32, i32) {
    %c0_i32 = arith.constant 0 : i32
    %c0_i32_0 = arith.constant 0 : i32
    %c0_i32_1 = arith.constant 0 : i32
    return %arg0, %c0_i32, %c0_i32_0 : i32, i32, i32
  }
}

module attributes {stable_mosaic.version = 11 : i64} {
  func.func @_bn_act_kernel(%arg0: i32, %arg1: memref<1x256x128xbf16, #tpu.memory_space<vmem>>, %arg2: memref<1x128xf32, #tpu.memory_space<vmem>>, %arg3: memref<1x128xf32, #tpu.memory_space<vmem>>, %arg4: memref<1x256x8xf32, #tpu.memory_space<vmem>>) attributes {dimension_semantics = [#tpu.dimension_semantics<parallel>], iteration_bounds = array<i64: 2>, scalar_prefetch = 0 : i64, scratch_operands = 0 : i64, tpu.core_type = #tpu.core_type<tc>, window_params = [{transform_indices = @transform_0, window_bounds = array<i64: 1, 256, 128>}, {pipeline_mode = #tpu.pipeline_mode<synchronous>, transform_indices = @transform_1, window_bounds = array<i64: 1, 128>}, {pipeline_mode = #tpu.pipeline_mode<synchronous>, transform_indices = @transform_2, window_bounds = array<i64: 1, 128>}, {transform_indices = @transform_3, window_bounds = array<i64: 1, 256, 8>}]} {
    %c0 = arith.constant 0 : index
    %c0_0 = arith.constant 0 : index
    %c0_1 = arith.constant 0 : index
    %0 = vector.load %arg1[%c0, %c0_0, %c0_1] : memref<1x256x128xbf16, #tpu.memory_space<vmem>>, vector<1x256x128xbf16>
    %1 = vector.shape_cast %0 : vector<1x256x128xbf16> to vector<256x128xbf16>
    %2 = arith.extf %1 : vector<256x128xbf16> to vector<256x128xf32>
    %c0_2 = arith.constant 0 : index
    %c0_3 = arith.constant 0 : index
    %3 = vector.load %arg2[%c0_2, %c0_3] : memref<1x128xf32, #tpu.memory_space<vmem>>, vector<1x128xf32>
    %4 = vector.broadcast %3 : vector<1x128xf32> to vector<256x128xf32>
    %5 = arith.mulf %2, %4 : vector<256x128xf32>
    %c0_4 = arith.constant 0 : index
    %c0_5 = arith.constant 0 : index
    %6 = vector.load %arg3[%c0_4, %c0_5] : memref<1x128xf32, #tpu.memory_space<vmem>>, vector<1x128xf32>
    %7 = vector.broadcast %6 : vector<1x128xf32> to vector<256x128xf32>
    %8 = arith.addf %5, %7 : vector<256x128xf32>
    %cst = arith.constant 0.000000e+00 : f32
    %9 = vector.broadcast %cst : f32 to vector<256x128xf32>
    %10 = arith.maximumf %8, %9 : vector<256x128xf32>
    %11 = vector.extract_strided_slice %10 {offsets = [0, 0], sizes = [256, 8], strides = [1, 1]} : vector<256x128xf32> to vector<256x8xf32>
    %c0_6 = arith.constant 0 : index
    %c0_7 = arith.constant 0 : index
    %c0_8 = arith.constant 0 : index
    %12 = vector.load %arg4[%c0_6, %c0_7, %c0_8] : memref<1x256x8xf32, #tpu.memory_space<vmem>>, vector<1x256x8xf32>
    %13 = vector.shape_cast %12 : vector<1x256x8xf32> to vector<256x8xf32>
    %14 = vector.shape_cast %11 : vector<256x8xf32> to vector<1x256x8xf32>
    tpu.vector_store %arg4[%c0_6, %c0_7, %c0_8], %14 {strides = array<i32>} : memref<1x256x8xf32, #tpu.memory_space<vmem>>, vector<1x256x8xf32>,
    return
  }
  func.func @transform_0(%arg0: i32) -> (i32, i32, i32) {
    %c0_i32 = arith.constant 0 : i32
    %c0_i32_0 = arith.constant 0 : i32
    %c0_i32_1 = arith.constant 0 : i32
    return %arg0, %c0_i32, %c0_i32_0 : i32, i32, i32
  }
  func.func @transform_1(%arg0: i32) -> (i32, i32) {
    %c0_i32 = arith.constant 0 : i32
    %c0_i32_0 = arith.constant 0 : i32
    %c0_i32_1 = arith.constant 0 : i32
    return %c0_i32, %c0_i32_0 : i32, i32
  }
  func.func @transform_2(%arg0: i32) -> (i32, i32) {
    %c0_i32 = arith.constant 0 : i32
    %c0_i32_0 = arith.constant 0 : i32
    %c0_i32_1 = arith.constant 0 : i32
    return %c0_i32, %c0_i32_0 : i32, i32
  }
  func.func @transform_3(%arg0: i32) -> (i32, i32, i32) {
    %c0_i32 = arith.constant 0 : i32
    %c0_i32_0 = arith.constant 0 : i32
    %c0_i32_1 = arith.constant 0 : i32
    return %arg0, %c0_i32, %c0_i32_0 : i32, i32, i32
  }
}

</mosaic_0001>

<bundles_post_ra>
// kernel: up_forward.4
= control target key start
LH: loop header
LB: loop body
LE: loop exit
PB: predicated region body
PF: predicated region fallthrough
CT: control target
= control target key end

     0   :  { %s660_s12 = smov 0   ;;  %s724_s0 = inlined_call_operand.vmem [shape: f32[2,4,8,8], index: 0, kind: input, shape index: {}]   ;;  %s725_s1 = inlined_call_operand.vmem [shape: bf16[16,8], index: 1, kind: input, shape index: {}]   ;;  %s726_s2 = inlined_call_operand.vmem [shape: bf16[8,16], index: 2, kind: input, shape index: {}]   ;;  %s727_s3 = inlined_call_operand.vmem [shape: bf16[2,4,16,16], index: 3, kind: output, shape index: {}]  }
   0x1 LB: > { %s537_s13 = sadd.s32 4294967295, %s636_s12   ;;  %p541_p0 = scmp.ge.s32.totalorder %s636_s12, 1  ;;  %s636_s12 = sphi %s660_s12, %s13_s12  }
   0x2   : > { %p137_p1 = scmp.lt.s32.totalorder %s636_s12, 3 }
   0x4   : > { %p138_p2 = pnand %p541_p0, %p137_p1 }
   0x5   : > { %p161_p3 = scmp.lt.s32.totalorder (!%p138_p2), %s537_s13, 1 }
   0x6   : > { %141 = sbr.rel (%p138_p2) target bundleno = 431 (0x1af), region = 32 }
   0xb   : > { %v180_v0 = vld [vmem:[%s726_s2] sm:$0xf]  ;;  %vm198_vm0 = vcmask 1043456   ;;  %s729_s13 = smov (!%p161_p3, %s537_s13), 1  ;;  %vm191_vm1 = vcmask 64512   ;;  %v638_v8 = vmov 0.0  }
   0xc   : > { %618 = vmatprep.subr.msk.bf16.mxu0 %vm198_vm0, %v180_v0  ;;  %v200_v1 = vsel %vm198_vm0, %v180_v0, 0  ;;  %s565_s16 = sshll.u32 %s729_s13, 5  ;;  %594 = vmatprep.subr.bf16.mxu1 %v638_v8  ;;  %vm639_vm2 = vmmov 0   ;;  %v629_v15 = vld [vmem:[%s725_s1] sm:$0xff]   ;;  %vm473_vm3 = vcmask 125952  }
   0xd   : > { %589 = vmatpush3.bf16.msra.mxu0 %v200_v1  ;;  %s165_s19 = scalar_lea.vmem %s724_s0, %s565_s16  ;;  %596 = vmatprep.mubr.msk.bf16.mxu1 %vm639_vm2, %v638_v8  ;;  %s703_s24 = scalar_lea.vmem %s727_s3, %s565_s16 }
   0xe   : > { %v172_v2 = vld [vmem:[%s165_s19] sm:$0xff]  ;;  %v173_v3 = vld [vmem:[%s165_s19 + $0x8] sm:$0xff]  ;;  %v174_v4 = vld [vmem:[%s165_s19 + $0x10] sm:$0xff]  ;;  %600 = vmatprep.subr.bf16.mxu0 %v638_v8 }
   0xf   : > { %v567_v5 = vpack.c.bf16 %v173_v3, %v172_v2  ;;  %v175_v6 = vld [vmem:[%s165_s19 + $0x18] sm:$0xff] }
  0x10   : > { %v568_v7 = vpack.c.bf16 %v175_v6, %v174_v4 }
  0x11   : > { %590 = vmatprep.mubr.msk.bf16.mxu0 %vm191_vm1, %v567_v5 }
  0x12   : > { %591 = vmatmul.mubr.msk.bf16.vlgmr.msra.gmra.mxu0 %vm191_vm1, %v568_v7 }
  0x13   : > { %602 = vmatprep.mubr.msk.bf16.mxu0 %vm639_vm2, %v638_v8 }
  0xd2   : > { %v592_v9 = vpop.f32.mrf.mxu0 }
  0xd3   : > { %v253_v13 = vpack.c.bf16 %v592_v9, %v592_v9 }
  0xd4   : > { %v236_v10 = vpop.f32.mrf.mxu0 }
  0xd5   : > { %v251_v11 = vpack.c.bf16 %v236_v10, %v236_v10  ;;  %v354_v18 = vsel %vm198_vm0, %v253_v13, 0 }
  0xd6   : > { %v593_v12 = vpop.f32.mrf.mxu0 }
  0xd7   : > { %v266_v14 = vsel %vm198_vm0, %v251_v11, 0  ;;  %v254_v19 = vpack.c.bf16 %v593_v12, %v593_v12 }
  0xd8   : > { %v239_v16 = vpop.f32.mrf.mxu0  ;;  %595 = vmatpush3.bf16.msra.mxu1 %v266_v14 }
  0xd9   : > { %v252_v17 = vpack.c.bf16 %v239_v16, %v239_v16  ;;  %606 = vmatprep.subr.bf16.mxu1 %v638_v8  ;;  %v398_v21 = vsel %vm198_vm0, %v254_v19, 0 }
  0xdb   : > { %v310_v20 = vsel %vm198_vm0, %v252_v17, 0  ;;  %597 = vmatmul.mubr.msk.bf16.vlgmr.msra.gmra.mxu1 %vm191_vm1, %v629_v15 }
  0xdc   : > { %601 = vmatpush3.bf16.msra.mxu0 %v310_v20  ;;  %607 = vmatpush3.bf16.msra.mxu1 %v354_v18 }
  0xdd   : > { %612 = vmatprep.subr.bf16.mxu0 %v638_v8  ;;  %608 = vmatprep.mubr.msk.bf16.mxu1 %vm639_vm2, %v638_v8 }
  0xdf   : > { %603 = vmatmul.mubr.msk.bf16.vlgmr.msra.gmra.mxu0 %vm191_vm1, %v629_v15 }
  0xe0   : > { %613 = vmatpush3.bf16.msra.mxu0 %v398_v21  ;;  %614 = vmatprep.mubr.msk.bf16.mxu0 %vm639_vm2, %v638_v8 }
  0xe3   : > { %609 = vmatmul.mubr.msk.bf16.vlgmr.msra.gmra.mxu1 %vm191_vm1, %v629_v15 }
  0xe7   : > { %615 = vmatmul.mubr.msk.bf16.vlgmr.msra.gmra.mxu0 %vm191_vm1, %v629_v15 }
 0x19b   : > { %v302_v22 = vpop.f32.mrf.mxu1 }
 0x19c   : > { %v569_v23 = vpack.c.bf16 %v302_v22, %v302_v22 }
 0x19d   : > { %v598_v24 = vpop.f32.mrf.mxu1 }
 0x19e   : > { %474 = vst.msk [vmem:[%s703_s24] sm:$0xf] %vm473_vm3, %v569_v23 }
 0x19f   : > { %v346_v25 = vpop.f32.mrf.mxu0  ;;  %v305_v26 = vpop.f32.mrf.mxu1 }
 0x1a0   : > { %v571_v27 = vpack.c.bf16 %v346_v25, %v346_v25  ;;  %v570_v28 = vpack.c.bf16 %v305_v26, %v305_v26 }
 0x1a1   : > { %v604_v29 = vpop.f32.mrf.mxu0  ;;  %v599_v30 = vpop.f32.mrf.mxu1 }
 0x1a2   : > { %476 = vst.msk [vmem:[%s703_s24 + $0x8] sm:$0xf] %vm473_vm3, %v571_v27  ;;  %475 = vst.msk [vmem:[%s703_s24 + $0x4] sm:$0xf] %vm473_vm3, %v570_v28 }
 0x1a3   : > { %v349_v31 = vpop.f32.mrf.mxu0  ;;  %v390_v32 = vpop.f32.mrf.mxu1 }
 0x1a4   : > { %v572_v33 = vpack.c.bf16 %v349_v31, %v349_v31  ;;  %v573_v34 = vpack.c.bf16 %v390_v32, %v390_v32 }
 0x1a5   : > { %v605_v35 = vpop.f32.mrf.mxu0  ;;  %v610_v36 = vpop.f32.mrf.mxu1 }
 0x1a6   : > { %477 = vst.msk [vmem:[%s703_s24 + $0xc] sm:$0xf] %vm473_vm3, %v572_v33  ;;  %478 = vst.msk [vmem:[%s703_s24 + $0x10] sm:$0xf] %vm473_vm3, %v573_v34 }
 0x1a7   : > { %v434_v37 = vpop.f32.mrf.mxu0  ;;  %v393_v38 = vpop.f32.mrf.mxu1 }
 0x1a8   : > { %v575_v39 = vpack.c.bf16 %v434_v37, %v434_v37  ;;  %v574_v40 = vpack.c.bf16 %v393_v38, %v393_v38 }
 0x1a9   : > { %v616_v41 = vpop.f32.mrf.mxu0  ;;  %v611_v42 = vpop.f32.mrf.mxu1 }
 0x1aa   : > { %480 = vst.msk [vmem:[%s703_s24 + $0x18] sm:$0xf] %vm473_vm3, %v575_v39  ;;  %479 = vst.msk [vmem:[%s703_s24 + $0x14] sm:$0xf] %vm473_vm3, %v574_v40 }
 0x1ab   : > { %v437_v43 = vpop.f32.mrf.mxu0 }
 0x1ac   : > { %v576_v44 = vpack.c.bf16 %v437_v43, %v437_v43 }
 0x1ad   : > { %v617_v45 = vpop.f32.mrf.mxu0 }
 0x1ae   : > { %481 = vst.msk [vmem:[%s703_s24 + $0x1c] sm:$0xf] %vm473_vm3, %v576_v44 }
 0x1af PF: > { %s13_s12 = sadd.s32 1, %s636_s12  }
 0x1b0   : > { %p10_p4 = scmp.ge.s32.totalorder %s13_s12, 4  }
 0x1b2   :  { %12 = sbr.rel (!%p10_p4) target bundleno = 1 (0x1), region = 62 }

// kernel: up_forward.7
= control target key start
LH: loop header
LB: loop body
LE: loop exit
PB: predicated region body
PF: predicated region fallthrough
CT: control target
= control target key end

     0   :  { %s563_s12 = smov 0   ;;  %s742_s0 = inlined_call_operand.vmem [shape: bf16[2,256,128], index: 0, kind: input, shape index: {}]   ;;  %s743_s1 = inlined_call_operand.vmem [shape: f32[1,128], index: 1, kind: input, shape index: {}]   ;;  %s744_s2 = inlined_call_operand.vmem [shape: f32[1,128], index: 2, kind: input, shape index: {}]   ;;  %s745_s3 = inlined_call_operand.vmem [shape: f32[2,256,8], index: 3, kind: output, shape index: {}]  }
   0x1 LB: > { %s433_s13 = sadd.s32 4294967295, %s541_s12   ;;  %p437_p0 = scmp.ge.s32.totalorder %s541_s12, 1  ;;  %s541_s12 = sphi %s563_s12, %s13_s12  }
   0x2   : > { %p137_p1 = scmp.lt.s32.totalorder %s541_s12, 3 }
   0x4   : > { %p138_p2 = pnand %p437_p0, %p137_p1 }
   0x5   : > { %p161_p3 = scmp.lt.s32.totalorder (!%p138_p2), %s433_s13, 1 }
   0x6   : > { %141 = sbr.rel (%p138_p2) target bundleno = 51 (0x33), region = 32 }
   0xb   : > { %s747_s13 = smov (!%p161_p3, %s433_s13), 1  ;;  %v582_v0 = vld [vmem:[%s743_s1] ss:$0 sm:$0xff]  ;;  %vm345_vm0 = vcmask 64512  }
   0xc   : > { %s446_s14 = sshll.u32 %s747_s13, 7  ;;  %v591_v9 = vld [vmem:[%s744_s2] ss:$0 sm:$0xff]  ;;  %s447_s22 = sshll.u32 %s747_s13, 8 }
   0xd   : > { %s577_s17 = scalar_lea.vmem %s742_s0, %s446_s14  ;;  %s609_s25 = scalar_lea.vmem %s745_s3, %s447_s22 }
   0xe   : > { %v449_v1 = vld [vmem:[%s577_s17] sm:$0xff]   ;;  %v512_v2 = vld [vmem:[%s577_s17 + $0x8] sm:$0xff]   ;;  %v513_v3 = vld [vmem:[%s577_s17 + $0x10] sm:$0xff]  }
   0xf   : > { %v450_v4 = vunpack.c.l.bf16 %v449_v1  ;;  %v451_v5 = vunpack.c.h.bf16 %v449_v1  ;;  %v454_v6 = vunpack.c.l.bf16 %v512_v2  ;;  %v455_v7 = vunpack.c.h.bf16 %v512_v2  ;;  %v514_v8 = vld [vmem:[%s577_s17 + $0x18] sm:$0xff]   ;;  %v515_v30 = vld [vmem:[%s577_s17 + $0x20] sm:$0xff]   ;;  %v516_v31 = vld [vmem:[%s577_s17 + $0x28] sm:$0xff]  }
  0x10   : > { %v458_v10 = vunpack.c.l.bf16 %v513_v3  ;;  %v459_v11 = vunpack.c.h.bf16 %v513_v3  ;;  %v462_v12 = vunpack.c.l.bf16 %v514_v8  ;;  %v463_v13 = vunpack.c.h.bf16 %v514_v8  ;;  %v517_v36 = vld [vmem:[%s577_s17 + $0x30] sm:$0xff]   ;;  %v518_v37 = vld [vmem:[%s577_s17 + $0x38] sm:$0xff]   ;;  %v519_v3 = vld [vmem:[%s577_s17 + $0x40] sm:$0xff]  }
  0x11   : > { %v242_v14 = vmul.f32 %v450_v4, %v582_v0  ;;  %v243_v15 = vmul.f32 %v451_v5, %v582_v0  ;;  %v244_v16 = vmul.f32 %v454_v6, %v582_v0  ;;  %v245_v17 = vmul.f32 %v455_v7, %v582_v0  ;;  %v520_v4 = vld [vmem:[%s577_s17 + $0x48] sm:$0xff]  }
  0x12   : > { %v246_v18 = vmul.f32 %v458_v10, %v582_v0  ;;  %v247_v19 = vmul.f32 %v459_v11, %v582_v0  ;;  %v248_v20 = vmul.f32 %v462_v12, %v582_v0  ;;  %v249_v21 = vmul.f32 %v463_v13, %v582_v0  ;;  %v521_v10 = vld [vmem:[%s577_s17 + $0x50] sm:$0xff]   ;;  %v522_v11 = vld [vmem:[%s577_s17 + $0x58] sm:$0xff]  }
  0x13   : > { %v281_v22 = vadd.f32 %v591_v9, %v242_v14  ;;  %v282_v23 = vadd.f32 %v591_v9, %v243_v15  ;;  %v283_v24 = vadd.f32 %v591_v9, %v244_v16  ;;  %v284_v25 = vadd.f32 %v591_v9, %v245_v17 }
  0x14   : > { %v285_v26 = vadd.f32 %v591_v9, %v246_v18  ;;  %v286_v27 = vadd.f32 %v591_v9, %v247_v19  ;;  %v287_v28 = vadd.f32 %v591_v9, %v248_v20  ;;  %v288_v29 = vadd.f32 %v591_v9, %v249_v21 }
  0x15   : > { %v313_v32 = vmax.f32 %v281_v22, 0.0  ;;  %v314_v33 = vmax.f32 %v282_v23, 0.0  ;;  %v315_v34 = vmax.f32 %v283_v24, 0.0  ;;  %v316_v35 = vmax.f32 %v284_v25, 0.0 }
  0x16   : > { %v317_v38 = vmax.f32 %v285_v26, 0.0  ;;  %v318_v39 = vmax.f32 %v286_v27, 0.0  ;;  %v319_v40 = vmax.f32 %v287_v28, 0.0  ;;  %v320_v41 = vmax.f32 %v288_v29, 0.0 }
  0x17   : > { %346 = vst.msk [vmem:[%s609_s25] sm:$0xff] %vm345_vm0, %v313_v32  ;;  %347 = vst.msk [vmem:[%s609_s25 + $0x8] sm:$0xff] %vm345_vm0, %v314_v33  ;;  %v466_v42 = vunpack.c.l.bf16 %v515_v30  ;;  %v467_v43 = vunpack.c.h.bf16 %v515_v30  ;;  %v470_v44 = vunpack.c.l.bf16 %v516_v31  ;;  %v471_v45 = vunpack.c.h.bf16 %v516_v31 }
  0x18   : > { %348 = vst.msk [vmem:[%s609_s25 + $0x10] sm:$0xff] %vm345_vm0, %v315_v34  ;;  %349 = vst.msk [vmem:[%s609_s25 + $0x18] sm:$0xff] %vm345_vm0, %v316_v35  ;;  %v474_v46 = vunpack.c.l.bf16 %v517_v36  ;;  %v475_v47 = vunpack.c.h.bf16 %v517_v36  ;;  %v478_v48 = vunpack.c.l.bf16 %v518_v37  ;;  %v479_v49 = vunpack.c.h.bf16 %v518_v37 }
  0x19   : > { %350 = vst.msk [vmem:[%s609_s25 + $0x20] sm:$0xff] %vm345_vm0, %v317_v38  ;;  %351 = vst.msk [vmem:[%s609_s25 + $0x28] sm:$0xff] %vm345_vm0, %v318_v39  ;;  %v250_v50 = vmul.f32 %v466_v42, %v582_v0  ;;  %v251_v51 = vmul.f32 %v467_v43, %v582_v0  ;;  %v252_v52 = vmul.f32 %v470_v44, %v582_v0  ;;  %v482_v16 = vunpack.c.l.bf16 %v519_v3 }
  0x1a   : > { %352 = vst.msk [vmem:[%s609_s25 + $0x30] sm:$0xff] %vm345_vm0, %v319_v40  ;;  %353 = vst.msk [vmem:[%s609_s25 + $0x38] sm:$0xff] %vm345_vm0, %v320_v41  ;;  %v253_v53 = vmul.f32 %v471_v45, %v582_v0  ;;  %v254_v54 = vmul.f32 %v474_v46, %v582_v0  ;;  %v255_v55 = vmul.f32 %v475_v47, %v582_v0  ;;  %v483_v17 = vunpack.c.h.bf16 %v519_v3  ;;  %v523_v40 = vld [vmem:[%s577_s17 + $0x60] sm:$0xff]   ;;  %v524_v41 = vld [vmem:[%s577_s17 + $0x68] sm:$0xff]  }
  0x1b   : > { %v256_v56 = vmul.f32 %v478_v48, %v582_v0  ;;  %v257_v57 = vmul.f32 %v479_v49, %v582_v0  ;;  %v289_v58 = vadd.f32 %v591_v9, %v250_v50  ;;  %v290_v59 = vadd.f32 %v591_v9, %v251_v51  ;;  %v525_v46 = vld [vmem:[%s577_s17 + $0x70] sm:$0xff]   ;;  %v526_v47 = vld [vmem:[%s577_s17 + $0x78] sm:$0xff]  }
  0x1c   : > { %v291_v60 = vadd.f32 %v591_v9, %v252_v52  ;;  %v292_v61 = vadd.f32 %v591_v9, %v253_v53  ;;  %v293_v62 = vadd.f32 %v591_v9, %v254_v54  ;;  %v294_v63 = vadd.f32 %v591_v9, %v255_v55 }
  0x1d   : > { %v295_v1 = vadd.f32 %v591_v9, %v256_v56  ;;  %v296_v2 = vadd.f32 %v591_v9, %v257_v57  ;;  %v321_v5 = vmax.f32 %v289_v58, 0.0  ;;  %v322_v6 = vmax.f32 %v290_v59, 0.0 }
  0x1e   : > { %v323_v7 = vmax.f32 %v291_v60, 0.0  ;;  %v324_v8 = vmax.f32 %v292_v61, 0.0  ;;  %v325_v12 = vmax.f32 %v293_v62, 0.0  ;;  %v326_v13 = vmax.f32 %v294_v63, 0.0 }
  0x1f   : > { %v327_v14 = vmax.f32 %v295_v1, 0.0  ;;  %v328_v15 = vmax.f32 %v296_v2, 0.0  ;;  %354 = vst.msk [vmem:[%s609_s25 + $0x40] sm:$0xff] %vm345_vm0, %v321_v5  ;;  %355 = vst.msk [vmem:[%s609_s25 + $0x48] sm:$0xff] %vm345_vm0, %v322_v6  ;;  %v486_v18 = vunpack.c.l.bf16 %v520_v4  ;;  %v487_v19 = vunpack.c.h.bf16 %v520_v4 }
  0x20   : > { %356 = vst.msk [vmem:[%s609_s25 + $0x50] sm:$0xff] %vm345_vm0, %v323_v7  ;;  %357 = vst.msk [vmem:[%s609_s25 + $0x58] sm:$0xff] %vm345_vm0, %v324_v8  ;;  %v490_v20 = vunpack.c.l.bf16 %v521_v10  ;;  %v491_v21 = vunpack.c.h.bf16 %v521_v10  ;;  %v494_v22 = vunpack.c.l.bf16 %v522_v11  ;;  %v495_v23 = vunpack.c.h.bf16 %v522_v11 }
  0x21   : > { %358 = vst.msk [vmem:[%s609_s25 + $0x60] sm:$0xff] %vm345_vm0, %v325_v12  ;;  %359 = vst.msk [vmem:[%s609_s25 + $0x68] sm:$0xff] %vm345_vm0, %v326_v13  ;;  %v258_v24 = vmul.f32 %v482_v16, %v582_v0  ;;  %v259_v25 = vmul.f32 %v483_v17, %v582_v0  ;;  %v260_v26 = vmul.f32 %v486_v18, %v582_v0  ;;  %v498_v52 = vunpack.c.l.bf16 %v523_v40 }
  0x22   : > { %360 = vst.msk [vmem:[%s609_s25 + $0x70] sm:$0xff] %vm345_vm0, %v327_v14  ;;  %361 = vst.msk [vmem:[%s609_s25 + $0x78] sm:$0xff] %vm345_vm0, %v328_v15  ;;  %v261_v27 = vmul.f32 %v487_v19, %v582_v0  ;;  %v262_v28 = vmul.f32 %v490_v20, %v582_v0  ;;  %v263_v29 = vmul.f32 %v491_v21, %v582_v0  ;;  %v499_v53 = vunpack.c.h.bf16 %v523_v40 }
  0x23   : > { %v264_v30 = vmul.f32 %v494_v22, %v582_v0  ;;  %v265_v31 = vmul.f32 %v495_v23, %v582_v0  ;;  %v297_v32 = vadd.f32 %v591_v9, %v258_v24  ;;  %v298_v33 = vadd.f32 %v591_v9, %v259_v25 }
  0x24   : > { %v299_v34 = vadd.f32 %v591_v9, %v260_v26  ;;  %v300_v35 = vadd.f32 %v591_v9, %v261_v27  ;;  %v301_v36 = vadd.f32 %v591_v9, %v262_v28  ;;  %v302_v37 = vadd.f32 %v591_v9, %v263_v29 }
  0x25   : > { %v303_v38 = vadd.f32 %v591_v9, %v264_v30  ;;  %v304_v39 = vadd.f32 %v591_v9, %v265_v31  ;;  %v329_v42 = vmax.f32 %v297_v32, 0.0  ;;  %v330_v43 = vmax.f32 %v298_v33, 0.0 }
  0x26   : > { %v331_v44 = vmax.f32 %v299_v34, 0.0  ;;  %v332_v45 = vmax.f32 %v300_v35, 0.0  ;;  %v333_v48 = vmax.f32 %v301_v36, 0.0  ;;  %v334_v49 = vmax.f32 %v302_v37, 0.0 }
  0x27   : > { %v335_v50 = vmax.f32 %v303_v38, 0.0  ;;  %v336_v51 = vmax.f32 %v304_v39, 0.0  ;;  %362 = vst.msk [vmem:[%s609_s25 + $0x80] sm:$0xff] %vm345_vm0, %v329_v42  ;;  %363 = vst.msk [vmem:[%s609_s25 + $0x88] sm:$0xff] %vm345_vm0, %v330_v43  ;;  %v502_v54 = vunpack.c.l.bf16 %v524_v41  ;;  %v503_v55 = vunpack.c.h.bf16 %v524_v41 }
  0x28   : > { %364 = vst.msk [vmem:[%s609_s25 + $0x90] sm:$0xff] %vm345_vm0, %v331_v44  ;;  %365 = vst.msk [vmem:[%s609_s25 + $0x98] sm:$0xff] %vm345_vm0, %v332_v45  ;;  %v506_v56 = vunpack.c.l.bf16 %v525_v46  ;;  %v507_v57 = vunpack.c.h.bf16 %v525_v46  ;;  %v510_v58 = vunpack.c.l.bf16 %v526_v47  ;;  %v511_v59 = vunpack.c.h.bf16 %v526_v47 }
  0x29   : > { %366 = vst.msk [vmem:[%s609_s25 + $0xa0] sm:$0xff] %vm345_vm0, %v333_v48  ;;  %367 = vst.msk [vmem:[%s609_s25 + $0xa8] sm:$0xff] %vm345_vm0, %v334_v49  ;;  %v266_v60 = vmul.f32 %v498_v52, %v582_v0  ;;  %v267_v61 = vmul.f32 %v499_v53, %v582_v0  ;;  %v268_v62 = vmul.f32 %v502_v54, %v582_v0 }
  0x2a   : > { %368 = vst.msk [vmem:[%s609_s25 + $0xb0] sm:$0xff] %vm345_vm0, %v335_v50  ;;  %369 = vst.msk [vmem:[%s609_s25 + $0xb8] sm:$0xff] %vm345_vm0, %v336_v51  ;;  %v269_v63 = vmul.f32 %v503_v55, %v582_v0  ;;  %v270_v1 = vmul.f32 %v506_v56, %v582_v0  ;;  %v271_v2 = vmul.f32 %v507_v57, %v582_v0 }
  0x2b   : > { %v272_v3 = vmul.f32 %v510_v58, %v582_v0  ;;  %v273_v4 = vmul.f32 %v511_v59, %v582_v0  ;;  %v305_v5 = vadd.f32 %v591_v9, %v266_v60  ;;  %v306_v6 = vadd.f32 %v591_v9, %v267_v61 }
  0x2c   : > { %v307_v7 = vadd.f32 %v591_v9, %v268_v62  ;;  %v308_v8 = vadd.f32 %v591_v9, %v269_v63  ;;  %v309_v10 = vadd.f32 %v591_v9, %v270_v1  ;;  %v310_v11 = vadd.f32 %v591_v9, %v271_v2 }
  0x2d   : > { %v311_v0 = vadd.f32 %v591_v9, %v272_v3  ;;  %v312_v12 = vadd.f32 %v591_v9, %v273_v4  ;;  %v337_v13 = vmax.f32 %v305_v5, 0.0  ;;  %v338_v14 = vmax.f32 %v306_v6, 0.0 }
  0x2e   : > { %v339_v15 = vmax.f32 %v307_v7, 0.0  ;;  %v340_v16 = vmax.f32 %v308_v8, 0.0  ;;  %v341_v17 = vmax.f32 %v309_v10, 0.0  ;;  %v342_v18 = vmax.f32 %v310_v11, 0.0 }
  0x2f   : > { %v343_v19 = vmax.f32 %v311_v0, 0.0  ;;  %v344_v20 = vmax.f32 %v312_v12, 0.0  ;;  %370 = vst.msk [vmem:[%s609_s25 + $0xc0] sm:$0xff] %vm345_vm0, %v337_v13  ;;  %371 = vst.msk [vmem:[%s609_s25 + $0xc8] sm:$0xff] %vm345_vm0, %v338_v14 }
  0x30   : > { %372 = vst.msk [vmem:[%s609_s25 + $0xd0] sm:$0xff] %vm345_vm0, %v339_v15  ;;  %373 = vst.msk [vmem:[%s609_s25 + $0xd8] sm:$0xff] %vm345_vm0, %v340_v16 }
  0x31   : > { %374 = vst.msk [vmem:[%s609_s25 + $0xe0] sm:$0xff] %vm345_vm0, %v341_v17  ;;  %375 = vst.msk [vmem:[%s609_s25 + $0xe8] sm:$0xff] %vm345_vm0, %v342_v18 }
  0x32   : > { %376 = vst.msk [vmem:[%s609_s25 + $0xf0] sm:$0xff] %vm345_vm0, %v343_v19  ;;  %377 = vst.msk [vmem:[%s609_s25 + $0xf8] sm:$0xff] %vm345_vm0, %v344_v20 }
  0x33 PF: > { %s13_s12 = sadd.s32 1, %s541_s12  }
  0x34   : > { %p10_p4 = scmp.ge.s32.totalorder %s13_s12, 4  }
  0x36   :  { %12 = sbr.rel (!%p10_p4) target bundleno = 1 (0x1), region = 62 }

// kernel: up_forward.5
= control target key start
LH: loop header
LB: loop body
LE: loop exit
PB: predicated region body
PF: predicated region fallthrough
CT: control target
= control target key end

     0   :  { %s3797_s12 = smov 0   ;;  %s5186_s0 = inlined_call_operand.vmem [shape: bf16[2,18,18,128], index: 0, kind: input, shape index: {}]   ;;  %s5187_s1 = inlined_call_operand.vmem [shape: bf16[1152,128], index: 1, kind: input, shape index: {}]   ;;  %s5188_s2 = inlined_call_operand.vmem [shape: bf16[2,16,16,128], index: 2, kind: output, shape index: {0}]   ;;  %s5189_s3 = inlined_call_operand.vmem [shape: f32[2,2,128], index: 3, kind: output, shape index: {1}]  }
   0x1 LB: > { %s2807_s13 = sadd.s32 4294967295, %s3775_s12   ;;  %p2811_p0 = scmp.ge.s32.totalorder %s3775_s12, 1  ;;  %s3775_s12 = sphi %s3797_s12, %s14_s12  }
   0x2   : > { %p140_p1 = scmp.lt.s32.totalorder %s3775_s12, 3 }
   0x4   : > { %p141_p2 = pnand %p2811_p0, %p140_p1 }
   0x6   : > { %144 = sbr.rel (%p141_p2) target bundleno = 553 (0x229), region = 28 }
   0xb   : > { %v3667_v0 = vld [vmem:[%s5187_s1 + $0x78] sm:$0xff]   ;;  %p168_p3 = scmp.lt.s32.totalorder %s2807_s13, 1  ;;  %v3669_v2 = vld [vmem:[%s5187_s1 + $0x70] sm:$0xff]   ;;  %v3671_v4 = vld [vmem:[%s5187_s1 + $0x68] sm:$0xff]   ;;  %vm237_vm0 = vsmask.f32 3328 }
   0xc   : > { %v3668_v1 = vld [vmem:[%s5187_s1 + $0x38] sm:$0xff]   ;;  %3122 = vmatprep.subr.bf16.mxu0 %v3667_v0  ;;  %3642 = vmatprep.subr.bf16.mxu1 %v3667_v0  ;;  %v3670_v3 = vld [vmem:[%s5187_s1 + $0x30] sm:$0xff]   ;;  %v3672_v5 = vld [vmem:[%s5187_s1 + $0x28] sm:$0xff]   ;;  %vm238_vm1 = vsmask.f32 7440  ;;  %vm672_vm3 = vcmask 1042432  }
   0xd   : > { %3123 = vmatpush3.bf16.msra.mxu0 %v3668_v1  ;;  %3650 = vmatpush3.bf16.msra.mxu1 %v3668_v1  ;;  %s5242_s13 = smov (!%p168_p3, %s2807_s13), 1  ;;  %v3673_v6 = vld [vmem:[%s5187_s1 + $0x60] sm:$0xff]   ;;  %v3675_v8 = vld [vmem:[%s5187_s1 + $0x58] sm:$0xff]   ;;  %v3677_v10 = vld [vmem:[%s5187_s1 + $0x50] sm:$0xff]   ;;  %vm673_vm4 = vcmask 1046532   ;;  %vm2558_vm6 = vcmask 1040384  }
   0xe   : > { %3124 = vmatprep.subr.bf16.mxu0 %v3669_v2  ;;  %3643 = vmatprep.subr.bf16.mxu1 %v3669_v2  ;;  %s3658_s28 = smul.u32 216, %s5242_s13  ;;  %v3674_v7 = vld [vmem:[%s5187_s1 + $0x20] sm:$0xff]   ;;  %v3676_v9 = vld [vmem:[%s5187_s1 + $0x18] sm:$0xff]   ;;  %v3678_v16 = vld [vmem:[%s5187_s1 + $0x10] sm:$0xff]   ;;  %s2815_s20 = sshll.u32 %s5242_s13, 1 }
   0xf   : > { %v3679_v21 = vld [vmem:[%s5187_s1 + $0x48] sm:$0xff]   ;;  %v3681_v36 = vld [vmem:[%s5187_s1 + $0x40] sm:$0xff]   ;;  %vm3883_vm2 = vmor %vm237_vm0, %vm238_vm1  ;;  %s181_s23 = scalar_lea.vmem %s5189_s3, %s2815_s20 }
  0x10   : > { %s3838_s8 = scalar_lea.vmem %s5186_s0, %s3658_s28  ;;  %v3680_v31 = vld [vmem:[%s5187_s1 + $0x8] sm:$0xff]   ;;  %v3682_v50 = vld [vmem:[%s5187_s1] sm:$0xff]   ;;  %v3685_v57 = vld [vmem:[%s5187_s1 + $0xf8] sm:$0xff]  }
  0x11   : > { %3125 = vmatpush3.bf16.msra.mxu0 %v3670_v3  ;;  %3651 = vmatpush3.bf16.msra.mxu1 %v3670_v3  ;;  %v3847_v11 = vld [vmem:[%s3838_s8] sm:$0xf]  ;;  %v3850_v12 = vld [vmem:[%s3838_s8 + $0x4] sm:$0xf]  ;;  %v3853_v13 = vld [vmem:[%s3838_s8 + $0x8] sm:$0x1] }
  0x12   : > { %3126 = vmatprep.subr.bf16.mxu0 %v3671_v4  ;;  %3644 = vmatprep.subr.bf16.mxu1 %v3671_v4  ;;  %v241_v14 = vshrl.u32 %v3847_v11, 16  ;;  %v244_v15 = vshll.u32 %v3847_v11, 16  ;;  %v250_v17 = vshll.u32 %v3850_v12, 16  ;;  %v254_v18 = vshrl.u32 %v3850_v12, 16  ;;  %v3864_v20 = vld [vmem:[%s3838_s8 + $0x90] sm:$0xf]  ;;  %vm4076_vm5 = vmor %vm672_vm3, %vm673_vm4 }
  0x13   : > { %v260_v19 = vshll.u32 %v3853_v13, 16  ;;  %v2816_v24 = vrot.slane %v3847_v11, 9  ;;  %v220_v25 = vld [vmem:[%s3838_s8 + $0x94] sm:$0xf]  ;;  %v677_v28 = vrot.slane %v3850_v12, 5  ;;  %v529_v30 = vshrl.u32 %v3864_v20, 16 }
  0x14   : > { %v243_v22 = vrot.slane %v241_v14, 4  ;;  %v246_v23 = vrot.slane %v244_v15, 5  ;;  %v252_v26 = vrot.slane %v250_v17, 5  ;;  %v256_v27 = vrot.slane %v254_v18, 4  ;;  %v221_v29 = vld [vmem:[%s3838_s8 + $0x98] sm:$0x1] }
  0x15   : > { %3127 = vmatpush3.bf16.msra.mxu0 %v3672_v5  ;;  %3652 = vmatpush3.bf16.msra.mxu1 %v3672_v5  ;;  %v262_v33 = vrot.slane %v260_v19, 5  ;;  %v532_v34 = vshll.u32 %v3864_v20, 16  ;;  %v538_v35 = vshll.u32 %v220_v25, 16  ;;  %v531_v39 = vrot.slane %v529_v30, 4  ;;  %v3686_v60 = vld [vmem:[%s5187_s1 + $0x178] sm:$0xff]  }
  0x16   : > { %3128 = vmatprep.subr.bf16.mxu0 %v3673_v6  ;;  %3645 = vmatprep.subr.bf16.mxu1 %v3673_v6  ;;  %v247_v32 = vor.u32 %v246_v23, %v243_v22  ;;  %v257_v38 = vor.u32 %v256_v27, %v252_v26  ;;  %v542_v40 = vshrl.u32 %v220_v25, 16  ;;  %v548_v41 = vshll.u32 %v221_v29, 16  ;;  %v3908_v61 = vld [vmem:[%s3838_s8 + $0xc] sm:$0xf]  ;;  %v3911_v62 = vld [vmem:[%s3838_s8 + $0x10] sm:$0xf] }
  0x17   : > { %v680_v43 = vrot.slane %v3853_v13, 5  ;;  %v534_v44 = vrot.slane %v532_v34, 5  ;;  %v540_v45 = vrot.slane %v538_v35, 5  ;;  %v3890_v47 = vrot.slane %v677_v28, 4  ;;  %v3687_v0 = vld [vmem:[%s5187_s1 + $0xb8] sm:$0xff]   ;;  %v3693_v35 = vld [vmem:[%s5187_s1 + $0xe8] sm:$0xff]  }
  0x18   : > { %v248_v42 = vrot.slane %v247_v32, 4  ;;  %v258_v46 = vrot.slane %v257_v38, 4  ;;  %v544_v48 = vrot.slane %v542_v40, 4  ;;  %v550_v49 = vrot.slane %v548_v41, 5  ;;  %v3688_v1 = vld [vmem:[%s5187_s1 + $0x138] sm:$0xff]   ;;  %v3717_v13 = vld [vmem:[%s5187_s1 + $0x120] sm:$0xff]  }
  0x19   : > { %3129 = vmatpush3.bf16.msra.mxu0 %v3674_v7  ;;  %3653 = vmatpush3.bf16.msra.mxu1 %v3674_v7  ;;  %v535_v52 = vor.u32 %v534_v44, %v531_v39  ;;  %v2834_v59 = vcombine.low %v3847_v11, %v3850_v12  ;;  %v3922_v2 = vld [vmem:[%s3838_s8 + $0x14] sm:$0x1]  ;;  %v265_v3 = vshrl.u32 %v3908_v61, 16  ;;  %v268_v4 = vshll.u32 %v3908_v61, 16  ;;  %v223_v14 = vld [vmem:[%s3838_s8 + $0xa0] sm:$0xf] }
  0x1a   : > { %3130 = vmatprep.subr.bf16.mxu0 %v3675_v8  ;;  %3646 = vmatprep.subr.bf16.mxu1 %v3675_v8  ;;  %v253_v51 = vsel %vm3883_vm2, %v248_v42, %v252_v26  ;;  %v263_v53 = vsel %vm3883_vm2, %v258_v46, %v262_v33  ;;  %v545_v54 = vor.u32 %v544_v48, %v540_v45  ;;  %v274_v5 = vshll.u32 %v3911_v62, 16  ;;  %v3690_v26 = vld [vmem:[%s5187_s1 + $0xb0] sm:$0xff]  }
  0x1b   : > { %v2850_v55 = vcombine.low %v253_v51, %v263_v53  ;;  %v536_v56 = vrot.slane %v535_v52, 4  ;;  %v3930_v7 = vcombine.low %v3864_v20, %v220_v25  ;;  %v278_v8 = vshrl.u32 %v3911_v62, 16  ;;  %v3696_v44 = vld [vmem:[%s5187_s1 + $0x170] sm:$0xff]   ;;  %v3694_v51 = vld [vmem:[%s5187_s1 + $0xa8] sm:$0xff]  }
  0x1c   : > { %v546_v58 = vrot.slane %v545_v54, 4  ;;  %v267_v17 = vrot.slane %v265_v3, 4  ;;  %v270_v18 = vrot.slane %v268_v4, 5  ;;  %v276_v19 = vrot.slane %v274_v5, 5  ;;  %v3698_v54 = vld [vmem:[%s5187_s1 + $0x130] sm:$0xff]  }
  0x1d   : > { %3131 = vmatpush3.bf16.msra.mxu0 %v3676_v9  ;;  %3654 = vmatpush3.bf16.msra.mxu1 %v3676_v9  ;;  %v541_v63 = vsel %vm3883_vm2, %v536_v56, %v540_v45  ;;  %v284_v9 = vshll.u32 %v3922_v2, 16  ;;  %v280_v20 = vrot.slane %v278_v8, 4  ;;  %v562_v29 = vshll.u32 %v223_v14, 16  ;;  %v3973_v56 = vld [vmem:[%s3838_s8 + $0x1c] sm:$0xf] }
  0x1e   : > { %3132 = vmatprep.subr.bf16.mxu0 %v3677_v10  ;;  %3647 = vmatprep.subr.bf16.mxu1 %v3677_v10  ;;  %v551_v6 = vsel %vm3883_vm2, %v546_v58, %v550_v49  ;;  %v222_v10 = vld [vmem:[%s3838_s8 + $0x9c] sm:$0xf]  ;;  %v271_v27 = vor.u32 %v270_v18, %v267_v17  ;;  %v566_v30 = vshrl.u32 %v223_v14, 16  ;;  %v3695_v58 = vld [vmem:[%s5187_s1 + $0xe0] sm:$0xff]   ;;  %v302_v4 = vshrl.u32 %v3973_v56, 16 }
  0x1f   : > { %1679 = vmatprep.mubr.bf16.mxu0 %v2850_v55  ;;  %v3936_v15 = vcombine.low %v541_v63, %v551_v6  ;;  %v286_v22 = vrot.slane %v284_v9, 5  ;;  %v553_v23 = vshrl.u32 %v222_v10, 16  ;;  %v556_v25 = vshll.u32 %v222_v10, 16  ;;  %v3970_v55 = vld [vmem:[%s3838_s8 + $0x18] sm:$0xf] }
  0x20   : > { %v281_v32 = vor.u32 %v280_v20, %v276_v19  ;;  %v564_v38 = vrot.slane %v562_v29, 5  ;;  %v568_v39 = vrot.slane %v566_v30, 4  ;;  %v292_v63 = vshll.u32 %v3970_v55, 16  ;;  %v225_v6 = vld [vmem:[%s3838_s8 + $0xa8] sm:$0xf]  ;;  %v3701_v29 = vld [vmem:[%s5187_s1 + $0xd8] sm:$0xff]  }
  0x21   : > { %3133 = vmatpush3.bf16.msra.mxu0 %v3678_v16  ;;  %3655 = vmatpush3.bf16.msra.mxu1 %v3678_v16  ;;  %5203 = vst [vmem:[#allocation2_spill] sm:$0xff] %v3936_v15  ;;  %v3689_v16 = vld [vmem:[%s5187_s1 + $0xf0] sm:$0xff]   ;;  %v555_v33 = vrot.slane %v553_v23, 4  ;;  %v558_v34 = vrot.slane %v556_v25, 5  ;;  %v3989_v3 = vcombine.low %v222_v10, %v223_v14  ;;  %v226_v8 = vld [vmem:[%s3838_s8 + $0xac] sm:$0xf] }
  0x22   : > { %3134 = vmatprep.subr.bf16.mxu0 %v3679_v21  ;;  %3648 = vmatprep.subr.bf16.mxu1 %v3679_v21  ;;  %v224_v21 = vld [vmem:[%s3838_s8 + $0xa4] sm:$0x1]  ;;  %v282_v41 = vrot.slane %v281_v32, 4  ;;  %v569_v46 = vor.u32 %v568_v39, %v564_v38  ;;  %v294_v18 = vrot.slane %v292_v63, 5  ;;  %v227_v10 = vld [vmem:[%s3838_s8 + $0xb0] sm:$0x1] }
  0x23   : > { %1775 = vmatprep.mubr.bf16.mxu1 %v3936_v15  ;;  %v559_v42 = vor.u32 %v558_v34, %v555_v33  ;;  %v304_v14 = vrot.slane %v302_v4, 4  ;;  %v577_v20 = vshrl.u32 %v225_v6, 16  ;;  %v586_v25 = vshll.u32 %v226_v8, 16  ;;  %v3702_v33 = vld [vmem:[%s5187_s1 + $0x98] sm:$0xff]   ;;  %v4417_v15 = vld [vmem:[%s3838_s8 + $0x8c] sm:$0x1] }
  0x24   : > { %v287_v48 = vsel %vm3883_vm2, %v282_v41, %v286_v22  ;;  %v570_v53 = vrot.slane %v569_v46, 4  ;;  %v580_v22 = vshll.u32 %v225_v6, 16  ;;  %v4019_v46 = vcombine.low %v225_v6, %v226_v8  ;;  %v3708_v6 = vld [vmem:[%s5187_s1 + $0x168] sm:$0xff]  }
  0x25   : > { %3135 = vmatpush3.bf16.msra.mxu0 %v3680_v31  ;;  %3656 = vmatpush3.bf16.msra.mxu1 %v3680_v31  ;;  %v572_v31 = vshll.u32 %v224_v21, 16  ;;  %v560_v49 = vrot.slane %v559_v42, 4 }
  0x26   : > { %3136 = vmatprep.subr.bf16.mxu0 %v3681_v36  ;;  %3649 = vmatprep.subr.bf16.mxu1 %v3681_v36  ;;  %v272_v36 = vrot.slane %v271_v27, 4  ;;  %v596_v27 = vshll.u32 %v227_v10, 16  ;;  %v582_v32 = vrot.slane %v580_v22, 5  ;;  %v3707_v10 = vld [vmem:[%s5187_s1 + $0xc8] sm:$0xff]   ;;  %v230_v22 = vld [vmem:[%s3838_s8 + $0xbc] sm:$0x1] }
  0x27   : > { %v574_v40 = vrot.slane %v572_v31, 5  ;;  %v579_v31 = vrot.slane %v577_v20, 4 }
  0x28   : > { %v277_v45 = vsel %vm3883_vm2, %v272_v36, %v276_v19  ;;  %v598_v41 = vrot.slane %v596_v27, 5 }
  0x29   : > { %3137 = vmatpush3.bf16.msra.mxu0 %v3682_v50  ;;  %3657 = vmatpush3.bf16.msra.mxu1 %v3682_v50  ;;  %v3959_v50 = vcombine.low %v3908_v61, %v3911_v62  ;;  %v3964_v52 = vcombine.low %v277_v45, %v287_v48  ;;  %v4017_v45 = vcombine.low %v3970_v55, %v3973_v56  ;;  %v4022_v48 = vld [vmem:[%s3838_s8 + $0x24] sm:$0xf] }
  0x2a   : > { %3234 = vmatprep.subr.bf16.mxu1 %v3685_v57  ;;  %3346 = vmatprep.subr.bf16.mxu0 %v3686_v60  ;;  %v565_v57 = vsel %vm3883_vm2, %v560_v49, %v564_v38  ;;  %v289_v60 = vshrl.u32 %v3970_v55, 16  ;;  %v3703_v38 = vld [vmem:[%s5187_s1 + $0xd0] sm:$0xff]   ;;  %v4025_v49 = vld [vmem:[%s3838_s8 + $0x28] sm:$0xf] }
  0x2b   : > { %v326_v4 = vshrl.u32 %v4025_v49, 16 }
  0x2c   : > { %1680 = vmatmul.mubr.bf16.vlgmr.msra.gmra.mxu0 %v2834_v59  ;;  %1776 = vmatmul.mubr.bf16.vlgmr.msra.gmra.mxu1 %v3930_v7  ;;  %v3981_v59 = vld [vmem:[%s3838_s8 + $0x20] sm:$0x1]  ;;  %v291_v17 = vrot.slane %v289_v60, 4  ;;  %v316_v60 = vshll.u32 %v4022_v48, 16 }
  0x2d   : > { %3235 = vmatpush3.bf16.msra.mxu1 %v3687_v0  ;;  %3347 = vmatpush3.bf16.msra.mxu0 %v3688_v1  ;;  %v298_v0 = vshll.u32 %v3973_v56, 16  ;;  %v575_v1 = vsel %vm3883_vm2, %v570_v53, %v574_v40  ;;  %v308_v5 = vshll.u32 %v3981_v59, 16  ;;  %v583_v40 = vor.u32 %v582_v32, %v579_v31 }
  0x2e   : > { %3236 = vmatprep.subr.bf16.mxu1 %v3689_v16  ;;  %3348 = vmatprep.subr.bf16.mxu0 %v3696_v44  ;;  %v3995_v9 = vcombine.low %v565_v57, %v575_v1  ;;  %v3697_v16 = vld [vmem:[%s5187_s1 + $0xa0] sm:$0xff]   ;;  %v295_v23 = vor.u32 %v294_v18, %v291_v17  ;;  %v4033_v57 = vld [vmem:[%s3838_s8 + $0x2c] sm:$0x1]  ;;  %v322_v1 = vshll.u32 %v4025_v49, 16  ;;  %v318_v17 = vrot.slane %v316_v60, 5 }
  0x2f   : > { %1687 = vmatprep.mubr.bf16.mxu0 %v3964_v52  ;;  %v300_v19 = vrot.slane %v298_v0, 5  ;;  %v310_v21 = vrot.slane %v308_v5, 5  ;;  %v584_v53 = vrot.slane %v583_v40, 4  ;;  %v4042_v5 = vld [vmem:[%s3838_s8 + $0xb4] sm:$0xf]  ;;  %v332_v18 = vshll.u32 %v4033_v57, 16 }
  0x30   : > { %5204 = vst [vmem:[#allocation3_spill] sm:$0xff] %v3995_v9  ;;  %1783 = vmatprep.mubr.bf16.mxu1 %v3995_v9  ;;  %v296_v34 = vrot.slane %v295_v23, 4  ;;  %v328_v20 = vrot.slane %v326_v4, 4  ;;  %v601_v23 = vshrl.u32 %v4042_v5, 16  ;;  %v3712_v60 = vld [vmem:[%s5187_s1 + $0x80] sm:$0xff]   ;;  %v4093_v4 = vcombine.low %v4022_v48, %v4025_v49 }
  0x31   : > { %3237 = vmatpush3.bf16.msra.mxu1 %v3690_v26  ;;  %3349 = vmatpush3.bf16.msra.mxu0 %v3698_v54  ;;  %v590_v26 = vshrl.u32 %v226_v8, 16  ;;  %v305_v30 = vor.u32 %v304_v14, %v300_v19  ;;  %v3704_v54 = vld [vmem:[%s5187_s1 + $0x90] sm:$0xff]  }
  0x32   : > { %3238 = vmatprep.subr.bf16.mxu1 %v3693_v35  ;;  %v588_v35 = vrot.slane %v586_v25, 5  ;;  %v301_v42 = vsel %vm3883_vm2, %v296_v34, %v300_v19  ;;  %v4051_v19 = vld [vmem:[%s3838_s8 + $0xb8] sm:$0xf]  ;;  %v3710_v25 = vld [vmem:[%s5187_s1 + $0x128] sm:$0xff]   ;;  %3350 = vmatprep.subr.bf16.mxu0 %v3708_v6  ;;  %v603_v32 = vrot.slane %v601_v23, 4  ;;  %5208 = vst [vmem:[#allocation5_spill] sm:$0xff] %v4093_v4 }
  0x33   : > { %v592_v36 = vrot.slane %v590_v26, 4  ;;  %v306_v39 = vrot.slane %v305_v30, 4  ;;  %v604_v30 = vshll.u32 %v4042_v5, 16  ;;  %v614_v34 = vshrl.u32 %v4051_v19, 16  ;;  %v3714_v6 = vld [vmem:[%s5187_s1 + $0x1f8] sm:$0xff]  }
  0x34   : > { %1688 = vmatmul.mubr.bf16.gmra.mxu0 %v3959_v50  ;;  %1784 = vmatmul.mubr.bf16.gmra.mxu1 %v3989_v3  ;;  %v589_v8 = vsel %vm3883_vm2, %v584_v53, %v588_v35  ;;  %v4144_v23 = vcombine.low %v4042_v5, %v4051_v19 }
  0x35   : > { %3239 = vmatpush3.bf16.msra.mxu1 %v3694_v51  ;;  %v593_v44 = vor.u32 %v592_v36, %v588_v35  ;;  %v311_v51 = vsel %vm3883_vm2, %v306_v39, %v310_v21  ;;  %v324_v21 = vrot.slane %v322_v1, 5  ;;  %3351 = vmatpush3.bf16.msra.mxu0 %v3710_v25  ;;  %v606_v36 = vrot.slane %v604_v30, 5  ;;  %v3709_v39 = vld [vmem:[%s5187_s1 + $0x88] sm:$0xff]  }
  0x36   : > { %3240 = vmatprep.subr.bf16.mxu1 %v3695_v58  ;;  %v313_v58 = vshrl.u32 %v4022_v48, 16  ;;  %v4037_v63 = vcombine.low %v301_v42, %v311_v51  ;;  %v3711_v51 = vld [vmem:[%s5187_s1 + $0xc0] sm:$0xff]  }
  0x37   : > { %v594_v0 = vrot.slane %v593_v44, 4  ;;  %v329_v31 = vor.u32 %v328_v20, %v324_v21  ;;  %v616_v44 = vrot.slane %v614_v34, 4  ;;  %v4122_v20 = vsel %vm4076_vm5, %v2816_v24, %v677_v28  ;;  %v3720_v24 = vld [vmem:[%s5187_s1 + $0x158] sm:$0xff]  }
  0x38   : > { %1695 = vmatprep.mubr.bf16.mxu0 %v4037_v63 }
  0x39   : > { %3241 = vmatpush3.bf16.msra.mxu1 %v3697_v16  ;;  %v315_v16 = vrot.slane %v313_v58, 4  ;;  %v599_v14 = vsel %vm3883_vm2, %v594_v0, %v598_v41  ;;  %v330_v41 = vrot.slane %v329_v31, 4 }
  0x3a   : > { %3242 = vmatprep.subr.bf16.mxu1 %v3701_v29  ;;  %v4064_v26 = vcombine.low %v589_v8, %v599_v14  ;;  %v334_v29 = vrot.slane %v332_v18, 5  ;;  %v4108_v18 = vsel %vm4076_vm5, %v3890_v47, %v680_v43  ;;  %v4111_v14 = vld [vmem:[%s3838_s8 + $0x30] sm:$0xf]  ;;  %v4131_v47 = vld [vmem:[%s3838_s8 + $0x38] sm:$0x1] }
  0x3b   : > { %v319_v27 = vor.u32 %v318_v17, %v315_v16  ;;  %v3716_v17 = vld [vmem:[%s5187_s1 + $0x160] sm:$0xff]   ;;  %v340_v12 = vshll.u32 %v4111_v14, 16 }
  0x3c   : > { %5205 = vst [vmem:[#allocation4_spill] sm:$0xff] %v4064_v26  ;;  %1696 = vmatmul.mubr.bf16.gmra.mxu0 %v4017_v45  ;;  %1791 = vmatprep.mubr.bf16.mxu1 %v4064_v26  ;;  %v335_v0 = vsel %vm3883_vm2, %v330_v41, %v334_v29 }
  0x3d   : > { %3243 = vmatpush3.bf16.msra.mxu1 %v3702_v33  ;;  %v610_v33 = vshll.u32 %v4051_v19, 16  ;;  %v320_v35 = vrot.slane %v319_v27, 4  ;;  %3352 = vmatprep.subr.bf16.mxu0 %v3716_v17  ;;  %v356_v27 = vshll.u32 %v4131_v47, 16  ;;  %v342_v31 = vrot.slane %v340_v12, 5  ;;  %v4191_v12 = vld [vmem:[%s3838_s8 + $0x50] sm:$0x1] }
  0x3e   : > { %3244 = vmatprep.subr.bf16.mxu1 %v3703_v38  ;;  %v620_v38 = vshll.u32 %v230_v22, 16  ;;  %1792 = vmatmul.mubr.bf16.gmra.mxu1 %v4019_v46  ;;  %v337_v22 = vshrl.u32 %v4111_v14, 16 }
  0x3f   : > { %v612_v42 = vrot.slane %v610_v33, 5  ;;  %v325_v53 = vsel %vm3883_vm2, %v320_v35, %v324_v21  ;;  %v4114_v21 = vld [vmem:[%s3838_s8 + $0x34] sm:$0xf]  ;;  %3353 = vmatpush3.bf16.msra.mxu0 %v3717_v13  ;;  %v358_v34 = vrot.slane %v356_v27, 5  ;;  %v2866_v35 = vcombine.low %v4122_v20, %v4108_v18 }
  0x40   : > { %v622_v58 = vrot.slane %v620_v38, 5  ;;  %v4098_v8 = vcombine.low %v325_v53, %v335_v0  ;;  %v346_v11 = vshll.u32 %v4114_v21, 16  ;;  %v350_v25 = vshrl.u32 %v4114_v21, 16  ;;  %3354 = vmatprep.subr.bf16.mxu0 %v3720_v24  ;;  %v4158_v38 = vld [vmem:[%s3838_s8 + $0x40] sm:$0xf] }
  0x41   : > { %3245 = vmatpush3.bf16.msra.mxu1 %v3704_v54  ;;  %v607_v54 = vor.u32 %v606_v36, %v603_v32  ;;  %v617_v1 = vor.u32 %v616_v44, %v612_v42  ;;  %v339_v30 = vrot.slane %v337_v22, 4  ;;  %v4155_v36 = vld [vmem:[%s3838_s8 + $0x3c] sm:$0xf]  ;;  %v4174_v0 = vld [vmem:[%s3838_s8 + $0x48] sm:$0xf]  ;;  %v2817_v22 = vrot.slane %v3908_v61, 9 }
  0x42   : > { %3246 = vmatprep.subr.bf16.mxu1 %v3707_v10  ;;  %1703 = vmatprep.mubr.bf16.mxu0 %v4098_v8  ;;  %v348_v32 = vrot.slane %v346_v11, 5  ;;  %v352_v33 = vrot.slane %v350_v25, 4  ;;  %v364_v44 = vshll.u32 %v4155_v36, 16  ;;  %v3725_v11 = vld [vmem:[%s5187_s1 + $0x150] sm:$0xff]   ;;  %v684_v25 = vrot.slane %v3911_v62, 5 }
  0x43   : > { %v608_v16 = vrot.slane %v607_v54, 4  ;;  %v618_v10 = vrot.slane %v617_v1, 4  ;;  %v343_v5 = vor.u32 %v342_v31, %v339_v30  ;;  %v4169_v54 = vcombine.low %v4111_v14, %v4114_v21 }
  0x44   : > { %1704 = vmatmul.mubr.bf16.gmra.mxu0 %v4093_v4  ;;  %v353_v19 = vor.u32 %v352_v33, %v348_v32  ;;  %v366_v17 = vrot.slane %v364_v44, 5  ;;  %v687_v27 = vrot.slane %v3922_v2, 5  ;;  %v385_v31 = vshrl.u32 %v4174_v0, 16  ;;  %v3721_v33 = vld [vmem:[%s5187_s1 + $0x1f0] sm:$0xff]  }
  0x45   : > { %3247 = vmatpush3.bf16.msra.mxu1 %v3709_v39  ;;  %v613_v43 = vsel %vm3883_vm2, %v608_v16, %v612_v42  ;;  %v623_v28 = vsel %vm3883_vm2, %v618_v10, %v622_v58  ;;  %v4161_v39 = vld [vmem:[%s3838_s8 + $0x44] sm:$0x1]  ;;  %v344_v41 = vrot.slane %v343_v5, 4  ;;  %v361_v42 = vshrl.u32 %v4155_v36, 16  ;;  %5210 = vst [vmem:[#allocation7_spill] sm:$0xff] %v4169_v54 }
  0x46   : > { %3248 = vmatprep.subr.bf16.mxu1 %v3711_v51  ;;  %v4148_v29 = vcombine.low %v613_v43, %v623_v28  ;;  %v370_v51 = vshll.u32 %v4158_v38, 16  ;;  %v354_v53 = vrot.slane %v353_v19, 4  ;;  %v374_v58 = vshrl.u32 %v4158_v38, 16  ;;  %v4185_v10 = vld [vmem:[%s3838_s8 + $0x4c] sm:$0xf]  ;;  %v3723_v19 = vld [vmem:[%s5187_s1 + $0x1b0] sm:$0xff]  }
  0x47   : > { %v349_v1 = vsel %vm3883_vm2, %v344_v41, %v348_v32  ;;  %v363_v16 = vrot.slane %v361_v42, 4  ;;  %v388_v32 = vshll.u32 %v4174_v0, 16  ;;  %v394_v61 = vshll.u32 %v4185_v10, 16  ;;  %v3726_v41 = vld [vmem:[%s5187_s1 + $0x110] sm:$0xff]  }
  0x48   : > { %5209 = vst [vmem:[#allocation6_spill] sm:$0xff] %v4148_v29  ;;  %1799 = vmatprep.mubr.bf16.mxu1 %v4148_v29  ;;  %v372_v18 = vrot.slane %v370_v51, 5  ;;  %v359_v20 = vsel %vm3883_vm2, %v354_v53, %v358_v34  ;;  %v376_v13 = vrot.slane %v374_v58, 4  ;;  %v685_v62 = vsel %vm4076_vm5, %v2817_v22, %v684_v25 }
  0x49   : > { %3249 = vmatpush3.bf16.msra.mxu1 %v3712_v60  ;;  %v380_v60 = vshll.u32 %v4161_v39, 16  ;;  %v4196_v24 = vcombine.low %v349_v1, %v359_v20  ;;  %v367_v28 = vor.u32 %v366_v17, %v363_v16  ;;  %v686_v5 = vrot.slane %v684_v25, 4  ;;  %v4235_v20 = vld [vmem:[%s3838_s8 + $0x58] sm:$0xf]  ;;  %v4244_v25 = vld [vmem:[%s3838_s8 + $0x5c] sm:$0x1] }
  0x4a   : > { %3458 = vmatprep.subr.bf16.mxu1 %v3714_v6  ;;  %1800 = vmatmul.mubr.bf16.gmra.mxu1 %v4144_v23  ;;  %v3715_v6 = vld [vmem:[%s5187_s1 + $0x1b8] sm:$0xff]   ;;  %v377_v30 = vor.u32 %v376_v13, %v372_v18  ;;  %v398_v2 = vshrl.u32 %v4185_v10, 16  ;;  %v387_v44 = vrot.slane %v385_v31, 4  ;;  %v390_v51 = vrot.slane %v388_v32, 5  ;;  %v3728_v13 = vld [vmem:[%s5187_s1 + $0x1e8] sm:$0xff]  }
  0x4b   : > { %1840 = vmatprep.mubr.bf16.mxu1 %v3959_v50  ;;  %v3722_v50 = vld [vmem:[%s5187_s1 + $0x118] sm:$0xff]   ;;  %v382_v43 = vrot.slane %v380_v60, 5  ;;  %1711 = vmatprep.mubr.bf16.mxu0 %v4196_v24  ;;  %v368_v34 = vrot.slane %v367_v28, 4  ;;  %v396_v53 = vrot.slane %v394_v61, 5  ;;  %v688_v60 = vsel %vm4076_vm5, %v686_v5, %v687_v27 }
  0x4c   : > { %3355 = vmatpush3.bf16.msra.mxu0 %v3722_v50  ;;  %v378_v42 = vrot.slane %v377_v30, 4  ;;  %v400_v50 = vrot.slane %v398_v2, 4  ;;  %v404_v1 = vshll.u32 %v4191_v12, 16  ;;  %v4227_v16 = vcombine.low %v4155_v36, %v4158_v38  ;;  %v4256_v2 = vld [vmem:[%s3838_s8 + $0x60] sm:$0xf] }
  0x4d   : > { %3356 = vmatprep.subr.bf16.mxu0 %v3725_v11  ;;  %1712 = vmatmul.mubr.bf16.gmra.mxu0 %v4169_v54  ;;  %v373_v58 = vsel %vm3883_vm2, %v368_v34, %v372_v18  ;;  %v391_v17 = vor.u32 %v390_v51, %v387_v44  ;;  %v4232_v18 = vld [vmem:[%s3838_s8 + $0x54] sm:$0xf]  ;;  %v2818_v28 = vrot.slane %v3970_v55, 9  ;;  %v691_v30 = vrot.slane %v3973_v56, 5  ;;  %v4261_v44 = vld [vmem:[%s3838_s8 + $0x64] sm:$0xf] }
  0x4e   : > { %5211 = vst [vmem:[#allocation8_spill] sm:$0xff] %v4227_v16  ;;  %v401_v11 = vor.u32 %v400_v50, %v396_v53  ;;  %v694_v31 = vrot.slane %v3981_v59, 5  ;;  %v409_v32 = vshrl.u32 %v4232_v18, 16  ;;  %v418_v55 = vshll.u32 %v4235_v20, 16  ;;  %v3729_v51 = vld [vmem:[%s5187_s1 + $0x1a8] sm:$0xff]  }
  0x4f   : > { %v392_v27 = vrot.slane %v391_v17, 4  ;;  %v422_v34 = vshrl.u32 %v4235_v20, 16  ;;  %v693_v5 = vrot.slane %v691_v30, 4  ;;  %v428_v50 = vshll.u32 %v4244_v25, 16 }
  0x50   : > { %3357 = vmatpush3.bf16.msra.mxu0 %v3726_v41  ;;  %v402_v61 = vrot.slane %v401_v11, 4  ;;  %v411_v56 = vrot.slane %v409_v32, 4  ;;  %v2819_v11 = vrot.slane %v4022_v48, 9  ;;  %v4292_v48 = vld [vmem:[%s3838_s8 + $0x68] sm:$0x1] }
  0x52   : > { %1841 = vmatmul.mubr.bf16.vlgmr.msra.gmra.mxu1 %v2866_v35  ;;  %v383_v35 = vsel %vm3883_vm2, %v378_v42, %v382_v43  ;;  %v406_v43 = vrot.slane %v404_v1, 5  ;;  %v420_v42 = vrot.slane %v418_v55, 5  ;;  %v3731_v1 = vld [vmem:[%s5187_s1 + $0x148] sm:$0xff]   ;;  %v442_v55 = vshll.u32 %v4261_v44, 16 }
  0x53   : > { %3459 = vmatpush3.bf16.msra.mxu1 %v3715_v6  ;;  %1848 = vmatprep.mubr.bf16.mxu1 %v4017_v45  ;;  %v4229_v6 = vcombine.low %v685_v62, %v688_v60  ;;  %v4240_v22 = vcombine.low %v373_v58, %v383_v35  ;;  %v397_v62 = vsel %vm3883_vm2, %v392_v27, %v396_v53  ;;  %v698_v27 = vrot.slane %v4025_v49, 5 }
  0x54   : > { %3460 = vmatprep.subr.bf16.mxu1 %v3721_v33  ;;  %v412_v33 = vshll.u32 %v4232_v18, 16  ;;  %v407_v59 = vsel %vm3883_vm2, %v402_v61, %v406_v43  ;;  %v4272_v58 = vcombine.low %v4174_v0, %v4185_v10  ;;  %v692_v60 = vsel %vm4076_vm5, %v2818_v28, %v691_v30  ;;  %v3732_v43 = vld [vmem:[%s5187_s1 + $0x108] sm:$0xff]   ;;  %3358 = vmatprep.subr.bf16.mxu0 %v3731_v1 }
  0x55   : > { %1719 = vmatprep.mubr.bf16.mxu0 %v4240_v22  ;;  %v4268_v53 = vcombine.low %v397_v62, %v407_v59  ;;  %v695_v35 = vsel %vm4076_vm5, %v693_v5, %v694_v31  ;;  %v430_v28 = vrot.slane %v428_v50, 5  ;;  %v701_v30 = vrot.slane %v4033_v57, 5  ;;  %3359 = vmatpush3.bf16.msra.mxu0 %v3732_v43  ;;  %v4303_v57 = vld [vmem:[%s3838_s8 + $0x70] sm:$0xf]  ;;  %v3734_v59 = vld [vmem:[%s5187_s1 + $0x1e0] sm:$0xff]  }
  0x56   : > { %v414_v41 = vrot.slane %v412_v33, 5  ;;  %1720 = vmatmul.mubr.bf16.gmra.mxu0 %v4227_v16  ;;  %v433_v31 = vshrl.u32 %v4256_v2, 16  ;;  %v436_v33 = vshll.u32 %v4256_v2, 16  ;;  %v700_v62 = vrot.slane %v698_v27, 4 }
  0x57   : > { %3461 = vmatpush3.bf16.msra.mxu1 %v3723_v19  ;;  %v424_v19 = vrot.slane %v422_v34, 4  ;;  %1727 = vmatprep.mubr.bf16.mxu0 %v4268_v53  ;;  %v4296_v34 = vcombine.low %v692_v60, %v695_v35  ;;  %v446_v49 = vshrl.u32 %v4261_v44, 16  ;;  %v444_v60 = vrot.slane %v442_v55, 5 }
  0x58   : > { %3462 = vmatprep.subr.bf16.mxu1 %v3728_v13  ;;  %v415_v17 = vor.u32 %v414_v41, %v411_v56  ;;  %v435_v5 = vrot.slane %v433_v31, 4  ;;  %v4300_v56 = vld [vmem:[%s3838_s8 + $0x6c] sm:$0xf]  ;;  %v452_v35 = vshll.u32 %v4292_v48, 16 }
  0x59   : > { %v425_v13 = vor.u32 %v424_v19, %v420_v42  ;;  %v448_v1 = vrot.slane %v446_v49, 4  ;;  %v460_v55 = vshll.u32 %v4300_v56, 16  ;;  %v470_v49 = vshrl.u32 %v4303_v57, 16 }
  0x5a   : > { %1849 = vmatmul.mubr.bf16.gmra.mxu1 %v4229_v6  ;;  %v416_v32 = vrot.slane %v415_v17, 4  ;;  %v699_v17 = vsel %vm4076_vm5, %v2819_v11, %v698_v27  ;;  %v708_v11 = vrot.slane %v4131_v47, 5  ;;  %v4328_v27 = vld [vmem:[%s3838_s8 + $0x74] sm:$0x1]  ;;  %v4340_v47 = vcombine.low %v4232_v18, %v4235_v20 }
  0x5b   : > { %1856 = vmatprep.mubr.bf16.mxu1 %v4093_v4  ;;  %3463 = vmatpush3.bf16.msra.mxu1 %v3729_v51  ;;  %v426_v61 = vrot.slane %v425_v13, 4  ;;  %v438_v51 = vrot.slane %v436_v33, 5  ;;  %v702_v13 = vsel %vm4076_vm5, %v700_v62, %v701_v30  ;;  %v449_v31 = vor.u32 %v448_v1, %v444_v60 }
  0x5c   : > { %v421_v41 = vsel %vm3883_vm2, %v416_v32, %v420_v42  ;;  %3464 = vmatprep.subr.bf16.mxu1 %v3734_v59  ;;  %v2820_v42 = vrot.slane %v4111_v14, 9  ;;  %v454_v32 = vrot.slane %v452_v35, 5  ;;  %v3736_v14 = vld [vmem:[%s5187_s1 + $0x140] sm:$0xff]   ;;  %v457_v33 = vshrl.u32 %v4300_v56, 16  ;;  %v4344_v59 = vld [vmem:[%s3838_s8 + $0x78] sm:$0xf] }
  0x5d   : > { %v431_v19 = vsel %vm3883_vm2, %v426_v61, %v430_v28  ;;  %v439_v43 = vor.u32 %v438_v51, %v435_v5  ;;  %v3735_v28 = vld [vmem:[%s5187_s1 + $0x1a0] sm:$0xff]   ;;  %v705_v61 = vrot.slane %v4114_v21, 5  ;;  %v466_v21 = vshll.u32 %v4303_v57, 16  ;;  %3360 = vmatprep.subr.bf16.mxu0 %v3736_v14 }
  0x5e   : > { %v4312_v50 = vcombine.low %v421_v41, %v431_v19  ;;  %1728 = vmatmul.mubr.bf16.gmra.mxu0 %v4272_v58  ;;  %v450_v62 = vrot.slane %v449_v31, 4  ;;  %v3737_v41 = vld [vmem:[%s5187_s1 + $0x100] sm:$0xff]   ;;  %v459_v51 = vrot.slane %v457_v33, 4  ;;  %v462_v1 = vrot.slane %v460_v55, 5  ;;  %v3739_v31 = vld [vmem:[%s5187_s1 + $0x1d8] sm:$0xff]  }
  0x5f   : > { %v440_v30 = vrot.slane %v439_v43, 4  ;;  %v707_v5 = vrot.slane %v705_v61, 4  ;;  %3465 = vmatpush3.bf16.msra.mxu1 %v3735_v28  ;;  %v468_v35 = vrot.slane %v466_v21, 5  ;;  %v4352_v43 = vld [vmem:[%s3838_s8 + $0x7c] sm:$0xf]  ;;  %v4357_v29 = vcombine.low %v699_v17, %v702_v13  ;;  %3361 = vmatpush3.bf16.msra.mxu0 %v3737_v41 }
  0x60   : > { %1735 = vmatprep.mubr.bf16.mxu0 %v4312_v50  ;;  %v455_v28 = vsel %vm3883_vm2, %v450_v62, %v454_v32  ;;  %v472_v14 = vrot.slane %v470_v49, 4  ;;  %v476_v26 = vshll.u32 %v4328_v27, 16  ;;  %3466 = vmatprep.subr.bf16.mxu1 %v3739_v31  ;;  %v4367_v21 = vld [vmem:[%s5187_s1 + $0x238] sm:$0xff]   ;;  %v4370_v13 = vld [vmem:[%s3838_s8 + $0x80] sm:$0x1]  ;;  %v481_v32 = vshrl.u32 %v4344_v59, 16 }
  0x61   : > { %v445_v19 = vsel %vm3883_vm2, %v440_v30, %v444_v60  ;;  %v463_v30 = vor.u32 %v462_v1, %v459_v51  ;;  %v484_v62 = vshll.u32 %v4344_v59, 16  ;;  %v712_v41 = vrot.slane %v4158_v38, 5  ;;  %v4381_v51 = vld [vmem:[%s3838_s8 + $0x84] sm:$0xf]  ;;  %v3741_v1 = vld [vmem:[%s5187_s1 + $0x198] sm:$0xff]   ;;  %3594 = vmatprep.subr.bf16.mxu0 %v4367_v21 }
  0x62   : > { %1857 = vmatmul.mubr.bf16.gmra.mxu1 %v4296_v34  ;;  %v4362_v60 = vcombine.low %v445_v19, %v455_v28  ;;  %v473_v33 = vor.u32 %v472_v14, %v468_v35  ;;  %v478_v55 = vrot.slane %v476_v26, 5  ;;  %v706_v26 = vsel %vm4076_vm5, %v2820_v42, %v705_v61  ;;  %v4392_v38 = vld [vmem:[%s3838_s8 + $0x88] sm:$0xf]  ;;  %v3742_v14 = vld [vmem:[%s5187_s1 + $0x1d0] sm:$0xff]  }
  0x63   : > { %1864 = vmatprep.mubr.bf16.mxu1 %v4169_v54  ;;  %v464_v17 = vrot.slane %v463_v30, 4  ;;  %v490_v19 = vshll.u32 %v4352_v43, 16  ;;  %v709_v31 = vsel %vm4076_vm5, %v707_v5, %v708_v11  ;;  %v483_v28 = vrot.slane %v481_v32, 4  ;;  %3467 = vmatpush3.bf16.msra.mxu1 %v3741_v1 }
  0x64   : > { %v474_v49 = vrot.slane %v473_v33, 4  ;;  %v486_v42 = vrot.slane %v484_v62, 5  ;;  %v494_v61 = vshrl.u32 %v4352_v43, 16  ;;  %v500_v11 = vshll.u32 %v4370_v13, 16  ;;  %3468 = vmatprep.subr.bf16.mxu1 %v3742_v14 }
  0x65   : > { %v469_v30 = vsel %vm3883_vm2, %v464_v17, %v468_v35  ;;  %v492_v9 = vrot.slane %v490_v19, 5  ;;  %v4405_v5 = vcombine.low %v4256_v2, %v4261_v44  ;;  %v2821_v35 = vrot.slane %v4155_v36, 9 }
  0x66   : > { %1736 = vmatmul.mubr.bf16.gmra.mxu0 %v4340_v47  ;;  %v479_v33 = vsel %vm3883_vm2, %v474_v49, %v478_v55  ;;  %v487_v32 = vor.u32 %v486_v42, %v483_v28  ;;  %v496_v62 = vrot.slane %v494_v61, 4  ;;  %v714_v17 = vrot.slane %v712_v41, 4  ;;  %v3744_v49 = vld [vmem:[%s5187_s1 + $0x190] sm:$0xff]  }
  0x67   : > { %1743 = vmatprep.mubr.bf16.mxu0 %v4362_v60  ;;  %v715_v55 = vrot.slane %v4161_v39, 5  ;;  %v4414_v19 = vcombine.low %v469_v30, %v479_v33  ;;  %v505_v28 = vshrl.u32 %v4381_v51, 16  ;;  %v502_v36 = vrot.slane %v500_v11, 5  ;;  %3469 = vmatpush3.bf16.msra.mxu1 %v3744_v49  ;;  %v3747_v33 = vld [vmem:[%s5187_s1 + $0x188] sm:$0xff]   ;;  %v3748_v49 = vld [vmem:[%s5187_s1 + $0x1c0] sm:$0xff]  }
  0x68   : > { %v497_v1 = vor.u32 %v496_v62, %v492_v9  ;;  %v508_v42 = vshll.u32 %v4381_v51, 16  ;;  %v514_v39 = vshll.u32 %v4392_v38, 16  ;;  %v518_v30 = vshrl.u32 %v4392_v38, 16 }
  0x69   : > { %v507_v14 = vrot.slane %v505_v28, 4  ;;  %v719_v11 = vrot.slane %v4185_v10, 5  ;;  %v716_v28 = vsel %vm4076_vm5, %v714_v17, %v715_v55  ;;  %v524_v54 = vshll.u32 %v4417_v15, 16 }
  0x6a   : > { %1865 = vmatmul.mubr.bf16.gmra.mxu1 %v4357_v29  ;;  %v498_v61 = vrot.slane %v497_v1, 4  ;;  %v516_v62 = vrot.slane %v514_v39, 5  ;;  %v713_v1 = vsel %vm4076_vm5, %v2821_v35, %v712_v41  ;;  %v3750_v41 = vld [vmem:[%s5187_s1 + $0x180] sm:$0xff]   ;;  %v4451_v35 = vcombine.low %v4300_v56, %v4303_v57 }
  0x6b   : > { %1872 = vmatprep.mubr.bf16.mxu1 %v4227_v16  ;;  %v4407_v16 = vcombine.low %v706_v26, %v709_v31  ;;  %v3745_v26 = vld [vmem:[%s5187_s1 + $0x1c8] sm:$0xff]   ;;  %v488_v31 = vrot.slane %v487_v32, 4  ;;  %v510_v32 = vrot.slane %v508_v42, 5  ;;  %v4453_v17 = vcombine.low %v713_v1, %v716_v28 }
  0x6c   : > { %3470 = vmatprep.subr.bf16.mxu1 %v3745_v26  ;;  %v520_v26 = vrot.slane %v518_v30, 4  ;;  %v503_v42 = vsel %vm3883_vm2, %v498_v61, %v502_v36  ;;  %v2822_v55 = vrot.slane %v4174_v0, 9  ;;  %v722_v36 = vrot.slane %v4191_v12, 5 }
  0x6d   : > { %v493_v10 = vsel %vm3883_vm2, %v488_v31, %v492_v9  ;;  %v511_v39 = vor.u32 %v510_v32, %v507_v14  ;;  %3471 = vmatpush3.bf16.msra.mxu1 %v3747_v33  ;;  %v721_v31 = vrot.slane %v719_v11, 4  ;;  %v526_v61 = vrot.slane %v524_v54, 5 }
  0x6e   : > { %1744 = vmatmul.mubr.bf16.gmra.mxu0 %v4405_v5  ;;  %v521_v4 = vor.u32 %v520_v26, %v516_v62  ;;  %3472 = vmatprep.subr.bf16.mxu1 %v3748_v49  ;;  %v4456_v9 = vcombine.low %v493_v10, %v503_v42  ;;  %v720_v0 = vsel %vm4076_vm5, %v2822_v55, %v719_v11  ;;  %v726_v12 = vrot.slane %v4235_v20, 5 }
  0x6f   : > { %1751 = vmatprep.mubr.bf16.mxu0 %v4414_v19  ;;  %v512_v14 = vrot.slane %v511_v39, 4  ;;  %v723_v33 = vsel %vm4076_vm5, %v721_v31, %v722_v36  ;;  %v4474_v32 = vcombine.low %v4344_v59, %v4352_v43  ;;  %v2823_v1 = vrot.slane %v4232_v18, 9 }
  0x70   : > { %v522_v30 = vrot.slane %v521_v4, 4  ;;  %v4476_v49 = vcombine.low %v720_v0, %v723_v33  ;;  %v728_v28 = vrot.slane %v726_v12, 4  ;;  %v729_v26 = vrot.slane %v4244_v25, 5 }
  0x71   : > { %3473 = vmatpush3.bf16.msra.mxu1 %v3750_v41  ;;  %v517_v4 = vsel %vm3883_vm2, %v512_v14, %v516_v62  ;;  %v727_v20 = vsel %vm4076_vm5, %v2823_v1, %v726_v12  ;;  %v733_v18 = vrot.slane %v4261_v44, 5  ;;  %v4493_v10 = vcombine.low %v4381_v51, %v4392_v38  ;;  %v3743_v14 = vld [vmem:[%s5187_s1 + $0x230] sm:$0xff]   ;;  %v3752_v12 = vld [vmem:[%s5187_s1 + $0x218] sm:$0xff]  }
  0x72   : > { %1873 = vmatmul.mubr.bf16.gmra.mxu1 %v4407_v16  ;;  %v527_v54 = vsel %vm3883_vm2, %v522_v30, %v526_v61  ;;  %v730_v62 = vsel %vm4076_vm5, %v728_v28, %v729_v26  ;;  %v2824_v42 = vrot.slane %v4256_v2, 9  ;;  %v736_v41 = vrot.slane %v4292_v48, 5  ;;  %v3757_v26 = vld [vmem:[%s3838_s8 + $0x94] sm:$0xf] }
  0x73   : > { %1880 = vmatprep.mubr.bf16.mxu1 %v4272_v58  ;;  %v4479_v11 = vcombine.low %v517_v4, %v527_v54  ;;  %v4495_v25 = vcombine.low %v727_v20, %v730_v62  ;;  %v735_v39 = vrot.slane %v733_v18, 4  ;;  %v740_v31 = vrot.slane %v4303_v57, 5  ;;  %v3754_v62 = vld [vmem:[%s5187_s1 + $0x208] sm:$0xff]  }
  0x74   : > { %v734_v44 = vsel %vm4076_vm5, %v2824_v42, %v733_v18  ;;  %v2825_v48 = vrot.slane %v4300_v56, 9  ;;  %v743_v61 = vrot.slane %v4328_v27, 5  ;;  %v747_v57 = vrot.slane %v4352_v43, 5  ;;  %v3746_v27 = vld [vmem:[%s5187_s1 + $0x228] sm:$0xff]   ;;  %v3749_v43 = vld [vmem:[%s5187_s1 + $0x220] sm:$0xff]  }
  0x75   : > { %v737_v55 = vsel %vm4076_vm5, %v735_v39, %v736_v41  ;;  %v742_v36 = vrot.slane %v740_v31, 4  ;;  %v750_v0 = vrot.slane %v4370_v13, 5  ;;  %v754_v33 = vrot.slane %v4392_v38, 5  ;;  %v3753_v38 = vld [vmem:[%s5187_s1 + $0x210] sm:$0xff]  }
  0x76   : > { %1752 = vmatmul.mubr.bf16.gmra.mxu0 %v4451_v35  ;;  %v4508_v2 = vcombine.low %v734_v44, %v737_v55  ;;  %v749_v30 = vrot.slane %v747_v57, 4  ;;  %v2827_v54 = vrot.slane %v4381_v51, 9  ;;  %v757_v28 = vrot.slane %v4417_v15, 5  ;;  %v3758_v42 = vld [vmem:[%s3838_s8 + $0x90] sm:$0xf] }
  0x77   : > { %1759 = vmatprep.mubr.bf16.mxu0 %v4456_v9  ;;  %v744_v56 = vsel %vm4076_vm5, %v742_v36, %v743_v61  ;;  %v756_v1 = vrot.slane %v754_v33, 4  ;;  %v761_v20 = vrot.slane %v3757_v26, 5  ;;  %v2828_v39 = vrot.slane %v3758_v42, 9  ;;  %v3759_v44 = vld [vmem:[%s3838_s8 + $0x98] sm:$0x1] }
  0x78   : > { %v751_v13 = vsel %vm4076_vm5, %v749_v30, %v750_v0  ;;  %v755_v51 = vsel %vm4076_vm5, %v2827_v54, %v754_v33  ;;  %v764_v55 = vrot.slane %v3759_v44, 5  ;;  %v3760_v61 = vld [vmem:[%s3838_s8 + $0xa0] sm:$0xf]  ;;  %v3766_v26 = vld [vmem:[%s3838_s8 + $0xb8] sm:$0xf] }
  0x79   : > { %v758_v15 = vsel %vm4076_vm5, %v756_v1, %v757_v28  ;;  %v763_v41 = vrot.slane %v761_v20, 4  ;;  %v3765_v28 = vld [vmem:[%s3838_s8 + $0xb0] sm:$0x1]  ;;  %v4612_v42 = vld [vmem:[%s3838_s8 + $0xc4] sm:$0xf] }
  0x7a   : > { %1881 = vmatmul.mubr.bf16.gmra.mxu1 %v4453_v17  ;;  %v4566_v18 = vcombine.low %v755_v51, %v758_v15  ;;  %v3767_v44 = vld [vmem:[%s3838_s8 + $0xb4] sm:$0xf] }
  0x7b   : > { %1888 = vmatprep.mubr.bf16.mxu1 %v4340_v47  ;;  %v765_v36 = vsel %vm4076_vm5, %v763_v41, %v764_v55  ;;  %v2831_v55 = vrot.slane %v3767_v44, 9  ;;  %v816_v44 = vrot.slane %v4612_v42, 5 }
  0x7e   : > { %1760 = vmatmul.mubr.bf16.gmra.mxu0 %v4474_v32 }
  0x7f   : > { %1767 = vmatprep.mubr.bf16.mxu0 %v4479_v11 }
  0x82   : > { %1889 = vmatmul.mubr.bf16.gmra.mxu1 %v4476_v49 }
  0x83   : > { %1896 = vmatprep.mubr.bf16.mxu1 %v4405_v5 }
  0x86   : > { %1768 = vmatmul.mubr.bf16.gmra.mxu0 %v4493_v10 }
  0x87   : > { %2001 = vmatprep.mubr.bf16.mxu0 %v4229_v6  ;;  %v741_v6 = vsel %vm4076_vm5, %v2825_v48, %v740_v31  ;;  %v3755_v31 = vld [vmem:[%s5187_s1 + $0x200] sm:$0xff]   ;;  %v762_v48 = vsel %vm4076_vm5, %v2828_v39, %v761_v20  ;;  %v782_v20 = vrot.slane %v3766_v26, 5  ;;  %v797_v26 = vshll.u32 %v4612_v42, 16 }
  0x8a   : > { %1897 = vmatmul.mubr.bf16.gmra.mxu1 %v4495_v25 }
  0x8b   : > { %1904 = vmatprep.mubr.bf16.mxu1 %v4451_v35 }
  0x8e   : > { %2002 = vmatmul.mubr.bf16.vlgmr.msra.gmra.mxu0 %v3964_v52  ;;  %v4528_v52 = vcombine.low %v741_v6, %v744_v56  ;;  %v4582_v6 = vcombine.low %v762_v48, %v765_v36  ;;  %v3761_v56 = vld [vmem:[%s3838_s8 + $0x9c] sm:$0xf] }
  0x8f   : > { %3595 = vmatpush3.bf16.msra.mxu0 %v4367_v21  ;;  %2009 = vmatprep.mubr.bf16.mxu0 %v4296_v34  ;;  %v2826_v21 = vrot.slane %v4344_v59, 9  ;;  %v3768_v48 = vld [vmem:[%s3838_s8 + $0xbc] sm:$0x1] }
  0x90   : > { %3596 = vmatprep.subr.bf16.mxu0 %v3743_v14  ;;  %v785_v36 = vrot.slane %v3768_v48, 5 }
  0x91   : > { %v748_v59 = vsel %vm4076_vm5, %v2826_v21, %v747_v57  ;;  %v2829_v57 = vrot.slane %v3761_v56, 9  ;;  %v3762_v21 = vld [vmem:[%s3838_s8 + $0xa4] sm:$0x1] }
  0x92   : > { %1905 = vmatmul.mubr.bf16.gmra.mxu1 %v4508_v2  ;;  %v4547_v4 = vcombine.low %v748_v59, %v751_v13  ;;  %v771_v30 = vrot.slane %v3762_v21, 5  ;;  %v3763_v59 = vld [vmem:[%s3838_s8 + $0xac] sm:$0xf] }
  0x93   : > { %1912 = vmatprep.mubr.bf16.mxu1 %v4474_v32  ;;  %3597 = vmatpush3.bf16.msra.mxu0 %v3743_v14  ;;  %v768_v14 = vrot.slane %v3760_v61, 5  ;;  %v775_v13 = vrot.slane %v3763_v59, 5  ;;  %v783_v61 = vsel %vm4076_vm5, %v2831_v55, %v782_v20 }
  0x94   : > { %3598 = vmatprep.subr.bf16.mxu0 %v3746_v27 }
  0x95   : > { %v769_v0 = vsel %vm4076_vm5, %v2829_v57, %v768_v14  ;;  %v777_v1 = vrot.slane %v775_v13, 4  ;;  %v5212_v57 = vld [vmem:[#allocation5_spill] sm:$0xff] }
  0x96   : > { %2010 = vmatmul.mubr.bf16.gmra.mxu0 %v4037_v63 }
  0x97   : > { %2017 = vmatprep.mubr.bf16.mxu0 %v4357_v29  ;;  %3599 = vmatpush3.bf16.msra.mxu0 %v3746_v27  ;;  %v770_v27 = vrot.slane %v768_v14, 4 }
  0x98   : > { %3600 = vmatprep.subr.bf16.mxu0 %v3749_v43 }
  0x9a   : > { %1913 = vmatmul.mubr.bf16.gmra.mxu1 %v4528_v52 }
  0x9b   : > { %1920 = vmatprep.mubr.bf16.mxu1 %v4493_v10  ;;  %3601 = vmatpush3.bf16.msra.mxu0 %v3749_v43  ;;  %v772_v43 = vsel %vm4076_vm5, %v770_v27, %v771_v30  ;;  %v5213_v27 = vld [vmem:[#allocation7_spill] sm:$0xff] }
  0x9c   : > { %3602 = vmatprep.subr.bf16.mxu0 %v3752_v12  ;;  %v4595_v33 = vcombine.low %v769_v0, %v772_v43 }
  0x9e   : > { %2018 = vmatmul.mubr.bf16.gmra.mxu0 %v4098_v8 }
  0x9f   : > { %2025 = vmatprep.mubr.bf16.mxu0 %v4407_v16  ;;  %3603 = vmatpush3.bf16.msra.mxu0 %v3752_v12  ;;  %v3764_v12 = vld [vmem:[%s3838_s8 + $0xa8] sm:$0xf] }
  0xa0   : > { %3604 = vmatprep.subr.bf16.mxu0 %v3753_v38  ;;  %v2830_v54 = vrot.slane %v3764_v12, 9 }
  0xa2   : > { %1921 = vmatmul.mubr.bf16.gmra.mxu1 %v4547_v4  ;;  %v776_v51 = vsel %vm4076_vm5, %v2830_v54, %v775_v13 }
  0xa3   : > { %1928 = vmatprep.mubr.bf16.mxu1 %v3930_v7  ;;  %3605 = vmatpush3.bf16.msra.mxu0 %v3753_v38  ;;  %v778_v38 = vrot.slane %v3765_v28, 5  ;;  %v5216_v28 = vld [vmem:[#allocation3_spill] sm:$0xff] }
  0xa4   : > { %3606 = vmatprep.subr.bf16.mxu0 %v3754_v62 }
  0xa5   : > { %v779_v15 = vsel %vm4076_vm5, %v777_v1, %v778_v38 }
  0xa6   : > { %2026 = vmatmul.mubr.bf16.gmra.mxu0 %v4196_v24  ;;  %v4614_v39 = vcombine.low %v776_v51, %v779_v15  ;;  %v801_v15 = vshrl.u32 %v4612_v42, 16 }
  0xa7   : > { %2033 = vmatprep.mubr.bf16.mxu0 %v4453_v17  ;;  %3607 = vmatpush3.bf16.msra.mxu0 %v3754_v62  ;;  %v4609_v62 = vld [vmem:[%s3838_s8 + $0xc0] sm:$0xf] }
  0xa8   : > { %3608 = vmatprep.subr.bf16.mxu0 %v3755_v31  ;;  %v4618_v41 = vcombine.low %v4609_v62, %v4612_v42  ;;  %v788_v38 = vshrl.u32 %v4609_v62, 16  ;;  %v791_v51 = vshll.u32 %v4609_v62, 16  ;;  %v5217_v42 = vld [vmem:[#allocation4_spill] sm:$0xff] }
  0xaa   : > { %1929 = vmatmul.mubr.bf16.gmra.mxu1 %v4566_v18 }
  0xab   : > { %1936 = vmatprep.mubr.bf16.mxu1 %v3989_v3  ;;  %3609 = vmatpush3.bf16.msra.mxu0 %v3755_v31  ;;  %v784_v31 = vrot.slane %v782_v20, 4 }
  0xad   : > { %v786_v14 = vsel %vm4076_vm5, %v784_v31, %v785_v36 }
  0xae   : > { %2034 = vmatmul.mubr.bf16.gmra.mxu0 %v4240_v22  ;;  %v4630_v56 = vcombine.low %v783_v61, %v786_v14  ;;  %v790_v61 = vrot.slane %v788_v38, 4  ;;  %v793_v14 = vrot.slane %v791_v51, 5 }
  0xaf   : > { %2041 = vmatprep.mubr.bf16.mxu0 %v4476_v49 }
  0xb2   : > { %1937 = vmatmul.mubr.bf16.gmra.mxu1 %v4582_v6 }
  0xb3   : > { %1944 = vmatprep.mubr.bf16.mxu1 %v4019_v46 }
  0xb6   : > { %2042 = vmatmul.mubr.bf16.gmra.mxu0 %v4268_v53 }
  0xb7   : > { %2049 = vmatprep.mubr.bf16.mxu0 %v4495_v25 }
  0xba   : > { %1945 = vmatmul.mubr.bf16.gmra.mxu1 %v4595_v33 }
  0xbb   : > { %1952 = vmatprep.mubr.bf16.mxu1 %v4144_v23 }
  0xbe   : > { %2050 = vmatmul.mubr.bf16.gmra.mxu0 %v4312_v50 }
  0xbf   : > { %2057 = vmatprep.mubr.bf16.mxu0 %v4508_v2 }
  0xc2   : > { %1953 = vmatmul.mubr.bf16.gmra.mxu1 %v4614_v39 }
  0xc3   : > { %1960 = vmatprep.mubr.bf16.mxu1 %v4618_v41 }
  0xc6   : > { %2058 = vmatmul.mubr.bf16.gmra.mxu0 %v4362_v60 }
  0xc7   : > { %2065 = vmatprep.mubr.bf16.mxu0 %v4528_v52 }
  0xca   : > { %1961 = vmatmul.mubr.bf16.gmra.mxu1 %v4630_v56 }
  0xcb   : > { %2162 = vmatprep.mubr.bf16.mxu1 %v4037_v63  ;;  %v5215_v63 = vld [vmem:[#allocation8_spill] sm:$0xff] }
  0xce   : > { %2066 = vmatmul.mubr.bf16.gmra.mxu0 %v4414_v19 }
  0xcf   : > { %2073 = vmatprep.mubr.bf16.mxu0 %v4547_v4 }
  0xd2   : > { %2163 = vmatmul.mubr.bf16.vlgmr.msra.gmra.mxu1 %v4017_v45  ;;  %v5214_v45 = vld [vmem:[#allocation2_spill] sm:$0xff] }
  0xd3   : > { %2170 = vmatprep.mubr.bf16.mxu1 %v4098_v8 }
  0xd6   : > { %2074 = vmatmul.mubr.bf16.gmra.mxu0 %v4456_v9 }
  0xd7   : > { %2081 = vmatprep.mubr.bf16.mxu0 %v4566_v18 }
  0xda   : > { %2171 = vmatmul.mubr.bf16.gmra.mxu1 %v5212_v57  ;;  %v799_v57 = vrot.slane %v797_v26, 5 }
  0xdb   : > { %2178 = vmatprep.mubr.bf16.mxu1 %v4196_v24 }
  0xde   : > { %2082 = vmatmul.mubr.bf16.gmra.mxu0 %v4479_v11 }
  0xdf   : > { %2089 = vmatprep.mubr.bf16.mxu0 %v4582_v6 }
  0xe2   : > { %2179 = vmatmul.mubr.bf16.gmra.mxu1 %v5213_v27  ;;  %v803_v27 = vrot.slane %v801_v15, 4 }
  0xe3   : > { %2186 = vmatprep.mubr.bf16.mxu1 %v4240_v22 }
  0xe6   : > { %2090 = vmatmul.mubr.bf16.gmra.mxu0 %v5214_v45 }
  0xe7   : > { %2097 = vmatprep.mubr.bf16.mxu0 %v4595_v33 }
  0xea   : > { %2187 = vmatmul.mubr.bf16.gmra.mxu1 %v5215_v63 }
  0xeb   : > { %2194 = vmatprep.mubr.bf16.mxu1 %v4268_v53 }
  0xec   : > { %v3138_v8 = vpop.f32.mrf.mxu0  ;;  %v3210_v21 = vpop.f32.mrf.mxu1 }
  0xee   : > { %v3139_v30 = vpop.f32.mrf.mxu0  ;;  %v3211_v24 = vpop.f32.mrf.mxu1  ;;  %2098 = vmatmul.mubr.bf16.gmra.mxu0 %v5216_v28 }
  0xef   : > { %v4652_v0 = vadd.f32 %v3139_v30, %v3138_v8  ;;  %v4654_v43 = vadd.f32 %v3211_v24, %v3210_v21  ;;  %2105 = vmatprep.mubr.bf16.mxu0 %v4614_v39  ;;  %v818_v21 = vrot.slane %v816_v44, 4 }
  0xf0   : > { %v3141_v59 = vpop.f32.mrf.mxu0  ;;  %v3213_v13 = vpop.f32.mrf.mxu1 }
  0xf2   : > { %v3142_v12 = vpop.f32.mrf.mxu0  ;;  %v3214_v22 = vpop.f32.mrf.mxu1  ;;  %2195 = vmatmul.mubr.bf16.gmra.mxu1 %v4272_v58  ;;  %v233_v58 = vld [vmem:[%s3838_s8 + $0xc8] sm:$0x1] }
  0xf3   : > { %v4656_v54 = vadd.f32 %v3142_v12, %v3141_v59  ;;  %v4658_v1 = vadd.f32 %v3214_v22, %v3213_v13  ;;  %2202 = vmatprep.mubr.bf16.mxu1 %v4312_v50  ;;  %v2832_v50 = vrot.slane %v4609_v62, 9  ;;  %v819_v30 = vrot.slane %v233_v58, 5 }
  0xf4   : > { %v3144_v53 = vpop.f32.mrf.mxu0  ;;  %v3216_v55 = vpop.f32.mrf.mxu1  ;;  %v794_v12 = vor.u32 %v793_v14, %v790_v61  ;;  %v804_v22 = vor.u32 %v803_v27, %v799_v57 }
  0xf5   : > { %v817_v62 = vsel %vm4076_vm5, %v2832_v50, %v816_v44  ;;  %v820_v51 = vsel %vm4076_vm5, %v818_v21, %v819_v30 }
  0xf6   : > { %v3145_v20 = vpop.f32.mrf.mxu0  ;;  %v3217_v36 = vpop.f32.mrf.mxu1  ;;  %2106 = vmatmul.mubr.bf16.gmra.mxu0 %v5217_v42 }
  0xf7   : > { %v4669_v31 = vadd.f32 %v3145_v20, %v3144_v53  ;;  %v4672_v63 = vadd.f32 %v3217_v36, %v3216_v55  ;;  %2113 = vmatprep.mubr.bf16.mxu0 %v4630_v56  ;;  %v807_v53 = vshll.u32 %v233_v58, 16  ;;  %v4687_v20 = vcombine.low %v817_v62, %v820_v51  ;;  %v5218_v58 = vld [vmem:[#allocation6_spill] sm:$0xff] }
  0xf8   : > { %v3147_v48 = vpop.f32.mrf.mxu0  ;;  %v3219_v24 = vpop.f32.mrf.mxu1  ;;  %v805_v55 = vrot.slane %v804_v22, 4 }
  0xfa   : > { %v3148_v8 = vpop.f32.mrf.mxu0  ;;  %2203 = vmatmul.mubr.bf16.gmra.mxu1 %v4340_v47  ;;  %v3220_v13 = vpop.f32.mrf.mxu1  ;;  %v795_v47 = vrot.slane %v794_v12, 4 }
  0xfb   : > { %v4675_v59 = vadd.f32 %v3148_v8, %v3147_v48  ;;  %2210 = vmatprep.mubr.bf16.mxu1 %v4362_v60  ;;  %v4681_v38 = vadd.f32 %v3220_v13, %v3219_v24  ;;  %v809_v48 = vrot.slane %v807_v53, 5 }
  0xfc   : > { %v3150_v15 = vpop.f32.mrf.mxu0  ;;  %v800_v8 = vsel %vm3883_vm2, %v795_v47, %v799_v57 }
  0xfd   : > { %v810_v50 = vsel %vm3883_vm2, %v805_v55, %v809_v48 }
  0xfe   : > { %v3151_v26 = vpop.f32.mrf.mxu0  ;;  %v3222_v36 = vpop.f32.mrf.mxu1  ;;  %2114 = vmatmul.mubr.bf16.gmra.mxu0 %v5218_v58 }
  0xff   : > { %v4689_v60 = vadd.f32 %v3151_v26, %v3150_v15  ;;  %2121 = vmatprep.mubr.bf16.mxu0 %v4687_v20 }
 0x100   : > { %v3153_v61 = vpop.f32.mrf.mxu0  ;;  %v3223_v14 = vpop.f32.mrf.mxu1 }
 0x101   : > { %v4693_v44 = vadd.f32 %v3223_v14, %v3222_v36 }
 0x102   : > { %2211 = vmatmul.mubr.bf16.gmra.mxu1 %v4405_v5  ;;  %v3154_v27 = vpop.f32.mrf.mxu0  ;;  %v3225_v21 = vpop.f32.mrf.mxu1  ;;  %v4703_v5 = vcombine.low %v800_v8, %v810_v50 }
 0x103   : > { %2218 = vmatprep.mubr.bf16.mxu1 %v4414_v19  ;;  %v4701_v30 = vadd.f32 %v3154_v27, %v3153_v61 }
 0x104   : > { %v3226_v24 = vpop.f32.mrf.mxu1  ;;  %v3156_v13 = vpop.f32.mrf.mxu0 }
 0x105   : > { %v4705_v12 = vadd.f32 %v3226_v24, %v3225_v21 }
 0x106   : > { %v3157_v22 = vpop.f32.mrf.mxu0  ;;  %2122 = vmatmul.mubr.bf16.gmra.mxu0 %v4703_v5 }
 0x107   : > { %v4707_v53 = vadd.f32 %v3157_v22, %v3156_v13  ;;  %3610 = vmatprep.mubr.bf16.mxu0 %v4296_v34 }
 0x108   : > { %v3159_v19 = vpop.f32.mrf.mxu0 }
 0x10a   : > { %v3228_v62 = vpop.f32.mrf.mxu1  ;;  %2219 = vmatmul.mubr.bf16.gmra.mxu1 %v4451_v35  ;;  %v3160_v51 = vpop.f32.mrf.mxu0 }
 0x10b   : > { %2226 = vmatprep.mubr.bf16.mxu1 %v4456_v9  ;;  %v4715_v26 = vadd.f32 %v3160_v51, %v3159_v19 }
 0x10c   : > { %v3229_v57 = vpop.f32.mrf.mxu1 }
 0x10d   : > { %v4713_v15 = vadd.f32 %v3229_v57, %v3228_v62  ;;  %v3162_v36 = vpop.f32.mrf.mxu0 }
 0x10e   : > { %v3231_v47 = vpop.f32.mrf.mxu1  ;;  %3611 = vmatmul.mubr.bf16.vlgmr.msra.gmra.mxu0 %v4357_v29 }
 0x10f   : > { %3614 = vmatprep.mubr.bf16.mxu0 %v4407_v16  ;;  %v3163_v34 = vpop.f32.mrf.mxu0 }
 0x110   : > { %v3232_v55 = vpop.f32.mrf.mxu1  ;;  %v4723_v9 = vadd.f32 %v3163_v34, %v3162_v36 }
 0x111   : > { %v4717_v48 = vadd.f32 %v3232_v55, %v3231_v47  ;;  %v3165_v27 = vpop.f32.mrf.mxu0 }
 0x112   : > { %v3250_v61 = vpop.f32.mrf.mxu1  ;;  %2227 = vmatmul.mubr.bf16.gmra.mxu1 %v4474_v32 }
 0x113   : > { %2234 = vmatprep.mubr.bf16.mxu1 %v4479_v11  ;;  %v3166_v21 = vpop.f32.mrf.mxu0 }
 0x114   : > { %v3251_v35 = vpop.f32.mrf.mxu1  ;;  %v4728_v13 = vadd.f32 %v3166_v21, %v3165_v27 }
 0x115   : > { %v3252_v14 = vadd.f32 %v3251_v35, %v3250_v61 }
 0x116   : > { %v3253_v8 = vpop.f32.mrf.mxu1  ;;  %v3168_v29 = vpop.f32.mrf.mxu0  ;;  %3615 = vmatmul.mubr.bf16.gmra.mxu0 %v4453_v17 }
 0x117   : > { %v4726_v50 = vadd.f32 %v3252_v14, %v4652_v0  ;;  %3618 = vmatprep.mubr.bf16.mxu0 %v4476_v49 }
 0x118   : > { %v3254_v24 = vpop.f32.mrf.mxu1  ;;  %v3169_v11 = vpop.f32.mrf.mxu0 }
 0x119   : > { %v3255_v32 = vadd.f32 %v3254_v24, %v3253_v8  ;;  %v4737_v62 = vadd.f32 %v3169_v11, %v3168_v29  ;;  %v4759_v24 = vld [vmem:[%s3838_s8 + $0xcc] sm:$0xf] }
 0x11a   : > { %v3256_v22 = vpop.f32.mrf.mxu1  ;;  %2235 = vmatmul.mubr.bf16.gmra.mxu1 %v4493_v10  ;;  %v3171_v57 = vpop.f32.mrf.mxu0  ;;  %v822_v11 = vshrl.u32 %v4759_v24, 16 }
 0x11b   : > { %v4733_v16 = vadd.f32 %v3255_v32, %v4656_v54  ;;  %2242 = vmatprep.mubr.bf16.mxu1 %v5214_v45 }
 0x11c   : > { %v3257_v0 = vpop.f32.mrf.mxu1  ;;  %v3172_v10 = vpop.f32.mrf.mxu0 }
 0x11d   : > { %v3258_v19 = vadd.f32 %v3257_v0, %v3256_v22  ;;  %v4742_v17 = vadd.f32 %v3172_v10, %v3171_v57  ;;  %v825_v0 = vshll.u32 %v4759_v24, 16 }
 0x11e   : > { %v3259_v51 = vpop.f32.mrf.mxu1  ;;  %v3174_v36 = vpop.f32.mrf.mxu0  ;;  %3619 = vmatmul.mubr.bf16.gmra.mxu0 %v4495_v25 }
 0x11f   : > { %v4740_v47 = vadd.f32 %v3258_v19, %v4669_v31  ;;  %3622 = vmatprep.mubr.bf16.mxu0 %v4508_v2 }
 0x120   : > { %v3260_v55 = vpop.f32.mrf.mxu1  ;;  %v3175_v45 = vpop.f32.mrf.mxu0 }
 0x121   : > { %v3261_v54 = vadd.f32 %v3260_v55, %v3259_v51  ;;  %v4751_v34 = vadd.f32 %v3175_v45, %v3174_v36  ;;  %v824_v55 = vrot.slane %v822_v11, 4 }
 0x122   : > { %v3262_v61 = vpop.f32.mrf.mxu1  ;;  %2243 = vmatmul.mubr.bf16.gmra.mxu1 %v3930_v7  ;;  %v3177_v14 = vpop.f32.mrf.mxu0 }
 0x123   : > { %v4747_v49 = vadd.f32 %v3261_v54, %v4675_v59  ;;  %2250 = vmatprep.mubr.bf16.mxu1 %v5216_v28  ;;  %v4762_v28 = vld [vmem:[%s3838_s8 + $0xd0] sm:$0xf]  ;;  %v827_v54 = vrot.slane %v825_v0, 5 }
 0x124   : > { %v3263_v31 = vpop.f32.mrf.mxu1  ;;  %v3178_v8 = vpop.f32.mrf.mxu0  ;;  %v831_v19 = vshll.u32 %v4762_v28, 16 }
 0x125   : > { %v3264_v35 = vadd.f32 %v3263_v31, %v3262_v61  ;;  %v4756_v21 = vadd.f32 %v3178_v8, %v3177_v14 }
 0x126   : > { %v3265_v27 = vpop.f32.mrf.mxu1  ;;  %v3180_v2 = vpop.f32.mrf.mxu0  ;;  %3623 = vmatmul.mubr.bf16.gmra.mxu0 %v4528_v52  ;;  %v833_v36 = vrot.slane %v831_v19, 5 }
 0x127   : > { %v4754_v7 = vadd.f32 %v3264_v35, %v4689_v60  ;;  %3626 = vmatprep.mubr.bf16.mxu0 %v4547_v4  ;;  %v236_v35 = vld [vmem:[%s3838_s8 + $0xd4] sm:$0x1]  ;;  %s2994_s8 = sshll.u32 %s5242_s13, 7 }
 0x128   : > { %v3266_v25 = vpop.f32.mrf.mxu1  ;;  %v3181_v60 = vpop.f32.mrf.mxu0  ;;  %s5080_s19 = scalar_lea.vmem %s5188_s2, %s2994_s8 }
 0x129   : > { %v3267_v59 = vadd.f32 %v3266_v25, %v3265_v27  ;;  %v4775_v57 = vadd.f32 %v3181_v60, %v3180_v2 }
 0x12a   : > { %v3268_v32 = vpop.f32.mrf.mxu1  ;;  %2251 = vmatmul.mubr.bf16.gmra.mxu1 %v3989_v3  ;;  %v835_v3 = vshrl.u32 %v4762_v28, 16 }
 0x12b   : > { %v4767_v29 = vadd.f32 %v3267_v59, %v4701_v30  ;;  %2258 = vmatprep.mubr.bf16.mxu1 %v5217_v42  ;;  %v3183_v30 = vpop.f32.mrf.mxu0  ;;  %v828_v59 = vor.u32 %v827_v54, %v824_v55 }
 0x12c   : > { %v3269_v22 = vpop.f32.mrf.mxu1  ;;  %v837_v61 = vrot.slane %v835_v3, 4 }
 0x12d   : > { %v3270_v52 = vadd.f32 %v3269_v22, %v3268_v32  ;;  %v3184_v4 = vpop.f32.mrf.mxu0  ;;  %v841_v32 = vshll.u32 %v236_v35, 16  ;;  %v829_v19 = vrot.slane %v828_v59, 4 }
 0x12e   : > { %v3271_v51 = vpop.f32.mrf.mxu1  ;;  %v4780_v45 = vadd.f32 %v3184_v4, %v3183_v30  ;;  %3627 = vmatmul.mubr.bf16.gmra.mxu0 %v4566_v18  ;;  %v838_v2 = vor.u32 %v837_v61, %v833_v36 }
 0x12f   : > { %v4778_v42 = vadd.f32 %v3270_v52, %v4707_v53  ;;  %v3186_v14 = vpop.f32.mrf.mxu0  ;;  %3630 = vmatprep.mubr.bf16.mxu0 %v4582_v6  ;;  %v834_v54 = vsel %vm3883_vm2, %v829_v19, %v833_v36 }
 0x130   : > { %v3272_v10 = vpop.f32.mrf.mxu1  ;;  %v839_v3 = vrot.slane %v838_v2, 4 }
 0x131   : > { %v3273_v31 = vadd.f32 %v3272_v10, %v3271_v51  ;;  %v3187_v53 = vpop.f32.mrf.mxu0 }
 0x132   : > { %v3274_v27 = vpop.f32.mrf.mxu1  ;;  %2259 = vmatmul.mubr.bf16.gmra.mxu1 %v4019_v46  ;;  %v4790_v60 = vadd.f32 %v3187_v53, %v3186_v14  ;;  %v853_v14 = vrot.slane %v236_v35, 5 }
 0x133   : > { %v4786_v8 = vadd.f32 %v3273_v31, %v4715_v26  ;;  %2266 = vmatprep.mubr.bf16.mxu1 %v5218_v58  ;;  %v3189_v11 = vpop.f32.mrf.mxu0  ;;  %v843_v58 = vrot.slane %v841_v32, 5 }
 0x134   : > { %v3275_v25 = vpop.f32.mrf.mxu1 }
 0x135   : > { %v3276_v22 = vadd.f32 %v3275_v25, %v3274_v27  ;;  %v3190_v18 = vpop.f32.mrf.mxu0  ;;  %v844_v61 = vsel %vm3883_vm2, %v839_v3, %v843_v58  ;;  %v2833_v27 = vrot.slane %v4759_v24, 9 }
 0x136   : > { %v3277_v0 = vpop.f32.mrf.mxu1  ;;  %v4795_v52 = vadd.f32 %v3190_v18, %v3189_v11  ;;  %3631 = vmatmul.mubr.bf16.gmra.mxu0 %v4595_v33 }
 0x137   : > { %v4793_v46 = vadd.f32 %v3276_v22, %v4723_v9  ;;  %v3192_v30 = vpop.f32.mrf.mxu0  ;;  %3634 = vmatprep.mubr.bf16.mxu0 %v4614_v39  ;;  %v850_v9 = vrot.slane %v4762_v28, 5  ;;  %v2886_v39 = vcombine.low %v834_v54, %v844_v61 }
 0x138   : > { %v3278_v26 = vpop.f32.mrf.mxu1 }
 0x139   : > { %v3279_v6 = vadd.f32 %v3278_v26, %v3277_v0  ;;  %v3193_v10 = vpop.f32.mrf.mxu0  ;;  %v852_v53 = vrot.slane %v850_v9, 4 }
 0x13a   : > { %v3280_v51 = vpop.f32.mrf.mxu1  ;;  %2267 = vmatmul.mubr.bf16.gmra.mxu1 %v4144_v23  ;;  %v4809_v23 = vadd.f32 %v3193_v10, %v3192_v30 }
 0x13b   : > { %v4800_v4 = vadd.f32 %v3279_v6, %v4728_v13  ;;  %2274 = vmatprep.mubr.bf16.mxu1 %v4703_v5  ;;  %v3195_v31 = vpop.f32.mrf.mxu0  ;;  %v854_v22 = vsel %vm4076_vm5, %v852_v53, %v853_v14 }
 0x13c   : > { %v3281_v55 = vpop.f32.mrf.mxu1 }
 0x13d   : > { %v3282_v33 = vadd.f32 %v3281_v55, %v3280_v51  ;;  %v3196_v25 = vpop.f32.mrf.mxu0 }
 0x13e   : > { %v3283_v13 = vpop.f32.mrf.mxu1  ;;  %v4815_v2 = vadd.f32 %v3196_v25, %v3195_v31  ;;  %3635 = vmatmul.mubr.bf16.gmra.mxu0 %v4630_v56  ;;  %v2885_v56 = vcombine.low %v4759_v24, %v4762_v28 }
 0x13f   : > { %v4812_v5 = vadd.f32 %v3282_v33, %v4737_v62  ;;  %v3198_v37 = vpop.f32.mrf.mxu0  ;;  %3638 = vmatprep.mubr.bf16.mxu0 %v4687_v20  ;;  %v851_v62 = vsel %vm4076_vm5, %v2833_v27, %v850_v9 }
 0x140   : > { %v3284_v59 = vpop.f32.mrf.mxu1 }
 0x141   : > { %v3285_v36 = vadd.f32 %v3284_v59, %v3283_v13  ;;  %v3199_v11 = vpop.f32.mrf.mxu0 }
 0x142   : > { %v3286_v32 = vpop.f32.mrf.mxu1  ;;  %2275 = vmatmul.mubr.bf16.gmra.mxu1 %v4618_v41  ;;  %v4827_v18 = vadd.f32 %v3199_v11, %v3198_v37 }
 0x143   : > { %v4820_v35 = vadd.f32 %v3285_v36, %v4742_v17  ;;  %2282 = vmatprep.mubr.bf16.mxu1 %v2886_v39  ;;  %v3201_v41 = vpop.f32.mrf.mxu0  ;;  %v2887_v17 = vcombine.low %v851_v62, %v854_v22 }
 0x144   : > { %v3287_v0 = vpop.f32.mrf.mxu1 }
 0x145   : > { %v3288_v26 = vadd.f32 %v3287_v0, %v3286_v32  ;;  %v3202_v20 = vpop.f32.mrf.mxu0 }
 0x146   : > { %v3289_v19 = vpop.f32.mrf.mxu1  ;;  %v4834_v6 = vadd.f32 %v3202_v20, %v3201_v41  ;;  %3639 = vmatmul.mubr.bf16.gmra.mxu0 %v2887_v17 }
 0x147   : > { %v4832_v3 = vadd.f32 %v3288_v26, %v4751_v34  ;;  %v3204_v30 = vpop.f32.mrf.mxu0 }
 0x148   : > { %v3290_v58 = vpop.f32.mrf.mxu1 }
 0x149   : > { %v3291_v40 = vadd.f32 %v3290_v58, %v3289_v19  ;;  %v3205_v10 = vpop.f32.mrf.mxu0 }
 0x14a   : > { %v3292_v51 = vpop.f32.mrf.mxu1  ;;  %2283 = vmatmul.mubr.bf16.gmra.mxu1 %v2885_v56  ;;  %v4839_v54 = vadd.f32 %v3205_v10, %v3204_v30 }
 0x14b   : > { %v4837_v9 = vadd.f32 %v3291_v40, %v4756_v21  ;;  %v3207_v28 = vpop.f32.mrf.mxu0 }
 0x14c   : > { %v3293_v55 = vpop.f32.mrf.mxu1 }
 0x14d   : > { %v3294_v24 = vadd.f32 %v3293_v55, %v3292_v51  ;;  %v3208_v33 = vpop.f32.mrf.mxu0 }
 0x14e   : > { %v3295_v34 = vpop.f32.mrf.mxu1  ;;  %v4844_v13 = vadd.f32 %v3208_v33, %v3207_v28 }
 0x14f   : > { %v4842_v61 = vadd.f32 %v3294_v24, %v4775_v57  ;;  %v3362_v27 = vpop.f32.mrf.mxu0 }
 0x150   : > { %v3296_v31 = vpop.f32.mrf.mxu1 }
 0x151   : > { %v3297_v14 = vadd.f32 %v3296_v31, %v3295_v34  ;;  %v3363_v25 = vpop.f32.mrf.mxu0 }
 0x152   : > { %v3298_v39 = vpop.f32.mrf.mxu1  ;;  %v3364_v36 = vadd.f32 %v3363_v25, %v3362_v27 }
 0x153   : > { %v4847_v21 = vadd.f32 %v3297_v14, %v4780_v45  ;;  %v3365_v32 = vpop.f32.mrf.mxu0 }
 0x154   : > { %v3299_v53 = vpop.f32.mrf.mxu1  ;;  %v4853_v57 = vadd.f32 %v3364_v36, %v4726_v50 }
 0x155   : > { %v3300_v59 = vadd.f32 %v3299_v53, %v3298_v39  ;;  %v3366_v11 = vpop.f32.mrf.mxu0 }
 0x156   : > { %v3301_v37 = vpop.f32.mrf.mxu1  ;;  %v3367_v26 = vadd.f32 %v3366_v11, %v3365_v32 }
 0x157   : > { %v4850_v62 = vadd.f32 %v3300_v59, %v4790_v60  ;;  %v3368_v19 = vpop.f32.mrf.mxu0 }
 0x158   : > { %v3302_v22 = vpop.f32.mrf.mxu1  ;;  %v4859_v56 = vadd.f32 %v3367_v26, %v4733_v16 }
 0x159   : > { %v3303_v0 = vadd.f32 %v3302_v22, %v3301_v37  ;;  %v3369_v20 = vpop.f32.mrf.mxu0 }
 0x15a   : > { %v3304_v41 = vpop.f32.mrf.mxu1  ;;  %v3370_v60 = vadd.f32 %v3369_v20, %v3368_v19 }
 0x15b   : > { %v4856_v45 = vadd.f32 %v3303_v0, %v4795_v52  ;;  %v3371_v30 = vpop.f32.mrf.mxu0 }
 0x15c   : > { %v3305_v17 = vpop.f32.mrf.mxu1  ;;  %v4865_v51 = vadd.f32 %v3370_v60, %v4740_v47 }
 0x15d   : > { %v3306_v58 = vadd.f32 %v3305_v17, %v3304_v41  ;;  %v3372_v55 = vpop.f32.mrf.mxu0 }
 0x15e   : > { %v3307_v40 = vpop.f32.mrf.mxu1  ;;  %v3373_v52 = vadd.f32 %v3372_v55, %v3371_v30 }
 0x15f   : > { %v4862_v50 = vadd.f32 %v3306_v58, %v4809_v23  ;;  %v3374_v34 = vpop.f32.mrf.mxu0 }
 0x160   : > { %v3308_v10 = vpop.f32.mrf.mxu1  ;;  %v4871_v33 = vadd.f32 %v3373_v52, %v4747_v49 }
 0x161   : > { %v3309_v24 = vadd.f32 %v3308_v10, %v3307_v40  ;;  %v3375_v14 = vpop.f32.mrf.mxu0 }
 0x162   : > { %v3310_v28 = vpop.f32.mrf.mxu1  ;;  %v3376_v23 = vadd.f32 %v3375_v14, %v3374_v34 }
 0x163   : > { %v4868_v16 = vadd.f32 %v3309_v24, %v4815_v2  ;;  %v3377_v53 = vpop.f32.mrf.mxu0 }
 0x164   : > { %v3311_v31 = vpop.f32.mrf.mxu1  ;;  %v4877_v25 = vadd.f32 %v3376_v23, %v4754_v7 }
 0x165   : > { %v3312_v39 = vadd.f32 %v3311_v31, %v3310_v28  ;;  %v3378_v36 = vpop.f32.mrf.mxu0 }
 0x166   : > { %v3313_v27 = vpop.f32.mrf.mxu1  ;;  %v3379_v2 = vadd.f32 %v3378_v36, %v3377_v53 }
 0x167   : > { %v4874_v47 = vadd.f32 %v3312_v39, %v4827_v18  ;;  %v3380_v22 = vpop.f32.mrf.mxu0 }
 0x168   : > { %v3314_v59 = vpop.f32.mrf.mxu1  ;;  %v4883_v11 = vadd.f32 %v3379_v2, %v4767_v29 }
 0x169   : > { %v3315_v37 = vadd.f32 %v3314_v59, %v3313_v27  ;;  %v3381_v26 = vpop.f32.mrf.mxu0 }
 0x16a   : > { %v3316_v32 = vpop.f32.mrf.mxu1  ;;  %v3382_v18 = vadd.f32 %v3381_v26, %v3380_v22 }
 0x16b   : > { %v4880_v49 = vadd.f32 %v3315_v37, %v4834_v6  ;;  %v3383_v17 = vpop.f32.mrf.mxu0 }
 0x16c   : > { %v3317_v0 = vpop.f32.mrf.mxu1  ;;  %v4889_v20 = vadd.f32 %v3382_v18, %v4778_v42 }
 0x16d   : > { %v3318_v41 = vadd.f32 %v3317_v0, %v3316_v32  ;;  %v3384_v60 = vpop.f32.mrf.mxu0 }
 0x16e   : > { %v3319_v19 = vpop.f32.mrf.mxu1  ;;  %v3385_v6 = vadd.f32 %v3384_v60, %v3383_v17 }
 0x16f   : > { %v4886_v7 = vadd.f32 %v3318_v41, %v4839_v54  ;;  %v3386_v10 = vpop.f32.mrf.mxu0 }
 0x170   : > { %v3320_v58 = vpop.f32.mrf.mxu1  ;;  %v4895_v55 = vadd.f32 %v3385_v6, %v4786_v8 }
 0x171   : > { %v3321_v40 = vadd.f32 %v3320_v58, %v3319_v19  ;;  %v3387_v52 = vpop.f32.mrf.mxu0 }
 0x172   : > { %v3322_v30 = vpop.f32.mrf.mxu1  ;;  %v3388_v54 = vadd.f32 %v3387_v52, %v3386_v10 }
 0x173   : > { %v4892_v29 = vadd.f32 %v3321_v40, %v4844_v13  ;;  %v3389_v31 = vpop.f32.mrf.mxu0 }
 0x174   : > { %v3323_v24 = vpop.f32.mrf.mxu1  ;;  %v4901_v14 = vadd.f32 %v3388_v54, %v4793_v46 }
 0x175   : > { %v3324_v28 = vadd.f32 %v3323_v24, %v3322_v30  ;;  %v3390_v23 = vpop.f32.mrf.mxu0 }
 0x176   : > { %v3325_v34 = vpop.f32.mrf.mxu1  ;;  %v3391_v13 = vadd.f32 %v3390_v23, %v3389_v31 }
 0x177   : > { %v4898_v42 = vadd.f32 %v3324_v28, %v4654_v43  ;;  %v3392_v59 = vpop.f32.mrf.mxu0 }
 0x178   : > { %v3326_v39 = vpop.f32.mrf.mxu1  ;;  %v4907_v36 = vadd.f32 %v3391_v13, %v4800_v4 }
 0x179   : > { %v3327_v27 = vadd.f32 %v3326_v39, %v3325_v34  ;;  %v3393_v2 = vpop.f32.mrf.mxu0 }
 0x17a   : > { %v3328_v53 = vpop.f32.mrf.mxu1  ;;  %v3394_v43 = vadd.f32 %v3393_v2, %v3392_v59 }
 0x17b   : > { %v4904_v8 = vadd.f32 %v3327_v27, %v4658_v1  ;;  %v3395_v0 = vpop.f32.mrf.mxu0 }
 0x17c   : > { %v3329_v37 = vpop.f32.mrf.mxu1  ;;  %v4913_v26 = vadd.f32 %v3394_v43, %v4812_v5 }
 0x17d   : > { %v3330_v32 = vadd.f32 %v3329_v37, %v3328_v53  ;;  %v3396_v18 = vpop.f32.mrf.mxu0 }
 0x17e   : > { %v3331_v22 = vpop.f32.mrf.mxu1  ;;  %v3397_v1 = vadd.f32 %v3396_v18, %v3395_v0 }
 0x17f   : > { %v4910_v46 = vadd.f32 %v3330_v32, %v4672_v63  ;;  %v3398_v58 = vpop.f32.mrf.mxu0 }
 0x180   : > { %v3332_v41 = vpop.f32.mrf.mxu1  ;;  %v4919_v60 = vadd.f32 %v3397_v1, %v4820_v35 }
 0x181   : > { %v3333_v19 = vadd.f32 %v3332_v41, %v3331_v22  ;;  %v3399_v6 = vpop.f32.mrf.mxu0 }
 0x182   : > { %v3334_v17 = vpop.f32.mrf.mxu1  ;;  %v3400_v63 = vadd.f32 %v3399_v6, %v3398_v58 }
 0x183   : > { %v4916_v4 = vadd.f32 %v3333_v19, %v4681_v38  ;;  %v3401_v24 = vpop.f32.mrf.mxu0 }
 0x184   : > { %v3335_v40 = vpop.f32.mrf.mxu1  ;;  %v4925_v52 = vadd.f32 %v3400_v63, %v4832_v3 }
 0x185   : > { %v3336_v30 = vadd.f32 %v3335_v40, %v3334_v17  ;;  %v3402_v54 = vpop.f32.mrf.mxu0 }
 0x186   : > { %v3337_v10 = vpop.f32.mrf.mxu1  ;;  %v3403_v38 = vadd.f32 %v3402_v54, %v3401_v24 }
 0x187   : > { %v4922_v5 = vadd.f32 %v3336_v30, %v4693_v44  ;;  %v3404_v39 = vpop.f32.mrf.mxu0 }
 0x188   : > { %v3338_v28 = vpop.f32.mrf.mxu1  ;;  %v4931_v23 = vadd.f32 %v3403_v38, %v4837_v9 }
 0x189   : > { %v3339_v34 = vadd.f32 %v3338_v28, %v3337_v10  ;;  %v3405_v13 = vpop.f32.mrf.mxu0 }
 0x18a   : > { %v3340_v31 = vpop.f32.mrf.mxu1  ;;  %v3406_v44 = vadd.f32 %v3405_v13, %v3404_v39 }
 0x18b   : > { %v4928_v35 = vadd.f32 %v3339_v34, %v4705_v12  ;;  %v3407_v37 = vpop.f32.mrf.mxu0 }
 0x18c   : > { %v3341_v27 = vpop.f32.mrf.mxu1  ;;  %v4937_v2 = vadd.f32 %v3406_v44, %v4842_v61 }
 0x18d   : > { %v3342_v53 = vadd.f32 %v3341_v27, %v3340_v31  ;;  %v3408_v43 = vpop.f32.mrf.mxu0 }
 0x18e   : > { %v3343_v59 = vpop.f32.mrf.mxu1  ;;  %v3409_v12 = vadd.f32 %v3408_v43, %v3407_v37 }
 0x18f   : > { %v4934_v3 = vadd.f32 %v3342_v53, %v4713_v15  ;;  %v3410_v0 = vpop.f32.mrf.mxu0 }
 0x190   : > { %v3344_v32 = vpop.f32.mrf.mxu1  ;;  %v4943_v18 = vadd.f32 %v3409_v12, %v4847_v21 }
 0x191   : > { %v3345_v22 = vadd.f32 %v3344_v32, %v3343_v59  ;;  %v3411_v19 = vpop.f32.mrf.mxu0 }
 0x192   : > { %v3474_v41 = vpop.f32.mrf.mxu1  ;;  %v3412_v17 = vadd.f32 %v3411_v19, %v3410_v0 }
 0x193   : > { %v4940_v9 = vadd.f32 %v3345_v22, %v4717_v48  ;;  %v3413_v58 = vpop.f32.mrf.mxu0 }
 0x194   : > { %v3475_v1 = vpop.f32.mrf.mxu1  ;;  %v4948_v61 = vadd.f32 %v3412_v17, %v4850_v62 }
 0x195   : > { %v3476_v15 = vadd.f32 %v3475_v1, %v3474_v41  ;;  %v3414_v30 = vpop.f32.mrf.mxu0 }
 0x196   : > { %v4945_v40 = vpop.f32.mrf.mxu1  ;;  %v3415_v48 = vadd.f32 %v3414_v30, %v3413_v58 }
 0x197   : > { %v4951_v6 = vadd.f32 %v3476_v15, %v4853_v57  ;;  %v3416_v10 = vpop.f32.mrf.mxu0 }
 0x198   : > { %v4953_v63 = vpop.f32.mrf.mxu1  ;;  %v4958_v24 = vadd.f32 %v3415_v48, %v4856_v45 }
 0x199   : > { %v3417_v28 = vpop.f32.mrf.mxu0 }
 0x19a   : > { %v4955_v21 = vpop.f32.mrf.mxu1  ;;  %v3418_v34 = vadd.f32 %v3417_v28, %v3416_v10 }
 0x19b   : > { %v3419_v38 = vpop.f32.mrf.mxu0 }
 0x19c   : > { %v4960_v54 = vpop.f32.mrf.mxu1  ;;  %v4965_v57 = vadd.f32 %v3418_v34, %v4862_v50 }
 0x19d   : > { %v3420_v31 = vpop.f32.mrf.mxu0 }
 0x19e   : > { %v4962_v62 = vpop.f32.mrf.mxu1  ;;  %v3421_v27 = vadd.f32 %v3420_v31, %v3419_v38 }
 0x19f   : > { %v3422_v13 = vpop.f32.mrf.mxu0 }
 0x1a0   : > { %v4967_v39 = vpop.f32.mrf.mxu1  ;;  %v4972_v45 = vadd.f32 %v3421_v27, %v4868_v16 }
 0x1a1   : > { %v3423_v44 = vpop.f32.mrf.mxu0 }
 0x1a2   : > { %v4969_v53 = vpop.f32.mrf.mxu1  ;;  %v3424_v37 = vadd.f32 %v3423_v44, %v3422_v13 }
 0x1a3   : > { %v3425_v32 = vpop.f32.mrf.mxu0 }
 0x1a4   : > { %v4974_v59 = vpop.f32.mrf.mxu1  ;;  %v4979_v50 = vadd.f32 %v3424_v37, %v4874_v47 }
 0x1a5   : > { %v3426_v22 = vpop.f32.mrf.mxu0 }
 0x1a6   : > { %v4976_v43 = vpop.f32.mrf.mxu1  ;;  %v3427_v0 = vadd.f32 %v3426_v22, %v3425_v32 }
 0x1a7   : > { %v3428_v41 = vpop.f32.mrf.mxu0 }
 0x1a8   : > { %v4981_v12 = vpop.f32.mrf.mxu1  ;;  %v4986_v16 = vadd.f32 %v3427_v0, %v4880_v49 }
 0x1a9   : > { %v3429_v1 = vpop.f32.mrf.mxu0 }
 0x1aa   : > { %v4983_v19 = vpop.f32.mrf.mxu1  ;;  %5219 = vst [vmem:[#allocation5_spill] sm:$0xff] %v4986_v16  ;;  %v3430_v15 = vadd.f32 %v3429_v1, %v3428_v41 }
 0x1ab   : > { %v3431_v58 = vpop.f32.mrf.mxu0 }
 0x1ac   : > { %v4988_v17 = vpop.f32.mrf.mxu1  ;;  %v4993_v47 = vadd.f32 %v3430_v15, %v4886_v7 }
 0x1ad   : > { %v3432_v48 = vpop.f32.mrf.mxu0 }
 0x1ae   : > { %v4990_v30 = vpop.f32.mrf.mxu1  ;;  %5220 = vst [vmem:[#allocation7_spill] sm:$0xff] %v4993_v47  ;;  %v3433_v28 = vadd.f32 %v3432_v48, %v3431_v58 }
 0x1af   : > { %v3434_v34 = vpop.f32.mrf.mxu0 }
 0x1b0   : > { %v4995_v10 = vpop.f32.mrf.mxu1  ;;  %v5000_v49 = vadd.f32 %v3433_v28, %v4892_v29 }
 0x1b1   : > { %v3435_v31 = vpop.f32.mrf.mxu0 }
 0x1b2   : > { %v4997_v38 = vpop.f32.mrf.mxu1  ;;  %5221 = vst [vmem:[#allocation2_spill] sm:$0xff] %v5000_v49  ;;  %v3436_v13 = vadd.f32 %v3435_v31, %v3434_v34 }
 0x1b3   : > { %v3437_v44 = vpop.f32.mrf.mxu0 }
 0x1b4   : > { %v5002_v27 = vpop.f32.mrf.mxu1  ;;  %v5007_v7 = vadd.f32 %v3436_v13, %v4898_v42 }
 0x1b5   : > { %v3438_v32 = vpop.f32.mrf.mxu0 }
 0x1b6   : > { %v5004_v37 = vpop.f32.mrf.mxu1  ;;  %5222 = vst [vmem:[#allocation8_spill] sm:$0xff] %v5007_v7  ;;  %v3439_v0 = vadd.f32 %v3438_v32, %v3437_v44 }
 0x1b7   : > { %v3440_v41 = vpop.f32.mrf.mxu0 }
 0x1b8   : > { %v5009_v22 = vpop.f32.mrf.mxu1  ;;  %v5014_v29 = vadd.f32 %v3439_v0, %v4904_v8 }
 0x1b9   : > { %v3441_v15 = vpop.f32.mrf.mxu0 }
 0x1ba   : > { %v5011_v1 = vpop.f32.mrf.mxu1  ;;  %5223 = vst [vmem:[#allocation3_spill] sm:$0xff] %v5014_v29  ;;  %v3442_v48 = vadd.f32 %v3441_v15, %v3440_v41 }
 0x1bb   : > { %v3443_v28 = vpop.f32.mrf.mxu0 }
 0x1bc   : > { %v5016_v58 = vpop.f32.mrf.mxu1  ;;  %v5021_v42 = vadd.f32 %v3442_v48, %v4910_v46 }
 0x1bd   : > { %v3444_v31 = vpop.f32.mrf.mxu0 }
 0x1be   : > { %v5018_v34 = vpop.f32.mrf.mxu1  ;;  %5224 = vst [vmem:[#allocation4_spill] sm:$0xff] %v5021_v42  ;;  %v3445_v44 = vadd.f32 %v3444_v31, %v3443_v28 }
 0x1bf   : > { %v3446_v32 = vpop.f32.mrf.mxu0 }
 0x1c0   : > { %v5023_v13 = vpop.f32.mrf.mxu1  ;;  %v5028_v8 = vadd.f32 %v3445_v44, %v4916_v4 }
 0x1c1   : > { %v3447_v0 = vpop.f32.mrf.mxu0 }
 0x1c2   : > { %v5025_v7 = vpop.f32.mrf.mxu1  ;;  %5225 = vst [vmem:[#allocation6_spill] sm:$0xff] %v5028_v8  ;;  %v3448_v41 = vadd.f32 %v3447_v0, %v3446_v32 }
 0x1c3   : > { %v3449_v15 = vpop.f32.mrf.mxu0 }
 0x1c4   : > { %v5030_v29 = vpop.f32.mrf.mxu1  ;;  %v5035_v46 = vadd.f32 %v3448_v41, %v4922_v5 }
 0x1c5   : > { %v3450_v48 = vpop.f32.mrf.mxu0 }
 0x1c6   : > { %v5032_v16 = vpop.f32.mrf.mxu1  ;;  %5226 = vst [vmem:[#allocation9_spill] sm:$0xff] %v5035_v46  ;;  %v3451_v28 = vadd.f32 %v3450_v48, %v3449_v15  ;;  %v3482_v15 = vadd.f32 %v4960_v54, %v4955_v21 }
 0x1c7   : > { %v3452_v31 = vpop.f32.mrf.mxu0 }
 0x1c8   : > { %v5037_v42 = vpop.f32.mrf.mxu1  ;;  %v5042_v4 = vadd.f32 %v3451_v28, %v4928_v35  ;;  %v3485_v35 = vadd.f32 %v4967_v39, %v4962_v62 }
 0x1c9   : > { %v3453_v44 = vpop.f32.mrf.mxu0 }
 0x1ca   : > { %v5039_v49 = vpop.f32.mrf.mxu1  ;;  %5227 = vst [vmem:[#allocation10_spill] sm:$0xff] %v5042_v4  ;;  %v3454_v32 = vadd.f32 %v3453_v44, %v3452_v31  ;;  %v3479_v44 = vadd.f32 %v4953_v63, %v4945_v40  ;;  %v2176_v21 = vadd.f32 %v3485_v35, %v4871_v33  ;;  %v3494_v63 = vadd.f32 %v4988_v17, %v4983_v19 }
 0x1cb   : > { %v3455_v0 = vpop.f32.mrf.mxu0 }
 0x1cc   : > { %v5044_v8 = vpop.f32.mrf.mxu1  ;;  %v5049_v5 = vadd.f32 %v3454_v32, %v4934_v3  ;;  %v2168_v40 = vadd.f32 %v3479_v44, %v4859_v56 }
 0x1cd   : > { %v3456_v41 = vpop.f32.mrf.mxu0 }
 0x1ce   : > { %v5046_v47 = vpop.f32.mrf.mxu1  ;;  %5228 = vst [vmem:[#allocation11_spill] sm:$0xff] %v5049_v5  ;;  %v3457_v48 = vadd.f32 %v3456_v41, %v3455_v0  ;;  %v2173_v5 = vadd.f32 %v3482_v15, %v4865_v51 }
 0x1cf   : > { %v3612_v31 = vpop.f32.mrf.mxu0 }
 0x1d0   : > { %v5051_v46 = vpop.f32.mrf.mxu1  ;;  %v5062_v4 = vadd.f32 %v3457_v48, %v4940_v9  ;;  %v2334_v39 = vadd.f32 %v3612_v31, %v2173_v5  ;;  %v3488_v9 = vadd.f32 %v4974_v59, %v4969_v53  ;;  %v3491_v48 = vadd.f32 %v4981_v12, %v4976_v43 }
 0x1d1   : > { %v2325_v32 = vpop.f32.mrf.mxu0  ;;  %v2189_v31 = vadd.f32 %v3494_v63, %v4889_v20 }
 0x1d2   : > { %v5057_v28 = vpop.f32.mrf.mxu1  ;;  %5229 = vst [vmem:[#allocation12_spill] sm:$0xff] %v5062_v4  ;;  %v2326_v0 = vadd.f32 %v2325_v32, %v4951_v6  ;;  %v3497_v6 = vadd.f32 %v4995_v10, %v4990_v30  ;;  %v2181_v30 = vadd.f32 %v3488_v9, %v4877_v25  ;;  %v2491_v32 = vmul.f32 %v2334_v39, %v2334_v39 }
 0x1d3   : > { %v3613_v62 = vpop.f32.mrf.mxu0  ;;  %v3500_v25 = vadd.f32 %v5002_v27, %v4997_v38  ;;  %v3509_v9 = vadd.f32 %v5023_v13, %v5018_v34  ;;  %v2184_v63 = vadd.f32 %v3491_v48, %v4883_v11  ;;  %v3503_v27 = vadd.f32 %v5009_v22, %v5004_v37 }
 0x1d4   : > { %v5064_v3 = vpop.f32.mrf.mxu1  ;;  %v2337_v41 = vadd.f32 %v3613_v62, %v2176_v21  ;;  %v2489_v59 = vmul.f32 %v2326_v0, %v2326_v0 }
 0x1d5   : > { %v2328_v33 = vpop.f32.mrf.mxu0  ;;  %v2197_v11 = vadd.f32 %v3500_v25, %v4901_v14  ;;  %v3512_v14 = vadd.f32 %v5030_v29, %v5025_v7  ;;  %v3518_v25 = vadd.f32 %v5044_v8, %v5039_v49 }
 0x1d6   : > { %v5069_v54 = vpop.f32.mrf.mxu1  ;;  %v3035_v5 = vpack.c.bf16 %v2337_v41, %v2334_v39  ;;  %v2329_v56 = vadd.f32 %v2328_v33, %v2168_v40  ;;  %v2192_v40 = vadd.f32 %v3497_v6, %v4895_v55  ;;  %v2492_v33 = vmul.f32 %v2337_v41, %v2337_v41 }
 0x1d7   : > { %v3616_v53 = vpop.f32.mrf.mxu0 }
 0x1d8   : > { %v5082_v51 = vpop.f32.mrf.mxu1  ;;  %3107 = vst [vmem:[%s5080_s19 + $0x8] sm:$0xff] %v3035_v5   ;;  %v2452_v19 = vadd.f32 %v2329_v56, %v2326_v0  ;;  %v2490_v17 = vmul.f32 %v2329_v56, %v2329_v56  ;;  %v3030_v35 = vpack.c.bf16 %v2329_v56, %v2326_v0  ;;  %v2350_v43 = vadd.f32 %v3616_v53, %v2189_v31 }
 0x1d9   : > { %v2341_v10 = vpop.f32.mrf.mxu0 }
 0x1da   : > { %v5086_v15 = vpop.f32.mrf.mxu1  ;;  %v2453_v21 = vadd.f32 %v2452_v19, %v2334_v39  ;;  %v2521_v62 = vadd.f32 %v2490_v17, %v2489_v59  ;;  %3031 = vst [vmem:[%s5080_s19] sm:$0xff] %v3030_v35   ;;  %v2342_v5 = vadd.f32 %v2341_v10, %v2181_v30  ;;  %v3506_v39 = vadd.f32 %v5016_v58, %v5011_v1 }
 0x1db   : > { %v3617_v0 = vpop.f32.mrf.mxu0  ;;  %v2208_v10 = vadd.f32 %v3509_v9, %v4919_v60 }
 0x1dc   : > { %v5092_v44 = vpop.f32.mrf.mxu1  ;;  %v2522_v56 = vadd.f32 %v2521_v62, %v2491_v32  ;;  %v2454_v12 = vadd.f32 %v2453_v21, %v2337_v41  ;;  %v2353_v20 = vadd.f32 %v3617_v0, %v2192_v40  ;;  %v2493_v19 = vmul.f32 %v2342_v5, %v2342_v5 }
 0x1dd   : > { %v2344_v6 = vpop.f32.mrf.mxu0  ;;  %v2205_v30 = vadd.f32 %v3506_v39, %v4913_v26  ;;  %v2495_v32 = vmul.f32 %v2350_v43, %v2350_v43  ;;  %v3521_v39 = vadd.f32 %v5051_v46, %v5046_v47  ;;  %v2213_v47 = vadd.f32 %v3512_v14, %v4925_v52 }
 0x1de   : > { %v5097_v4 = vpop.f32.mrf.mxu1  ;;  %v2455_v59 = vadd.f32 %v2454_v12, %v2342_v5  ;;  %v2523_v53 = vadd.f32 %v2522_v56, %v2492_v33  ;;  %v3045_v41 = vpack.c.bf16 %v2353_v20, %v2350_v43  ;;  %v2345_v17 = vadd.f32 %v2344_v6, %v2184_v63 }
 0x1df   : > { %v3620_v38 = vpop.f32.mrf.mxu0  ;;  %v2496_v56 = vmul.f32 %v2353_v20, %v2353_v20 }
 0x1e0   : > { %v5105_v55 = vpop.f32.mrf.mxu1  ;;  %v2524_v1 = vadd.f32 %v2523_v53, %v2493_v19  ;;  %3109 = vst [vmem:[%s5080_s19 + $0x18] sm:$0xff] %v3045_v41   ;;  %v2456_v58 = vadd.f32 %v2455_v59, %v2345_v17  ;;  %v2494_v34 = vmul.f32 %v2345_v17, %v2345_v17  ;;  %v3040_v13 = vpack.c.bf16 %v2345_v17, %v2342_v5 }
 0x1e1   : > { %v2357_v48 = vpop.f32.mrf.mxu0  ;;  %v2366_v33 = vadd.f32 %v3620_v38, %v2205_v30  ;;  %v2200_v5 = vadd.f32 %v3503_v27, %v4907_v36  ;;  %v2221_v17 = vadd.f32 %v3518_v25, %v4937_v2  ;;  %v2224_v38 = vadd.f32 %v3521_v39, %v4943_v18 }
 0x1e2   : > { %v5108_v35 = vpop.f32.mrf.mxu1  ;;  %v2457_v21 = vadd.f32 %v2456_v58, %v2350_v43  ;;  %v2525_v62 = vadd.f32 %v2524_v1, %v2494_v34  ;;  %3108 = vst [vmem:[%s5080_s19 + $0x10] sm:$0xff] %v3040_v13   ;;  %v2358_v40 = vadd.f32 %v2357_v48, %v2197_v11  ;;  %v3524_v30 = vadd.f32 %v5064_v3, %v5057_v28 }
 0x1e3   : > { %v3621_v22 = vpop.f32.mrf.mxu0  ;;  %v2499_v27 = vmul.f32 %v2366_v33, %v2366_v33  ;;  %v3530_v18 = vadd.f32 %v5092_v44, %v5086_v15  ;;  %v3527_v3 = vadd.f32 %v5082_v51, %v5069_v54 }
 0x1e4   : > { %v5113_v31 = vpop.f32.mrf.mxu1  ;;  %v2369_v0 = vadd.f32 %v3621_v22, %v2208_v10  ;;  %v2526_v26 = vadd.f32 %v2525_v62, %v2495_v32  ;;  %v2458_v12 = vadd.f32 %v2457_v21, %v2353_v20  ;;  %v2497_v6 = vmul.f32 %v2358_v40, %v2358_v40 }
 0x1e5   : > { %v2360_v43 = vpop.f32.mrf.mxu0  ;;  %v3515_v20 = vadd.f32 %v5037_v42, %v5032_v16  ;;  %v3533_v62 = vadd.f32 %v5105_v55, %v5097_v4  ;;  %v2229_v44 = vadd.f32 %v3524_v30, %v4948_v61  ;;  %v2237_v55 = vadd.f32 %v3530_v18, %v4965_v57  ;;  %v5232_v18 = vld [vmem:[#allocation5_spill] sm:$0xff] }
 0x1e6   : > { %v5119_v37 = vpop.f32.mrf.mxu1  ;;  %v3055_v9 = vpack.c.bf16 %v2369_v0, %v2366_v33  ;;  %v2361_v63 = vadd.f32 %v2360_v43, %v2200_v5  ;;  %v2459_v36 = vadd.f32 %v2458_v12, %v2358_v40  ;;  %v2527_v59 = vadd.f32 %v2526_v26, %v2496_v56 }
 0x1e7   : > { %v3624_v29 = vpop.f32.mrf.mxu0  ;;  %v2216_v48 = vadd.f32 %v3515_v20, %v4931_v23  ;;  %v2500_v52 = vmul.f32 %v2369_v0, %v2369_v0  ;;  %v2240_v43 = vadd.f32 %v3533_v62, %v4972_v45 }
 0x1e8   : > { %v5124_v60 = vpop.f32.mrf.mxu1  ;;  %3111 = vst [vmem:[%s5080_s19 + $0x28] sm:$0xff] %v3055_v9   ;;  %v2498_v19 = vmul.f32 %v2361_v63, %v2361_v63  ;;  %v3050_v53 = vpack.c.bf16 %v2361_v63, %v2358_v40  ;;  %v2528_v41 = vadd.f32 %v2527_v59, %v2497_v6  ;;  %v2460_v49 = vadd.f32 %v2459_v36, %v2361_v63 }
 0x1e9   : > { %v2373_v46 = vpop.f32.mrf.mxu0  ;;  %v2382_v42 = vadd.f32 %v3624_v29, %v2221_v17  ;;  %v2232_v59 = vadd.f32 %v3527_v3, %v4958_v24  ;;  %v3536_v29 = vadd.f32 %v5113_v31, %v5108_v35  ;;  %v3539_v35 = vadd.f32 %v5124_v60, %v5119_v37 }
 0x1ea   : > { %v5130_v7 = vpop.f32.mrf.mxu1  ;;  %3110 = vst [vmem:[%s5080_s19 + $0x20] sm:$0xff] %v3050_v53   ;;  %v2461_v1 = vadd.f32 %v2460_v49, %v2366_v33  ;;  %v2529_v58 = vadd.f32 %v2528_v41, %v2498_v19  ;;  %v2374_v34 = vadd.f32 %v2373_v46, %v2213_v47 }
 0x1eb   : > { %v3625_v16 = vpop.f32.mrf.mxu0  ;;  %v2503_v25 = vmul.f32 %v2382_v42, %v2382_v42  ;;  %v2248_v62 = vadd.f32 %v3539_v35, %v5232_v18 }
 0x1ec   : > { %v3541_v8 = vpop.f32.mrf.mxu1  ;;  %v2385_v11 = vadd.f32 %v3625_v16, %v2224_v38  ;;  %v2530_v10 = vadd.f32 %v2529_v58, %v2499_v27  ;;  %v2462_v32 = vadd.f32 %v2461_v1, %v2369_v0  ;;  %v2501_v23 = vmul.f32 %v2374_v34, %v2374_v34 }
 0x1ed   : > { %v2376_v21 = vpop.f32.mrf.mxu0  ;;  %v3542_v45 = vadd.f32 %v3541_v8, %v5130_v7  ;;  %v2245_v7 = vadd.f32 %v3536_v29, %v4979_v50  ;;  %v5235_v29 = vld [vmem:[#allocation6_spill] sm:$0xff] }
 0x1ee   : > { %v3543_v13 = vpop.f32.mrf.mxu1  ;;  %v3065_v40 = vpack.c.bf16 %v2385_v11, %v2382_v42  ;;  %v2377_v22 = vadd.f32 %v2376_v21, %v2216_v48  ;;  %v2463_v33 = vadd.f32 %v2462_v32, %v2374_v34  ;;  %v2531_v5 = vadd.f32 %v2530_v10, %v2500_v52 }
 0x1ef   : > { %v3628_v28 = vpop.f32.mrf.mxu0  ;;  %v2504_v61 = vmul.f32 %v2385_v11, %v2385_v11 }
 0x1f0   : > { %v3544_v2 = vpop.f32.mrf.mxu1  ;;  %3113 = vst [vmem:[%s5080_s19 + $0x38] sm:$0xff] %v3065_v40   ;;  %v2502_v0 = vmul.f32 %v2377_v22, %v2377_v22  ;;  %v3060_v56 = vpack.c.bf16 %v2377_v22, %v2374_v34  ;;  %v2532_v26 = vadd.f32 %v2531_v5, %v2501_v23  ;;  %v2464_v12 = vadd.f32 %v2463_v33, %v2377_v22 }
 0x1f1   : > { %v2389_v4 = vpop.f32.mrf.mxu0  ;;  %v2398_v51 = vadd.f32 %v3628_v28, %v2237_v55  ;;  %v3545_v41 = vadd.f32 %v3544_v2, %v3543_v13  ;;  %v5230_v13 = vld [vmem:[#allocation7_spill] sm:$0xff] }
 0x1f2   : > { %v3546_v14 = vpop.f32.mrf.mxu1  ;;  %3112 = vst [vmem:[%s5080_s19 + $0x30] sm:$0xff] %v3060_v56   ;;  %v2465_v39 = vadd.f32 %v2464_v12, %v2382_v42  ;;  %v2533_v9 = vadd.f32 %v2532_v26, %v2502_v0  ;;  %v2390_v63 = vadd.f32 %v2389_v4, %v2229_v44  ;;  %v2253_v42 = vadd.f32 %v3542_v45, %v5230_v13 }
 0x1f3   : > { %v3629_v54 = vpop.f32.mrf.mxu0  ;;  %v2507_v30 = vmul.f32 %v2398_v51, %v2398_v51 }
 0x1f4   : > { %v3547_v15 = vpop.f32.mrf.mxu1  ;;  %v2401_v6 = vadd.f32 %v3629_v54, %v2240_v43  ;;  %v2534_v20 = vadd.f32 %v2533_v9, %v2503_v25  ;;  %v2466_v19 = vadd.f32 %v2465_v39, %v2385_v11  ;;  %v2505_v17 = vmul.f32 %v2390_v63, %v2390_v63  ;;  %v5231_v11 = vld [vmem:[#allocation2_spill] sm:$0xff] }
 0x1f5   : > { %v2392_v53 = vpop.f32.mrf.mxu0  ;;  %v2256_v48 = vadd.f32 %v3545_v41, %v5231_v11  ;;  %v3548_v40 = vadd.f32 %v3547_v15, %v3546_v14 }
 0x1f6   : > { %v3549_v36 = vpop.f32.mrf.mxu1  ;;  %v3075_v49 = vpack.c.bf16 %v2401_v6, %v2398_v51  ;;  %v2393_v47 = vadd.f32 %v2392_v53, %v2232_v59  ;;  %v2467_v46 = vadd.f32 %v2466_v19, %v2390_v63  ;;  %v2535_v38 = vadd.f32 %v2534_v20, %v2504_v61 }
 0x1f7   : > { %v3632_v24 = vpop.f32.mrf.mxu0  ;;  %v2508_v22 = vmul.f32 %v2401_v6, %v2401_v6 }
 0x1f8   : > { %v3550_v57 = vpop.f32.mrf.mxu1  ;;  %3115 = vst [vmem:[%s5080_s19 + $0x48] sm:$0xff] %v3075_v49   ;;  %v2506_v31 = vmul.f32 %v2393_v47, %v2393_v47  ;;  %v3070_v1 = vpack.c.bf16 %v2393_v47, %v2390_v63  ;;  %v2536_v58 = vadd.f32 %v2535_v38, %v2505_v17  ;;  %v2468_v34 = vadd.f32 %v2467_v46, %v2393_v47  ;;  %v5233_v63 = vld [vmem:[#allocation8_spill] sm:$0xff]  ;;  %v5236_v47 = vld [vmem:[#allocation3_spill] sm:$0xff] }
 0x1f9   : > { %v2405_v8 = vpop.f32.mrf.mxu0  ;;  %v2414_v60 = vadd.f32 %v3632_v24, %v2253_v42  ;;  %v3551_v43 = vadd.f32 %v3550_v57, %v3549_v36  ;;  %v2261_v54 = vadd.f32 %v3548_v40, %v5233_v63 }
 0x1fa   : > { %v3552_v27 = vpop.f32.mrf.mxu1  ;;  %3114 = vst [vmem:[%s5080_s19 + $0x40] sm:$0xff] %v3070_v1   ;;  %v2469_v52 = vadd.f32 %v2468_v34, %v2398_v51  ;;  %v2537_v10 = vadd.f32 %v2536_v58, %v2506_v31  ;;  %v2406_v32 = vadd.f32 %v2405_v8, %v2245_v7 }
 0x1fb   : > { %v3633_v37 = vpop.f32.mrf.mxu0  ;;  %v2511_v20 = vmul.f32 %v2414_v60, %v2414_v60  ;;  %v2264_v46 = vadd.f32 %v3551_v43, %v5236_v47 }
 0x1fc   : > { %v3553_v16 = vpop.f32.mrf.mxu1  ;;  %v2417_v21 = vadd.f32 %v3633_v37, %v2256_v48  ;;  %v2538_v50 = vadd.f32 %v2537_v10, %v2507_v30  ;;  %v2470_v33 = vadd.f32 %v2469_v52, %v2401_v6  ;;  %v2509_v12 = vmul.f32 %v2406_v32, %v2406_v32  ;;  %v5234_v6 = vld [vmem:[#allocation4_spill] sm:$0xff] }
 0x1fd   : > { %v2408_v5 = vpop.f32.mrf.mxu0  ;;  %v3554_v28 = vadd.f32 %v3553_v16, %v3552_v27 }
 0x1fe   : > { %v3555_v2 = vpop.f32.mrf.mxu1  ;;  %v3085_v3 = vpack.c.bf16 %v2417_v21, %v2414_v60  ;;  %v2409_v56 = vadd.f32 %v2408_v5, %v2248_v62  ;;  %v2471_v26 = vadd.f32 %v2470_v33, %v2406_v32  ;;  %v2539_v44 = vadd.f32 %v2538_v50, %v2508_v22  ;;  %v5238_v33 = vld [vmem:[#allocation11_spill] sm:$0xff]  ;;  %v5239_v5 = vld [vmem:[#allocation10_spill] sm:$0xff] }
 0x1ff   : > { %v3636_v55 = vpop.f32.mrf.mxu0  ;;  %v2269_v59 = vadd.f32 %v3554_v28, %v5234_v6  ;;  %v2512_v17 = vmul.f32 %v2417_v21, %v2417_v21 }
 0x200   : > { %v3556_v23 = vpop.f32.mrf.mxu1  ;;  %3117 = vst [vmem:[%s5080_s19 + $0x58] sm:$0xff] %v3085_v3   ;;  %v2510_v25 = vmul.f32 %v2409_v56, %v2409_v56  ;;  %v3080_v14 = vpack.c.bf16 %v2409_v56, %v2406_v32  ;;  %v2540_v15 = vadd.f32 %v2539_v44, %v2509_v12  ;;  %v2472_v39 = vadd.f32 %v2471_v26, %v2409_v56  ;;  %v5237_v32 = vld [vmem:[#allocation9_spill] sm:$0xff] }
 0x201   : > { %v3557_v0 = vadd.f32 %v3556_v23, %v3555_v2  ;;  %v2421_v51 = vpop.f32.mrf.mxu0  ;;  %v2430_v57 = vadd.f32 %v3636_v55, %v2269_v59 }
 0x202   : > { %v3558_v4 = vpop.f32.mrf.mxu1  ;;  %3116 = vst [vmem:[%s5080_s19 + $0x50] sm:$0xff] %v3080_v14   ;;  %v2473_v19 = vadd.f32 %v2472_v39, %v2414_v60  ;;  %v2541_v53 = vadd.f32 %v2540_v15, %v2510_v25  ;;  %v2422_v45 = vadd.f32 %v2421_v51, %v2261_v54  ;;  %v5240_v15 = vld [vmem:[#allocation12_spill] sm:$0xff] }
 0x203   : > { %v2272_v61 = vadd.f32 %v3557_v0, %v5235_v29  ;;  %v3637_v36 = vpop.f32.mrf.mxu0 }
 0x204   : > { %v3559_v9 = vpop.f32.mrf.mxu1  ;;  %v2542_v38 = vadd.f32 %v2541_v53, %v2511_v20  ;;  %v2474_v24 = vadd.f32 %v2473_v19, %v2417_v21  ;;  %v2513_v16 = vmul.f32 %v2422_v45, %v2422_v45  ;;  %v2515_v21 = vmul.f32 %v2430_v57, %v2430_v57 }
 0x205   : > { %v2433_v49 = vadd.f32 %v3637_v36, %v2272_v61  ;;  %v3560_v27 = vadd.f32 %v3559_v9, %v3558_v4  ;;  %v2424_v31 = vpop.f32.mrf.mxu0 }
 0x206   : > { %v3561_v41 = vpop.f32.mrf.mxu1  ;;  %v2425_v58 = vadd.f32 %v2424_v31, %v2264_v46  ;;  %v2475_v34 = vadd.f32 %v2474_v24, %v2422_v45  ;;  %v2543_v7 = vadd.f32 %v2542_v38, %v2512_v17 }
 0x207   : > { %v3095_v1 = vpack.c.bf16 %v2433_v49, %v2430_v57  ;;  %v3640_v13 = vpop.f32.mrf.mxu0  ;;  %v2277_v2 = vadd.f32 %v3560_v27, %v5237_v32  ;;  %v2516_v3 = vmul.f32 %v2433_v49, %v2433_v49 }
 0x208   : > { %v3562_v35 = vpop.f32.mrf.mxu1  ;;  %v2514_v11 = vmul.f32 %v2425_v58, %v2425_v58  ;;  %v3090_v48 = vpack.c.bf16 %v2425_v58, %v2422_v45  ;;  %v2544_v30 = vadd.f32 %v2543_v7, %v2513_v16  ;;  %v2476_v52 = vadd.f32 %v2475_v34, %v2425_v58 }
 0x209   : > { %3119 = vst [vmem:[%s5080_s19 + $0x68] sm:$0xff] %v3095_v1   ;;  %v3563_v42 = vadd.f32 %v3562_v35, %v3561_v41  ;;  %v2437_v37 = vpop.f32.mrf.mxu0 }
 0x20a   : > { %v3564_v8 = vpop.f32.mrf.mxu1  ;;  %3118 = vst [vmem:[%s5080_s19 + $0x60] sm:$0xff] %v3090_v48   ;;  %v2477_v18 = vadd.f32 %v2476_v52, %v2430_v57  ;;  %v2545_v62 = vadd.f32 %v2544_v30, %v2514_v11  ;;  %v2438_v40 = vadd.f32 %v2437_v37, %v2277_v2 }
 0x20b   : > { %v3641_v50 = vpop.f32.mrf.mxu0  ;;  %v2280_v28 = vadd.f32 %v3563_v42, %v5239_v5 }
 0x20c   : > { %v3565_v10 = vpop.f32.mrf.mxu1  ;;  %v2546_v0 = vadd.f32 %v2545_v62, %v2515_v21  ;;  %v2478_v56 = vadd.f32 %v2477_v18, %v2433_v49  ;;  %v2517_v25 = vmul.f32 %v2438_v40, %v2438_v40 }
 0x20d   : > { %v3566_v60 = vadd.f32 %v3565_v10, %v3564_v8  ;;  %v2440_v12 = vpop.f32.mrf.mxu0 }
 0x20e   : > { %v3567_v22 = vpop.f32.mrf.mxu1  ;;  %v2441_v4 = vadd.f32 %v2440_v12, %v2280_v28  ;;  %v2479_v43 = vadd.f32 %v2478_v56, %v2438_v40  ;;  %v2547_v14 = vadd.f32 %v2546_v0, %v2516_v3 }
 0x20f   : > { %v2285_v23 = vadd.f32 %v3566_v60, %v5238_v33 }
 0x210   : > { %v3568_v26 = vpop.f32.mrf.mxu1  ;;  %v2518_v9 = vmul.f32 %v2441_v4, %v2441_v4  ;;  %v3100_v63 = vpack.c.bf16 %v2441_v4, %v2438_v40  ;;  %v2548_v54 = vadd.f32 %v2547_v14, %v2517_v25  ;;  %v2480_v51 = vadd.f32 %v2479_v43, %v2441_v4 }
 0x211   : > { %v3569_v44 = vadd.f32 %v3568_v26, %v3567_v22  ;;  %v2446_v55 = vadd.f32 %v3640_v13, %v2285_v23 }
 0x212   : > { %3120 = vst [vmem:[%s5080_s19 + $0x70] sm:$0xff] %v3100_v63   ;;  %v2549_v61 = vadd.f32 %v2548_v54, %v2518_v9 }
 0x213   : > { %v2288_v39 = vadd.f32 %v3569_v44, %v5240_v15  ;;  %v2519_v59 = vmul.f32 %v2446_v55, %v2446_v55  ;;  %v2481_v29 = vadd.f32 %v2480_v51, %v2446_v55 }
 0x215   : > { %v2449_v6 = vadd.f32 %v3641_v50, %v2288_v39  ;;  %v2550_v45 = vadd.f32 %v2549_v61, %v2519_v59 }
 0x217   : > { %v2520_v20 = vmul.f32 %v2449_v6, %v2449_v6  ;;  %v3105_v19 = vpack.c.bf16 %v2449_v6, %v2446_v55  ;;  %v2482_v53 = vadd.f32 %v2481_v29, %v2449_v6 }
 0x219   : > { %3121 = vst [vmem:[%s5080_s19 + $0x78] sm:$0xff] %v3105_v19   ;;  %v2483_v41 = vrot.slane %v2482_v53, 4  ;;  %v2551_v36 = vadd.f32 %v2550_v45, %v2520_v20 }
 0x21b   : > { %v2484_v57 = vadd.f32 %v2483_v41, %v2482_v53  ;;  %v2552_v49 = vrot.slane %v2551_v36, 4 }
 0x21d   : > { %v2485_v47 = vrot.slane %v2484_v57, 2  ;;  %v2553_v46 = vadd.f32 %v2552_v49, %v2551_v36 }
 0x21f   : > { %v2486_v17 = vadd.f32 %v2485_v47, %v2484_v57  ;;  %v2554_v38 = vrot.slane %v2553_v46, 2 }
 0x221   : > { %v2487_v27 = vrot.slane %v2486_v17, 1  ;;  %v2555_v24 = vadd.f32 %v2554_v38, %v2553_v46 }
 0x223   : > { %v2556_v35 = vrot.slane %v2555_v24, 1  ;;  %v2488_v31 = vadd.f32 %v2487_v27, %v2486_v17 }
 0x225   : > { %v2557_v1 = vadd.f32 %v2556_v35, %v2555_v24 }
 0x227   : > { %v2559_v58 = vsel %vm2558_vm6, %v2488_v31, %v2557_v1 }
 0x228   : > { %2560 = vst [vmem:[%s181_s23] sm:$0x3] %v2559_v58 }
 0x229 PF: > { %s14_s12 = sadd.s32 1, %s3775_s12  }
 0x22a   : > { %p11_p4 = scmp.ge.s32.totalorder %s14_s12, 4  }
 0x22c   :  { %13 = sbr.rel (!%p11_p4) target bundleno = 1 (0x1), region = 70 }

// kernel: up_forward.6
= control target key start
LH: loop header
LB: loop body
LE: loop exit
PB: predicated region body
PF: predicated region fallthrough
CT: control target
= control target key end

     0   :  { %s4779_s18 = smov 0   ;;  %s6385_s0 = inlined_call_operand.vmem [shape: bf16[2,16,16,128], index: 0, kind: input, shape index: {}]   ;;  %s6386_s1 = inlined_call_operand.vmem [shape: f32[1,128], index: 1, kind: input, shape index: {}]   ;;  %s6387_s2 = inlined_call_operand.vmem [shape: f32[1,128], index: 2, kind: input, shape index: {}]   ;;  %s6388_s3 = inlined_call_operand.vmem [shape: bf16[1152,128], index: 3, kind: input, shape index: {}]   ;;  %s6389_s4 = inlined_call_operand.vmem [shape: bf16[2,256,128], index: 4, kind: output, shape index: {0}]   ;;  %s6390_s5 = inlined_call_operand.vmem [shape: f32[2,2,128], index: 5, kind: output, shape index: {1}]  }
   0x1 LB: > { %s3626_s19 = sadd.s32 4294967295, %s4746_s18   ;;  %p3630_p0 = scmp.ge.s32.totalorder %s4746_s18, 1  ;;  %s4746_s18 = sphi %s4779_s18, %s16_s18  }
   0x2   : > { %p190_p1 = scmp.lt.s32.totalorder %s4746_s18, 3 }
   0x4   : > { %p191_p2 = pnand %p3630_p0, %p190_p1 }
   0x6   : > { %194 = sbr.rel (%p191_p2) target bundleno = 637 (0x27d), region = 36 }
   0xb   : > { %v4633_v0 = vld [vmem:[%s6388_s3 + $0x78] sm:$0xff]   ;;  %v4748_v2 = vmov 0   ;;  %v4635_v3 = vld [vmem:[%s6388_s3 + $0x70] sm:$0xff]   ;;  %v4637_v5 = vld [vmem:[%s6388_s3 + $0x68] sm:$0xff]   ;;  %p222_p3 = scmp.lt.s32.totalorder %s3626_s19, 1  ;;  %vm1491_vm0 = vcmask 1042432  }
   0xc   : > { %v4634_v1 = vld [vmem:[%s6388_s3 + $0x38] sm:$0xff]   ;;  %427 = vst [vmem:[#allocation2] sm:$0xf] %v4748_v2  ;;  %428 = vst [vmem:[#allocation2 + $0x4] sm:$0xf] %v4748_v2  ;;  %4088 = vmatprep.subr.bf16.mxu0 %v4633_v0  ;;  %4608 = vmatprep.subr.bf16.mxu1 %v4633_v0  ;;  %v4636_v4 = vld [vmem:[%s6388_s3 + $0x30] sm:$0xff]  }
   0xd   : > { %429 = vst [vmem:[#allocation2 + $0x8] sm:$0x1] %v4748_v2  ;;  %430 = vst [vmem:[#allocation2 + $0xc] sm:$0xf] %v4748_v2  ;;  %4089 = vmatpush3.bf16.msra.mxu0 %v4634_v1  ;;  %4616 = vmatpush3.bf16.msra.mxu1 %v4634_v1  ;;  %v4638_v6 = vld [vmem:[%s6388_s3 + $0x28] sm:$0xff]   ;;  %v4639_v7 = vld [vmem:[%s6388_s3 + $0x60] sm:$0xff]  }
   0xe   : > { %431 = vst [vmem:[#allocation2 + $0x10] sm:$0xf] %v4748_v2  ;;  %432 = vst [vmem:[#allocation2 + $0x14] sm:$0x1] %v4748_v2  ;;  %4090 = vmatprep.subr.bf16.mxu0 %v4635_v3  ;;  %4609 = vmatprep.subr.bf16.mxu1 %v4635_v3  ;;  %s6492_s19 = smov (!%p222_p3, %s3626_s19), 1  ;;  %v4640_v8 = vld [vmem:[%s6388_s3 + $0x20] sm:$0xff]  }
   0xf   : > { %433 = vst [vmem:[#allocation2 + $0x18] sm:$0xf] %v4748_v2  ;;  %434 = vst [vmem:[#allocation2 + $0x1c] sm:$0xf] %v4748_v2  ;;  %v4641_v9 = vld [vmem:[%s6388_s3 + $0x58] sm:$0xff]   ;;  %s3848_s13 = sshll.u32 %s6492_s19, 7 }
  0x10   : > { %435 = vst [vmem:[#allocation2 + $0x20] sm:$0x1] %v4748_v2  ;;  %436 = vst [vmem:[#allocation2 + $0x24] sm:$0xf] %v4748_v2  ;;  %v4642_v10 = vld [vmem:[%s6388_s3 + $0x18] sm:$0xff]   ;;  %v4643_v11 = vld [vmem:[%s6388_s3 + $0x50] sm:$0xff]   ;;  %s4832_s22 = scalar_lea.vmem %s6385_s0, %s3848_s13 }
  0x11   : > { %437 = vst [vmem:[#allocation2 + $0x28] sm:$0xf] %v4748_v2  ;;  %438 = vst [vmem:[#allocation2 + $0x2c] sm:$0x1] %v4748_v2  ;;  %4091 = vmatpush3.bf16.msra.mxu0 %v4636_v4  ;;  %4617 = vmatpush3.bf16.msra.mxu1 %v4636_v4  ;;  %vm1056_vm1 = vsmask.f32 3328 }
  0x12   : > { %439 = vst [vmem:[#allocation2 + $0x30] sm:$0xf] %v4748_v2  ;;  %440 = vst [vmem:[#allocation2 + $0x34] sm:$0xf] %v4748_v2  ;;  %4092 = vmatprep.subr.bf16.mxu0 %v4637_v5  ;;  %4610 = vmatprep.subr.bf16.mxu1 %v4637_v5  ;;  %vm1492_vm2 = vcmask 1046532   ;;  %v3915_v20 = vld [vmem:[%s4832_s22] sm:$0xff]  }
  0x13   : > { %441 = vst [vmem:[#allocation2 + $0x38] sm:$0x1] %v4748_v2  ;;  %442 = vst [vmem:[#allocation2 + $0x3c] sm:$0xf] %v4748_v2  ;;  %v4834_v12 = vld [vmem:[#allocation2] sm:$0xf]  ;;  %v3916_v34 = vunpack.c.l.bf16 %v3915_v20  ;;  %v3917_v35 = vunpack.c.h.bf16 %v3915_v20 }
  0x14   : > { %443 = vst [vmem:[#allocation2 + $0x40] sm:$0xf] %v4748_v2  ;;  %444 = vst [vmem:[#allocation2 + $0x44] sm:$0x1] %v4748_v2  ;;  %v4836_v13 = vld [vmem:[#allocation2 + $0x4] sm:$0xf] }
  0x15   : > { %445 = vst [vmem:[#allocation2 + $0x48] sm:$0xf] %v4748_v2  ;;  %446 = vst [vmem:[#allocation2 + $0x4c] sm:$0xf] %v4748_v2  ;;  %4093 = vmatpush3.bf16.msra.mxu0 %v4638_v6  ;;  %4618 = vmatpush3.bf16.msra.mxu1 %v4638_v6  ;;  %v1004_v14 = vld [vmem:[#allocation2 + $0x8] sm:$0x1]  ;;  %v3688_v4 = vcombine.low %v4834_v12, %v4836_v13 }
  0x16   : > { %447 = vst [vmem:[#allocation2 + $0x50] sm:$0x1] %v4748_v2  ;;  %448 = vst [vmem:[#allocation2 + $0x54] sm:$0xf] %v4748_v2  ;;  %4094 = vmatprep.subr.bf16.mxu0 %v4639_v7  ;;  %4611 = vmatprep.subr.bf16.mxu1 %v4639_v7  ;;  %v1060_v15 = vshrl.u32 %v4834_v12, 16  ;;  %v1063_v16 = vshll.u32 %v4834_v12, 16 }
  0x17   : > { %449 = vst [vmem:[#allocation2 + $0x58] sm:$0xf] %v4748_v2  ;;  %450 = vst [vmem:[#allocation2 + $0x5c] sm:$0x1] %v4748_v2  ;;  %vm1057_vm3 = vsmask.f32 7440 }
  0x18   : > { %451 = vst [vmem:[#allocation2 + $0x60] sm:$0xf] %v4748_v2  ;;  %452 = vst [vmem:[#allocation2 + $0x64] sm:$0xf] %v4748_v2  ;;  %v1069_v17 = vshll.u32 %v4836_v13, 16  ;;  %v1073_v18 = vshrl.u32 %v4836_v13, 16 }
  0x19   : > { %453 = vst [vmem:[#allocation2 + $0x68] sm:$0x1] %v4748_v2  ;;  %454 = vst [vmem:[#allocation2 + $0x6c] sm:$0xf] %v4748_v2  ;;  %4095 = vmatpush3.bf16.msra.mxu0 %v4640_v8  ;;  %4619 = vmatpush3.bf16.msra.mxu1 %v4640_v8  ;;  %v1079_v19 = vshll.u32 %v1004_v14, 16  ;;  %v4644_v21 = vld [vmem:[%s6388_s3 + $0x10] sm:$0xff]  }
  0x1a   : > { %455 = vst [vmem:[#allocation2 + $0x70] sm:$0xf] %v4748_v2  ;;  %456 = vst [vmem:[#allocation2 + $0x74] sm:$0x1] %v4748_v2  ;;  %4096 = vmatprep.subr.bf16.mxu0 %v4641_v9  ;;  %4612 = vmatprep.subr.bf16.mxu1 %v4641_v9  ;;  %v1062_v22 = vrot.slane %v1060_v15, 4  ;;  %v1065_v23 = vrot.slane %v1063_v16, 5 }
  0x1b   : > { %457 = vst [vmem:[#allocation2 + $0x78] sm:$0xf] %v4748_v2  ;;  %458 = vst [vmem:[#allocation2 + $0x7c] sm:$0xf] %v4748_v2  ;;  %v1496_v24 = vrot.slane %v4836_v13, 5  ;;  %v1499_v25 = vrot.slane %v1004_v14, 5 }
  0x1c   : > { %459 = vst [vmem:[#allocation2 + $0x80] sm:$0x1] %v4748_v2  ;;  %460 = vst [vmem:[#allocation2 + $0x84] sm:$0xf] %v4748_v2  ;;  %v4645_v26 = vld [vmem:[%s6388_s3 + $0x48] sm:$0xff]   ;;  %v1071_v27 = vrot.slane %v1069_v17, 5  ;;  %v1066_v32 = vor.u32 %v1065_v23, %v1062_v22 }
  0x1d   : > { %461 = vst [vmem:[#allocation2 + $0x88] sm:$0xf] %v4748_v2  ;;  %462 = vst [vmem:[#allocation2 + $0x8c] sm:$0x1] %v4748_v2  ;;  %4097 = vmatpush3.bf16.msra.mxu0 %v4642_v10  ;;  %4620 = vmatpush3.bf16.msra.mxu1 %v4642_v10  ;;  %v1075_v28 = vrot.slane %v1073_v18, 4  ;;  %v3670_v30 = vrot.slane %v4834_v12, 9 }
  0x1e   : > { %463 = vst [vmem:[#allocation2 + $0x90] sm:$0xf] %v4748_v2  ;;  %464 = vst [vmem:[#allocation2 + $0x94] sm:$0xf] %v4748_v2  ;;  %4098 = vmatprep.subr.bf16.mxu0 %v4643_v11  ;;  %4613 = vmatprep.subr.bf16.mxu1 %v4643_v11  ;;  %v4860_v31 = vld [vmem:[%s6386_s1] ss:$0 sm:$0xff] }
  0x1f   : > { %465 = vst [vmem:[#allocation2 + $0x98] sm:$0x1] %v4748_v2  ;;  %466 = vst [vmem:[#allocation2 + $0x9c] sm:$0xf] %v4748_v2  ;;  %v1498_v33 = vrot.slane %v1496_v24, 4  ;;  %v4068_v36 = vld [vmem:[%s4832_s22 + $0x58] sm:$0xff]   ;;  %v1076_v38 = vor.u32 %v1075_v28, %v1071_v27  ;;  %v309_v44 = vmul.f32 %v3916_v34, %v4860_v31  ;;  %v310_v45 = vmul.f32 %v3917_v35, %v4860_v31 }
  0x20   : > { %467 = vst [vmem:[#allocation2 + $0xa0] sm:$0xf] %v4748_v2  ;;  %468 = vst [vmem:[#allocation2 + $0xa4] sm:$0x1] %v4748_v2  ;;  %v1081_v39 = vrot.slane %v1079_v19, 5  ;;  %vm885_vm6 = vcmask 1043456   ;;  %v3960_v48 = vunpack.c.l.bf16 %v4068_v36  ;;  %v3961_v49 = vunpack.c.h.bf16 %v4068_v36 }
  0x21   : > { %469 = vst [vmem:[#allocation2 + $0xa8] sm:$0xf] %v4748_v2  ;;  %470 = vst [vmem:[#allocation2 + $0xac] sm:$0xf] %v4748_v2  ;;  %v4872_v40 = vld [vmem:[%s6387_s2] ss:$0 sm:$0xff]  ;;  %4099 = vmatpush3.bf16.msra.mxu0 %v4644_v21  ;;  %4621 = vmatpush3.bf16.msra.mxu1 %v4644_v21 }
  0x22   : > { %471 = vst [vmem:[#allocation2 + $0xb0] sm:$0x1] %v4748_v2  ;;  %472 = vst [vmem:[#allocation2 + $0xb4] sm:$0xf] %v4748_v2  ;;  %v4646_v41 = vld [vmem:[%s6388_s3 + $0x8] sm:$0xff]   ;;  %v1067_v42 = vrot.slane %v1066_v32, 4  ;;  %4100 = vmatprep.subr.bf16.mxu0 %v4645_v26  ;;  %4614 = vmatprep.subr.bf16.mxu1 %v4645_v26  ;;  %v347_v53 = vadd.f32 %v4872_v40, %v309_v44  ;;  %v348_v54 = vadd.f32 %v4872_v40, %v310_v45 }
  0x23   : > { %473 = vst [vmem:[#allocation2 + $0xb8] sm:$0xf] %v4748_v2  ;;  %474 = vst [vmem:[#allocation2 + $0xbc] sm:$0x1] %v4748_v2  ;;  %v4647_v46 = vld [vmem:[%s6388_s3 + $0x40] sm:$0xff]   ;;  %v1077_v47 = vrot.slane %v1076_v38, 4  ;;  %v331_v57 = vmul.f32 %v3960_v48, %v4860_v31  ;;  %v332_v58 = vmul.f32 %v3961_v49, %v4860_v31 }
  0x24   : > { %475 = vst [vmem:[#allocation2 + $0xc0] sm:$0xf] %v4748_v2  ;;  %476 = vst [vmem:[#allocation2 + $0xc4] sm:$0xf] %v4748_v2  ;;  %v4648_v51 = vld [vmem:[%s6388_s3] sm:$0xff]   ;;  %vm892_vm7 = vcmask 1040384  }
  0x25   : > { %477 = vst [vmem:[#allocation2 + $0xc8] sm:$0x1] %v4748_v2  ;;  %478 = vst [vmem:[#allocation2 + $0xcc] sm:$0xf] %v4748_v2  ;;  %v4650_v59 = vld [vmem:[%s6388_s3 + $0xf8] sm:$0xff]   ;;  %4101 = vmatpush3.bf16.msra.mxu0 %v4646_v41  ;;  %4622 = vmatpush3.bf16.msra.mxu1 %v4646_v41  ;;  %v379_v62 = vmax.f32 %v347_v53, 0.0  ;;  %v369_v0 = vadd.f32 %v4872_v40, %v331_v57  ;;  %v370_v1 = vadd.f32 %v4872_v40, %v332_v58 }
  0x26   : > { %479 = vst [vmem:[#allocation2 + $0xd0] sm:$0xf] %v4748_v2  ;;  %480 = vst [vmem:[#allocation2 + $0xd4] sm:$0x1] %v4748_v2  ;;  %v4651_v60 = vld [vmem:[%s6388_s3 + $0x178] sm:$0xff]   ;;  %v380_v63 = vmax.f32 %v348_v54, 0.0  ;;  %4102 = vmatprep.subr.bf16.mxu0 %v4647_v46  ;;  %4615 = vmatprep.subr.bf16.mxu1 %v4647_v46 }
  0x27   : > { %vm4852_vm4 = vmor %vm1491_vm0, %vm1492_vm2  ;;  %vm561_vm8 = vsmask.f32 256  ;;  %v3850_v2 = vpack.c.bf16 %v379_v62, %v379_v62  ;;  %vm562_vm9 = vsmask.f32 4368  ;;  %vm886_vm10 = vsmask.f32 7938 }
  0x28   : > { %vm4865_vm5 = vmor %vm1056_vm1, %vm1057_vm3  ;;  %v4879_v43 = vsel %vm4852_vm4, %v1498_v33, %v1499_v25  ;;  %v4888_v50 = vsel %vm4852_vm4, %v3670_v30, %v1496_v24  ;;  %v3851_v3 = vpack.c.bf16 %v380_v63, %v380_v63  ;;  %v401_v5 = vmax.f32 %v369_v0, 0.0  ;;  %v4058_v7 = vld [vmem:[%s4832_s22 + $0x8] sm:$0xff]   ;;  %v4655_v14 = vld [vmem:[%s6388_s3 + $0x138] sm:$0xff]  }
  0x29   : > { %v1072_v52 = vsel %vm4865_vm5, %v1067_v42, %v1071_v27  ;;  %v1082_v56 = vsel %vm4865_vm5, %v1077_v47, %v1081_v39  ;;  %v402_v6 = vmax.f32 %v370_v1, 0.0  ;;  %4103 = vmatpush3.bf16.msra.mxu0 %v4648_v51  ;;  %4623 = vmatpush3.bf16.msra.mxu1 %v4648_v51  ;;  %v565_v8 = vshrl.u32 %v3850_v2, 16  ;;  %vm4918_vm11 = vmor %vm561_vm8, %vm562_vm9  ;;  %v888_v12 = vld [vmem:[#allocation2 + $0xc] sm:$0xf]  ;;  %v4069_v19 = vld [vmem:[%s4832_s22 + $0x60] sm:$0xff]  }
  0x2a   : > { %v3704_v61 = vcombine.low %v1072_v52, %v1082_v56  ;;  %v568_v9 = vshll.u32 %v3850_v2, 16  ;;  %v573_v10 = vshrl.u32 %v3851_v3, 16  ;;  %v576_v11 = vshll.u32 %v3851_v3, 16  ;;  %4200 = vmatprep.subr.bf16.mxu1 %v4650_v59  ;;  %4312 = vmatprep.subr.bf16.mxu0 %v4651_v60  ;;  %vm4925_vm12 = vmand %vm885_vm6, %vm886_vm10  ;;  %v894_v26 = vld [vmem:[#allocation2 + $0x14] sm:$0x1]  ;;  %v4712_v15 = vld [vmem:[%s6388_s3 + $0x228] sm:$0xff]  }
  0x2b   : > { %v3872_v13 = vpack.c.bf16 %v401_v5, %v401_v5  ;;  %v3873_v16 = vpack.c.bf16 %v402_v6, %v402_v6  ;;  %v3920_v17 = vunpack.c.l.bf16 %v4058_v7  ;;  %v3921_v18 = vunpack.c.h.bf16 %v4058_v7  ;;  %vm4931_vm13 = vmand %vm892_vm7, %vm561_vm8  ;;  %v967_v38 = vld [vmem:[#allocation2 + $0x90] sm:$0xf]  ;;  %v971_v48 = vld [vmem:[#allocation2 + $0x98] sm:$0x1] }
  0x2c   : > { %2498 = vmatprep.mubr.bf16.mxu0 %v3704_v61  ;;  %v567_v20 = vrot.slane %v565_v8, 7  ;;  %v575_v21 = vrot.slane %v573_v10, 7  ;;  %v3964_v23 = vunpack.c.l.bf16 %v4069_v19  ;;  %v3965_v24 = vunpack.c.h.bf16 %v4069_v19  ;;  %v4663_v56 = vld [vmem:[%s6388_s3 + $0x170] sm:$0xff]   ;;  %v4070_v6 = vld [vmem:[%s4832_s22 + $0x68] sm:$0xff]   ;;  %v922_v55 = vld [vmem:[#allocation2 + $0x44] sm:$0x1] }
  0x2d   : > { %2499 = vmatmul.mubr.bf16.vlgmr.msra.gmra.mxu0 %v3688_v4  ;;  %v752_v27 = vshrl.u32 %v3872_v13, 16  ;;  %v755_v28 = vshll.u32 %v3872_v13, 16  ;;  %v760_v30 = vshrl.u32 %v3873_v16, 16  ;;  %v763_v32 = vshll.u32 %v3873_v16, 16  ;;  %v4665_v0 = vld [vmem:[%s6388_s3 + $0x130] sm:$0xff]  }
  0x2e   : > { %v570_v33 = vor.u32 %v568_v9, %v567_v20  ;;  %v571_v34 = vrot.slane %v567_v20, 4  ;;  %v578_v35 = vor.u32 %v576_v11, %v575_v21  ;;  %v580_v36 = vrot.slane %v575_v21, 4  ;;  %4313 = vmatpush3.bf16.msra.mxu0 %v4655_v14  ;;  %v4059_v1 = vld [vmem:[%s4832_s22 + $0x10] sm:$0xff]  }
  0x2f   : > { %v754_v39 = vrot.slane %v752_v27, 7  ;;  %v762_v41 = vrot.slane %v760_v30, 7  ;;  %v311_v42 = vmul.f32 %v3920_v17, %v4860_v31  ;;  %v312_v44 = vmul.f32 %v3921_v18, %v4860_v31  ;;  %4314 = vmatprep.subr.bf16.mxu0 %v4663_v56 }
  0x30   : > { %v579_v45 = vsel %vm4918_vm11, %v571_v34, %v578_v35  ;;  %v889_v46 = vsel %vm4925_vm12, %v570_v33, %v888_v12  ;;  %v895_v47 = vsel %vm4931_vm13, %v580_v36, %v894_v26  ;;  %v333_v49 = vmul.f32 %v3964_v23, %v4860_v31 }
  0x31   : > { %890 = vst [vmem:[#allocation2 + $0xc] sm:$0xf] %v889_v46  ;;  %891 = vst [vmem:[#allocation2 + $0x10] sm:$0xf] %v579_v45  ;;  %v757_v51 = vor.u32 %v755_v28, %v754_v39  ;;  %v758_v52 = vrot.slane %v754_v39, 4  ;;  %v765_v53 = vor.u32 %v763_v32, %v762_v41  ;;  %v767_v54 = vrot.slane %v762_v41, 4 }
  0x32   : > { %896 = vst [vmem:[#allocation2 + $0x14] sm:$0x1] %v895_v47  ;;  %v349_v57 = vadd.f32 %v4872_v40, %v311_v42  ;;  %v350_v58 = vadd.f32 %v4872_v40, %v312_v44  ;;  %v334_v59 = vmul.f32 %v3965_v24, %v4860_v31  ;;  %v371_v60 = vadd.f32 %v4872_v40, %v333_v49 }
  0x33   : > { %v766_v61 = vsel %vm4918_vm11, %v758_v52, %v765_v53  ;;  %v968_v62 = vsel %vm4925_vm12, %v757_v51, %v967_v38  ;;  %v972_v63 = vsel %vm4931_vm13, %v767_v54, %v971_v48  ;;  %4315 = vmatpush3.bf16.msra.mxu0 %v4665_v0  ;;  %v3924_v7 = vunpack.c.l.bf16 %v4059_v1 }
  0x34   : > { %969 = vst [vmem:[#allocation2 + $0x90] sm:$0xf] %v968_v62  ;;  %970 = vst [vmem:[#allocation2 + $0x94] sm:$0xf] %v766_v61  ;;  %v381_v2 = vmax.f32 %v349_v57, 0.0  ;;  %v382_v3 = vmax.f32 %v350_v58, 0.0  ;;  %v372_v4 = vadd.f32 %v4872_v40, %v334_v59  ;;  %v3925_v8 = vunpack.c.h.bf16 %v4059_v1 }
  0x35   : > { %973 = vst [vmem:[#allocation2 + $0x98] sm:$0x1] %v972_v63  ;;  %v403_v5 = vmax.f32 %v371_v60, 0.0  ;;  %v3968_v9 = vunpack.c.l.bf16 %v4070_v6  ;;  %v3969_v10 = vunpack.c.h.bf16 %v4070_v6  ;;  %v313_v16 = vmul.f32 %v3924_v7, %v4860_v31 }
  0x36   : > { %v3852_v11 = vpack.c.bf16 %v381_v2, %v381_v2  ;;  %v404_v14 = vmax.f32 %v372_v4, 0.0  ;;  %v4963_v12 = vpack.c.bf16 %v382_v3, %v382_v3  ;;  %v314_v21 = vmul.f32 %v3925_v8, %v4860_v31  ;;  %v897_v8 = vld [vmem:[#allocation2 + $0x18] sm:$0xf] }
  0x37   : > { %v4965_v13 = vpack.c.bf16 %v403_v5, %v403_v5  ;;  %v4978_v23 = vmul.f32 %v3968_v9, %v4860_v31  ;;  %v4981_v24 = vmul.f32 %v3969_v10, %v4860_v31  ;;  %v4993_v48 = vadd.f32 %v4872_v40, %v313_v16  ;;  %v901_v16 = vld [vmem:[#allocation2 + $0x20] sm:$0x1] }
  0x38   : > { %v4968_v17 = vld [vmem:[#allocation2 + $0xc] sm:$0xf]  ;;  %v4970_v18 = vld [vmem:[#allocation2 + $0x10] sm:$0xf]  ;;  %v4974_v20 = vpack.c.bf16 %v404_v14, %v404_v14  ;;  %v582_v34 = vshrl.u32 %v3852_v11, 16  ;;  %v585_v35 = vshll.u32 %v3852_v11, 16  ;;  %v4996_v49 = vadd.f32 %v4872_v40, %v314_v21 }
  0x39   : > { %v4972_v19 = vld [vmem:[#allocation2 + $0x14] sm:$0x1]  ;;  %v1084_v26 = vshrl.u32 %v4968_v17, 16  ;;  %v1087_v27 = vshll.u32 %v4968_v17, 16  ;;  %v1093_v28 = vshll.u32 %v4970_v18, 16  ;;  %v1097_v30 = vshrl.u32 %v4970_v18, 16 }
  0x3a   : > { %v1103_v32 = vshll.u32 %v4972_v19, 16  ;;  %v4990_v33 = vcombine.low %v4968_v17, %v4970_v18  ;;  %v584_v2 = vrot.slane %v582_v34, 7  ;;  %v590_v3 = vshrl.u32 %v4963_v12, 16  ;;  %v4673_v21 = vld [vmem:[%s6388_s3 + $0x168] sm:$0xff]  }
  0x3b   : > { %v1086_v36 = vrot.slane %v1084_v26, 4  ;;  %v1089_v38 = vrot.slane %v1087_v27, 5  ;;  %v1095_v39 = vrot.slane %v1093_v28, 5  ;;  %v1099_v41 = vrot.slane %v1097_v30, 4  ;;  %v1038_v42 = vld [vmem:[#allocation2 + $0x90] sm:$0xf]  ;;  %4316 = vmatprep.subr.bf16.mxu0 %v4673_v21 }
  0x3c   : > { %v1105_v44 = vrot.slane %v1103_v32, 5  ;;  %v1039_v45 = vld [vmem:[#allocation2 + $0x94] sm:$0xf]  ;;  %v1040_v46 = vld [vmem:[#allocation2 + $0x98] sm:$0x1]  ;;  %v1348_v47 = vshrl.u32 %v1038_v42, 16  ;;  %v587_v11 = vor.u32 %v585_v35, %v584_v2 }
  0x3d   : > { %v1090_v51 = vor.u32 %v1089_v38, %v1086_v36  ;;  %v1100_v52 = vor.u32 %v1099_v41, %v1095_v39  ;;  %v1351_v53 = vshll.u32 %v1038_v42, 16  ;;  %v1357_v54 = vshll.u32 %v1039_v45, 16  ;;  %v974_v36 = vld [vmem:[#allocation2 + $0x9c] sm:$0xf]  ;;  %v904_v21 = vld [vmem:[#allocation2 + $0x24] sm:$0xf] }
  0x3e   : > { %v1350_v56 = vrot.slane %v1348_v47, 4  ;;  %v1361_v57 = vshrl.u32 %v1039_v45, 16  ;;  %v1367_v58 = vshll.u32 %v1040_v46, 16  ;;  %v4998_v59 = vcombine.low %v1038_v42, %v1039_v45 }
  0x3f   : > { %v1091_v60 = vrot.slane %v1090_v51, 4  ;;  %v1101_v61 = vrot.slane %v1100_v52, 4  ;;  %v1353_v62 = vrot.slane %v1351_v53, 5  ;;  %v1359_v63 = vrot.slane %v1357_v54, 5  ;;  %v4677_v51 = vld [vmem:[%s6388_s3 + $0x128] sm:$0xff]  }
  0x40   : > { %v1363_v0 = vrot.slane %v1361_v57, 4  ;;  %v1369_v1 = vrot.slane %v1367_v58, 5  ;;  %v593_v7 = vshll.u32 %v4963_v12, 16  ;;  %v588_v14 = vrot.slane %v584_v2, 4  ;;  %v978_v57 = vld [vmem:[#allocation2 + $0xa4] sm:$0x1]  ;;  %4317 = vmatpush3.bf16.msra.mxu0 %v4677_v51 }
  0x41   : > { %v1096_v4 = vsel %vm4865_vm5, %v1091_v60, %v1095_v39  ;;  %v1106_v5 = vsel %vm4865_vm5, %v1101_v61, %v1105_v44  ;;  %v1354_v6 = vor.u32 %v1353_v62, %v1350_v56  ;;  %v592_v27 = vrot.slane %v590_v3, 7  ;;  %v5049_v2 = vld [vmem:[%s4832_s22 + $0x70] sm:$0xff]  }
  0x42   : > { %v5006_v9 = vcombine.low %v1096_v4, %v1106_v5  ;;  %v1364_v10 = vor.u32 %v1363_v0, %v1359_v63  ;;  %v769_v28 = vshrl.u32 %v4965_v13, 16  ;;  %v772_v30 = vshll.u32 %v4965_v13, 16  ;;  %v4654_v13 = vld [vmem:[%s6388_s3 + $0xb8] sm:$0xff]   ;;  %v4657_v3 = vld [vmem:[%s6388_s3 + $0xb0] sm:$0xff]  }
  0x43   : > { %v1355_v26 = vrot.slane %v1354_v6, 4  ;;  %v898_v32 = vsel %vm4925_vm12, %v587_v11, %v897_v8  ;;  %v777_v34 = vshrl.u32 %v4974_v20, 16  ;;  %v780_v35 = vshll.u32 %v4974_v20, 16  ;;  %v4656_v20 = vld [vmem:[%s6388_s3 + $0xf0] sm:$0xff]  }
  0x44   : > { %2506 = vmatprep.mubr.bf16.mxu0 %v5006_v9  ;;  %v1365_v12 = vrot.slane %v1364_v10, 4  ;;  %v595_v39 = vor.u32 %v593_v7, %v592_v27  ;;  %v597_v41 = vrot.slane %v592_v27, 4  ;;  %899 = vst [vmem:[#allocation2 + $0x18] sm:$0xf] %v898_v32  ;;  %v771_v42 = vrot.slane %v769_v28, 7  ;;  %v4661_v32 = vld [vmem:[%s6388_s3 + $0xa8] sm:$0xff]  }
  0x45   : > { %v1360_v38 = vsel %vm4865_vm5, %v1355_v26, %v1359_v63  ;;  %2507 = vmatmul.mubr.bf16.gmra.mxu0 %v4990_v33  ;;  %v779_v45 = vrot.slane %v777_v34, 7  ;;  %v383_v46 = vmax.f32 %v4993_v48, 0.0  ;;  %v384_v47 = vmax.f32 %v4996_v49, 0.0 }
  0x46   : > { %v1370_v44 = vsel %vm4865_vm5, %v1365_v12, %v1369_v1  ;;  %v596_v53 = vsel %vm4918_vm11, %v588_v14, %v595_v39  ;;  %v902_v54 = vsel %vm4931_vm13, %v597_v41, %v901_v16  ;;  %v774_v56 = vor.u32 %v772_v30, %v771_v42  ;;  %v4060_v1 = vld [vmem:[%s4832_s22 + $0x18] sm:$0xff]   ;;  %v4658_v14 = vld [vmem:[%s6388_s3 + $0xe8] sm:$0xff]  }
  0x47   : > { %v5034_v52 = vcombine.low %v1360_v38, %v1370_v44  ;;  %900 = vst [vmem:[#allocation2 + $0x1c] sm:$0xf] %v596_v53  ;;  %903 = vst [vmem:[#allocation2 + $0x20] sm:$0x1] %v902_v54  ;;  %v775_v48 = vrot.slane %v771_v42, 4  ;;  %v782_v49 = vor.u32 %v780_v35, %v779_v45  ;;  %v784_v58 = vrot.slane %v779_v45, 4 }
  0x48   : > { %v3854_v60 = vpack.c.bf16 %v383_v46, %v383_v46  ;;  %v975_v61 = vsel %vm4925_vm12, %v774_v56, %v974_v36  ;;  %v3855_v62 = vpack.c.bf16 %v384_v47, %v384_v47  ;;  %v373_v63 = vadd.f32 %v4872_v40, %v4978_v23  ;;  %v4662_v36 = vld [vmem:[%s6388_s3 + $0xe0] sm:$0xff]  }
  0x49   : > { %6416 = vst [vmem:[#allocation3_spill] sm:$0xff] %v5034_v52  ;;  %2594 = vmatprep.mubr.bf16.mxu1 %v5034_v52  ;;  %v374_v0 = vadd.f32 %v4872_v40, %v4981_v24  ;;  %v783_v4 = vsel %vm4918_vm11, %v775_v48, %v782_v49  ;;  %976 = vst [vmem:[#allocation2 + $0x9c] sm:$0xf] %v975_v61  ;;  %v979_v5 = vsel %vm4931_vm13, %v784_v58, %v978_v57  ;;  %v4683_v42 = vld [vmem:[%s6388_s3 + $0x160] sm:$0xff]  }
  0x4a   : > { %2595 = vmatmul.mubr.bf16.vlgmr.msra.gmra.mxu1 %v4998_v59  ;;  %v599_v23 = vshrl.u32 %v3854_v60, 16  ;;  %v602_v6 = vshll.u32 %v3854_v60, 16  ;;  %977 = vst [vmem:[#allocation2 + $0xa0] sm:$0xf] %v783_v4  ;;  %980 = vst [vmem:[#allocation2 + $0xa4] sm:$0x1] %v979_v5  ;;  %v3928_v26 = vunpack.c.l.bf16 %v4060_v1  ;;  %v3929_v27 = vunpack.c.h.bf16 %v4060_v1  ;;  %4318 = vmatprep.subr.bf16.mxu0 %v4683_v42 }
  0x4b   : > { %4201 = vmatpush3.bf16.msra.mxu1 %v4654_v13  ;;  %v607_v24 = vshrl.u32 %v3855_v62, 16  ;;  %v610_v7 = vshll.u32 %v3855_v62, 16  ;;  %v405_v8 = vmax.f32 %v373_v63, 0.0  ;;  %v406_v10 = vmax.f32 %v374_v0, 0.0  ;;  %v5059_v11 = vld [vmem:[#allocation2 + $0x18] sm:$0xf] }
  0x4c   : > { %4202 = vmatprep.subr.bf16.mxu1 %v4656_v20  ;;  %v601_v16 = vrot.slane %v599_v23, 7  ;;  %v3972_v28 = vunpack.c.l.bf16 %v5049_v2  ;;  %v1108_v30 = vshrl.u32 %v5059_v11, 16  ;;  %v1111_v12 = vshll.u32 %v5059_v11, 16  ;;  %v4684_v48 = vld [vmem:[%s6388_s3 + $0x120] sm:$0xff]   ;;  %v908_v0 = vld [vmem:[#allocation2 + $0x2c] sm:$0x1] }
  0x4d   : > { %v609_v34 = vrot.slane %v607_v24, 7  ;;  %v5070_v35 = vpack.c.bf16 %v405_v8, %v405_v8  ;;  %v5075_v39 = vpack.c.bf16 %v406_v10, %v406_v10  ;;  %v5078_v41 = vmul.f32 %v3928_v26, %v4860_v31  ;;  %v4664_v60 = vld [vmem:[%s6388_s3 + $0xa0] sm:$0xff]   ;;  %4319 = vmatpush3.bf16.msra.mxu0 %v4684_v48 }
  0x4e   : > { %v604_v38 = vor.u32 %v602_v6, %v601_v16  ;;  %v605_v13 = vrot.slane %v601_v16, 4  ;;  %v5083_v44 = vld [vmem:[#allocation2 + $0x1c] sm:$0xf]  ;;  %v5085_v20 = vld [vmem:[#allocation2 + $0x20] sm:$0x1]  ;;  %v1110_v45 = vrot.slane %v1108_v30, 4  ;;  %v5088_v51 = vmul.f32 %v3929_v27, %v4860_v31 }
  0x4f   : > { %4203 = vmatpush3.bf16.msra.mxu1 %v4657_v3  ;;  %v1113_v46 = vrot.slane %v1111_v12, 5  ;;  %v612_v47 = vor.u32 %v610_v7, %v609_v34  ;;  %v1117_v53 = vshll.u32 %v5083_v44, 16  ;;  %v1121_v54 = vshrl.u32 %v5083_v44, 16 }
  0x50   : > { %v1127_v56 = vshll.u32 %v5085_v20, 16  ;;  %4204 = vmatprep.subr.bf16.mxu1 %v4658_v14  ;;  %v5095_v57 = vcombine.low %v5059_v11, %v5083_v44  ;;  %v1041_v58 = vld [vmem:[#allocation2 + $0x9c] sm:$0xf]  ;;  %v614_v62 = vrot.slane %v609_v34, 4  ;;  %v905_v63 = vsel %vm4925_vm12, %v604_v38, %v904_v21 }
  0x51   : > { %v1114_v49 = vor.u32 %v1113_v46, %v1110_v45  ;;  %v613_v61 = vsel %vm4918_vm11, %v605_v13, %v612_v47  ;;  %v1119_v1 = vrot.slane %v1117_v53, 5  ;;  %v1123_v3 = vrot.slane %v1121_v54, 4  ;;  %v1042_v5 = vld [vmem:[#allocation2 + $0xa0] sm:$0xf]  ;;  %906 = vst [vmem:[#allocation2 + $0x24] sm:$0xf] %v905_v63 }
  0x52   : > { %6417 = vst [vmem:[#allocation4_spill] sm:$0xff] %v5095_v57  ;;  %v1129_v4 = vrot.slane %v1127_v56, 5  ;;  %v1372_v23 = vshrl.u32 %v1041_v58, 16  ;;  %907 = vst [vmem:[#allocation2 + $0x28] sm:$0xf] %v613_v61  ;;  %v1375_v7 = vshll.u32 %v1041_v58, 16  ;;  %v5107_v27 = vcombine.low %v1041_v58, %v1042_v5 }
  0x53   : > { %v1115_v6 = vrot.slane %v1114_v49, 4  ;;  %v1043_v24 = vld [vmem:[#allocation2 + $0xa4] sm:$0x1]  ;;  %v1381_v8 = vshll.u32 %v1042_v5, 16  ;;  %v1385_v10 = vshrl.u32 %v1042_v5, 16  ;;  %4205 = vmatpush3.bf16.msra.mxu1 %v4661_v32  ;;  %v1124_v14 = vor.u32 %v1123_v3, %v1119_v1  ;;  %v4666_v21 = vld [vmem:[%s6388_s3 + $0xd8] sm:$0xff]  }
  0x54   : > { %v1374_v16 = vrot.slane %v1372_v23, 4  ;;  %v1391_v26 = vshll.u32 %v1043_v24, 16  ;;  %4206 = vmatprep.subr.bf16.mxu1 %v4662_v36  ;;  %v1377_v12 = vrot.slane %v1375_v7, 5  ;;  %v909_v32 = vsel %vm4931_vm13, %v614_v62, %v908_v0  ;;  %v4669_v36 = vld [vmem:[%s6388_s3 + $0x98] sm:$0xff]   ;;  %v4670_v46 = vld [vmem:[%s6388_s3 + $0xd0] sm:$0xff]  }
  0x55   : > { %v1120_v30 = vsel %vm4865_vm5, %v1115_v6, %v1119_v1  ;;  %v1383_v34 = vrot.slane %v1381_v8, 5  ;;  %v1387_v38 = vrot.slane %v1385_v10, 4  ;;  %v1125_v13 = vrot.slane %v1124_v14, 4  ;;  %v4686_v47 = vld [vmem:[%s6388_s3 + $0x158] sm:$0xff]   ;;  %910 = vst [vmem:[#allocation2 + $0x2c] sm:$0x1] %v909_v32 }
  0x56   : > { %v1393_v42 = vrot.slane %v1391_v26, 5  ;;  %v786_v45 = vshrl.u32 %v5070_v35, 16  ;;  %v1378_v53 = vor.u32 %v1377_v12, %v1374_v16  ;;  %v789_v56 = vshll.u32 %v5070_v35, 16  ;;  %v981_v62 = vld [vmem:[#allocation2 + $0xa8] sm:$0xf]  ;;  %4320 = vmatprep.subr.bf16.mxu0 %v4686_v47  ;;  %v4689_v6 = vld [vmem:[%s6388_s3 + $0x118] sm:$0xff]  }
  0x57   : > { %v1388_v54 = vor.u32 %v1387_v38, %v1383_v34  ;;  %4207 = vmatpush3.bf16.msra.mxu1 %v4664_v60  ;;  %v794_v48 = vshrl.u32 %v5075_v39, 16  ;;  %v1130_v49 = vsel %vm4865_vm5, %v1125_v13, %v1129_v4  ;;  %v797_v61 = vshll.u32 %v5075_v39, 16  ;;  %4321 = vmatpush3.bf16.msra.mxu0 %v4689_v6 }
  0x58   : > { %v788_v58 = vrot.slane %v786_v45, 7  ;;  %4208 = vmatprep.subr.bf16.mxu1 %v4666_v21  ;;  %v353_v63 = vadd.f32 %v4872_v40, %v5078_v41  ;;  %v5133_v0 = vcombine.low %v1120_v30, %v1130_v49  ;;  %v1379_v60 = vrot.slane %v1378_v53, 4  ;;  %v5135_v3 = vld [vmem:[#allocation2 + $0x24] sm:$0xf]  ;;  %v985_v21 = vld [vmem:[#allocation2 + $0xb0] sm:$0x1] }
  0x59   : > { %v1389_v1 = vrot.slane %v1388_v54, 4  ;;  %v5137_v35 = vld [vmem:[#allocation2 + $0x28] sm:$0xf]  ;;  %v354_v4 = vadd.f32 %v4872_v40, %v5088_v51  ;;  %v1132_v5 = vshrl.u32 %v5135_v3, 16  ;;  %v1135_v39 = vshll.u32 %v5135_v3, 16  ;;  %v4671_v30 = vld [vmem:[%s6388_s3 + $0x90] sm:$0xff]  }
  0x5a   : > { %v1141_v23 = vshll.u32 %v5137_v35, 16  ;;  %v1145_v41 = vshrl.u32 %v5137_v35, 16  ;;  %2514 = vmatprep.mubr.bf16.mxu0 %v5133_v0  ;;  %v1384_v24 = vsel %vm4865_vm5, %v1379_v60, %v1383_v34  ;;  %v791_v7 = vor.u32 %v789_v56, %v788_v58  ;;  %v4676_v53 = vld [vmem:[%s6388_s3 + $0x88] sm:$0xff]  }
  0x5b   : > { %v1394_v51 = vsel %vm4865_vm5, %v1389_v1, %v1393_v42  ;;  %v792_v8 = vrot.slane %v788_v58, 4  ;;  %4209 = vmatpush3.bf16.msra.mxu1 %v4669_v36  ;;  %2515 = vmatmul.mubr.bf16.gmra.mxu0 %v5095_v57  ;;  %v1134_v14 = vrot.slane %v1132_v5, 4  ;;  %v1137_v16 = vrot.slane %v1135_v39, 5  ;;  %v4672_v42 = vld [vmem:[%s6388_s3 + $0xc8] sm:$0xff]   ;;  %v4692_v1 = vld [vmem:[%s6388_s3 + $0x150] sm:$0xff]  }
  0x5c   : > { %v5153_v10 = vcombine.low %v1384_v24, %v1394_v51  ;;  %v1143_v26 = vrot.slane %v1141_v23, 5  ;;  %4210 = vmatprep.subr.bf16.mxu1 %v4670_v46  ;;  %v1147_v12 = vrot.slane %v1145_v41, 4  ;;  %v796_v34 = vrot.slane %v794_v48, 7  ;;  %v5169_v32 = vld [vmem:[#allocation2 + $0x2c] sm:$0x1]  ;;  %v4678_v23 = vld [vmem:[%s6388_s3 + $0xc0] sm:$0xff]   ;;  %4322 = vmatprep.subr.bf16.mxu0 %v4692_v1 }
  0x5d   : > { %v982_v38 = vsel %vm4925_vm12, %v791_v7, %v981_v62  ;;  %v5163_v13 = vcombine.low %v5135_v3, %v5137_v35  ;;  %v1138_v45 = vor.u32 %v1137_v16, %v1134_v14  ;;  %v385_v36 = vmax.f32 %v353_v63, 0.0  ;;  %v5199_v7 = vld [vmem:[%s4832_s22 + $0x28] sm:$0xff]  }
  0x5e   : > { %6418 = vst [vmem:[#allocation5_spill] sm:$0xff] %v5153_v10  ;;  %2602 = vmatprep.mubr.bf16.mxu1 %v5153_v10  ;;  %983 = vst [vmem:[#allocation2 + $0xa8] sm:$0xf] %v982_v38  ;;  %v386_v46 = vmax.f32 %v354_v4, 0.0  ;;  %v3973_v47 = vunpack.c.h.bf16 %v5049_v2  ;;  %v1148_v54 = vor.u32 %v1147_v12, %v1143_v26  ;;  %v1151_v56 = vshll.u32 %v5169_v32, 16  ;;  %v5191_v2 = vld [vmem:[%s4832_s22 + $0x20] sm:$0xff]  }
  0x5f   : > { %6419 = vst [vmem:[#allocation6_spill] sm:$0xff] %v5163_v13  ;;  %2603 = vmatmul.mubr.bf16.gmra.mxu1 %v5107_v27  ;;  %v799_v48 = vor.u32 %v797_v61, %v796_v34  ;;  %v801_v49 = vrot.slane %v796_v34, 4  ;;  %v1139_v58 = vrot.slane %v1138_v45, 4  ;;  %v3856_v62 = vpack.c.bf16 %v385_v36, %v385_v36  ;;  %v911_v45 = vld [vmem:[#allocation2 + $0x30] sm:$0xf] }
  0x60   : > { %4211 = vmatpush3.bf16.msra.mxu1 %v4671_v30  ;;  %v3857_v60 = vpack.c.bf16 %v386_v46, %v386_v46  ;;  %v337_v63 = vmul.f32 %v3972_v28, %v4860_v31  ;;  %v1149_v4 = vrot.slane %v1148_v54, 4  ;;  %v1153_v5 = vrot.slane %v1151_v56, 5  ;;  %v4693_v28 = vld [vmem:[%s6388_s3 + $0x110] sm:$0xff]   ;;  %v4680_v54 = vld [vmem:[%s6388_s3 + $0x1f8] sm:$0xff]  }
  0x61   : > { %v800_v39 = vsel %vm4918_vm11, %v792_v8, %v799_v48  ;;  %v986_v61 = vsel %vm4931_vm13, %v801_v49, %v985_v21  ;;  %4212 = vmatprep.subr.bf16.mxu1 %v4672_v42  ;;  %v1144_v41 = vsel %vm4865_vm5, %v1139_v58, %v1143_v26  ;;  %v616_v6 = vshrl.u32 %v3856_v62, 16  ;;  %v4679_v26 = vld [vmem:[%s6388_s3 + $0x80] sm:$0xff]   ;;  %4323 = vmatpush3.bf16.msra.mxu0 %v4693_v28 }
  0x62   : > { %984 = vst [vmem:[#allocation2 + $0xac] sm:$0xf] %v800_v39  ;;  %987 = vst [vmem:[#allocation2 + $0xb0] sm:$0x1] %v986_v61  ;;  %v619_v24 = vshll.u32 %v3856_v62, 16  ;;  %v624_v51 = vshrl.u32 %v3857_v60, 16  ;;  %v1154_v8 = vsel %vm4865_vm5, %v1149_v4, %v1153_v5  ;;  %v338_v16 = vmul.f32 %v3973_v47, %v4860_v31 }
  0x63   : > { %v627_v14 = vshll.u32 %v3857_v60, 16  ;;  %v375_v21 = vadd.f32 %v4872_v40, %v337_v63  ;;  %v5208_v30 = vcombine.low %v1144_v41, %v1154_v8  ;;  %v618_v12 = vrot.slane %v616_v6, 7  ;;  %v915_v62 = vld [vmem:[#allocation2 + $0x38] sm:$0x1]  ;;  %v4699_v8 = vld [vmem:[%s6388_s3 + $0x108] sm:$0xff]  }
  0x64   : > { %v626_v34 = vrot.slane %v624_v51, 7  ;;  %4213 = vmatpush3.bf16.msra.mxu1 %v4676_v53  ;;  %v3932_v38 = vunpack.c.l.bf16 %v5191_v2  ;;  %v376_v36 = vadd.f32 %v4872_v40, %v338_v16  ;;  %v3933_v47 = vunpack.c.h.bf16 %v5191_v2  ;;  %v4697_v40 = vld [vmem:[%s6388_s3 + $0x148] sm:$0xff]  }
  0x65   : > { %v1044_v42 = vld [vmem:[#allocation2 + $0xa8] sm:$0xf]  ;;  %v407_v46 = vmax.f32 %v375_v21, 0.0  ;;  %4214 = vmatprep.subr.bf16.mxu1 %v4678_v23  ;;  %v3936_v56 = vunpack.c.l.bf16 %v5199_v7  ;;  %2522 = vmatprep.mubr.bf16.mxu0 %v5208_v30  ;;  %v621_v49 = vor.u32 %v619_v24, %v618_v12  ;;  %v622_v58 = vrot.slane %v618_v12, 4 }
  0x66   : > { %v1396_v48 = vshrl.u32 %v1044_v42, 16  ;;  %v1399_v53 = vshll.u32 %v1044_v42, 16  ;;  %2523 = vmatmul.mubr.bf16.gmra.mxu0 %v5163_v13  ;;  %v629_v60 = vor.u32 %v627_v14, %v626_v34  ;;  %v631_v63 = vrot.slane %v626_v34, 4  ;;  %4324 = vmatprep.subr.bf16.mxu0 %v4697_v40 }
  0x67   : > { %v408_v1 = vmax.f32 %v376_v36, 0.0  ;;  %v3878_v4 = vpack.c.bf16 %v407_v46, %v407_v46  ;;  %v912_v61 = vsel %vm4925_vm12, %v621_v49, %v911_v45  ;;  %v317_v23 = vmul.f32 %v3932_v38, %v4860_v31  ;;  %v988_v45 = vld [vmem:[#allocation2 + $0xb4] sm:$0xf]  ;;  %4325 = vmatpush3.bf16.msra.mxu0 %v4699_v8 }
  0x68   : > { %v1398_v5 = vrot.slane %v1396_v48, 4  ;;  %v1401_v39 = vrot.slane %v1399_v53, 5  ;;  %4215 = vmatpush3.bf16.msra.mxu1 %v4679_v26  ;;  %v630_v41 = vsel %vm4918_vm11, %v622_v58, %v629_v60  ;;  %913 = vst [vmem:[#allocation2 + $0x30] sm:$0xf] %v912_v61  ;;  %v916_v6 = vsel %vm4931_vm13, %v631_v63, %v915_v62  ;;  %v992_v53 = vld [vmem:[#allocation2 + $0xbc] sm:$0x1] }
  0x69   : > { %v1045_v2 = vld [vmem:[#allocation2 + $0xac] sm:$0xf]  ;;  %v1046_v28 = vld [vmem:[#allocation2 + $0xb0] sm:$0x1]  ;;  %v3879_v24 = vpack.c.bf16 %v408_v1, %v408_v1  ;;  %v803_v51 = vshrl.u32 %v3878_v4, 16  ;;  %4424 = vmatprep.subr.bf16.mxu1 %v4680_v54  ;;  %v806_v34 = vshll.u32 %v3878_v4, 16 }
  0x6a   : > { %v1402_v14 = vor.u32 %v1401_v39, %v1398_v5  ;;  %v1405_v16 = vshll.u32 %v1045_v2, 16  ;;  %v1409_v31 = vshrl.u32 %v1045_v2, 16  ;;  %v1415_v21 = vshll.u32 %v1046_v28, 16  ;;  %914 = vst [vmem:[#allocation2 + $0x34] sm:$0xf] %v630_v41  ;;  %v4703_v41 = vld [vmem:[%s6388_s3 + $0x140] sm:$0xff]  }
  0x6b   : > { %917 = vst [vmem:[#allocation2 + $0x38] sm:$0x1] %v916_v6  ;;  %v5232_v26 = vcombine.low %v1044_v42, %v1045_v2  ;;  %v805_v12 = vrot.slane %v803_v51, 7  ;;  %v811_v38 = vshrl.u32 %v3879_v24, 16  ;;  %v814_v40 = vshll.u32 %v3879_v24, 16  ;;  %4326 = vmatprep.subr.bf16.mxu0 %v4703_v41 }
  0x6c   : > { %v1403_v36 = vrot.slane %v1402_v14, 4  ;;  %v1407_v46 = vrot.slane %v1405_v16, 5  ;;  %v1411_v54 = vrot.slane %v1409_v31, 4  ;;  %v1417_v48 = vrot.slane %v1415_v21, 5  ;;  %v5239_v42 = vld [vmem:[%s6386_s1] ss:$0 sm:$0xff] }
  0x6d   : > { %v808_v49 = vor.u32 %v806_v34, %v805_v12  ;;  %v809_v58 = vrot.slane %v805_v12, 4  ;;  %v813_v62 = vrot.slane %v811_v38, 7  ;;  %v318_v1 = vmul.f32 %v5239_v42, %v3933_v47  ;;  %v5245_v4 = vld [vmem:[%s6387_s2] ss:$0 sm:$0xff] }
  0x6e   : > { %v1408_v60 = vsel %vm4865_vm5, %v1403_v36, %v1407_v46  ;;  %v1412_v63 = vor.u32 %v1411_v54, %v1407_v46  ;;  %v355_v5 = vadd.f32 %v5245_v4, %v317_v23  ;;  %v3937_v28 = vunpack.c.h.bf16 %v5199_v7 }
  0x6f   : > { %v816_v39 = vor.u32 %v814_v40, %v813_v62  ;;  %v818_v61 = vrot.slane %v813_v62, 4  ;;  %v989_v2 = vsel %vm4925_vm12, %v808_v49, %v988_v45  ;;  %v5254_v47 = vld [vmem:[#allocation2 + $0x30] sm:$0xf]  ;;  %v356_v24 = vadd.f32 %v5245_v4, %v318_v1  ;;  %v4704_v45 = vld [vmem:[%s6388_s3 + $0x100] sm:$0xff]  }
  0x70   : > { %v1413_v6 = vrot.slane %v1412_v63, 4  ;;  %990 = vst [vmem:[#allocation2 + $0xb4] sm:$0xf] %v989_v2  ;;  %v387_v51 = vmax.f32 %v355_v5, 0.0  ;;  %v319_v23 = vmul.f32 %v5239_v42, %v3936_v56  ;;  %v1156_v16 = vshrl.u32 %v5254_v47, 16  ;;  %4327 = vmatpush3.bf16.msra.mxu0 %v4704_v45 }
  0x71   : > { %v5260_v8 = vld [vmem:[#allocation2 + $0x34] sm:$0xf]  ;;  %v1159_v31 = vshll.u32 %v5254_v47, 16  ;;  %v817_v21 = vsel %vm4918_vm11, %v809_v58, %v816_v39  ;;  %v993_v12 = vsel %vm4931_vm13, %v818_v61, %v992_v53  ;;  %v388_v40 = vmax.f32 %v356_v24, 0.0 }
  0x72   : > { %v5262_v14 = vld [vmem:[#allocation2 + $0x38] sm:$0x1]  ;;  %v1418_v7 = vsel %vm4865_vm5, %v1413_v6, %v1417_v48  ;;  %v1165_v56 = vshll.u32 %v5260_v8, 16  ;;  %v1169_v34 = vshrl.u32 %v5260_v8, 16  ;;  %991 = vst [vmem:[#allocation2 + $0xb8] sm:$0xf] %v817_v21  ;;  %v5282_v53 = vcombine.low %v5254_v47, %v5260_v8 }
  0x73   : > { %v1175_v38 = vshll.u32 %v5262_v14, 16  ;;  %994 = vst [vmem:[#allocation2 + $0xbc] sm:$0x1] %v993_v12  ;;  %v5278_v36 = vcombine.low %v1408_v60, %v1418_v7  ;;  %v1158_v46 = vrot.slane %v1156_v16, 4  ;;  %v1161_v54 = vrot.slane %v1159_v31, 5  ;;  %v4706_v48 = vld [vmem:[%s6388_s3 + $0x238] sm:$0xff]  }
  0x74   : > { %6421 = vst [vmem:[#allocation8_spill] sm:$0xff] %v5282_v53  ;;  %v1167_v49 = vrot.slane %v1165_v56, 5  ;;  %v1171_v58 = vrot.slane %v1169_v34, 4  ;;  %v3858_v60 = vpack.c.bf16 %v387_v51, %v387_v51  ;;  %v320_v1 = vmul.f32 %v5239_v42, %v3937_v28  ;;  %4560 = vmatprep.subr.bf16.mxu0 %v4706_v48 }
  0x75   : > { %6420 = vst [vmem:[#allocation7_spill] sm:$0xff] %v5278_v36  ;;  %v1177_v62 = vrot.slane %v1175_v38, 5  ;;  %2610 = vmatprep.mubr.bf16.mxu1 %v5278_v36  ;;  %v1162_v63 = vor.u32 %v1161_v54, %v1158_v46  ;;  %v357_v5 = vadd.f32 %v5245_v4, %v319_v23  ;;  %v3859_v61 = vpack.c.bf16 %v388_v40, %v388_v40 }
  0x76   : > { %2611 = vmatmul.mubr.bf16.gmra.mxu1 %v5232_v26  ;;  %v1172_v39 = vor.u32 %v1171_v58, %v1167_v49  ;;  %v3671_v2 = vrot.slane %v4968_v17, 9  ;;  %v1503_v41 = vrot.slane %v4970_v18, 5  ;;  %v633_v16 = vshrl.u32 %v3858_v60, 16  ;;  %v918_v18 = vld [vmem:[#allocation2 + $0x3c] sm:$0xf] }
  0x77   : > { %v1163_v6 = vrot.slane %v1162_v63, 4  ;;  %v1047_v24 = vld [vmem:[#allocation2 + $0xb4] sm:$0xf]  ;;  %v636_v31 = vshll.u32 %v3858_v60, 16  ;;  %v358_v21 = vadd.f32 %v5245_v4, %v320_v1  ;;  %v641_v7 = vshrl.u32 %v3859_v61, 16 }
  0x78   : > { %v1173_v51 = vrot.slane %v1172_v39, 4  ;;  %v1420_v12 = vshrl.u32 %v1047_v24, 16  ;;  %v1423_v28 = vshll.u32 %v1047_v24, 16  ;;  %v635_v17 = vrot.slane %v633_v16, 7 }
  0x79   : > { %v1168_v23 = vsel %vm4865_vm5, %v1163_v6, %v1167_v49  ;;  %v1048_v56 = vld [vmem:[#allocation2 + $0xb8] sm:$0xf]  ;;  %v644_v38 = vshll.u32 %v3859_v61, 16  ;;  %v1504_v45 = vsel %vm4852_vm4, %v3671_v2, %v1503_v41  ;;  %v4063_v49 = vld [vmem:[%s4832_s22 + $0x30] sm:$0xff]  }
  0x7a   : > { %v1049_v34 = vld [vmem:[#allocation2 + $0xbc] sm:$0x1]  ;;  %v1178_v46 = vsel %vm4865_vm5, %v1173_v51, %v1177_v62  ;;  %v1422_v54 = vrot.slane %v1420_v12, 4  ;;  %v1425_v48 = vrot.slane %v1423_v28, 5  ;;  %v1429_v58 = vshll.u32 %v1048_v56, 16 }
  0x7b   : > { %v5300_v40 = vcombine.low %v1168_v23, %v1178_v46  ;;  %v1433_v63 = vshrl.u32 %v1048_v56, 16  ;;  %v1439_v60 = vshll.u32 %v1049_v34, 16  ;;  %v5302_v1 = vcombine.low %v1047_v24, %v1048_v56 }
  0x7c   : > { %v1426_v39 = vor.u32 %v1425_v48, %v1422_v54  ;;  %v1431_v6 = vrot.slane %v1429_v58, 5  ;;  %v638_v61 = vor.u32 %v636_v31, %v635_v17  ;;  %v639_v16 = vrot.slane %v635_v17, 4 }
  0x7d   : > { %2530 = vmatprep.mubr.bf16.mxu0 %v5300_v40  ;;  %v1435_v2 = vrot.slane %v1433_v63, 4  ;;  %v1441_v36 = vrot.slane %v1439_v60, 5  ;;  %v643_v62 = vrot.slane %v641_v7, 7  ;;  %v389_v51 = vmax.f32 %v357_v5, 0.0  ;;  %v925_v60 = vld [vmem:[#allocation2 + $0x48] sm:$0xf] }
  0x7e   : > { %v1427_v12 = vrot.slane %v1426_v39, 4  ;;  %2531 = vmatmul.mubr.bf16.gmra.mxu0 %v5282_v53  ;;  %v919_v28 = vsel %vm4925_vm12, %v638_v61, %v918_v18  ;;  %v390_v24 = vmax.f32 %v358_v21, 0.0  ;;  %v1505_v23 = vrot.slane %v1503_v41, 4  ;;  %v929_v61 = vld [vmem:[#allocation2 + $0x50] sm:$0x1] }
  0x7f   : > { %v1436_v56 = vor.u32 %v1435_v2, %v1431_v6  ;;  %v646_v34 = vor.u32 %v644_v38, %v643_v62  ;;  %v648_v46 = vrot.slane %v643_v62, 4  ;;  %920 = vst [vmem:[#allocation2 + $0x3c] sm:$0xf] %v919_v28  ;;  %v3860_v31 = vpack.c.bf16 %v389_v51, %v389_v51  ;;  %v4064_v28 = vld [vmem:[%s4832_s22 + $0x38] sm:$0xff]  }
  0x80   : > { %v1432_v17 = vsel %vm4865_vm5, %v1427_v12, %v1431_v6  ;;  %v3861_v54 = vpack.c.bf16 %v390_v24, %v390_v24  ;;  %v1506_v7 = vrot.slane %v4972_v19, 5  ;;  %v3940_v5 = vunpack.c.l.bf16 %v4063_v49 }
  0x81   : > { %v1437_v48 = vrot.slane %v1436_v56, 4  ;;  %v647_v58 = vsel %vm4918_vm11, %v639_v16, %v646_v34  ;;  %v923_v21 = vsel %vm4931_vm13, %v648_v46, %v922_v55  ;;  %v650_v41 = vshrl.u32 %v3860_v31, 16 }
  0x82   : > { %921 = vst [vmem:[#allocation2 + $0x40] sm:$0xf] %v647_v58  ;;  %924 = vst [vmem:[#allocation2 + $0x44] sm:$0x1] %v923_v21  ;;  %v653_v38 = vshll.u32 %v3860_v31, 16  ;;  %v658_v18 = vshrl.u32 %v3861_v54, 16  ;;  %v1507_v39 = vsel %vm4852_vm4, %v1505_v23, %v1506_v7  ;;  %v3941_v2 = vunpack.c.h.bf16 %v4063_v49 }
  0x83   : > { %v661_v63 = vshll.u32 %v3861_v54, 16  ;;  %v1442_v19 = vsel %vm4865_vm5, %v1437_v48, %v1441_v36  ;;  %v652_v6 = vrot.slane %v650_v41, 7  ;;  %v5320_v16 = vcombine.low %v1504_v45, %v1507_v39 }
  0x84   : > { %v5322_v55 = vcombine.low %v1432_v17, %v1442_v19  ;;  %v660_v62 = vrot.slane %v658_v18, 7  ;;  %v321_v51 = vmul.f32 %v5239_v42, %v3940_v5  ;;  %v3672_v12 = vrot.slane %v5059_v11, 9 }
  0x85   : > { %v655_v24 = vor.u32 %v653_v38, %v652_v6  ;;  %v656_v56 = vrot.slane %v652_v6, 4  ;;  %v322_v23 = vmul.f32 %v5239_v42, %v3941_v2  ;;  %v1510_v34 = vrot.slane %v5083_v44, 5 }
  0x86   : > { %6422 = vst [vmem:[#allocation9_spill] sm:$0xff] %v5322_v55  ;;  %2618 = vmatprep.mubr.bf16.mxu1 %v5322_v55  ;;  %v5330_v36 = vld [vmem:[#allocation2 + $0x3c] sm:$0xf]  ;;  %v663_v45 = vor.u32 %v661_v63, %v660_v62  ;;  %v665_v49 = vrot.slane %v660_v62, 4  ;;  %v359_v46 = vadd.f32 %v5245_v4, %v321_v51  ;;  %v1513_v31 = vrot.slane %v5085_v20, 5 }
  0x87   : > { %2619 = vmatmul.mubr.bf16.gmra.mxu1 %v5302_v1  ;;  %v1180_v11 = vshrl.u32 %v5330_v36, 16  ;;  %v1183_v17 = vshll.u32 %v5330_v36, 16  ;;  %v926_v54 = vsel %vm4925_vm12, %v655_v24, %v925_v60  ;;  %v360_v44 = vadd.f32 %v5245_v4, %v322_v23 }
  0x88   : > { %2659 = vmatprep.mubr.bf16.mxu1 %v4990_v33  ;;  %v664_v7 = vsel %vm4918_vm11, %v656_v56, %v663_v45  ;;  %927 = vst [vmem:[#allocation2 + $0x48] sm:$0xf] %v926_v54  ;;  %v930_v20 = vsel %vm4931_vm13, %v665_v49, %v929_v61  ;;  %v391_v5 = vmax.f32 %v359_v46, 0.0  ;;  %v1511_v48 = vsel %vm4852_vm4, %v3672_v12, %v1510_v34 }
  0x89   : > { %v5347_v58 = vld [vmem:[#allocation2 + $0x40] sm:$0xf]  ;;  %v5349_v21 = vld [vmem:[#allocation2 + $0x44] sm:$0x1]  ;;  %v1182_v41 = vrot.slane %v1180_v11, 4  ;;  %v1185_v38 = vrot.slane %v1183_v17, 5  ;;  %v3944_v33 = vunpack.c.l.bf16 %v4064_v28  ;;  %v3945_v18 = vunpack.c.h.bf16 %v4064_v28 }
  0x8a   : > { %928 = vst [vmem:[#allocation2 + $0x4c] sm:$0xf] %v664_v7  ;;  %931 = vst [vmem:[#allocation2 + $0x50] sm:$0x1] %v930_v20  ;;  %v1189_v63 = vshll.u32 %v5347_v58, 16  ;;  %v1193_v60 = vshrl.u32 %v5347_v58, 16  ;;  %v5356_v19 = vcombine.low %v5330_v36, %v5347_v58  ;;  %v3862_v2 = vpack.c.bf16 %v391_v5, %v391_v5 }
  0x8b   : > { %v1199_v39 = vshll.u32 %v5349_v21, 16  ;;  %v1186_v6 = vor.u32 %v1185_v38, %v1182_v41  ;;  %v392_v61 = vmax.f32 %v360_v44, 0.0  ;;  %v1512_v62 = vrot.slane %v1510_v34, 4  ;;  %v4682_v28 = vld [vmem:[%s6388_s3 + $0x1b8] sm:$0xff]   ;;  %v4687_v11 = vld [vmem:[%s6388_s3 + $0x1f0] sm:$0xff]  }
  0x8c   : > { %6423 = vst [vmem:[#allocation10_spill] sm:$0xff] %v5356_v19  ;;  %v1191_v51 = vrot.slane %v1189_v63, 5  ;;  %v1195_v12 = vrot.slane %v1193_v60, 4  ;;  %v323_v56 = vmul.f32 %v5239_v42, %v3944_v33  ;;  %v667_v49 = vshrl.u32 %v3862_v2, 16  ;;  %v932_v63 = vld [vmem:[#allocation2 + $0x54] sm:$0xf] }
  0x8d   : > { %v1201_v24 = vrot.slane %v1199_v39, 5  ;;  %v1187_v23 = vrot.slane %v1186_v6, 4  ;;  %v3863_v45 = vpack.c.bf16 %v392_v61, %v392_v61  ;;  %v670_v46 = vshll.u32 %v3862_v2, 16 }
  0x8e   : > { %v1196_v17 = vor.u32 %v1195_v12, %v1191_v51  ;;  %v1514_v34 = vsel %vm4852_vm4, %v1512_v62, %v1513_v31  ;;  %v324_v54 = vmul.f32 %v5239_v42, %v3945_v18  ;;  %v361_v44 = vadd.f32 %v5245_v4, %v323_v56  ;;  %v4690_v31 = vld [vmem:[%s6388_s3 + $0x1b0] sm:$0xff]   ;;  %v4694_v12 = vld [vmem:[%s6388_s3 + $0x1e8] sm:$0xff]  }
  0x8f   : > { %v1192_v7 = vsel %vm4865_vm5, %v1187_v23, %v1191_v51  ;;  %v6424_v20 = vcombine.low %v4888_v50, %v4879_v43  ;;  %v5374_v5 = vld [vmem:[#allocation2 + $0x48] sm:$0xf]  ;;  %v669_v41 = vrot.slane %v667_v49, 7  ;;  %v675_v38 = vshrl.u32 %v3863_v45, 16 }
  0x90   : > { %v678_v33 = vshll.u32 %v3863_v45, 16  ;;  %v1197_v18 = vrot.slane %v1196_v17, 4  ;;  %v1204_v6 = vshrl.u32 %v5374_v5, 16  ;;  %v5385_v43 = vcombine.low %v1511_v48, %v1514_v34 }
  0x91   : > { %2660 = vmatmul.mubr.bf16.vlgmr.msra.gmra.mxu1 %v6424_v20  ;;  %v5379_v60 = vld [vmem:[#allocation2 + $0x4c] sm:$0xf]  ;;  %v5381_v39 = vld [vmem:[#allocation2 + $0x50] sm:$0x1]  ;;  %v362_v50 = vadd.f32 %v5245_v4, %v324_v54  ;;  %v1207_v61 = vshll.u32 %v5374_v5, 16  ;;  %v672_v23 = vor.u32 %v670_v46, %v669_v41  ;;  %v677_v20 = vrot.slane %v675_v38, 7 }
  0x92   : > { %4425 = vmatpush3.bf16.msra.mxu1 %v4682_v28  ;;  %2667 = vmatprep.mubr.bf16.mxu1 %v5095_v57  ;;  %v1213_v2 = vshll.u32 %v5379_v60, 16  ;;  %v1217_v62 = vshrl.u32 %v5379_v60, 16  ;;  %v1223_v51 = vshll.u32 %v5381_v39, 16  ;;  %v1202_v28 = vsel %vm4865_vm5, %v1197_v18, %v1201_v24  ;;  %v4696_v24 = vld [vmem:[%s6388_s3 + $0x1a8] sm:$0xff]  }
  0x93   : > { %4426 = vmatprep.subr.bf16.mxu1 %v4687_v11  ;;  %v1206_v48 = vrot.slane %v1204_v6, 4  ;;  %v5399_v56 = vcombine.low %v5374_v5, %v5379_v60  ;;  %v5401_v45 = vcombine.low %v1192_v7, %v1202_v28  ;;  %v1209_v49 = vrot.slane %v1207_v61, 5  ;;  %v936_v7 = vld [vmem:[#allocation2 + $0x5c] sm:$0x1]  ;;  %v4065_v28 = vld [vmem:[%s4832_s22 + $0x40] sm:$0xff]  }
  0x94   : > { %v1215_v17 = vrot.slane %v1213_v2, 5  ;;  %v1219_v34 = vrot.slane %v1217_v62, 4  ;;  %v1225_v54 = vrot.slane %v1223_v51, 5  ;;  %v673_v11 = vrot.slane %v669_v41, 4  ;;  %v4700_v41 = vld [vmem:[%s6388_s3 + $0x1e0] sm:$0xff]  }
  0x95   : > { %6425 = vst [vmem:[#allocation11_spill] sm:$0xff] %v5399_v56  ;;  %v933_v55 = vsel %vm4925_vm12, %v672_v23, %v932_v63  ;;  %2538 = vmatprep.mubr.bf16.mxu0 %v5401_v45  ;;  %v1210_v18 = vor.u32 %v1209_v49, %v1206_v48  ;;  %v393_v6 = vmax.f32 %v361_v44, 0.0  ;;  %v394_v61 = vmax.f32 %v362_v50, 0.0 }
  0x96   : > { %4427 = vmatpush3.bf16.msra.mxu1 %v4690_v31  ;;  %v1220_v46 = vor.u32 %v1219_v34, %v1215_v17  ;;  %934 = vst [vmem:[#allocation2 + $0x54] sm:$0xf] %v933_v55  ;;  %2539 = vmatmul.mubr.bf16.gmra.mxu0 %v5356_v19  ;;  %v680_v38 = vor.u32 %v678_v33, %v677_v20  ;;  %v682_v63 = vrot.slane %v677_v20, 4  ;;  %v3673_v31 = vrot.slane %v5135_v3, 9 }
  0x97   : > { %4428 = vmatprep.subr.bf16.mxu1 %v4694_v12  ;;  %v1517_v2 = vrot.slane %v5137_v35, 5  ;;  %v1211_v62 = vrot.slane %v1210_v18, 4  ;;  %v3864_v55 = vpack.c.bf16 %v393_v6, %v393_v6  ;;  %v3865_v44 = vpack.c.bf16 %v394_v61, %v394_v61  ;;  %v4702_v35 = vld [vmem:[%s6388_s3 + $0x1a0] sm:$0xff]  }
  0x98   : > { %v1221_v51 = vrot.slane %v1220_v46, 4  ;;  %v681_v50 = vsel %vm4918_vm11, %v673_v11, %v680_v38  ;;  %v937_v12 = vsel %vm4931_vm13, %v682_v63, %v936_v7  ;;  %v4705_v11 = vld [vmem:[%s6388_s3 + $0x1d8] sm:$0xff]   ;;  %v1520_v46 = vrot.slane %v5169_v32, 5 }
  0x99   : > { %2668 = vmatmul.mubr.bf16.gmra.mxu1 %v5320_v16  ;;  %v1518_v33 = vsel %vm4852_vm4, %v3673_v31, %v1517_v2  ;;  %v1519_v3 = vrot.slane %v1517_v2, 4  ;;  %v1216_v48 = vsel %vm4865_vm5, %v1211_v62, %v1215_v17  ;;  %935 = vst [vmem:[#allocation2 + $0x58] sm:$0xf] %v681_v50  ;;  %938 = vst [vmem:[#allocation2 + $0x5c] sm:$0x1] %v937_v12  ;;  %v684_v49 = vshrl.u32 %v3864_v55, 16 }
  0x9a   : > { %2675 = vmatprep.mubr.bf16.mxu1 %v5163_v13  ;;  %4429 = vmatpush3.bf16.msra.mxu1 %v4696_v24  ;;  %v1226_v23 = vsel %vm4865_vm5, %v1221_v51, %v1225_v54  ;;  %v687_v34 = vshll.u32 %v3864_v55, 16  ;;  %v692_v24 = vshrl.u32 %v3865_v44, 16  ;;  %v695_v18 = vshll.u32 %v3865_v44, 16  ;;  %v939_v17 = vld [vmem:[#allocation2 + $0x60] sm:$0xf]  ;;  %v4707_v44 = vld [vmem:[%s6388_s3 + $0x198] sm:$0xff]  }
  0x9b   : > { %4430 = vmatprep.subr.bf16.mxu1 %v4700_v41  ;;  %v5434_v20 = vcombine.low %v1216_v48, %v1226_v23  ;;  %v686_v7 = vrot.slane %v684_v49, 7  ;;  %v3948_v6 = vunpack.c.l.bf16 %v4065_v28  ;;  %v3949_v61 = vunpack.c.h.bf16 %v4065_v28  ;;  %v946_v13 = vld [vmem:[#allocation2 + $0x6c] sm:$0xf] }
  0x9c   : > { %v3674_v54 = vrot.slane %v5254_v47, 9  ;;  %v694_v41 = vrot.slane %v692_v24, 7  ;;  %v1521_v63 = vsel %vm4852_vm4, %v1519_v3, %v1520_v46  ;;  %v1524_v31 = vrot.slane %v5260_v8, 5  ;;  %v943_v47 = vld [vmem:[#allocation2 + $0x68] sm:$0x1]  ;;  %v4708_v3 = vld [vmem:[%s6388_s3 + $0x1d0] sm:$0xff]  }
  0x9d   : > { %2546 = vmatprep.mubr.bf16.mxu0 %v5434_v20  ;;  %v5439_v38 = vld [vmem:[#allocation2 + $0x54] sm:$0xf]  ;;  %v1527_v2 = vrot.slane %v5262_v14, 5  ;;  %v689_v51 = vor.u32 %v687_v34, %v686_v7  ;;  %v690_v55 = vrot.slane %v686_v7, 4  ;;  %v5451_v8 = vcombine.low %v1518_v33, %v1521_v63 }
  0x9e   : > { %4431 = vmatpush3.bf16.msra.mxu1 %v4702_v35  ;;  %v1228_v32 = vshrl.u32 %v5439_v38, 16  ;;  %v1231_v62 = vshll.u32 %v5439_v38, 16  ;;  %2547 = vmatmul.mubr.bf16.gmra.mxu0 %v5399_v56  ;;  %v697_v50 = vor.u32 %v695_v18, %v694_v41  ;;  %v699_v12 = vrot.slane %v694_v41, 4  ;;  %v4710_v41 = vld [vmem:[%s6388_s3 + $0x190] sm:$0xff]  }
  0x9f   : > { %4432 = vmatprep.subr.bf16.mxu1 %v4705_v11  ;;  %v325_v14 = vmul.f32 %v5239_v42, %v3948_v6  ;;  %v940_v48 = vsel %vm4925_vm12, %v689_v51, %v939_v17  ;;  %v326_v23 = vmul.f32 %v5239_v42, %v3949_v61  ;;  %v1525_v18 = vsel %vm4852_vm4, %v3674_v54, %v1524_v31  ;;  %v4066_v61 = vld [vmem:[%s4832_s22 + $0x48] sm:$0xff]  }
  0xa0   : > { %v1230_v28 = vrot.slane %v1228_v32, 4  ;;  %v1233_v35 = vrot.slane %v1231_v62, 5  ;;  %v5461_v49 = vld [vmem:[#allocation2 + $0x58] sm:$0xf]  ;;  %v5463_v33 = vld [vmem:[#allocation2 + $0x5c] sm:$0x1]  ;;  %v698_v34 = vsel %vm4918_vm11, %v690_v55, %v697_v50  ;;  %v944_v11 = vsel %vm4931_vm13, %v699_v12, %v943_v47 }
  0xa1   : > { %2676 = vmatmul.mubr.bf16.gmra.mxu1 %v5385_v43  ;;  %941 = vst [vmem:[#allocation2 + $0x60] sm:$0xf] %v940_v48  ;;  %v363_v24 = vadd.f32 %v5245_v4, %v325_v14  ;;  %v1237_v7 = vshll.u32 %v5461_v49, 16  ;;  %v1241_v17 = vshrl.u32 %v5461_v49, 16  ;;  %v1247_v6 = vshll.u32 %v5463_v33, 16  ;;  %v4711_v51 = vld [vmem:[%s6388_s3 + $0x1c8] sm:$0xff]  }
  0xa2   : > { %2683 = vmatprep.mubr.bf16.mxu1 %v5282_v53  ;;  %v1234_v46 = vor.u32 %v1233_v35, %v1230_v28  ;;  %942 = vst [vmem:[#allocation2 + $0x64] sm:$0xf] %v698_v34  ;;  %945 = vst [vmem:[#allocation2 + $0x68] sm:$0x1] %v944_v11  ;;  %4433 = vmatpush3.bf16.msra.mxu1 %v4707_v44  ;;  %v5482_v63 = vcombine.low %v5439_v38, %v5461_v49  ;;  %v1526_v62 = vrot.slane %v1524_v31, 4  ;;  %v5495_v34 = vld [vmem:[%s4832_s22 + $0x50] sm:$0xff]  }
  0xa3   : > { %v364_v54 = vadd.f32 %v5245_v4, %v326_v23  ;;  %v395_v32 = vmax.f32 %v363_v24, 0.0  ;;  %4434 = vmatprep.subr.bf16.mxu1 %v4708_v3  ;;  %v1239_v47 = vrot.slane %v1237_v7, 5  ;;  %v1243_v44 = vrot.slane %v1241_v17, 4  ;;  %v4713_v11 = vld [vmem:[%s6388_s3 + $0x188] sm:$0xff]   ;;  %v4714_v17 = vld [vmem:[%s6388_s3 + $0x1c0] sm:$0xff]  }
  0xa4   : > { %6426 = vst [vmem:[#allocation12_spill] sm:$0xff] %v5482_v63  ;;  %v1235_v55 = vrot.slane %v1234_v46, 4  ;;  %v1249_v50 = vrot.slane %v1247_v6, 5  ;;  %v1528_v28 = vsel %vm4852_vm4, %v1526_v62, %v1527_v2  ;;  %v3952_v35 = vunpack.c.l.bf16 %v4066_v61 }
  0xa5   : > { %v396_v12 = vmax.f32 %v364_v54, 0.0  ;;  %v3866_v14 = vpack.c.bf16 %v395_v32, %v395_v32  ;;  %v1244_v23 = vor.u32 %v1243_v44, %v1239_v47  ;;  %v5492_v31 = vcombine.low %v1525_v18, %v1528_v28  ;;  %v4716_v28 = vld [vmem:[%s6388_s3 + $0x180] sm:$0xff]  }
  0xa6   : > { %v1240_v48 = vsel %vm4865_vm5, %v1235_v55, %v1239_v47  ;;  %v3953_v3 = vunpack.c.h.bf16 %v4066_v61  ;;  %4435 = vmatpush3.bf16.msra.mxu1 %v4710_v41  ;;  %v327_v2 = vmul.f32 %v5239_v42, %v3952_v35  ;;  %v3675_v41 = vrot.slane %v5330_v36, 9 }
  0xa7   : > { %v3867_v24 = vpack.c.bf16 %v396_v12, %v396_v12  ;;  %v701_v46 = vshrl.u32 %v3866_v14, 16  ;;  %v704_v7 = vshll.u32 %v3866_v14, 16  ;;  %4436 = vmatprep.subr.bf16.mxu1 %v4711_v51  ;;  %v1245_v18 = vrot.slane %v1244_v23, 4 }
  0xa8   : > { %v5504_v6 = vld [vmem:[#allocation2 + $0x60] sm:$0xf]  ;;  %v328_v61 = vmul.f32 %v5239_v42, %v3953_v3  ;;  %v1531_v54 = vrot.slane %v5347_v58, 5  ;;  %v365_v47 = vadd.f32 %v5245_v4, %v327_v2  ;;  %v3956_v44 = vunpack.c.l.bf16 %v5495_v34 }
  0xa9   : > { %2684 = vmatmul.mubr.bf16.gmra.mxu1 %v5451_v8  ;;  %v5510_v32 = vld [vmem:[#allocation2 + $0x64] sm:$0xf]  ;;  %v5512_v62 = vld [vmem:[#allocation2 + $0x68] sm:$0x1]  ;;  %v1252_v51 = vshrl.u32 %v5504_v6, 16  ;;  %v1255_v55 = vshll.u32 %v5504_v6, 16  ;;  %v1250_v12 = vsel %vm4865_vm5, %v1245_v18, %v1249_v50 }
  0xaa   : > { %2691 = vmatprep.mubr.bf16.mxu1 %v5356_v19  ;;  %v1261_v36 = vshll.u32 %v5510_v32, 16  ;;  %v1265_v58 = vshrl.u32 %v5510_v32, 16  ;;  %v1271_v14 = vshll.u32 %v5512_v62, 16  ;;  %4437 = vmatpush3.bf16.msra.mxu1 %v4713_v11  ;;  %v5527_v35 = vcombine.low %v1240_v48, %v1250_v12 }
  0xab   : > { %v1254_v23 = vrot.slane %v1252_v51, 4  ;;  %v1257_v3 = vrot.slane %v1255_v55, 5  ;;  %v5531_v2 = vcombine.low %v5504_v6, %v5510_v32  ;;  %4438 = vmatprep.subr.bf16.mxu1 %v4714_v17  ;;  %v703_v52 = vrot.slane %v701_v46, 7 }
  0xac   : > { %v1263_v50 = vrot.slane %v1261_v36, 5  ;;  %v1267_v18 = vrot.slane %v1265_v58, 4  ;;  %v1273_v10 = vrot.slane %v1271_v14, 5  ;;  %2554 = vmatprep.mubr.bf16.mxu0 %v5527_v35  ;;  %v709_v19 = vshrl.u32 %v3867_v24, 16 }
  0xad   : > { %6427 = vst [vmem:[#allocation13_spill] sm:$0xff] %v5531_v2  ;;  %v1258_v11 = vor.u32 %v1257_v3, %v1254_v23  ;;  %v712_v53 = vshll.u32 %v3867_v24, 16  ;;  %v366_v48 = vadd.f32 %v5245_v4, %v328_v61  ;;  %2555 = vmatmul.mubr.bf16.gmra.mxu0 %v5482_v63  ;;  %v706_v55 = vor.u32 %v704_v7, %v703_v52  ;;  %v950_v23 = vld [vmem:[#allocation2 + $0x74] sm:$0x1] }
  0xae   : > { %v1268_v51 = vor.u32 %v1267_v18, %v1263_v50  ;;  %v707_v12 = vrot.slane %v703_v52, 4  ;;  %v397_v57 = vmax.f32 %v365_v47, 0.0  ;;  %4439 = vmatpush3.bf16.msra.mxu1 %v4716_v28  ;;  %v711_v36 = vrot.slane %v709_v19, 7 }
  0xaf   : > { %v1259_v17 = vrot.slane %v1258_v11, 4  ;;  %v398_v58 = vmax.f32 %v366_v48, 0.0  ;;  %v1532_v46 = vsel %vm4852_vm4, %v3675_v41, %v1531_v54  ;;  %v947_v24 = vsel %vm4925_vm12, %v706_v55, %v946_v13  ;;  %v953_v55 = vld [vmem:[#allocation2 + $0x78] sm:$0xf] }
  0xb0   : > { %v1269_v14 = vrot.slane %v1268_v51, 4  ;;  %v3868_v61 = vpack.c.bf16 %v397_v57, %v397_v57  ;;  %v1533_v3 = vrot.slane %v1531_v54, 4  ;;  %v714_v7 = vor.u32 %v712_v53, %v711_v36  ;;  %948 = vst [vmem:[#allocation2 + $0x6c] sm:$0xf] %v947_v24  ;;  %v957_v24 = vld [vmem:[#allocation2 + $0x80] sm:$0x1] }
  0xb1   : > { %2692 = vmatmul.mubr.bf16.gmra.mxu1 %v5492_v31  ;;  %v1264_v52 = vsel %vm4865_vm5, %v1259_v17, %v1263_v50  ;;  %v716_v47 = vrot.slane %v711_v36, 4  ;;  %v3869_v19 = vpack.c.bf16 %v398_v58, %v398_v58  ;;  %v1534_v13 = vrot.slane %v5349_v21, 5 }
  0xb2   : > { %2699 = vmatprep.mubr.bf16.mxu1 %v5399_v56  ;;  %v1274_v41 = vsel %vm4865_vm5, %v1269_v14, %v1273_v10  ;;  %v718_v28 = vshrl.u32 %v3868_v61, 16  ;;  %v721_v18 = vshll.u32 %v3868_v61, 16  ;;  %v715_v57 = vsel %vm4918_vm11, %v707_v12, %v714_v7 }
  0xb3   : > { %v5547_v11 = vcombine.low %v1264_v52, %v1274_v41  ;;  %v951_v53 = vsel %vm4931_vm13, %v716_v47, %v950_v23  ;;  %v726_v54 = vshrl.u32 %v3869_v19, 16  ;;  %949 = vst [vmem:[#allocation2 + $0x70] sm:$0xf] %v715_v57  ;;  %v729_v48 = vshll.u32 %v3869_v19, 16 }
  0xb4   : > { %952 = vst [vmem:[#allocation2 + $0x74] sm:$0x1] %v951_v53  ;;  %v720_v50 = vrot.slane %v718_v28, 7  ;;  %v1535_v10 = vsel %vm4852_vm4, %v1533_v3, %v1534_v13  ;;  %v3957_v51 = vunpack.c.h.bf16 %v5495_v34  ;;  %v329_v12 = vmul.f32 %v5239_v42, %v3956_v44 }
  0xb5   : > { %2562 = vmatprep.mubr.bf16.mxu0 %v5547_v11  ;;  %v728_v21 = vrot.slane %v726_v54, 7  ;;  %v5557_v17 = vcombine.low %v1532_v46, %v1535_v10  ;;  %v3676_v36 = vrot.slane %v5374_v5, 9  ;;  %v1538_v61 = vrot.slane %v5379_v60, 5 }
  0xb6   : > { %2563 = vmatmul.mubr.bf16.gmra.mxu0 %v5531_v2  ;;  %v723_v58 = vor.u32 %v721_v18, %v720_v50  ;;  %v724_v14 = vrot.slane %v720_v50, 4  ;;  %v330_v23 = vmul.f32 %v5239_v42, %v3957_v51  ;;  %v367_v52 = vadd.f32 %v5245_v4, %v329_v12 }
  0xb7   : > { %v731_v34 = vor.u32 %v729_v48, %v728_v21  ;;  %v733_v3 = vrot.slane %v728_v21, 4  ;;  %v1541_v46 = vrot.slane %v5381_v39, 5  ;;  %v5566_v7 = vld [vmem:[#allocation2 + $0x6c] sm:$0xf]  ;;  %v1539_v42 = vsel %vm4852_vm4, %v3676_v36, %v1538_v61 }
  0xb8   : > { %v954_v5 = vsel %vm4925_vm12, %v723_v58, %v953_v55  ;;  %v368_v44 = vadd.f32 %v5245_v4, %v330_v23  ;;  %v1540_v47 = vrot.slane %v1538_v61, 4  ;;  %v1276_v60 = vshrl.u32 %v5566_v7, 16 }
  0xb9   : > { %2700 = vmatmul.mubr.bf16.gmra.mxu1 %v5557_v17  ;;  %v1279_v19 = vshll.u32 %v5566_v7, 16  ;;  %v732_v39 = vsel %vm4918_vm11, %v724_v14, %v731_v34  ;;  %955 = vst [vmem:[#allocation2 + $0x78] sm:$0xf] %v954_v5  ;;  %v958_v41 = vsel %vm4931_vm13, %v733_v3, %v957_v24  ;;  %v399_v4 = vmax.f32 %v367_v52, 0.0 }
  0xba   : > { %2707 = vmatprep.mubr.bf16.mxu1 %v5482_v63  ;;  %956 = vst [vmem:[#allocation2 + $0x7c] sm:$0xf] %v732_v39  ;;  %959 = vst [vmem:[#allocation2 + $0x80] sm:$0x1] %v958_v41  ;;  %v400_v28 = vmax.f32 %v368_v44, 0.0  ;;  %v1542_v18 = vsel %vm4852_vm4, %v1540_v47, %v1541_v46  ;;  %v1278_v53 = vrot.slane %v1276_v60, 4 }
  0xbb   : > { %v5583_v13 = vld [vmem:[#allocation2 + $0x70] sm:$0xf]  ;;  %v5585_v57 = vld [vmem:[#allocation2 + $0x74] sm:$0x1]  ;;  %v1281_v54 = vrot.slane %v1279_v19, 5  ;;  %v5590_v51 = vcombine.low %v1539_v42, %v1542_v18  ;;  %v3870_v55 = vpack.c.bf16 %v399_v4, %v399_v4  ;;  %v1545_v36 = vrot.slane %v5461_v49, 5 }
  0xbc   : > { %v1285_v50 = vshll.u32 %v5583_v13, 16  ;;  %v1289_v48 = vshrl.u32 %v5583_v13, 16  ;;  %v1295_v10 = vshll.u32 %v5585_v57, 16  ;;  %v3871_v12 = vpack.c.bf16 %v400_v28, %v400_v28 }
  0xbd   : > { %v1282_v21 = vor.u32 %v1281_v54, %v1278_v53  ;;  %v3677_v23 = vrot.slane %v5439_v38, 9  ;;  %v735_v34 = vshrl.u32 %v3870_v55, 16  ;;  %v738_v3 = vshll.u32 %v3870_v55, 16 }
  0xbe   : > { %v1287_v58 = vrot.slane %v1285_v50, 5  ;;  %v1291_v14 = vrot.slane %v1289_v48, 4  ;;  %v1297_v24 = vrot.slane %v1295_v10, 5  ;;  %v1548_v52 = vrot.slane %v5463_v33, 5 }
  0xbf   : > { %v1283_v61 = vrot.slane %v1282_v21, 4  ;;  %v743_v44 = vshrl.u32 %v3871_v12, 16  ;;  %v746_v42 = vshll.u32 %v3871_v12, 16  ;;  %v1547_v47 = vrot.slane %v1545_v36, 4 }
  0xc0   : > { %v1292_v46 = vor.u32 %v1291_v14, %v1287_v58  ;;  %v5595_v5 = vld [vmem:[#allocation2 + $0x78] sm:$0xf]  ;;  %v5602_v60 = vcombine.low %v5566_v7, %v5583_v13  ;;  %v737_v50 = vrot.slane %v735_v34, 7  ;;  %v1546_v48 = vsel %vm4852_vm4, %v3677_v23, %v1545_v36  ;;  %v964_v23 = vld [vmem:[#allocation2 + $0x8c] sm:$0x1] }
  0xc1   : > { %2708 = vmatmul.mubr.bf16.gmra.mxu1 %v5590_v51  ;;  %v1288_v49 = vsel %vm4865_vm5, %v1283_v61, %v1287_v58  ;;  %v5604_v38 = vld [vmem:[#allocation2 + $0x7c] sm:$0xf]  ;;  %v5606_v19 = vld [vmem:[#allocation2 + $0x80] sm:$0x1]  ;;  %v1300_v33 = vshrl.u32 %v5595_v5, 16  ;;  %v1303_v39 = vshll.u32 %v5595_v5, 16  ;;  %v1549_v34 = vsel %vm4852_vm4, %v1547_v47, %v1548_v52 }
  0xc2   : > { %2715 = vmatprep.mubr.bf16.mxu1 %v5531_v2  ;;  %v1293_v41 = vrot.slane %v1292_v46, 4  ;;  %v1309_v4 = vshll.u32 %v5604_v38, 16  ;;  %v1313_v28 = vshrl.u32 %v5604_v38, 16  ;;  %v1319_v18 = vshll.u32 %v5606_v19, 16  ;;  %v960_v58 = vld [vmem:[#allocation2 + $0x84] sm:$0xf] }
  0xc3   : > { %v1302_v53 = vrot.slane %v1300_v33, 4  ;;  %v1305_v54 = vrot.slane %v1303_v39, 5  ;;  %v740_v46 = vor.u32 %v738_v3, %v737_v50  ;;  %v741_v2 = vrot.slane %v737_v50, 4 }
  0xc4   : > { %v1298_v10 = vsel %vm4865_vm5, %v1293_v41, %v1297_v24  ;;  %v1311_v21 = vrot.slane %v1309_v4, 5  ;;  %v1315_v55 = vrot.slane %v1313_v28, 4  ;;  %v1321_v12 = vrot.slane %v1319_v18, 5 }
  0xc5   : > { %v5618_v14 = vcombine.low %v1288_v49, %v1298_v10  ;;  %v1306_v61 = vor.u32 %v1305_v54, %v1302_v53  ;;  %v745_v56 = vrot.slane %v743_v44, 7  ;;  %v3678_v33 = vrot.slane %v5504_v6, 9  ;;  %v4072_v53 = vld [vmem:[%s4832_s22 + $0x78] sm:$0xff]   ;;  %s6249_s22 = scalar_lea.vmem %s6389_s4, %s3848_s13  ;;  %s3635_s13 = sshll.u32 %s6492_s19, 1 }
  0xc6   : > { %v1316_v63 = vor.u32 %v1315_v55, %v1311_v21  ;;  %v961_v24 = vsel %vm4925_vm12, %v740_v46, %v960_v58  ;;  %v5626_v39 = vcombine.low %v1546_v48, %v1549_v34  ;;  %v1552_v49 = vrot.slane %v5510_v32, 5  ;;  %s235_s11 = scalar_lea.vmem %s6390_s5, %s3635_s13 }
  0xc7   : > { %2570 = vmatprep.mubr.bf16.mxu0 %v5618_v14  ;;  %v1307_v36 = vrot.slane %v1306_v61, 4  ;;  %v748_v44 = vor.u32 %v746_v42, %v745_v56  ;;  %v750_v41 = vrot.slane %v745_v56, 4  ;;  %962 = vst [vmem:[#allocation2 + $0x84] sm:$0xf] %v961_v24  ;;  %v1555_v52 = vrot.slane %v5512_v62, 5 }
  0xc8   : > { %2571 = vmatmul.mubr.bf16.gmra.mxu0 %v5602_v60  ;;  %v1317_v3 = vrot.slane %v1316_v63, 4  ;;  %v1553_v47 = vsel %vm4852_vm4, %v3678_v33, %v1552_v49  ;;  %v1554_v4 = vrot.slane %v1552_v49, 4  ;;  %v1559_v62 = vrot.slane %v5583_v13, 5 }
  0xc9   : > { %v1312_v6 = vsel %vm4865_vm5, %v1307_v36, %v1311_v21  ;;  %2716 = vmatmul.mubr.bf16.gmra.mxu1 %v5626_v39  ;;  %v749_v63 = vsel %vm4918_vm11, %v741_v2, %v748_v44  ;;  %v965_v56 = vsel %vm4931_vm13, %v750_v41, %v964_v23  ;;  %v5650_v18 = vcombine.low %v5595_v5, %v5604_v38 }
  0xca   : > { %v1322_v32 = vsel %vm4865_vm5, %v1317_v3, %v1321_v12  ;;  %2723 = vmatprep.mubr.bf16.mxu1 %v5602_v60  ;;  %963 = vst [vmem:[#allocation2 + $0x88] sm:$0xf] %v749_v63  ;;  %966 = vst [vmem:[#allocation2 + $0x8c] sm:$0x1] %v965_v56  ;;  %v1556_v28 = vsel %vm4852_vm4, %v1554_v4, %v1555_v52  ;;  %v3679_v54 = vrot.slane %v5566_v7, 9  ;;  %v1561_v50 = vrot.slane %v1559_v62, 4 }
  0xcb   : > { %v5644_v42 = vcombine.low %v1312_v6, %v1322_v32  ;;  %v5653_v2 = vcombine.low %v1553_v47, %v1556_v28  ;;  %v1562_v13 = vrot.slane %v5585_v57, 5  ;;  %v3976_v55 = vunpack.c.l.bf16 %v4072_v53 }
  0xcc   : > { %v1566_v12 = vrot.slane %v5604_v38, 5  ;;  %v1560_v57 = vsel %vm4852_vm4, %v3679_v54, %v1559_v62  ;;  %v3977_v49 = vunpack.c.h.bf16 %v4072_v53  ;;  %v4725_v38 = vld [vmem:[%s6386_s1] ss:$0 sm:$0xff]  ;;  %v3680_v6 = vrot.slane %v5595_v5, 9 }
  0xcd   : > { %2578 = vmatprep.mubr.bf16.mxu0 %v5644_v42  ;;  %v1563_v34 = vsel %vm4852_vm4, %v1561_v50, %v1562_v13  ;;  %v339_v3 = vmul.f32 %v4725_v38, %v3976_v55  ;;  %v1569_v32 = vrot.slane %v5606_v19, 5  ;;  %v4726_v53 = vld [vmem:[%s6387_s2] ss:$0 sm:$0xff] }
  0xce   : > { %v5658_v48 = vld [vmem:[#allocation2 + $0x84] sm:$0xf]  ;;  %v5673_v52 = vcombine.low %v1560_v57, %v1563_v34  ;;  %v1568_v4 = vrot.slane %v1566_v12, 4  ;;  %v340_v28 = vmul.f32 %v4725_v38, %v3977_v49  ;;  %v1567_v5 = vsel %vm4852_vm4, %v3680_v6, %v1566_v12  ;;  %v995_v6 = vld [vmem:[#allocation2 + $0xc0] sm:$0xf] }
  0xcf   : > { %v1324_v10 = vshrl.u32 %v5658_v48, 16  ;;  %v1327_v21 = vshll.u32 %v5658_v48, 16  ;;  %v377_v54 = vadd.f32 %v4726_v53, %v339_v3 }
  0xd0   : > { %2579 = vmatmul.mubr.bf16.gmra.mxu0 %v5650_v18  ;;  %v1570_v19 = vsel %vm4852_vm4, %v1568_v4, %v1569_v32 }
  0xd1   : > { %2724 = vmatmul.mubr.bf16.gmra.mxu1 %v5653_v2  ;;  %v1036_v58 = vld [vmem:[#allocation2 + $0x88] sm:$0xf]  ;;  %v1037_v61 = vld [vmem:[#allocation2 + $0x8c] sm:$0x1]  ;;  %v1326_v46 = vrot.slane %v1324_v10, 4  ;;  %v1329_v7 = vrot.slane %v1327_v21, 5  ;;  %v378_v21 = vadd.f32 %v4726_v53, %v340_v28 }
  0xd2   : > { %2731 = vmatprep.mubr.bf16.mxu1 %v5650_v18  ;;  %v1333_v33 = vshll.u32 %v1036_v58, 16  ;;  %v1337_v36 = vshrl.u32 %v1036_v58, 16  ;;  %v1343_v24 = vshll.u32 %v1037_v61, 16  ;;  %v5678_v62 = vcombine.low %v5658_v48, %v1036_v58 }
  0xd3   : > { %v1330_v23 = vor.u32 %v1329_v7, %v1326_v46  ;;  %v1573_v10 = vrot.slane %v1036_v58, 5  ;;  %v409_v55 = vmax.f32 %v377_v54, 0.0  ;;  %v410_v57 = vmax.f32 %v378_v21, 0.0  ;;  %v4709_v54 = vld [vmem:[%s6388_s3 + $0x230] sm:$0xff]  }
  0xd4   : > { %v1335_v44 = vrot.slane %v1333_v33, 5  ;;  %v1339_v41 = vrot.slane %v1337_v36, 4  ;;  %v1345_v56 = vrot.slane %v1343_v24, 5  ;;  %v5695_v33 = vcombine.low %v1567_v5, %v1570_v19 }
  0xd5   : > { %v1331_v47 = vrot.slane %v1330_v23, 4  ;;  %v3880_v34 = vpack.c.bf16 %v409_v55, %v409_v55  ;;  %v3681_v36 = vrot.slane %v5658_v48, 9  ;;  %v1576_v12 = vrot.slane %v1037_v61, 5  ;;  %v4727_v48 = vld [vmem:[#allocation2 + $0x94] sm:$0xf] }
  0xd6   : > { %v1340_v63 = vor.u32 %v1339_v41, %v1335_v44  ;;  %v1575_v24 = vrot.slane %v1573_v10, 4  ;;  %v3881_v23 = vpack.c.bf16 %v410_v57, %v410_v57  ;;  %v1580_v61 = vrot.slane %v4727_v48, 5  ;;  %v4731_v57 = vld [vmem:[#allocation2 + $0xa0] sm:$0xf] }
  0xd7   : > { %v1336_v50 = vsel %vm4865_vm5, %v1331_v47, %v1335_v44  ;;  %v820_v49 = vshrl.u32 %v3880_v34, 16  ;;  %v823_v58 = vshll.u32 %v3880_v34, 16  ;;  %v1574_v41 = vsel %vm4852_vm4, %v3681_v36, %v1573_v10  ;;  %v4729_v10 = vld [vmem:[#allocation2 + $0x98] sm:$0x1]  ;;  %v4732_v36 = vld [vmem:[#allocation2 + $0x9c] sm:$0xf] }
  0xd8   : > { %v1341_v13 = vrot.slane %v1340_v63, 4  ;;  %v828_v3 = vshrl.u32 %v3881_v23, 16  ;;  %v831_v44 = vshll.u32 %v3881_v23, 16  ;;  %v1577_v47 = vsel %vm4852_vm4, %v1575_v24, %v1576_v12 }
  0xd9   : > { %2732 = vmatmul.mubr.bf16.gmra.mxu1 %v5673_v52  ;;  %v822_v38 = vrot.slane %v820_v49, 7  ;;  %v1582_v19 = vrot.slane %v1580_v61, 4  ;;  %v1583_v21 = vrot.slane %v4729_v10, 5  ;;  %v1587_v34 = vrot.slane %v4731_v57, 5  ;;  %v4715_v49 = vld [vmem:[%s6388_s3 + $0x220] sm:$0xff]  }
  0xda   : > { %2739 = vmatprep.mubr.bf16.mxu1 %v5678_v62  ;;  %v1346_v46 = vsel %vm4865_vm5, %v1341_v13, %v1345_v56  ;;  %v830_v63 = vrot.slane %v828_v3, 7  ;;  %v4728_v13 = vld [vmem:[#allocation2 + $0x90] sm:$0xf]  ;;  %v3683_v12 = vrot.slane %v4732_v36, 9 }
  0xdb   : > { %v5693_v7 = vcombine.low %v1336_v50, %v1346_v46  ;;  %v825_v4 = vor.u32 %v823_v58, %v822_v38  ;;  %v826_v32 = vrot.slane %v822_v38, 4  ;;  %v5712_v50 = vcombine.low %v1574_v41, %v1577_v47  ;;  %v4730_v46 = vld [vmem:[%s6388_s3 + $0x238] sm:$0xff]   ;;  %v4733_v41 = vld [vmem:[#allocation2 + $0xa4] sm:$0x1] }
  0xdc   : > { %v833_v56 = vor.u32 %v831_v44, %v830_v63  ;;  %v835_v53 = vrot.slane %v830_v63, 4  ;;  %v3682_v5 = vrot.slane %v4728_v13, 9  ;;  %v1589_v44 = vrot.slane %v1587_v34, 4 }
  0xdd   : > { %2586 = vmatprep.mubr.bf16.mxu0 %v5693_v7  ;;  %v996_v28 = vsel %vm4925_vm12, %v825_v4, %v995_v6  ;;  %v1590_v48 = vrot.slane %v4733_v41, 5  ;;  %v1588_v4 = vsel %vm4852_vm4, %v3683_v12, %v1587_v34 }
  0xde   : > { %2587 = vmatmul.mubr.bf16.gmra.mxu0 %v5678_v62  ;;  %997 = vst [vmem:[#allocation2 + $0xc0] sm:$0xf] %v996_v28  ;;  %v834_v55 = vsel %vm4918_vm11, %v826_v32, %v833_v56  ;;  %v1581_v25 = vsel %vm4852_vm4, %v3682_v5, %v1580_v61  ;;  %v4718_v5 = vld [vmem:[%s6388_s3 + $0x218] sm:$0xff]  }
  0xdf   : > { %2820 = vmatprep.mubr.bf16.mxu0 %v5320_v16  ;;  %v999_v16 = vld [vmem:[#allocation2 + $0xc8] sm:$0x1]  ;;  %998 = vst [vmem:[#allocation2 + $0xc4] sm:$0xf] %v834_v55 }
  0xe0   : > { %v1000_v22 = vsel %vm4931_vm13, %v835_v53, %v999_v16 }
  0xe1   : > { %2740 = vmatmul.mubr.bf16.gmra.mxu1 %v5695_v33  ;;  %1001 = vst [vmem:[#allocation2 + $0xc8] sm:$0x1] %v1000_v22  ;;  %v1591_v22 = vsel %vm4852_vm4, %v1589_v44, %v1590_v48  ;;  %v4719_v44 = vld [vmem:[%s6388_s3 + $0x210] sm:$0xff]  }
  0xe2   : > { %2747 = vmatprep.mubr.bf16.mxu1 %v4998_v59 }
  0xe5   : > { %v5732_v24 = vld [vmem:[#allocation2 + $0xc0] sm:$0xf] }
  0xe6   : > { %2821 = vmatmul.mubr.bf16.vlgmr.msra.gmra.mxu0 %v5006_v9  ;;  %v1584_v9 = vsel %vm4852_vm4, %v1582_v19, %v1583_v21  ;;  %v1607_v58 = vshrl.u32 %v5732_v24, 16  ;;  %v1610_v38 = vshll.u32 %v5732_v24, 16  ;;  %v3686_v3 = vrot.slane %v5732_v24, 9  ;;  %v1051_v61 = vld [vmem:[#allocation2 + $0xc4] sm:$0xf] }
  0xe7   : > { %2828 = vmatprep.mubr.bf16.mxu0 %v5385_v43  ;;  %4561 = vmatpush3.bf16.msra.mxu0 %v4730_v46  ;;  %v5734_v23 = vcombine.low %v1581_v25, %v1584_v9  ;;  %v1620_v32 = vshrl.u32 %v1051_v61, 16  ;;  %v1635_v63 = vrot.slane %v1051_v61, 5  ;;  %v4734_v46 = vld [vmem:[#allocation2 + $0xac] sm:$0xf] }
  0xe8   : > { %4562 = vmatprep.subr.bf16.mxu0 %v4709_v54  ;;  %v1052_v47 = vld [vmem:[#allocation2 + $0xc8] sm:$0x1]  ;;  %v1609_v28 = vrot.slane %v1607_v58, 4  ;;  %v1612_v53 = vrot.slane %v1610_v38, 5  ;;  %v5761_v38 = vcombine.low %v1588_v4, %v1591_v22 }
  0xe9   : > { %2748 = vmatmul.mubr.bf16.gmra.mxu1 %v5712_v50  ;;  %v1638_v16 = vrot.slane %v1052_v47, 5  ;;  %v1626_v13 = vshll.u32 %v1052_v47, 16  ;;  %v1636_v10 = vsel %vm4852_vm4, %v3686_v3, %v1635_v63  ;;  %v1637_v21 = vrot.slane %v1635_v63, 4  ;;  %v4735_v3 = vld [vmem:[#allocation2 + $0xa8] sm:$0xf] }
  0xea   : > { %2755 = vmatprep.mubr.bf16.mxu1 %v5107_v27  ;;  %v1622_v55 = vrot.slane %v1620_v32, 4  ;;  %v1613_v25 = vor.u32 %v1612_v53, %v1609_v28  ;;  %v3684_v41 = vrot.slane %v4735_v3, 9  ;;  %v4720_v63 = vld [vmem:[%s6388_s3 + $0x208] sm:$0xff]   ;;  %v4737_v53 = vld [vmem:[#allocation2 + $0xb8] sm:$0xf] }
  0xeb   : > { %4563 = vmatpush3.bf16.msra.mxu0 %v4709_v54  ;;  %v1616_v54 = vshll.u32 %v1051_v61, 16  ;;  %v1639_v57 = vsel %vm4852_vm4, %v1637_v21, %v1638_v16  ;;  %v1628_v58 = vrot.slane %v1626_v13, 5  ;;  %v4738_v21 = vld [vmem:[#allocation2 + $0xb4] sm:$0xf] }
  0xec   : > { %4564 = vmatprep.subr.bf16.mxu0 %v4712_v15  ;;  %v5759_v34 = vcombine.low %v1636_v10, %v1639_v57  ;;  %v1614_v36 = vrot.slane %v1613_v25, 4  ;;  %v5789_v10 = vcombine.low %v5732_v24, %v1051_v61 }
  0xed   : > { %v4104_v6 = vpop.f32.mrf.mxu0  ;;  %v1618_v9 = vrot.slane %v1616_v54, 5  ;;  %v1601_v54 = vrot.slane %v4737_v53, 5  ;;  %v6430_v53 = vld [vmem:[#allocation8_spill] sm:$0xff] }
  0xee   : > { %2829 = vmatmul.mubr.bf16.gmra.mxu0 %v5133_v0 }
  0xef   : > { %2836 = vmatprep.mubr.bf16.mxu0 %v5451_v8  ;;  %4565 = vmatpush3.bf16.msra.mxu0 %v4712_v15  ;;  %v4105_v56 = vpop.f32.mrf.mxu0  ;;  %v1594_v15 = vrot.slane %v4734_v46, 5  ;;  %v1623_v12 = vor.u32 %v1622_v55, %v1618_v9  ;;  %v3685_v55 = vrot.slane %v4738_v21, 9  ;;  %v1603_v22 = vrot.slane %v1601_v54, 4  ;;  %v4739_v46 = vld [vmem:[#allocation2 + $0xbc] sm:$0x1] }
  0xf0   : > { %4566 = vmatprep.subr.bf16.mxu0 %v4715_v49  ;;  %v5750_v19 = vadd.f32 %v4105_v56, %v4104_v6  ;;  %v4736_v6 = vld [vmem:[#allocation2 + $0xb0] sm:$0x1] }
  0xf1   : > { %2756 = vmatmul.mubr.bf16.gmra.mxu1 %v5734_v23  ;;  %v1596_v48 = vrot.slane %v1594_v15, 4  ;;  %v1597_v47 = vrot.slane %v4736_v6, 5  ;;  %v1624_v32 = vrot.slane %v1623_v12, 4  ;;  %v1595_v56 = vsel %vm4852_vm4, %v3684_v41, %v1594_v15  ;;  %v5791_v25 = vpop.f32.mrf.mxu0  ;;  %v6428_v6 = vld [vmem:[#allocation4_spill] sm:$0xff] }
  0xf2   : > { %2763 = vmatprep.mubr.bf16.mxu1 %v5232_v26  ;;  %v1604_v15 = vrot.slane %v4739_v46, 5  ;;  %v1602_v24 = vsel %vm4852_vm4, %v3685_v55, %v1601_v54 }
  0xf3   : > { %4567 = vmatpush3.bf16.msra.mxu0 %v4715_v49  ;;  %v1619_v49 = vsel %vm4865_vm5, %v1614_v36, %v1618_v9  ;;  %v1629_v4 = vsel %vm4865_vm5, %v1624_v32, %v1628_v58  ;;  %v1598_v28 = vsel %vm4852_vm4, %v1596_v48, %v1597_v47  ;;  %v5801_v9 = vpop.f32.mrf.mxu0 }
  0xf4   : > { %4568 = vmatprep.subr.bf16.mxu0 %v4718_v5  ;;  %v5776_v16 = vcombine.low %v1619_v49, %v1629_v4  ;;  %v5783_v13 = vcombine.low %v1595_v56, %v1598_v28  ;;  %v1605_v61 = vsel %vm4852_vm4, %v1603_v22, %v1604_v15 }
  0xf5   : > { %v5803_v57 = vcombine.low %v1602_v24, %v1605_v61  ;;  %v6431_v24 = vld [vmem:[#allocation10_spill] sm:$0xff] }
  0xf6   : > { %2837 = vmatmul.mubr.bf16.gmra.mxu0 %v5208_v30 }
  0xf7   : > { %2844 = vmatprep.mubr.bf16.mxu0 %v5492_v31  ;;  %4569 = vmatpush3.bf16.msra.mxu0 %v4718_v5  ;;  %v4721_v5 = vld [vmem:[%s6388_s3 + $0x200] sm:$0xff]  }
  0xf8   : > { %4570 = vmatprep.subr.bf16.mxu0 %v4719_v44 }
  0xf9   : > { %2764 = vmatmul.mubr.bf16.gmra.mxu1 %v5761_v38 }
  0xfa   : > { %2771 = vmatprep.mubr.bf16.mxu1 %v5302_v1 }
  0xfb   : > { %4571 = vmatpush3.bf16.msra.mxu0 %v4719_v44 }
  0xfc   : > { %4572 = vmatprep.subr.bf16.mxu0 %v4720_v63 }
  0xfe   : > { %2845 = vmatmul.mubr.bf16.gmra.mxu0 %v5300_v40 }
  0xff   : > { %2852 = vmatprep.mubr.bf16.mxu0 %v5557_v17  ;;  %4573 = vmatpush3.bf16.msra.mxu0 %v4720_v63 }
 0x100   : > { %4574 = vmatprep.subr.bf16.mxu0 %v4721_v5 }
 0x101   : > { %2772 = vmatmul.mubr.bf16.gmra.mxu1 %v5783_v13 }
 0x102   : > { %2779 = vmatprep.mubr.bf16.mxu1 %v5789_v10 }
 0x103   : > { %4575 = vmatpush3.bf16.msra.mxu0 %v4721_v5 }
 0x105   : > { %v4110_v36 = vpop.f32.mrf.mxu0 }
 0x106   : > { %2853 = vmatmul.mubr.bf16.gmra.mxu0 %v5401_v45 }
 0x107   : > { %2860 = vmatprep.mubr.bf16.mxu0 %v5590_v51  ;;  %v4111_v12 = vpop.f32.mrf.mxu0 }
 0x108   : > { %v5808_v58 = vadd.f32 %v4111_v12, %v4110_v36  ;;  %v6432_v36 = vld [vmem:[#allocation11_spill] sm:$0xff] }
 0x109   : > { %2780 = vmatmul.mubr.bf16.gmra.mxu1 %v5803_v57  ;;  %v5819_v32 = vpop.f32.mrf.mxu0 }
 0x10a   : > { %2981 = vmatprep.mubr.bf16.mxu1 %v5133_v0  ;;  %v4176_v3 = vpop.f32.mrf.mxu1  ;;  %v6429_v0 = vld [vmem:[#allocation6_spill] sm:$0xff] }
 0x10b   : > { %v5824_v4 = vpop.f32.mrf.mxu0 }
 0x10c   : > { %v4177_v41 = vpop.f32.mrf.mxu1 }
 0x10d   : > { %v5811_v44 = vadd.f32 %v4177_v41, %v4176_v3  ;;  %v6433_v41 = vld [vmem:[#allocation12_spill] sm:$0xff] }
 0x10e   : > { %2861 = vmatmul.mubr.bf16.gmra.mxu0 %v5434_v20  ;;  %v4179_v48 = vpop.f32.mrf.mxu1 }
 0x10f   : > { %2868 = vmatprep.mubr.bf16.mxu0 %v5626_v39 }
 0x110   : > { %v4180_v47 = vpop.f32.mrf.mxu1 }
 0x111   : > { %2982 = vmatmul.mubr.bf16.vlgmr.msra.gmra.mxu1 %v6428_v6  ;;  %v5817_v49 = vadd.f32 %v4180_v47, %v4179_v48 }
 0x112   : > { %2989 = vmatprep.mubr.bf16.mxu1 %v5208_v30 }
 0x116   : > { %2869 = vmatmul.mubr.bf16.gmra.mxu0 %v5527_v35 }
 0x117   : > { %2876 = vmatprep.mubr.bf16.mxu0 %v5653_v2 }
 0x119   : > { %2990 = vmatmul.mubr.bf16.gmra.mxu1 %v6429_v0 }
 0x11a   : > { %2997 = vmatprep.mubr.bf16.mxu1 %v5300_v40 }
 0x11b   : > { %v4116_v63 = vpop.f32.mrf.mxu0 }
 0x11d   : > { %v4117_v56 = vpop.f32.mrf.mxu0 }
 0x11e   : > { %2877 = vmatmul.mubr.bf16.gmra.mxu0 %v5547_v11  ;;  %v5829_v28 = vadd.f32 %v4117_v56, %v4116_v63 }
 0x11f   : > { %2884 = vmatprep.mubr.bf16.mxu0 %v5673_v52  ;;  %v4182_v30 = vpop.f32.mrf.mxu1  ;;  %v5832_v54 = vpop.f32.mrf.mxu0 }
 0x121   : > { %2998 = vmatmul.mubr.bf16.gmra.mxu1 %v6430_v53  ;;  %v4183_v5 = vpop.f32.mrf.mxu1  ;;  %v5837_v40 = vpop.f32.mrf.mxu0 }
 0x122   : > { %3005 = vmatprep.mubr.bf16.mxu1 %v5401_v45  ;;  %v5835_v21 = vadd.f32 %v4183_v5, %v4182_v30  ;;  %v6435_v30 = vld [vmem:[#allocation13_spill] sm:$0xff] }
 0x123   : > { %v4185_v55 = vpop.f32.mrf.mxu1 }
 0x125   : > { %v4186_v22 = vpop.f32.mrf.mxu1 }
 0x126   : > { %2885 = vmatmul.mubr.bf16.gmra.mxu0 %v5618_v14  ;;  %v5840_v46 = vadd.f32 %v4186_v22, %v4185_v55  ;;  %v4122_v15 = vpop.f32.mrf.mxu0 }
 0x127   : > { %2892 = vmatprep.mubr.bf16.mxu0 %v5695_v33 }
 0x128   : > { %v4123_v61 = vpop.f32.mrf.mxu0 }
 0x129   : > { %3006 = vmatmul.mubr.bf16.gmra.mxu1 %v6431_v24  ;;  %v5845_v45 = vadd.f32 %v4123_v61, %v4122_v15 }
 0x12a   : > { %3013 = vmatprep.mubr.bf16.mxu1 %v5434_v20  ;;  %v5852_v3 = vpop.f32.mrf.mxu0 }
 0x12c   : > { %v5859_v47 = vpop.f32.mrf.mxu0 }
 0x12e   : > { %2893 = vmatmul.mubr.bf16.gmra.mxu0 %v5644_v42 }
 0x12f   : > { %2900 = vmatprep.mubr.bf16.mxu0 %v5712_v50 }
 0x131   : > { %3014 = vmatmul.mubr.bf16.gmra.mxu1 %v6432_v36  ;;  %v6437_v36 = vld [vmem:[#allocation7_spill] sm:$0xff] }
 0x132   : > { %3021 = vmatprep.mubr.bf16.mxu1 %v5527_v35  ;;  %v6434_v35 = vld [vmem:[#allocation3_spill] sm:$0xff] }
 0x136   : > { %2901 = vmatmul.mubr.bf16.gmra.mxu0 %v5693_v7  ;;  %v4188_v12 = vpop.f32.mrf.mxu1 }
 0x137   : > { %2908 = vmatprep.mubr.bf16.mxu0 %v5734_v23 }
 0x138   : > { %v4189_v20 = vpop.f32.mrf.mxu1 }
 0x139   : > { %3022 = vmatmul.mubr.bf16.gmra.mxu1 %v6433_v41  ;;  %v5857_v48 = vadd.f32 %v4189_v20, %v4188_v12 }
 0x13a   : > { %3029 = vmatprep.mubr.bf16.mxu1 %v5547_v11  ;;  %v4191_v6 = vpop.f32.mrf.mxu1  ;;  %v6436_v11 = vld [vmem:[#allocation5_spill] sm:$0xff] }
 0x13c   : > { %v4192_v0 = vpop.f32.mrf.mxu1 }
 0x13d   : > { %v5861_v63 = vadd.f32 %v4192_v0, %v4191_v6 }
 0x13e   : > { %2909 = vmatmul.mubr.bf16.gmra.mxu0 %v6434_v35  ;;  %v4128_v56 = vpop.f32.mrf.mxu0 }
 0x13f   : > { %2916 = vmatprep.mubr.bf16.mxu0 %v5761_v38 }
 0x140   : > { %v4129_v53 = vpop.f32.mrf.mxu0 }
 0x141   : > { %3030 = vmatmul.mubr.bf16.gmra.mxu1 %v6435_v30  ;;  %v5867_v5 = vadd.f32 %v4129_v53, %v4128_v56  ;;  %v4109_v30 = vadd.f32 %v5801_v9, %v5791_v25  ;;  %v6438_v53 = vld [vmem:[#allocation9_spill] sm:$0xff] }
 0x142   : > { %3037 = vmatprep.mubr.bf16.mxu1 %v5618_v14  ;;  %v5876_v12 = vpop.f32.mrf.mxu0 }
 0x146   : > { %2917 = vmatmul.mubr.bf16.gmra.mxu0 %v6436_v11 }
 0x147   : > { %2924 = vmatprep.mubr.bf16.mxu0 %v5783_v13  ;;  %v4194_v55 = vpop.f32.mrf.mxu1 }
 0x149   : > { %3038 = vmatmul.mubr.bf16.gmra.mxu1 %v5602_v60  ;;  %v4195_v22 = vpop.f32.mrf.mxu1  ;;  %v5883_v60 = vpop.f32.mrf.mxu0 }
 0x14a   : > { %3045 = vmatprep.mubr.bf16.mxu1 %v5644_v42  ;;  %v5873_v15 = vadd.f32 %v4195_v22, %v4194_v55 }
 0x14b   : > { %v4197_v24 = vpop.f32.mrf.mxu1 }
 0x14d   : > { %v4198_v61 = vpop.f32.mrf.mxu1 }
 0x14e   : > { %2925 = vmatmul.mubr.bf16.gmra.mxu0 %v6437_v36  ;;  %v5878_v14 = vadd.f32 %v4198_v61, %v4197_v24 }
 0x14f   : > { %2932 = vmatprep.mubr.bf16.mxu0 %v5803_v57 }
 0x151   : > { %v4216_v41 = vpop.f32.mrf.mxu1  ;;  %3046 = vmatmul.mubr.bf16.gmra.mxu1 %v5650_v18 }
 0x152   : > { %3053 = vmatprep.mubr.bf16.mxu1 %v5693_v7 }
 0x153   : > { %v4217_v20 = vpop.f32.mrf.mxu1 }
 0x154   : > { %v4218_v42 = vadd.f32 %v4217_v20, %v4216_v41 }
 0x155   : > { %v4219_v6 = vpop.f32.mrf.mxu1 }
 0x156   : > { %v5886_v0 = vadd.f32 %v4218_v42, %v5750_v19  ;;  %2933 = vmatmul.mubr.bf16.gmra.mxu0 %v6438_v53  ;;  %v4134_v55 = vpop.f32.mrf.mxu0 }
 0x157   : > { %v4220_v56 = vpop.f32.mrf.mxu1  ;;  %2940 = vmatprep.mubr.bf16.mxu0 %v5759_v34 }
 0x158   : > { %v4221_v22 = vadd.f32 %v4220_v56, %v4219_v6  ;;  %v4135_v24 = vpop.f32.mrf.mxu0 }
 0x159   : > { %v4222_v18 = vpop.f32.mrf.mxu1  ;;  %3054 = vmatmul.mubr.bf16.gmra.mxu1 %v5678_v62  ;;  %v5895_v61 = vadd.f32 %v4135_v24, %v4134_v55 }
 0x15a   : > { %v5892_v7 = vadd.f32 %v4221_v22, %v4109_v30  ;;  %3061 = vmatprep.mubr.bf16.mxu1 %v6434_v35  ;;  %v4137_v41 = vpop.f32.mrf.mxu0  ;;  %v4115_v30 = vadd.f32 %v5824_v4, %v5819_v32 }
 0x15b   : > { %v4223_v19 = vpop.f32.mrf.mxu1 }
 0x15c   : > { %v4224_v20 = vadd.f32 %v4223_v19, %v4222_v18  ;;  %v4138_v9 = vpop.f32.mrf.mxu0 }
 0x15d   : > { %v4225_v25 = vpop.f32.mrf.mxu1  ;;  %v5901_v6 = vadd.f32 %v4138_v9, %v4137_v41  ;;  %v4121_v9 = vadd.f32 %v5837_v40, %v5832_v54 }
 0x15e   : > { %v5899_v42 = vadd.f32 %v4224_v20, %v5808_v58  ;;  %2941 = vmatmul.mubr.bf16.gmra.mxu0 %v5776_v16  ;;  %v4140_v62 = vpop.f32.mrf.mxu0 }
 0x15f   : > { %v4226_v56 = vpop.f32.mrf.mxu1  ;;  %4576 = vmatprep.mubr.bf16.mxu0 %v5385_v43 }
 0x160   : > { %v4227_v55 = vadd.f32 %v4226_v56, %v4225_v25  ;;  %v4141_v22 = vpop.f32.mrf.mxu0  ;;  %v5921_v56 = vld [vmem:[#allocation2 + $0xcc] sm:$0xf] }
 0x161   : > { %v4228_v35 = vpop.f32.mrf.mxu1  ;;  %3062 = vmatmul.mubr.bf16.gmra.mxu1 %v4998_v59  ;;  %v5910_v58 = vadd.f32 %v4141_v22, %v4140_v62  ;;  %v1644_v54 = vshll.u32 %v5921_v56, 16 }
 0x162   : > { %v5907_v18 = vadd.f32 %v4227_v55, %v4115_v30  ;;  %3069 = vmatprep.mubr.bf16.mxu1 %v6436_v11  ;;  %v4143_v19 = vpop.f32.mrf.mxu0  ;;  %v5924_v30 = vld [vmem:[#allocation2 + $0xd0] sm:$0xf]  ;;  %v1641_v55 = vshrl.u32 %v5921_v56, 16 }
 0x163   : > { %v4229_v24 = vpop.f32.mrf.mxu1  ;;  %v1650_v40 = vshll.u32 %v5924_v30, 16 }
 0x164   : > { %v4230_v41 = vadd.f32 %v4229_v24, %v4228_v35  ;;  %v4144_v4 = vpop.f32.mrf.mxu0  ;;  %v1654_v35 = vshrl.u32 %v5924_v30, 16 }
 0x165   : > { %v4231_v32 = vpop.f32.mrf.mxu1  ;;  %v5916_v25 = vadd.f32 %v4144_v4, %v4143_v19  ;;  %v1652_v4 = vrot.slane %v1650_v40, 5 }
 0x166   : > { %v5914_v20 = vadd.f32 %v4230_v41, %v5829_v28  ;;  %4577 = vmatmul.mubr.bf16.vlgmr.msra.gmra.mxu0 %v5451_v8  ;;  %v1643_v41 = vrot.slane %v1641_v55, 4 }
 0x167   : > { %v4232_v43 = vpop.f32.mrf.mxu1  ;;  %4580 = vmatprep.mubr.bf16.mxu0 %v5492_v31 }
 0x168   : > { %v4233_v59 = vadd.f32 %v4232_v43, %v4231_v32  ;;  %v1656_v43 = vrot.slane %v1654_v35, 4 }
 0x169   : > { %v4234_v11 = vpop.f32.mrf.mxu1  ;;  %3070 = vmatmul.mubr.bf16.gmra.mxu1 %v5107_v27  ;;  %v1646_v27 = vrot.slane %v1644_v54, 5 }
 0x16a   : > { %v5926_v62 = vadd.f32 %v4233_v59, %v4121_v9  ;;  %3077 = vmatprep.mubr.bf16.mxu1 %v6437_v36  ;;  %v4127_v36 = vadd.f32 %v5859_v47, %v5852_v3  ;;  %v5947_v3 = vld [vmem:[#allocation2 + $0xd4] sm:$0x1]  ;;  %v1657_v54 = vor.u32 %v1656_v43, %v1652_v4 }
 0x16b   : > { %v4235_v28 = vpop.f32.mrf.mxu1 }
 0x16c   : > { %v4236_v8 = vadd.f32 %v4235_v28, %v4234_v11 }
 0x16d   : > { %v4237_v31 = vpop.f32.mrf.mxu1  ;;  %v4146_v24 = vpop.f32.mrf.mxu0 }
 0x16e   : > { %v5935_v22 = vadd.f32 %v4236_v8, %v5845_v45  ;;  %4581 = vmatmul.mubr.bf16.gmra.mxu0 %v5557_v17  ;;  %v1647_v17 = vor.u32 %v1646_v27, %v1643_v41  ;;  %v1660_v8 = vshll.u32 %v5947_v3, 16  ;;  %v1658_v27 = vrot.slane %v1657_v54, 4 }
 0x16f   : > { %v4238_v19 = vpop.f32.mrf.mxu1  ;;  %4584 = vmatprep.mubr.bf16.mxu0 %v5590_v51  ;;  %v4147_v9 = vpop.f32.mrf.mxu0 }
 0x170   : > { %v4239_v32 = vadd.f32 %v4238_v19, %v4237_v31  ;;  %v5941_v11 = vadd.f32 %v4147_v9, %v4146_v24  ;;  %v1648_v19 = vrot.slane %v1647_v17, 4 }
 0x171   : > { %v4240_v59 = vpop.f32.mrf.mxu1  ;;  %3078 = vmatmul.mubr.bf16.gmra.mxu1 %v5232_v26  ;;  %v4149_v28 = vpop.f32.mrf.mxu0 }
 0x172   : > { %v5943_v45 = vadd.f32 %v4239_v32, %v4127_v36  ;;  %3085 = vmatprep.mubr.bf16.mxu1 %v6438_v53  ;;  %v4133_v53 = vadd.f32 %v5883_v60, %v5876_v12  ;;  %v1662_v36 = vrot.slane %v1660_v8, 5 }
 0x173   : > { %v4241_v55 = vpop.f32.mrf.mxu1  ;;  %v4150_v51 = vpop.f32.mrf.mxu0 }
 0x174   : > { %v4242_v47 = vadd.f32 %v4241_v55, %v4240_v59  ;;  %v5950_v35 = vadd.f32 %v4150_v51, %v4149_v28  ;;  %v1663_v12 = vsel %vm4865_vm5, %v1658_v27, %v1662_v36 }
 0x175   : > { %v4243_v40 = vpop.f32.mrf.mxu1 }
 0x176   : > { %v5953_v31 = vadd.f32 %v4242_v47, %v5867_v5  ;;  %v4152_v24 = vpop.f32.mrf.mxu0  ;;  %4585 = vmatmul.mubr.bf16.gmra.mxu0 %v5626_v39  ;;  %v1653_v39 = vsel %vm4865_vm5, %v1648_v19, %v1652_v4 }
 0x177   : > { %v4244_v26 = vpop.f32.mrf.mxu1  ;;  %4588 = vmatprep.mubr.bf16.mxu0 %v5653_v2  ;;  %v3740_v8 = vcombine.low %v1653_v39, %v1663_v12 }
 0x178   : > { %v4245_v41 = vadd.f32 %v4244_v26, %v4243_v40  ;;  %v4153_v32 = vpop.f32.mrf.mxu0 }
 0x179   : > { %v4246_v43 = vpop.f32.mrf.mxu1  ;;  %v4154_v9 = vadd.f32 %v4153_v32, %v4152_v24  ;;  %3086 = vmatmul.mubr.bf16.gmra.mxu1 %v5302_v1  ;;  %v3739_v24 = vcombine.low %v5921_v56, %v5924_v30 }
 0x17a   : > { %v5959_v59 = vadd.f32 %v4245_v41, %v4133_v53  ;;  %v4155_v5 = vpop.f32.mrf.mxu0  ;;  %3093 = vmatprep.mubr.bf16.mxu1 %v5776_v16 }
 0x17b   : > { %v4247_v28 = vpop.f32.mrf.mxu1 }
 0x17c   : > { %v4248_v55 = vadd.f32 %v4247_v28, %v4246_v43  ;;  %v4156_v60 = vpop.f32.mrf.mxu0 }
 0x17d   : > { %v4249_v2 = vpop.f32.mrf.mxu1  ;;  %v4157_v17 = vadd.f32 %v4156_v60, %v4155_v5  ;;  %v1669_v5 = vrot.slane %v5924_v30, 5 }
 0x17e   : > { %v5968_v47 = vadd.f32 %v4248_v55, %v5895_v61  ;;  %4589 = vmatmul.mubr.bf16.gmra.mxu0 %v5673_v52 }
 0x17f   : > { %v4250_v54 = vpop.f32.mrf.mxu1  ;;  %4592 = vmatprep.mubr.bf16.mxu0 %v5695_v33 }
 0x180   : > { %v4251_v1 = vadd.f32 %v4250_v54, %v4249_v2 }
 0x181   : > { %v4252_v16 = vpop.f32.mrf.mxu1  ;;  %3094 = vmatmul.mubr.bf16.gmra.mxu1 %v5789_v10 }
 0x182   : > { %v5973_v51 = vadd.f32 %v4251_v1, %v5901_v6  ;;  %3101 = vmatprep.mubr.bf16.mxu1 %v3740_v8  ;;  %v1671_v8 = vrot.slane %v1669_v5, 4 }
 0x183   : > { %v4253_v37 = vpop.f32.mrf.mxu1 }
 0x184   : > { %v4254_v4 = vadd.f32 %v4253_v37, %v4252_v16 }
 0x185   : > { %v4255_v40 = vpop.f32.mrf.mxu1 }
 0x186   : > { %v5977_v61 = vadd.f32 %v4254_v4, %v5910_v58  ;;  %4593 = vmatmul.mubr.bf16.gmra.mxu0 %v5712_v50 }
 0x187   : > { %v4256_v52 = vpop.f32.mrf.mxu1  ;;  %4596 = vmatprep.mubr.bf16.mxu0 %v5734_v23 }
 0x188   : > { %v4257_v33 = vadd.f32 %v4256_v52, %v4255_v40  ;;  %v4158_v6 = vpop.f32.mrf.mxu0 }
 0x189   : > { %v4258_v10 = vpop.f32.mrf.mxu1  ;;  %3102 = vmatmul.mubr.bf16.gmra.mxu1 %v3739_v24 }
 0x18a   : > { %v5984_v26 = vadd.f32 %v4257_v33, %v5916_v25  ;;  %v4159_v19 = vpop.f32.mrf.mxu0 }
 0x18b   : > { %v4160_v53 = vadd.f32 %v4159_v19, %v4158_v6  ;;  %v4259_v41 = vpop.f32.mrf.mxu1 }
 0x18c   : > { %v4161_v58 = vpop.f32.mrf.mxu0  ;;  %v4260_v27 = vadd.f32 %v4259_v41, %v4258_v10 }
 0x18d   : > { %v4261_v36 = vpop.f32.mrf.mxu1 }
 0x18e   : > { %v4162_v32 = vpop.f32.mrf.mxu0  ;;  %v5987_v43 = vadd.f32 %v4260_v27, %v5941_v11  ;;  %4597 = vmatmul.mubr.bf16.gmra.mxu0 %v5761_v38  ;;  %v3687_v11 = vrot.slane %v5921_v56, 9  ;;  %v1672_v38 = vrot.slane %v5947_v3, 5 }
 0x18f   : > { %v4163_v50 = vadd.f32 %v4162_v32, %v4161_v58  ;;  %v4262_v23 = vpop.f32.mrf.mxu1  ;;  %4600 = vmatprep.mubr.bf16.mxu0 %v5783_v13 }
 0x190   : > { %v4164_v25 = vpop.f32.mrf.mxu0  ;;  %v4263_v28 = vadd.f32 %v4262_v23, %v4261_v36  ;;  %v1673_v56 = vsel %vm4852_vm4, %v1671_v8, %v1672_v38 }
 0x191   : > { %v4264_v55 = vpop.f32.mrf.mxu1 }
 0x192   : > { %v4165_v39 = vpop.f32.mrf.mxu0  ;;  %v5993_v12 = vadd.f32 %v4263_v28, %v5950_v35  ;;  %v1670_v35 = vsel %vm4852_vm4, %v3687_v11, %v1669_v5 }
 0x193   : > { %v4166_v60 = vadd.f32 %v4165_v39, %v4164_v25  ;;  %v4265_v2 = vpop.f32.mrf.mxu1  ;;  %v3741_v52 = vcombine.low %v1670_v35, %v1673_v56 }
 0x194   : > { %v4167_v54 = vpop.f32.mrf.mxu0  ;;  %v4266_v1 = vadd.f32 %v4265_v2, %v4264_v55 }
 0x195   : > { %v4267_v16 = vpop.f32.mrf.mxu1 }
 0x196   : > { %v4168_v13 = vpop.f32.mrf.mxu0  ;;  %v5997_v37 = vadd.f32 %v4266_v1, %v4154_v9  ;;  %4601 = vmatmul.mubr.bf16.gmra.mxu0 %v5803_v57 }
 0x197   : > { %v4169_v30 = vadd.f32 %v4168_v13, %v4167_v54  ;;  %v4268_v4 = vpop.f32.mrf.mxu1  ;;  %4604 = vmatprep.mubr.bf16.mxu0 %v5759_v34 }
 0x198   : > { %v4269_v40 = vadd.f32 %v4268_v4, %v4267_v16 }
 0x199   : > { %v4270_v24 = vpop.f32.mrf.mxu1 }
 0x19a   : > { %v6005_v3 = vadd.f32 %v4269_v40, %v4157_v17 }
 0x19b   : > { %v4271_v33 = vpop.f32.mrf.mxu1 }
 0x19c   : > { %v4272_v9 = vadd.f32 %v4271_v33, %v4270_v24 }
 0x19d   : > { %v4273_v6 = vpop.f32.mrf.mxu1 }
 0x19e   : > { %v6007_v10 = vadd.f32 %v4272_v9, %v4160_v53  ;;  %v4170_v57 = vpop.f32.mrf.mxu0  ;;  %4605 = vmatmul.mubr.bf16.gmra.mxu0 %v3741_v52 }
 0x19f   : > { %v4274_v19 = vpop.f32.mrf.mxu1 }
 0x1a0   : > { %v4275_v34 = vadd.f32 %v4274_v19, %v4273_v6  ;;  %v4171_v41 = vpop.f32.mrf.mxu0 }
 0x1a1   : > { %v4276_v58 = vpop.f32.mrf.mxu1  ;;  %v4172_v27 = vadd.f32 %v4171_v41, %v4170_v57 }
 0x1a2   : > { %v6009_v36 = vadd.f32 %v4275_v34, %v4163_v50  ;;  %v4173_v29 = vpop.f32.mrf.mxu0 }
 0x1a3   : > { %v4277_v32 = vpop.f32.mrf.mxu1 }
 0x1a4   : > { %v4278_v23 = vadd.f32 %v4277_v32, %v4276_v58  ;;  %v4174_v17 = vpop.f32.mrf.mxu0 }
 0x1a5   : > { %v4279_v25 = vpop.f32.mrf.mxu1  ;;  %v4175_v5 = vadd.f32 %v4174_v17, %v4173_v29 }
 0x1a6   : > { %v6011_v28 = vadd.f32 %v4278_v23, %v4166_v60  ;;  %v4328_v55 = vpop.f32.mrf.mxu0 }
 0x1a7   : > { %v4280_v53 = vpop.f32.mrf.mxu1 }
 0x1a8   : > { %v4281_v39 = vadd.f32 %v4280_v53, %v4279_v25  ;;  %v4329_v2 = vpop.f32.mrf.mxu0 }
 0x1a9   : > { %v4282_v54 = vpop.f32.mrf.mxu1  ;;  %v4330_v11 = vadd.f32 %v4329_v2, %v4328_v55 }
 0x1aa   : > { %v6013_v8 = vadd.f32 %v4281_v39, %v4169_v30  ;;  %v4331_v38 = vpop.f32.mrf.mxu0 }
 0x1ab   : > { %v4283_v1 = vpop.f32.mrf.mxu1  ;;  %v6016_v50 = vadd.f32 %v4330_v11, %v5886_v0 }
 0x1ac   : > { %v4284_v16 = vadd.f32 %v4283_v1, %v4282_v54  ;;  %v4332_v13 = vpop.f32.mrf.mxu0 }
 0x1ad   : > { %v4285_v4 = vpop.f32.mrf.mxu1  ;;  %v4333_v35 = vadd.f32 %v4332_v13, %v4331_v38 }
 0x1ae   : > { %v6018_v56 = vadd.f32 %v4284_v16, %v4172_v27  ;;  %v4334_v60 = vpop.f32.mrf.mxu0 }
 0x1af   : > { %v4286_v40 = vpop.f32.mrf.mxu1  ;;  %v6021_v24 = vadd.f32 %v4333_v35, %v5892_v7 }
 0x1b0   : > { %v4287_v52 = vadd.f32 %v4286_v40, %v4285_v4  ;;  %v4335_v33 = vpop.f32.mrf.mxu0 }
 0x1b1   : > { %v4288_v30 = vpop.f32.mrf.mxu1  ;;  %v4336_v9 = vadd.f32 %v4335_v33, %v4334_v60 }
 0x1b2   : > { %v6023_v6 = vadd.f32 %v4287_v52, %v4175_v5  ;;  %v4337_v57 = vpop.f32.mrf.mxu0 }
 0x1b3   : > { %v4289_v0 = vpop.f32.mrf.mxu1  ;;  %v6026_v19 = vadd.f32 %v4336_v9, %v5899_v42 }
 0x1b4   : > { %v4290_v34 = vadd.f32 %v4289_v0, %v4288_v30  ;;  %v4338_v41 = vpop.f32.mrf.mxu0 }
 0x1b5   : > { %v4291_v58 = vpop.f32.mrf.mxu1  ;;  %v4339_v27 = vadd.f32 %v4338_v41, %v4337_v57 }
 0x1b6   : > { %v6029_v29 = vadd.f32 %v4290_v34, %v5811_v44  ;;  %v4340_v7 = vpop.f32.mrf.mxu0 }
 0x1b7   : > { %v4292_v32 = vpop.f32.mrf.mxu1  ;;  %v6032_v23 = vadd.f32 %v4339_v27, %v5907_v18 }
 0x1b8   : > { %v4293_v17 = vadd.f32 %v4292_v32, %v4291_v58  ;;  %v4341_v25 = vpop.f32.mrf.mxu0 }
 0x1b9   : > { %v4294_v5 = vpop.f32.mrf.mxu1  ;;  %v4342_v55 = vadd.f32 %v4341_v25, %v4340_v7 }
 0x1ba   : > { %v6035_v53 = vadd.f32 %v4293_v17, %v5817_v49  ;;  %v4343_v42 = vpop.f32.mrf.mxu0 }
 0x1bb   : > { %v4295_v39 = vpop.f32.mrf.mxu1  ;;  %v6038_v2 = vadd.f32 %v4342_v55, %v5914_v20 }
 0x1bc   : > { %v4296_v54 = vadd.f32 %v4295_v39, %v4294_v5  ;;  %v4344_v44 = vpop.f32.mrf.mxu0 }
 0x1bd   : > { %v4297_v11 = vpop.f32.mrf.mxu1  ;;  %v4345_v38 = vadd.f32 %v4344_v44, %v4343_v42 }
 0x1be   : > { %v6041_v1 = vadd.f32 %v4296_v54, %v5835_v21  ;;  %v4346_v18 = vpop.f32.mrf.mxu0 }
 0x1bf   : > { %v4298_v16 = vpop.f32.mrf.mxu1  ;;  %v6044_v13 = vadd.f32 %v4345_v38, %v5926_v62 }
 0x1c0   : > { %v4299_v4 = vadd.f32 %v4298_v16, %v4297_v11  ;;  %v4347_v49 = vpop.f32.mrf.mxu0 }
 0x1c1   : > { %v4300_v35 = vpop.f32.mrf.mxu1  ;;  %v4348_v60 = vadd.f32 %v4347_v49, %v4346_v18 }
 0x1c2   : > { %v6047_v40 = vadd.f32 %v4299_v4, %v5840_v46  ;;  %v4349_v20 = vpop.f32.mrf.mxu0 }
 0x1c3   : > { %v4301_v52 = vpop.f32.mrf.mxu1  ;;  %v6050_v33 = vadd.f32 %v4348_v60, %v5935_v22 }
 0x1c4   : > { %v4302_v30 = vadd.f32 %v4301_v52, %v4300_v35  ;;  %v4350_v21 = vpop.f32.mrf.mxu0 }
 0x1c5   : > { %v4303_v9 = vpop.f32.mrf.mxu1  ;;  %v4351_v57 = vadd.f32 %v4350_v21, %v4349_v20 }
 0x1c6   : > { %v6053_v0 = vadd.f32 %v4302_v30, %v5857_v48  ;;  %v4352_v62 = vpop.f32.mrf.mxu0 }
 0x1c7   : > { %v4304_v34 = vpop.f32.mrf.mxu1  ;;  %v6056_v41 = vadd.f32 %v4351_v57, %v5943_v45 }
 0x1c8   : > { %v4305_v58 = vadd.f32 %v4304_v34, %v4303_v9  ;;  %v4353_v46 = vpop.f32.mrf.mxu0 }
 0x1c9   : > { %v4306_v27 = vpop.f32.mrf.mxu1  ;;  %v4354_v7 = vadd.f32 %v4353_v46, %v4352_v62 }
 0x1ca   : > { %v6059_v32 = vadd.f32 %v4305_v58, %v5861_v63  ;;  %v4355_v22 = vpop.f32.mrf.mxu0 }
 0x1cb   : > { %v4307_v17 = vpop.f32.mrf.mxu1  ;;  %v6062_v25 = vadd.f32 %v4354_v7, %v5953_v31 }
 0x1cc   : > { %v4308_v5 = vadd.f32 %v4307_v17, %v4306_v27  ;;  %v4356_v48 = vpop.f32.mrf.mxu0 }
 0x1cd   : > { %v4309_v55 = vpop.f32.mrf.mxu1  ;;  %v4357_v42 = vadd.f32 %v4356_v48, %v4355_v22 }
 0x1ce   : > { %v6065_v39 = vadd.f32 %v4308_v5, %v5873_v15  ;;  %v4358_v45 = vpop.f32.mrf.mxu0 }
 0x1cf   : > { %v4310_v54 = vpop.f32.mrf.mxu1  ;;  %v6068_v44 = vadd.f32 %v4357_v42, %v5959_v59 }
 0x1d0   : > { %6439 = vst [vmem:[#allocation4_spill] sm:$0xff] %v6065_v39  ;;  %v4311_v11 = vadd.f32 %v4310_v54, %v4309_v55  ;;  %v4359_v63 = vpop.f32.mrf.mxu0 }
 0x1d1   : > { %v4440_v38 = vpop.f32.mrf.mxu1  ;;  %v4360_v18 = vadd.f32 %v4359_v63, %v4358_v45 }
 0x1d2   : > { %v6071_v16 = vadd.f32 %v4311_v11, %v5878_v14  ;;  %v4361_v31 = vpop.f32.mrf.mxu0 }
 0x1d3   : > { %v4441_v4 = vpop.f32.mrf.mxu1  ;;  %v6074_v49 = vadd.f32 %v4360_v18, %v5968_v47 }
 0x1d4   : > { %6440 = vst [vmem:[#allocation6_spill] sm:$0xff] %v6071_v16  ;;  %v4442_v35 = vadd.f32 %v4441_v4, %v4440_v38  ;;  %v4362_v15 = vpop.f32.mrf.mxu0 }
 0x1d5   : > { %v4443_v60 = vpop.f32.mrf.mxu1  ;;  %v4363_v20 = vadd.f32 %v4362_v15, %v4361_v31 }
 0x1d6   : > { %v6077_v52 = vadd.f32 %v4442_v35, %v6016_v50  ;;  %v4364_v59 = vpop.f32.mrf.mxu0 }
 0x1d7   : > { %v4444_v30 = vpop.f32.mrf.mxu1  ;;  %v6080_v21 = vadd.f32 %v4363_v20, %v5973_v51 }
 0x1d8   : > { %v4445_v9 = vadd.f32 %v4444_v30, %v4443_v60  ;;  %v4365_v14 = vpop.f32.mrf.mxu0 }
 0x1d9   : > { %v6082_v57 = vpop.f32.mrf.mxu1  ;;  %v4366_v62 = vadd.f32 %v4365_v14, %v4364_v59 }
 0x1da   : > { %v6085_v47 = vadd.f32 %v4445_v9, %v6021_v24  ;;  %v4367_v34 = vpop.f32.mrf.mxu0 }
 0x1db   : > { %v6087_v58 = vpop.f32.mrf.mxu1  ;;  %v6090_v46 = vadd.f32 %v4366_v62, %v5977_v61 }
 0x1dc   : > { %v4368_v50 = vpop.f32.mrf.mxu0 }
 0x1dd   : > { %v6092_v27 = vpop.f32.mrf.mxu1  ;;  %v4369_v7 = vadd.f32 %v4368_v50, %v4367_v34 }
 0x1de   : > { %v4370_v51 = vpop.f32.mrf.mxu0 }
 0x1df   : > { %v6094_v22 = vpop.f32.mrf.mxu1  ;;  %v6097_v17 = vadd.f32 %v4369_v7, %v5984_v26 }
 0x1e0   : > { %v4371_v5 = vpop.f32.mrf.mxu0 }
 0x1e1   : > { %v6099_v48 = vpop.f32.mrf.mxu1  ;;  %v4372_v24 = vadd.f32 %v4371_v5, %v4370_v51 }
 0x1e2   : > { %v4373_v55 = vpop.f32.mrf.mxu0 }
 0x1e3   : > { %v6101_v42 = vpop.f32.mrf.mxu1  ;;  %v6104_v61 = vadd.f32 %v4372_v24, %v5987_v43 }
 0x1e4   : > { %v4374_v45 = vpop.f32.mrf.mxu0 }
 0x1e5   : > { %v6106_v54 = vpop.f32.mrf.mxu1  ;;  %v4375_v11 = vadd.f32 %v4374_v45, %v4373_v55 }
 0x1e6   : > { %v4376_v63 = vpop.f32.mrf.mxu0 }
 0x1e7   : > { %v6108_v38 = vpop.f32.mrf.mxu1  ;;  %v6111_v26 = vadd.f32 %v4375_v11, %v5993_v12 }
 0x1e8   : > { %v4377_v18 = vpop.f32.mrf.mxu0 }
 0x1e9   : > { %v6113_v31 = vpop.f32.mrf.mxu1  ;;  %v4378_v4 = vadd.f32 %v4377_v18, %v4376_v63 }
 0x1ea   : > { %v4379_v35 = vpop.f32.mrf.mxu0 }
 0x1eb   : > { %v6115_v15 = vpop.f32.mrf.mxu1  ;;  %v6118_v43 = vadd.f32 %v4378_v4, %v5997_v37 }
 0x1ec   : > { %v4380_v60 = vpop.f32.mrf.mxu0 }
 0x1ed   : > { %6441 = vst [vmem:[#allocation8_spill] sm:$0xff] %v6118_v43  ;;  %v6120_v20 = vpop.f32.mrf.mxu1  ;;  %v4381_v59 = vadd.f32 %v4380_v60, %v4379_v35 }
 0x1ee   : > { %v4382_v30 = vpop.f32.mrf.mxu0 }
 0x1ef   : > { %v6122_v9 = vpop.f32.mrf.mxu1  ;;  %v6125_v12 = vadd.f32 %v4381_v59, %v6005_v3 }
 0x1f0   : > { %v4383_v14 = vpop.f32.mrf.mxu0 }
 0x1f1   : > { %6442 = vst [vmem:[#allocation10_spill] sm:$0xff] %v6125_v12  ;;  %v6127_v62 = vpop.f32.mrf.mxu1  ;;  %v4384_v34 = vadd.f32 %v4383_v14, %v4382_v30 }
 0x1f2   : > { %v4385_v50 = vpop.f32.mrf.mxu0 }
 0x1f3   : > { %v6129_v7 = vpop.f32.mrf.mxu1  ;;  %v6132_v37 = vadd.f32 %v4384_v34, %v6007_v10 }
 0x1f4   : > { %v4386_v51 = vpop.f32.mrf.mxu0 }
 0x1f5   : > { %6443 = vst [vmem:[#allocation11_spill] sm:$0xff] %v6132_v37  ;;  %v6134_v5 = vpop.f32.mrf.mxu1  ;;  %v4387_v24 = vadd.f32 %v4386_v51, %v4385_v50 }
 0x1f6   : > { %v4388_v55 = vpop.f32.mrf.mxu0 }
 0x1f7   : > { %v6136_v45 = vpop.f32.mrf.mxu1  ;;  %v6139_v3 = vadd.f32 %v4387_v24, %v6009_v36 }
 0x1f8   : > { %v4389_v11 = vpop.f32.mrf.mxu0 }
 0x1f9   : > { %6444 = vst [vmem:[#allocation12_spill] sm:$0xff] %v6139_v3  ;;  %v6141_v63 = vpop.f32.mrf.mxu1  ;;  %v4390_v18 = vadd.f32 %v4389_v11, %v4388_v55 }
 0x1fa   : > { %v4391_v4 = vpop.f32.mrf.mxu0 }
 0x1fb   : > { %v6143_v35 = vpop.f32.mrf.mxu1  ;;  %v6146_v10 = vadd.f32 %v4390_v18, %v6011_v28 }
 0x1fc   : > { %v4392_v60 = vpop.f32.mrf.mxu0 }
 0x1fd   : > { %6445 = vst [vmem:[#allocation3_spill] sm:$0xff] %v6146_v10  ;;  %v6148_v59 = vpop.f32.mrf.mxu1  ;;  %v4393_v30 = vadd.f32 %v4392_v60, %v4391_v4 }
 0x1fe   : > { %v4394_v14 = vpop.f32.mrf.mxu0 }
 0x1ff   : > { %v6150_v34 = vpop.f32.mrf.mxu1  ;;  %v6153_v36 = vadd.f32 %v4393_v30, %v6013_v8 }
 0x200   : > { %v4395_v50 = vpop.f32.mrf.mxu0 }
 0x201   : > { %6446 = vst [vmem:[#allocation13_spill] sm:$0xff] %v6153_v36  ;;  %v6155_v51 = vpop.f32.mrf.mxu1  ;;  %v4396_v24 = vadd.f32 %v4395_v50, %v4394_v14 }
 0x202   : > { %v4397_v55 = vpop.f32.mrf.mxu0 }
 0x203   : > { %v6157_v11 = vpop.f32.mrf.mxu1  ;;  %v6160_v28 = vadd.f32 %v4396_v24, %v6018_v56 }
 0x204   : > { %v4398_v18 = vpop.f32.mrf.mxu0 }
 0x205   : > { %6447 = vst [vmem:[#allocation5_spill] sm:$0xff] %v6160_v28  ;;  %v6162_v16 = vpop.f32.mrf.mxu1  ;;  %v4399_v4 = vadd.f32 %v4398_v18, %v4397_v55 }
 0x206   : > { %v4400_v60 = vpop.f32.mrf.mxu0 }
 0x207   : > { %v6164_v39 = vpop.f32.mrf.mxu1  ;;  %v6167_v8 = vadd.f32 %v4399_v4, %v6023_v6 }
 0x208   : > { %v4401_v30 = vpop.f32.mrf.mxu0 }
 0x209   : > { %6448 = vst [vmem:[#allocation7_spill] sm:$0xff] %v6167_v8  ;;  %v6169_v36 = vpop.f32.mrf.mxu1  ;;  %v4402_v14 = vadd.f32 %v4401_v30, %v4400_v60 }
 0x20a   : > { %v4403_v50 = vpop.f32.mrf.mxu0 }
 0x20b   : > { %v6171_v10 = vpop.f32.mrf.mxu1  ;;  %v6174_v56 = vadd.f32 %v4402_v14, %v6029_v29 }
 0x20c   : > { %v4404_v24 = vpop.f32.mrf.mxu0 }
 0x20d   : > { %6449 = vst [vmem:[#allocation9_spill] sm:$0xff] %v6174_v56  ;;  %v6176_v28 = vpop.f32.mrf.mxu1  ;;  %v4405_v55 = vadd.f32 %v4404_v24, %v4403_v50 }
 0x20e   : > { %v4406_v18 = vpop.f32.mrf.mxu0 }
 0x20f   : > { %v6178_v12 = vpop.f32.mrf.mxu1  ;;  %v6181_v6 = vadd.f32 %v4405_v55, %v6035_v53 }
 0x210   : > { %v4407_v4 = vpop.f32.mrf.mxu0 }
 0x211   : > { %6450 = vst [vmem:[#allocation14_spill] sm:$0xff] %v6181_v6  ;;  %v6183_v8 = vpop.f32.mrf.mxu1  ;;  %v4408_v60 = vadd.f32 %v4407_v4, %v4406_v18 }
 0x212   : > { %v4409_v30 = vpop.f32.mrf.mxu0 }
 0x213   : > { %v6185_v3 = vpop.f32.mrf.mxu1  ;;  %v6188_v29 = vadd.f32 %v4408_v60, %v6041_v1 }
 0x214   : > { %v4410_v14 = vpop.f32.mrf.mxu0 }
 0x215   : > { %6451 = vst [vmem:[#allocation15_spill] sm:$0xff] %v6188_v29  ;;  %v6190_v56 = vpop.f32.mrf.mxu1  ;;  %v4411_v50 = vadd.f32 %v4410_v14, %v4409_v30 }
 0x216   : > { %v4412_v24 = vpop.f32.mrf.mxu0 }
 0x217   : > { %v6192_v37 = vpop.f32.mrf.mxu1  ;;  %v6195_v53 = vadd.f32 %v4411_v50, %v6047_v40 }
 0x218   : > { %6452 = vst [vmem:[#allocation16_spill] sm:$0xff] %v6192_v37  ;;  %v4413_v55 = vpop.f32.mrf.mxu0 }
 0x219   : > { %6453 = vst [vmem:[#allocation17_spill] sm:$0xff] %v6195_v53  ;;  %v6197_v6 = vpop.f32.mrf.mxu1  ;;  %v4414_v18 = vadd.f32 %v4413_v55, %v4412_v24 }
 0x21a   : > { %v4415_v4 = vpop.f32.mrf.mxu0 }
 0x21b   : > { %v6199_v43 = vpop.f32.mrf.mxu1  ;;  %v6202_v1 = vadd.f32 %v4414_v18, %v6053_v0 }
 0x21c   : > { %v4416_v60 = vpop.f32.mrf.mxu0 }
 0x21d   : > { %6454 = vst [vmem:[#allocation18_spill] sm:$0xff] %v6202_v1  ;;  %v6204_v29 = vpop.f32.mrf.mxu1  ;;  %v4417_v30 = vadd.f32 %v4416_v60, %v4415_v4  ;;  %v4448_v4 = vadd.f32 %v6087_v58, %v6082_v57 }
 0x21e   : > { %v6206_v14 = vpop.f32.mrf.mxu0 }
 0x21f   : > { %6455 = vst [vmem:[#allocation19_spill] sm:$0xff] %v6206_v14  ;;  %v6208_v37 = vpop.f32.mrf.mxu1  ;;  %v6211_v40 = vadd.f32 %v4417_v30, %v6059_v32  ;;  %v4451_v32 = vadd.f32 %v6094_v22, %v6092_v27  ;;  %v4460_v22 = vadd.f32 %v6115_v15, %v6113_v31 }
 0x220   : > { %v6213_v50 = vpop.f32.mrf.mxu0 }
 0x221   : > { %6456 = vst [vmem:[#allocation20_spill] sm:$0xff] %v6211_v40  ;;  %6457 = vst [vmem:[#allocation21_spill] sm:$0xff] %v6213_v50  ;;  %v6215_v24 = vpop.f32.mrf.mxu1  ;;  %v2995_v50 = vadd.f32 %v4451_v32, %v6032_v23 }
 0x222   : > { %v6217_v55 = vpop.f32.mrf.mxu0 }
 0x223   : > { %6458 = vst [vmem:[#allocation22_spill] sm:$0xff] %v6217_v55  ;;  %v6219_v53 = vpop.f32.mrf.mxu1  ;;  %v2992_v55 = vadd.f32 %v4448_v4, %v6026_v19 }
 0x224   : > { %v6221_v0 = vpop.f32.mrf.mxu0 }
 0x225   : > { %6459 = vst [vmem:[#allocation23_spill] sm:$0xff] %v6221_v0  ;;  %v6223_v18 = vpop.f32.mrf.mxu1  ;;  %v4454_v0 = vadd.f32 %v6101_v42, %v6099_v48 }
 0x226   : > { %6460 = vst [vmem:[#allocation24_spill] sm:$0xff] %v6223_v18  ;;  %v4578_v60 = vpop.f32.mrf.mxu0 }
 0x227   : > { %v6229_v30 = vpop.f32.mrf.mxu1  ;;  %v3153_v57 = vadd.f32 %v4578_v60, %v2992_v55  ;;  %v3000_v31 = vadd.f32 %v4454_v0, %v6038_v2  ;;  %v3008_v55 = vadd.f32 %v4460_v22, %v6050_v33  ;;  %v4466_v33 = vadd.f32 %v6129_v7, %v6127_v62 }
 0x228   : > { %v3144_v40 = vpop.f32.mrf.mxu0  ;;  %v4469_v62 = vadd.f32 %v6136_v45, %v6134_v5 }
 0x229   : > { %v6231_v1 = vpop.f32.mrf.mxu1  ;;  %v3145_v58 = vadd.f32 %v3144_v40, %v6077_v52  ;;  %v3310_v60 = vmul.f32 %v3153_v57, %v3153_v57 }
 0x22a   : > { %6461 = vst [vmem:[#allocation25_spill] sm:$0xff] %v6231_v1  ;;  %v4579_v14 = vpop.f32.mrf.mxu0  ;;  %v4463_v1 = vadd.f32 %v6122_v9, %v6120_v20 }
 0x22b   : > { %v6237_v18 = vpop.f32.mrf.mxu1  ;;  %v3156_v27 = vadd.f32 %v4579_v14, %v2995_v50  ;;  %v3308_v20 = vmul.f32 %v3145_v58, %v3145_v58  ;;  %v4457_v50 = vadd.f32 %v6108_v38, %v6106_v54  ;;  %v4475_v38 = vadd.f32 %v6150_v34, %v6148_v59 }
 0x22c   : > { %6462 = vst [vmem:[#allocation26_spill] sm:$0xff] %v6237_v18  ;;  %v3147_v19 = vpop.f32.mrf.mxu0  ;;  %v3011_v32 = vadd.f32 %v4463_v1, %v6056_v41  ;;  %v4472_v41 = vadd.f32 %v6143_v35, %v6141_v63  ;;  %v3016_v59 = vadd.f32 %v4466_v33, %v6062_v25  ;;  %v4478_v25 = vadd.f32 %v6157_v11, %v6155_v51 }
 0x22d   : > { %v6251_v23 = vpop.f32.mrf.mxu1  ;;  %v3986_v48 = vpack.c.bf16 %v3156_v27, %v3153_v57  ;;  %v3148_v52 = vadd.f32 %v3147_v19, %v6085_v47  ;;  %v3003_v1 = vadd.f32 %v4457_v50, %v6044_v13  ;;  %v3027_v50 = vadd.f32 %v4475_v38, %v6080_v21 }
 0x22e   : > { %6463 = vst [vmem:[#allocation27_spill] sm:$0xff] %v6251_v23  ;;  %v4582_v42 = vpop.f32.mrf.mxu0 }
 0x22f   : > { %v6255_v15 = vpop.f32.mrf.mxu1  ;;  %4073 = vst [vmem:[%s6249_s22 + $0x8] sm:$0xff] %v3986_v48   ;;  %v3271_v9 = vadd.f32 %v3148_v52, %v3145_v58  ;;  %v3309_v14 = vmul.f32 %v3148_v52, %v3148_v52  ;;  %v3981_v40 = vpack.c.bf16 %v3148_v52, %v3145_v58  ;;  %v3169_v52 = vadd.f32 %v4582_v42, %v3008_v55 }
 0x230   : > { %6464 = vst [vmem:[#allocation28_spill] sm:$0xff] %v6255_v15  ;;  %v3160_v4 = vpop.f32.mrf.mxu0  ;;  %v3311_v15 = vmul.f32 %v3156_v27, %v3156_v27 }
 0x231   : > { %v6262_v47 = vpop.f32.mrf.mxu1  ;;  %v3272_v19 = vadd.f32 %v3271_v9, %v3153_v57  ;;  %v3340_v2 = vadd.f32 %v3309_v14, %v3308_v20  ;;  %3982 = vst [vmem:[%s6249_s22] sm:$0xff] %v3981_v40   ;;  %v3161_v0 = vadd.f32 %v3160_v4, %v3000_v31  ;;  %v3314_v55 = vmul.f32 %v3169_v52, %v3169_v52 }
 0x232   : > { %v4583_v48 = vpop.f32.mrf.mxu0 }
 0x233   : > { %v6265_v23 = vpop.f32.mrf.mxu1  ;;  %v3341_v58 = vadd.f32 %v3340_v2, %v3310_v60  ;;  %v3273_v18 = vadd.f32 %v3272_v19, %v3156_v27  ;;  %v3172_v54 = vadd.f32 %v4583_v48, %v3011_v32  ;;  %v3312_v20 = vmul.f32 %v3161_v0, %v3161_v0 }
 0x234   : > { %v3163_v57 = vpop.f32.mrf.mxu0 }
 0x235   : > { %v6274_v22 = vpop.f32.mrf.mxu1  ;;  %v3274_v31 = vadd.f32 %v3273_v18, %v3161_v0  ;;  %v3342_v42 = vadd.f32 %v3341_v58, %v3311_v15  ;;  %v3996_v27 = vpack.c.bf16 %v3172_v54, %v3169_v52  ;;  %v3164_v9 = vadd.f32 %v3163_v57, %v3003_v1 }
 0x236   : > { %v4586_v14 = vpop.f32.mrf.mxu0  ;;  %v3024_v15 = vadd.f32 %v4472_v41, %v6074_v49  ;;  %v3315_v48 = vmul.f32 %v3172_v54, %v3172_v54  ;;  %v4487_v41 = vadd.f32 %v6178_v12, %v6176_v28 }
 0x237   : > { %v6276_v40 = vpop.f32.mrf.mxu1  ;;  %v3343_v7 = vadd.f32 %v3342_v42, %v3312_v20  ;;  %4075 = vst [vmem:[%s6249_s22 + $0x18] sm:$0xff] %v3996_v27   ;;  %v3275_v63 = vadd.f32 %v3274_v31, %v3164_v9  ;;  %v3313_v35 = vmul.f32 %v3164_v9, %v3164_v9  ;;  %v3991_v13 = vpack.c.bf16 %v3164_v9, %v3161_v0 }
 0x238   : > { %v3176_v34 = vpop.f32.mrf.mxu0  ;;  %v3185_v19 = vadd.f32 %v4586_v14, %v3024_v15  ;;  %v3019_v0 = vadd.f32 %v4469_v62, %v6068_v44  ;;  %v3043_v14 = vadd.f32 %v4487_v41, %v6111_v26  ;;  %v6468_v41 = vld [vmem:[#allocation12_spill] sm:$0xff] }
 0x239   : > { %v6282_v18 = vpop.f32.mrf.mxu1  ;;  %v3276_v4 = vadd.f32 %v3275_v63, %v3169_v52  ;;  %v3344_v32 = vadd.f32 %v3343_v7, %v3313_v35  ;;  %4074 = vst [vmem:[%s6249_s22 + $0x10] sm:$0xff] %v3991_v13   ;;  %v3177_v60 = vadd.f32 %v3176_v34, %v3016_v59  ;;  %v4484_v52 = vadd.f32 %v6171_v10, %v6169_v36 }
 0x23a   : > { %v4587_v5 = vpop.f32.mrf.mxu0  ;;  %v3032_v36 = vadd.f32 %v4478_v25, %v6090_v46  ;;  %v3318_v62 = vmul.f32 %v3185_v19, %v3185_v19  ;;  %v4490_v46 = vadd.f32 %v6185_v3, %v6183_v8  ;;  %v6465_v3 = vld [vmem:[#allocation16_spill] sm:$0xff] }
 0x23b   : > { %v6287_v45 = vpop.f32.mrf.mxu1  ;;  %v3188_v2 = vadd.f32 %v4587_v5, %v3027_v50  ;;  %v3345_v49 = vadd.f32 %v3344_v32, %v3314_v55  ;;  %v3277_v58 = vadd.f32 %v3276_v4, %v3172_v54  ;;  %v3316_v57 = vmul.f32 %v3177_v60, %v3177_v60 }
 0x23c   : > { %v3179_v21 = vpop.f32.mrf.mxu0  ;;  %v4481_v54 = vadd.f32 %v6164_v39, %v6162_v16  ;;  %v3040_v9 = vadd.f32 %v4484_v52, %v6104_v61  ;;  %v4496_v4 = vadd.f32 %v6199_v43, %v6197_v6  ;;  %v4499_v32 = vadd.f32 %v6208_v37, %v6204_v29  ;;  %v6467_v37 = vld [vmem:[#allocation11_spill] sm:$0xff] }
 0x23d   : > { %v6292_v33 = vpop.f32.mrf.mxu1  ;;  %v4006_v38 = vpack.c.bf16 %v3188_v2, %v3185_v19  ;;  %v3180_v1 = vadd.f32 %v3179_v21, %v3019_v0  ;;  %v3278_v44 = vadd.f32 %v3277_v58, %v3177_v60  ;;  %v3346_v31 = vadd.f32 %v3345_v49, %v3315_v48  ;;  %v6466_v21 = vld [vmem:[#allocation8_spill] sm:$0xff] }
 0x23e   : > { %v4590_v51 = vpop.f32.mrf.mxu0  ;;  %v3035_v34 = vadd.f32 %v4481_v54, %v6097_v17  ;;  %v3319_v15 = vmul.f32 %v3188_v2, %v3188_v2  ;;  %v4493_v8 = vadd.f32 %v6465_v3, %v6190_v56  ;;  %v3048_v43 = vadd.f32 %v4490_v46, %v6466_v21  ;;  %v6477_v3 = vld [vmem:[#allocation7_spill] sm:$0xff] }
 0x23f   : > { %v6298_v11 = vpop.f32.mrf.mxu1  ;;  %4077 = vst [vmem:[%s6249_s22 + $0x28] sm:$0xff] %v4006_v38   ;;  %v3317_v20 = vmul.f32 %v3180_v1, %v3180_v1  ;;  %v4001_v42 = vpack.c.bf16 %v3180_v1, %v3177_v60  ;;  %v3347_v27 = vadd.f32 %v3346_v31, %v3316_v57  ;;  %v3279_v10 = vadd.f32 %v3278_v44, %v3180_v1 }
 0x240   : > { %v3192_v12 = vpop.f32.mrf.mxu0  ;;  %v3201_v13 = vadd.f32 %v4590_v51, %v3040_v9  ;;  %v3056_v29 = vadd.f32 %v4496_v4, %v6467_v37  ;;  %v3059_v38 = vadd.f32 %v4499_v32, %v6468_v41  ;;  %v4502_v51 = vadd.f32 %v6219_v53, %v6215_v24  ;;  %v6473_v53 = vld [vmem:[#allocation27_spill] sm:$0xff]  ;;  %v6474_v24 = vld [vmem:[#allocation28_spill] sm:$0xff] }
 0x241   : > { %v6304_v28 = vpop.f32.mrf.mxu1  ;;  %4076 = vst [vmem:[%s6249_s22 + $0x20] sm:$0xff] %v4001_v42   ;;  %v3280_v7 = vadd.f32 %v3279_v10, %v3185_v19  ;;  %v3348_v63 = vadd.f32 %v3347_v27, %v3317_v20  ;;  %v3193_v35 = vadd.f32 %v3192_v12, %v3032_v36  ;;  %v6469_v42 = vld [vmem:[#allocation10_spill] sm:$0xff]  ;;  %v6470_v36 = vld [vmem:[#allocation24_spill] sm:$0xff]  ;;  %v4520_v41 = vadd.f32 %v6287_v45, %v6282_v18 }
 0x242   : > { %v4591_v39 = vpop.f32.mrf.mxu0  ;;  %v3322_v1 = vmul.f32 %v3201_v13, %v3201_v13  ;;  %v3051_v27 = vadd.f32 %v4493_v8, %v6469_v42  ;;  %v4505_v12 = vadd.f32 %v6229_v30, %v6470_v36  ;;  %v6480_v42 = vld [vmem:[#allocation21_spill] sm:$0xff]  ;;  %v4517_v36 = vadd.f32 %v6276_v40, %v6274_v22 }
 0x243   : > { %v6309_v16 = vpop.f32.mrf.mxu1  ;;  %v3204_v59 = vadd.f32 %v4591_v39, %v3043_v14  ;;  %v3349_v50 = vadd.f32 %v3348_v63, %v3318_v62  ;;  %v3281_v61 = vadd.f32 %v3280_v7, %v3188_v2  ;;  %v3320_v19 = vmul.f32 %v3193_v35, %v3193_v35  ;;  %v6471_v63 = vld [vmem:[#allocation25_spill] sm:$0xff] }
 0x244   : > { %v3195_v55 = vpop.f32.mrf.mxu0 }
 0x245   : > { %v6314_v26 = vpop.f32.mrf.mxu1  ;;  %v4016_v60 = vpack.c.bf16 %v3204_v59, %v3201_v13  ;;  %v3196_v5 = vadd.f32 %v3195_v55, %v3035_v34  ;;  %v3282_v17 = vadd.f32 %v3281_v61, %v3193_v35  ;;  %v3350_v0 = vadd.f32 %v3349_v50, %v3319_v15 }
 0x246   : > { %v4594_v25 = vpop.f32.mrf.mxu0  ;;  %v3323_v10 = vmul.f32 %v3204_v59, %v3204_v59  ;;  %v4511_v34 = vadd.f32 %v6474_v24, %v6473_v53  ;;  %v6485_v24 = vld [vmem:[#allocation9_spill] sm:$0xff] }
 0x247   : > { %4079 = vst [vmem:[%s6249_s22 + $0x38] sm:$0xff] %v4016_v60   ;;  %v3321_v2 = vmul.f32 %v3196_v5, %v3196_v5  ;;  %v4011_v48 = vpack.c.bf16 %v3196_v5, %v3193_v35  ;;  %v3351_v49 = vadd.f32 %v3350_v0, %v3320_v19  ;;  %v3283_v58 = vadd.f32 %v3282_v17, %v3196_v5  ;;  %v6324_v52 = vpop.f32.mrf.mxu1  ;;  %v6472_v35 = vld [vmem:[#allocation26_spill] sm:$0xff]  ;;  %v6475_v60 = vld [vmem:[#allocation3_spill] sm:$0xff]  ;;  %v6476_v0 = vld [vmem:[#allocation5_spill] sm:$0xff] }
 0x248   : > { %v3208_v6 = vpop.f32.mrf.mxu0  ;;  %v3217_v54 = vadd.f32 %v4594_v25, %v3056_v29  ;;  %v4508_v39 = vadd.f32 %v6472_v35, %v6471_v63  ;;  %v3064_v5 = vadd.f32 %v4502_v51, %v6475_v60  ;;  %v3075_v8 = vadd.f32 %v4511_v34, %v6477_v3  ;;  %v6483_v63 = vld [vmem:[#allocation22_spill] sm:$0xff]  ;;  %v6484_v35 = vld [vmem:[#allocation23_spill] sm:$0xff] }
 0x249   : > { %4078 = vst [vmem:[%s6249_s22 + $0x30] sm:$0xff] %v4011_v48   ;;  %v3284_v44 = vadd.f32 %v3283_v58, %v3201_v13  ;;  %v3352_v57 = vadd.f32 %v3351_v49, %v3321_v2  ;;  %v3209_v31 = vadd.f32 %v3208_v6, %v3048_v43  ;;  %v6334_v7 = vpop.f32.mrf.mxu1  ;;  %v6478_v2 = vld [vmem:[#allocation13_spill] sm:$0xff]  ;;  %v6488_v3 = vld [vmem:[#allocation6_spill] sm:$0xff] }
 0x24a   : > { %v4595_v56 = vpop.f32.mrf.mxu0  ;;  %v3072_v25 = vadd.f32 %v4508_v39, %v6476_v0  ;;  %v3067_v48 = vadd.f32 %v4505_v12, %v6478_v2  ;;  %v3326_v49 = vmul.f32 %v3217_v54, %v3217_v54  ;;  %v4423_v39 = vadd.f32 %v6484_v35, %v6483_v63 }
 0x24b   : > { %v3220_v20 = vadd.f32 %v4595_v56, %v3059_v38  ;;  %v3353_v9 = vadd.f32 %v3352_v57, %v3322_v1  ;;  %v3285_v14 = vadd.f32 %v3284_v44, %v3204_v59  ;;  %v3324_v50 = vmul.f32 %v3209_v31, %v3209_v31  ;;  %v4531_v19 = vpop.f32.mrf.mxu1 }
 0x24c   : > { %v3211_v62 = vpop.f32.mrf.mxu0  ;;  %v4523_v38 = vadd.f32 %v6298_v11, %v6292_v33  ;;  %v4514_v57 = vadd.f32 %v6265_v23, %v6262_v47  ;;  %v6481_v23 = vld [vmem:[#allocation15_spill] sm:$0xff]  ;;  %v4532_v0 = vadd.f32 %v4531_v19, %v6334_v7 }
 0x24d   : > { %v4026_v13 = vpack.c.bf16 %v3220_v20, %v3217_v54  ;;  %v3212_v46 = vadd.f32 %v3211_v62, %v3051_v27  ;;  %v3286_v15 = vadd.f32 %v3285_v14, %v3209_v31  ;;  %v3354_v61 = vadd.f32 %v3353_v9, %v3323_v10  ;;  %v4533_v51 = vpop.f32.mrf.mxu1 }
 0x24e   : > { %v4598_v55 = vpop.f32.mrf.mxu0  ;;  %v3327_v1 = vmul.f32 %v3220_v20, %v3220_v20  ;;  %v3088_v47 = vadd.f32 %v4520_v41, %v6481_v23  ;;  %v3080_v22 = vadd.f32 %v4514_v57, %v6485_v24 }
 0x24f   : > { %4081 = vst [vmem:[%s6249_s22 + $0x48] sm:$0xff] %v4026_v13   ;;  %v3325_v30 = vmul.f32 %v3212_v46, %v3212_v46  ;;  %v4021_v4 = vpack.c.bf16 %v3212_v46, %v3209_v31  ;;  %v3355_v59 = vadd.f32 %v3354_v61, %v3324_v50  ;;  %v3287_v32 = vadd.f32 %v3286_v15, %v3212_v46  ;;  %v4534_v34 = vpop.f32.mrf.mxu1  ;;  %v6486_v46 = vld [vmem:[#allocation4_spill] sm:$0xff]  ;;  %v6487_v50 = vld [vmem:[#allocation14_spill] sm:$0xff] }
 0x250   : > { %v3224_v17 = vpop.f32.mrf.mxu0  ;;  %v3233_v37 = vadd.f32 %v4598_v55, %v3072_v25  ;;  %v3083_v61 = vadd.f32 %v4517_v36, %v6487_v50  ;;  %v4526_v55 = vadd.f32 %v6309_v16, %v6304_v28  ;;  %v4535_v25 = vadd.f32 %v4534_v34, %v4533_v51  ;;  %v6489_v16 = vld [vmem:[#allocation18_spill] sm:$0xff] }
 0x251   : > { %4080 = vst [vmem:[%s6249_s22 + $0x40] sm:$0xff] %v4021_v4   ;;  %v3288_v58 = vadd.f32 %v3287_v32, %v3217_v54  ;;  %v3356_v21 = vadd.f32 %v3355_v59, %v3325_v30  ;;  %v3225_v43 = vadd.f32 %v3224_v17, %v3064_v5  ;;  %v6479_v54 = vld [vmem:[#allocation19_spill] sm:$0xff] }
 0x252   : > { %v4599_v6 = vpop.f32.mrf.mxu0  ;;  %v4420_v27 = vadd.f32 %v6480_v42, %v6479_v54  ;;  %v3330_v30 = vmul.f32 %v3233_v37, %v3233_v37  ;;  %v6490_v54 = vld [vmem:[#allocation20_spill] sm:$0xff] }
 0x253   : > { %v3236_v29 = vadd.f32 %v4599_v6, %v3075_v8  ;;  %v3357_v44 = vadd.f32 %v3356_v21, %v3326_v49  ;;  %v3289_v31 = vadd.f32 %v3288_v58, %v3220_v20  ;;  %v3328_v12 = vmul.f32 %v3225_v43, %v3225_v43  ;;  %v6482_v20 = vld [vmem:[#allocation17_spill] sm:$0xff] }
 0x254   : > { %v3227_v56 = vpop.f32.mrf.mxu0  ;;  %v3091_v62 = vadd.f32 %v4523_v38, %v6482_v20  ;;  %v2943_v15 = vadd.f32 %v4420_v27, %v6486_v46  ;;  %v2946_v8 = vadd.f32 %v4423_v39, %v6488_v3  ;;  %v4529_v6 = vadd.f32 %v6324_v52, %v6314_v26 }
 0x255   : > { %v4036_v10 = vpack.c.bf16 %v3236_v29, %v3233_v37  ;;  %v3228_v18 = vadd.f32 %v3227_v56, %v3067_v48  ;;  %v3290_v45 = vadd.f32 %v3289_v31, %v3225_v43  ;;  %v3358_v33 = vadd.f32 %v3357_v44, %v3327_v1 }
 0x256   : > { %v4602_v11 = vpop.f32.mrf.mxu0  ;;  %v3331_v2 = vmul.f32 %v3236_v29, %v3236_v29  ;;  %v3104_v44 = vadd.f32 %v4532_v0, %v2943_v15  ;;  %v3107_v57 = vadd.f32 %v4535_v25, %v2946_v8  ;;  %v3099_v42 = vadd.f32 %v4529_v6, %v6490_v54 }
 0x257   : > { %4083 = vst [vmem:[%s6249_s22 + $0x58] sm:$0xff] %v4036_v10   ;;  %v3329_v9 = vmul.f32 %v3228_v18, %v3228_v18  ;;  %v4031_v14 = vpack.c.bf16 %v3228_v18, %v3225_v43  ;;  %v3359_v13 = vadd.f32 %v3358_v33, %v3328_v12  ;;  %v3291_v53 = vadd.f32 %v3290_v45, %v3228_v18 }
 0x258   : > { %v3240_v40 = vpop.f32.mrf.mxu0  ;;  %v3249_v5 = vadd.f32 %v4602_v11, %v3088_v47  ;;  %v3096_v43 = vadd.f32 %v4526_v55, %v6489_v16 }
 0x259   : > { %4082 = vst [vmem:[%s6249_s22 + $0x50] sm:$0xff] %v4031_v14   ;;  %v3292_v4 = vadd.f32 %v3291_v53, %v3233_v37  ;;  %v3360_v59 = vadd.f32 %v3359_v13, %v3329_v9  ;;  %v3241_v32 = vadd.f32 %v3240_v40, %v3080_v22 }
 0x25a   : > { %v4603_v60 = vpop.f32.mrf.mxu0  ;;  %v3334_v27 = vmul.f32 %v3249_v5, %v3249_v5 }
 0x25b   : > { %v3252_v17 = vadd.f32 %v4603_v60, %v3091_v62  ;;  %v3361_v48 = vadd.f32 %v3360_v59, %v3330_v30  ;;  %v3293_v49 = vadd.f32 %v3292_v4, %v3236_v29  ;;  %v3332_v41 = vmul.f32 %v3241_v32, %v3241_v32 }
 0x25c   : > { %v3243_v58 = vpop.f32.mrf.mxu0 }
 0x25d   : > { %v4046_v21 = vpack.c.bf16 %v3252_v17, %v3249_v5  ;;  %v3244_v28 = vadd.f32 %v3243_v58, %v3083_v61  ;;  %v3294_v37 = vadd.f32 %v3293_v49, %v3241_v32  ;;  %v3362_v38 = vadd.f32 %v3361_v48, %v3331_v2 }
 0x25e   : > { %v4606_v1 = vpop.f32.mrf.mxu0  ;;  %v3335_v10 = vmul.f32 %v3252_v17, %v3252_v17 }
 0x25f   : > { %4085 = vst [vmem:[%s6249_s22 + $0x68] sm:$0xff] %v4046_v21   ;;  %v3333_v7 = vmul.f32 %v3244_v28, %v3244_v28  ;;  %v4041_v19 = vpack.c.bf16 %v3244_v28, %v3241_v32  ;;  %v3363_v31 = vadd.f32 %v3362_v38, %v3332_v41  ;;  %v3295_v29 = vadd.f32 %v3294_v37, %v3244_v28 }
 0x260   : > { %v3256_v56 = vpop.f32.mrf.mxu0  ;;  %v3265_v18 = vadd.f32 %v4606_v1, %v3104_v44 }
 0x261   : > { %4084 = vst [vmem:[%s6249_s22 + $0x60] sm:$0xff] %v4041_v19   ;;  %v3257_v51 = vadd.f32 %v3256_v56, %v3096_v43  ;;  %v3296_v26 = vadd.f32 %v3295_v29, %v3249_v5  ;;  %v3364_v52 = vadd.f32 %v3363_v31, %v3333_v7 }
 0x262   : > { %v4607_v36 = vpop.f32.mrf.mxu0  ;;  %v3338_v13 = vmul.f32 %v3265_v18, %v3265_v18 }
 0x263   : > { %v3268_v45 = vadd.f32 %v4607_v36, %v3107_v57  ;;  %v3365_v12 = vadd.f32 %v3364_v52, %v3334_v27  ;;  %v3297_v33 = vadd.f32 %v3296_v26, %v3252_v17  ;;  %v3336_v11 = vmul.f32 %v3257_v51, %v3257_v51 }
 0x264   : > { %v3259_v9 = vpop.f32.mrf.mxu0 }
 0x265   : > { %v3260_v14 = vadd.f32 %v3259_v9, %v3099_v42  ;;  %v4056_v23 = vpack.c.bf16 %v3268_v45, %v3265_v18  ;;  %v3298_v47 = vadd.f32 %v3297_v33, %v3257_v51  ;;  %v3366_v20 = vadd.f32 %v3365_v12, %v3335_v10 }
 0x266   : > { %v3339_v22 = vmul.f32 %v3268_v45, %v3268_v45 }
 0x267   : > { %v3337_v62 = vmul.f32 %v3260_v14, %v3260_v14  ;;  %v4051_v63 = vpack.c.bf16 %v3260_v14, %v3257_v51  ;;  %4087 = vst [vmem:[%s6249_s22 + $0x78] sm:$0xff] %v4056_v23   ;;  %v3367_v35 = vadd.f32 %v3366_v20, %v3336_v11  ;;  %v3299_v39 = vadd.f32 %v3298_v47, %v3260_v14 }
 0x269   : > { %4086 = vst [vmem:[%s6249_s22 + $0x70] sm:$0xff] %v4051_v63   ;;  %v3368_v53 = vadd.f32 %v3367_v35, %v3337_v62  ;;  %v3300_v24 = vadd.f32 %v3299_v39, %v3265_v18 }
 0x26b   : > { %v3369_v40 = vadd.f32 %v3368_v53, %v3338_v13  ;;  %v3301_v34 = vadd.f32 %v3300_v24, %v3268_v45 }
 0x26d   : > { %v3302_v46 = vrot.slane %v3301_v34, 4  ;;  %v3370_v15 = vadd.f32 %v3369_v40, %v3339_v22 }
 0x26f   : > { %v3303_v50 = vadd.f32 %v3302_v46, %v3301_v34  ;;  %v3371_v61 = vrot.slane %v3370_v15, 4 }
 0x271   : > { %v3304_v55 = vrot.slane %v3303_v50, 2  ;;  %v3372_v30 = vadd.f32 %v3371_v61, %v3370_v15 }
 0x273   : > { %v3305_v4 = vadd.f32 %v3304_v55, %v3303_v50  ;;  %v3373_v59 = vrot.slane %v3372_v30, 2 }
 0x275   : > { %v3306_v32 = vrot.slane %v3305_v4, 1  ;;  %v3374_v60 = vadd.f32 %v3373_v59, %v3372_v30 }
 0x277   : > { %v3375_v5 = vrot.slane %v3374_v60, 1  ;;  %v3307_v17 = vadd.f32 %v3306_v32, %v3305_v4 }
 0x279   : > { %v3376_v0 = vadd.f32 %v3375_v5, %v3374_v60 }
 0x27b   : > { %v3378_v25 = vsel %vm892_vm7, %v3307_v17, %v3376_v0 }
 0x27c   : > { %3379 = vst [vmem:[%s235_s11] sm:$0x3] %v3378_v25 }
 0x27d PF: > { %s16_s18 = sadd.s32 1, %s4746_s18  }
 0x27e   : > { %p13_p4 = scmp.ge.s32.totalorder %s16_s18, 4  }
 0x280   :  { %15 = sbr.rel (!%p13_p4) target bundleno = 1 (0x1), region = 79 }

</bundles_post_ra>
